<compile_context>
chip_gen: v7x
topology: tpu7x:2x2x1
jax: 0.10.0
libtpu: 0.0.40
codegen_flags: <defaults>
</compile_context>

<pallas_src>
import math

import jax
import jax.numpy as jnp
from jax import lax
from jax.experimental import pallas as pl
from jax.experimental.pallas import tpu as pltpu

# --- small, module-consistent sizes ------------------------------------------
BATCH = 2
IMG_X = IMG_Y = 96       # smallest-ish image for which conv4 + pool is non-degenerate
IN_CH = 1
CH1, CH2, CH3, CH4 = 8, 16, 32, 64
K1, K234 = 5, 3
STRIDE = 2
FC_HIDDEN1 = 128         # demo-sized fc_hidden1 (module default 1024)
CNN_EMBED_DIM = 128      # demo-sized CNN_embed_dim (module default 512)
BN_EPS = 1e-5
LANES = 128              # lane-dense width used by the head kernel


def conv_out(n, k, s=STRIDE):
    return (n - k) // s + 1


H1 = conv_out(IMG_X, K1)      # 46
H2 = conv_out(H1, K234)       # 22
P2 = H2 // 2                  # 11  (MaxPool2d(2))
H3 = conv_out(P2, K234)       # 5
H4 = conv_out(H3, K234)       # 2
P4 = H4 // 2                  # 1   (MaxPool2d(2))
FLAT = CH4 * P4 * P4          # 64  (fc1 input features)

_VMEM = pl.BlockSpec(memory_space=pltpu.MemorySpace.VMEM)


# --- Pallas kernels -----------------------------------------------------------
def gemm_bias_relu_kernel(p_ref, wb_ref, o_ref):
    """o = relu(P @ W + b); W = wb[:-1, :], b = wb[-1:, :] (bias packed as last row)."""
    k = wb_ref.shape[0] - 1
    z = jnp.dot(p_ref[...], wb_ref[0:k, :], preferred_element_type=jnp.float32)
    o_ref[...] = jnp.maximum(z + wb_ref[k:k + 1, :], 0.0)


def head_kernel(p4_ref, params_ref, o_ref):
    """Fused conv4 (as GEMM) + ReLU + MaxPool2d(2) + flatten + fc1/relu + fc2/relu + fc3.

    p4_ref     : [4*B, K4]  conv4 im2col patches, rows ordered (oh, ow, b).
    params_ref : packed lane-dense slab [K4 + 1 + 3*(LANES + 1), LANES]:
                 [W4; b4; Wfc1; b1; Wfc2; b2; Wfc3; b3] (zero-padded to 128 lanes).
    o_ref      : [B, LANES] lane-dense output.
    """
    b = o_ref.shape[0]
    k4 = p4_ref.shape[1]

    r = 0
    w4 = params_ref[r:r + k4, :]; r += k4
    b4 = params_ref[r:r + 1, :]; r += 1
    w1 = params_ref[r:r + LANES, :]; r += LANES
    b1 = params_ref[r:r + 1, :]; r += 1
    w2 = params_ref[r:r + LANES, :]; r += LANES
    b2 = params_ref[r:r + 1, :]; r += 1
    w3 = params_ref[r:r + LANES, :]; r += LANES
    b3 = params_ref[r:r + 1, :]; r += 1

    # conv4 + folded-BN bias + ReLU on the MXU.
    h4 = jnp.maximum(
        jnp.dot(p4_ref[...], w4, preferred_element_type=jnp.float32) + b4, 0.0)  # [4B, 128]

    # MaxPool2d(2) over the 2x2 spatial conv4 output == elementwise max of the
    # four contiguous (oh, ow) row groups; spatial is 1x1 afterwards, so this is
    # also the flatten to [B, 64] (zero-padded out to 128 lanes).
    pooled = jnp.maximum(jnp.maximum(h4[0 * b:1 * b, :], h4[1 * b:2 * b, :]),
                         jnp.maximum(h4[2 * b:3 * b, :], h4[3 * b:4 * b, :]))

    # TODO(synk): nn.Dropout is identity at inference; add pltpu.prng_* masking
    # if this is ever used in training mode.
    h = jnp.maximum(jnp.dot(pooled, w1, preferred_element_type=jnp.float32) + b1, 0.0)
    h = jnp.maximum(jnp.dot(h, w2, preferred_element_type=jnp.float32) + b2, 0.0)
    o_ref[...] = jnp.dot(h, w3, preferred_element_type=jnp.float32) + b3


# --- wrapper helpers -----------------------------------------------------------
def extract_patches(x_nhwc, k, s=STRIDE):
    """[B,H,W,C] -> [B,OH,OW,k*k*C]; feature order (kh, kw, c) matches the
    torch conv weight [Cout,Cin,kh,kw] transposed to (kh,kw,Cin,Cout)."""
    _, h, w, _ = x_nhwc.shape
    oh = (h - k) // s + 1
    ow = (w - k) // s + 1
    cols = []
    for ki in range(k):
        for kj in range(k):
            cols.append(x_nhwc[:, ki:ki + s * (oh - 1) + 1:s,
                               kj:kj + s * (ow - 1) + 1:s, :])
    return jnp.concatenate(cols, axis=-1)


def maxpool2_nhwc(x):
    b, h, w, c = x.shape
    x = x[:, :(h // 2) * 2, :(w // 2) * 2, :]
    x = x.reshape(b, h // 2, 2, w // 2, 2, c)
    return x.max(axis=(2, 4))


def _gemm_bias_relu(patches, wb):
    rows, cout = patches.shape[0], wb.shape[1]
    return pl.pallas_call(
        gemm_bias_relu_kernel,
        out_shape=jax.ShapeDtypeStruct((rows, cout), jnp.float32),
        in_specs=[_VMEM, _VMEM],
        out_specs=_VMEM,
    )(patches, wb)


def _head(p4, slab, batch):
    out = pl.pallas_call(
        head_kernel,
        out_shape=jax.ShapeDtypeStruct((batch, LANES), jnp.float32),
        in_specs=[_VMEM, _VMEM],
        out_specs=_VMEM,
    )(p4, slab)
    return out[:, :CNN_EMBED_DIM]   # lane-dense store in-kernel; slice in wrapper


def encoder_cnn_forward(x, kparams):
    """x: [B, 1, H, W] (NCHW, matching the torch module). Eval-mode forward."""
    conv_wb, head_slab = kparams["conv_wb"], kparams["head_slab"]
    batch = x.shape[0]
    y = jnp.transpose(x, (0, 2, 3, 1))                            # NHWC

    # conv1/conv2/conv3: im2col in XLA, GEMM + folded-BN bias + ReLU in Pallas.
    # TODO(synk): strided im2col and the 2x2 maxpool stay in XLA; odd activation
    # sizes (46/22/11/5) have no lane-aligned strided-window expression in Mosaic.
    for li, k in enumerate((K1, K234, K234)):
        p = extract_patches(y, k)
        bb, oh, ow, kk = p.shape
        out = _gemm_bias_relu(p.reshape(bb * oh * ow, kk), conv_wb[li])
        y = out.reshape(bb, oh, ow, out.shape[1])
        if li == 1:
            y = maxpool2_nhwc(y)                                   # pool after conv2

    # conv4 + second pool + flatten + fc1/fc2/fc3: single fused head kernel.
    p4 = extract_patches(y, K234)                                  # [B, 2, 2, 9*CH3]
    p4 = jnp.transpose(p4, (1, 2, 0, 3)).reshape(4 * batch, -1)    # rows (oh, ow, b)
    return _head(p4, head_slab, batch)


# --- parameter construction ----------------------------------------------------
def init_params(key):
    keys = iter(jax.random.split(key, 8))

    def conv_layer(cin, cout, ksz):
        kw, kb, kg, kbe, km, kv = jax.random.split(next(keys), 6)
        bound = 1.0 / math.sqrt(cin * ksz * ksz)
        return dict(
            w=jax.random.uniform(kw, (cout, cin, ksz, ksz), jnp.float32, -bound, bound),
            b=jax.random.uniform(kb, (cout,), jnp.float32, -bound, bound),
            gamma=jax.random.uniform(kg, (cout,), jnp.float32, 0.5, 1.5),
            beta=jax.random.uniform(kbe, (cout,), jnp.float32, -0.1, 0.1),
            mean=0.1 * jax.random.normal(km, (cout,), jnp.float32),
            var=jax.random.uniform(kv, (cout,), jnp.float32, 0.5, 1.5),
        )

    def linear(cin, cout):
        kw, kb = jax.random.split(next(keys))
        bound = 1.0 / math.sqrt(cin)
        return (jax.random.uniform(kw, (cout, cin), jnp.float32, -bound, bound),
                jax.random.uniform(kb, (cout,), jnp.float32, -bound, bound))

    convs = [conv_layer(IN_CH, CH1, K1), conv_layer(CH1, CH2, K234),
             conv_layer(CH2, CH3, K234), conv_layer(CH3, CH4, K234)]
    fcs = (linear(FLAT, FC_HIDDEN1), linear(FC_HIDDEN1, CNN_EMBED_DIM),
           linear(CNN_EMBED_DIM, CNN_EMBED_DIM))
    return convs, fcs


def prepare_kernel_params(convs, fcs):
    assert FLAT <= LANES and FC_HIDDEN1 <= LANES and CNN_EMBED_DIM <= LANES

    def fold_bn(p):
        scale = p["gamma"] / jnp.sqrt(p["var"] + BN_EPS)
        return p["w"] * scale[:, None, None, None], (p["b"] - p["mean"]) * scale + p["beta"]

    def conv_to_gemm(p):
        w_f, b_f = fold_bn(p)
        cout = w_f.shape[0]
        wg = jnp.transpose(w_f, (2, 3, 1, 0)).reshape(-1, cout)    # [k*k*Cin, Cout]
        return jnp.concatenate([wg, b_f[None, :]], axis=0)         # bias as last row

    def pad_lanes(a):
        return jnp.pad(a, ((0, 0), (0, LANES - a.shape[1])))

    def fc_block(w, b):                                            # torch [out, in]
        wt = jnp.pad(w.T, ((0, LANES - w.shape[1]), (0, LANES - w.shape[0])))
        br = jnp.pad(b[None, :], ((0, 0), (0, LANES - b.shape[0])))
        return wt, br

    conv_wb = [conv_to_gemm(p) for p in convs]
    slab = [pad_lanes(conv_wb[3][:-1]), pad_lanes(conv_wb[3][-1:])]
    for w, b in fcs:
        wt, br = fc_block(w, b)
        slab += [wt, br]
    return dict(conv_wb=conv_wb[:3], head_slab=jnp.concatenate(slab, axis=0))


# --- pure-XLA reference (mirrors the torch eval forward) ------------------------
def reference_forward(x, convs, fcs):
    def conv_bn_relu(y, p):
        y = lax.conv_general_dilated(y, p["w"], (STRIDE, STRIDE), "VALID",
                                     dimension_numbers=("NCHW", "OIHW", "NCHW"))
        y = y + p["b"][None, :, None, None]
        inv = (p["gamma"] / jnp.sqrt(p["var"] + BN_EPS))[None, :, None, None]
        y = (y - p["mean"][None, :, None, None]) * inv + p["beta"][None, :, None, None]
        return jnp.maximum(y, 0.0)

    def maxpool2(y):
        return lax.reduce_window(y, -jnp.inf, lax.max, (1, 1, 2, 2), (1, 1, 2, 2), "VALID")

    y = conv_bn_relu(x, convs[0])
    y = conv_bn_relu(y, convs[1])
    y = maxpool2(y)
    y = conv_bn_relu(y, convs[2])
    y = conv_bn_relu(y, convs[3])
    y = maxpool2(y)
    y = y.reshape(y.shape[0], -1)
    (w1, b1), (w2, b2), (w3, b3) = fcs
    y = jnp.maximum(y @ w1.T + b1, 0.0)
    y = jnp.maximum(y @ w2.T + b2, 0.0)
    return y @ w3.T + b3


if __name__ == "__main__":
    key = jax.random.PRNGKey(0)
    k_params, k_x = jax.random.split(key)
    convs, fcs = init_params(k_params)
    kparams = prepare_kernel_params(convs, fcs)

    x = jax.random.normal(k_x, (BATCH, IN_CH, IMG_X, IMG_Y), jnp.float32)

    forward = jax.jit(encoder_cnn_forward)
    out = jax.block_until_ready(forward(x, kparams))
    ref = jax.block_until_ready(reference_forward(x, convs, fcs))

    assert out.shape == (BATCH, CNN_EMBED_DIM), out.shape
    max_err = float(jnp.max(jnp.abs(out - ref)))
    assert jnp.allclose(out, ref, atol=2e-3, rtol=2e-3), max_err

    print("KERNEL_OK")
</pallas_src>

<mosaic_0001>
module attributes {stable_mosaic.version = 11 : i64} {
  func.func @gemm_bias_relu_kernel(%arg0: memref<4232x25xf32, #tpu.memory_space<vmem>>, %arg1: memref<26x8xf32, #tpu.memory_space<vmem>>, %arg2: memref<4232x8xf32, #tpu.memory_space<vmem>>) attributes {dimension_semantics = [], scalar_prefetch = 0 : i64, scratch_operands = 0 : i64, tpu.core_type = #tpu.core_type<tc>} {
    %c0 = arith.constant 0 : index
    %c0_0 = arith.constant 0 : index
    %0 = vector.load %arg0[%c0, %c0_0] : memref<4232x25xf32, #tpu.memory_space<vmem>>, vector<4232x25xf32>
    %c0_1 = arith.constant 0 : index
    %c0_2 = arith.constant 0 : index
    %1 = vector.load %arg1[%c0_1, %c0_2] : memref<26x8xf32, #tpu.memory_space<vmem>>, vector<25x8xf32>
    %cst = arith.constant dense<0.000000e+00> : vector<4232x8xf32>
    %2 = tpu.matmul %0, %1, %cst {dimension_numbers = #tpu.dot_dimension_numbers<[1], [0], [0], [1], [0, 0, 1, 1], [], []>} : vector<4232x25xf32>, vector<25x8xf32>, vector<4232x8xf32> -> vector<4232x8xf32>
    %c25 = arith.constant 25 : index
    %c0_3 = arith.constant 0 : index
    %3 = vector.load %arg1[%c25, %c0_3] : memref<26x8xf32, #tpu.memory_space<vmem>>, vector<1x8xf32>
    %4 = vector.broadcast %3 : vector<1x8xf32> to vector<4232x8xf32>
    %5 = arith.addf %2, %4 : vector<4232x8xf32>
    %cst_4 = arith.constant 0.000000e+00 : f32
    %6 = vector.broadcast %cst_4 : f32 to vector<4232x8xf32>
    %7 = arith.maximumf %5, %6 : vector<4232x8xf32>
    %c0_5 = arith.constant 0 : index
    %c0_6 = arith.constant 0 : index
    %8 = vector.load %arg2[%c0_5, %c0_6] : memref<4232x8xf32, #tpu.memory_space<vmem>>, vector<4232x8xf32>
    tpu.vector_store %arg2[%c0_5, %c0_6], %7 {strides = array<i32>} : memref<4232x8xf32, #tpu.memory_space<vmem>>, vector<4232x8xf32>,
    return
  }
}

module attributes {stable_mosaic.version = 11 : i64} {
  func.func @gemm_bias_relu_kernel(%arg0: memref<968x72xf32, #tpu.memory_space<vmem>>, %arg1: memref<73x16xf32, #tpu.memory_space<vmem>>, %arg2: memref<968x16xf32, #tpu.memory_space<vmem>>) attributes {dimension_semantics = [], scalar_prefetch = 0 : i64, scratch_operands = 0 : i64, tpu.core_type = #tpu.core_type<tc>} {
    %c0 = arith.constant 0 : index
    %c0_0 = arith.constant 0 : index
    %0 = vector.load %arg0[%c0, %c0_0] : memref<968x72xf32, #tpu.memory_space<vmem>>, vector<968x72xf32>
    %c0_1 = arith.constant 0 : index
    %c0_2 = arith.constant 0 : index
    %1 = vector.load %arg1[%c0_1, %c0_2] : memref<73x16xf32, #tpu.memory_space<vmem>>, vector<72x16xf32>
    %cst = arith.constant dense<0.000000e+00> : vector<968x16xf32>
    %2 = tpu.matmul %0, %1, %cst {dimension_numbers = #tpu.dot_dimension_numbers<[1], [0], [0], [1], [0, 0, 1, 1], [], []>} : vector<968x72xf32>, vector<72x16xf32>, vector<968x16xf32> -> vector<968x16xf32>
    %c72 = arith.constant 72 : index
    %c0_3 = arith.constant 0 : index
    %3 = vector.load %arg1[%c72, %c0_3] : memref<73x16xf32, #tpu.memory_space<vmem>>, vector<1x16xf32>
    %4 = vector.broadcast %3 : vector<1x16xf32> to vector<968x16xf32>
    %5 = arith.addf %2, %4 : vector<968x16xf32>
    %cst_4 = arith.constant 0.000000e+00 : f32
    %6 = vector.broadcast %cst_4 : f32 to vector<968x16xf32>
    %7 = arith.maximumf %5, %6 : vector<968x16xf32>
    %c0_5 = arith.constant 0 : index
    %c0_6 = arith.constant 0 : index
    %8 = vector.load %arg2[%c0_5, %c0_6] : memref<968x16xf32, #tpu.memory_space<vmem>>, vector<968x16xf32>
    tpu.vector_store %arg2[%c0_5, %c0_6], %7 {strides = array<i32>} : memref<968x16xf32, #tpu.memory_space<vmem>>, vector<968x16xf32>,
    return
  }
}

module attributes {stable_mosaic.version = 11 : i64} {
  func.func @gemm_bias_relu_kernel(%arg0: memref<50x144xf32, #tpu.memory_space<vmem>>, %arg1: memref<145x32xf32, #tpu.memory_space<vmem>>, %arg2: memref<50x32xf32, #tpu.memory_space<vmem>>) attributes {dimension_semantics = [], scalar_prefetch = 0 : i64, scratch_operands = 0 : i64, tpu.core_type = #tpu.core_type<tc>} {
    %c0 = arith.constant 0 : index
    %c0_0 = arith.constant 0 : index
    %0 = vector.load %arg0[%c0, %c0_0] : memref<50x144xf32, #tpu.memory_space<vmem>>, vector<50x144xf32>
    %c0_1 = arith.constant 0 : index
    %c0_2 = arith.constant 0 : index
    %1 = vector.load %arg1[%c0_1, %c0_2] : memref<145x32xf32, #tpu.memory_space<vmem>>, vector<144x32xf32>
    %cst = arith.constant dense<0.000000e+00> : vector<50x32xf32>
    %2 = tpu.matmul %0, %1, %cst {dimension_numbers = #tpu.dot_dimension_numbers<[1], [0], [0], [1], [0, 0, 1, 1], [], []>} : vector<50x144xf32>, vector<144x32xf32>, vector<50x32xf32> -> vector<50x32xf32>
    %c144 = arith.constant 144 : index
    %c0_3 = arith.constant 0 : index
    %3 = vector.load %arg1[%c144, %c0_3] : memref<145x32xf32, #tpu.memory_space<vmem>>, vector<1x32xf32>
    %4 = vector.broadcast %3 : vector<1x32xf32> to vector<50x32xf32>
    %5 = arith.addf %2, %4 : vector<50x32xf32>
    %cst_4 = arith.constant 0.000000e+00 : f32
    %6 = vector.broadcast %cst_4 : f32 to vector<50x32xf32>
    %7 = arith.maximumf %5, %6 : vector<50x32xf32>
    %c0_5 = arith.constant 0 : index
    %c0_6 = arith.constant 0 : index
    %8 = vector.load %arg2[%c0_5, %c0_6] : memref<50x32xf32, #tpu.memory_space<vmem>>, vector<50x32xf32>
    tpu.vector_store %arg2[%c0_5, %c0_6], %7 {strides = array<i32>} : memref<50x32xf32, #tpu.memory_space<vmem>>, vector<50x32xf32>,
    return
  }
}

module attributes {stable_mosaic.version = 11 : i64} {
  func.func @head_kernel(%arg0: memref<8x288xf32, #tpu.memory_space<vmem>>, %arg1: memref<676x128xf32, #tpu.memory_space<vmem>>, %arg2: memref<2x128xf32, #tpu.memory_space<vmem>>) attributes {dimension_semantics = [], scalar_prefetch = 0 : i64, scratch_operands = 0 : i64, tpu.core_type = #tpu.core_type<tc>} {
    %c0 = arith.constant 0 : index
    %c0_0 = arith.constant 0 : index
    %0 = vector.load %arg1[%c0, %c0_0] : memref<676x128xf32, #tpu.memory_space<vmem>>, vector<288x128xf32>
    %c288 = arith.constant 288 : index
    %c0_1 = arith.constant 0 : index
    %1 = vector.load %arg1[%c288, %c0_1] : memref<676x128xf32, #tpu.memory_space<vmem>>, vector<1x128xf32>
    %c289 = arith.constant 289 : index
    %c0_2 = arith.constant 0 : index
    %2 = vector.load %arg1[%c289, %c0_2] : memref<676x128xf32, #tpu.memory_space<vmem>>, vector<128x128xf32>
    %c417 = arith.constant 417 : index
    %c0_3 = arith.constant 0 : index
    %3 = vector.load %arg1[%c417, %c0_3] : memref<676x128xf32, #tpu.memory_space<vmem>>, vector<1x128xf32>
    %c418 = arith.constant 418 : index
    %c0_4 = arith.constant 0 : index
    %4 = vector.load %arg1[%c418, %c0_4] : memref<676x128xf32, #tpu.memory_space<vmem>>, vector<128x128xf32>
    %c546 = arith.constant 546 : index
    %c0_5 = arith.constant 0 : index
    %5 = vector.load %arg1[%c546, %c0_5] : memref<676x128xf32, #tpu.memory_space<vmem>>, vector<1x128xf32>
    %c547 = arith.constant 547 : index
    %c0_6 = arith.constant 0 : index
    %6 = vector.load %arg1[%c547, %c0_6] : memref<676x128xf32, #tpu.memory_space<vmem>>, vector<128x128xf32>
    %c675 = arith.constant 675 : index
    %c0_7 = arith.constant 0 : index
    %7 = vector.load %arg1[%c675, %c0_7] : memref<676x128xf32, #tpu.memory_space<vmem>>, vector<1x128xf32>
    %c0_8 = arith.constant 0 : index
    %c0_9 = arith.constant 0 : index
    %8 = vector.load %arg0[%c0_8, %c0_9] : memref<8x288xf32, #tpu.memory_space<vmem>>, vector<8x288xf32>
    %cst = arith.constant dense<0.000000e+00> : vector<8x128xf32>
    %9 = tpu.matmul %8, %0, %cst {dimension_numbers = #tpu.dot_dimension_numbers<[1], [0], [0], [1], [0, 0, 1, 1], [], []>} : vector<8x288xf32>, vector<288x128xf32>, vector<8x128xf32> -> vector<8x128xf32>
    %10 = vector.broadcast %1 : vector<1x128xf32> to vector<8x128xf32>
    %11 = arith.addf %9, %10 : vector<8x128xf32>
    %cst_10 = arith.constant 0.000000e+00 : f32
    %12 = vector.broadcast %cst_10 : f32 to vector<8x128xf32>
    %13 = arith.maximumf %11, %12 : vector<8x128xf32>
    %14 = vector.extract_strided_slice %13 {offsets = [0, 0], sizes = [2, 128], strides = [1, 1]} : vector<8x128xf32> to vector<2x128xf32>
    %15 = vector.extract_strided_slice %13 {offsets = [2, 0], sizes = [2, 128], strides = [1, 1]} : vector<8x128xf32> to vector<2x128xf32>
    %16 = arith.maximumf %14, %15 : vector<2x128xf32>
    %17 = vector.extract_strided_slice %13 {offsets = [4, 0], sizes = [2, 128], strides = [1, 1]} : vector<8x128xf32> to vector<2x128xf32>
    %18 = vector.extract_strided_slice %13 {offsets = [6, 0], sizes = [2, 128], strides = [1, 1]} : vector<8x128xf32> to vector<2x128xf32>
    %19 = arith.maximumf %17, %18 : vector<2x128xf32>
    %20 = arith.maximumf %16, %19 : vector<2x128xf32>
    %cst_11 = arith.constant dense<0.000000e+00> : vector<2x128xf32>
    %21 = tpu.matmul %20, %2, %cst_11 {dimension_numbers = #tpu.dot_dimension_numbers<[1], [0], [0], [1], [0, 0, 1, 1], [], []>} : vector<2x128xf32>, vector<128x128xf32>, vector<2x128xf32> -> vector<2x128xf32>
    %22 = vector.broadcast %3 : vector<1x128xf32> to vector<2x128xf32>
    %23 = arith.addf %21, %22 : vector<2x128xf32>
    %cst_12 = arith.constant 0.000000e+00 : f32
    %24 = vector.broadcast %cst_12 : f32 to vector<2x128xf32>
    %25 = arith.maximumf %23, %24 : vector<2x128xf32>
    %cst_13 = arith.constant dense<0.000000e+00> : vector<2x128xf32>
    %26 = tpu.matmul %25, %4, %cst_13 {dimension_numbers = #tpu.dot_dimension_numbers<[1], [0], [0], [1], [0, 0, 1, 1], [], []>} : vector<2x128xf32>, vector<128x128xf32>, vector<2x128xf32> -> vector<2x128xf32>
    %27 = vector.broadcast %5 : vector<1x128xf32> to vector<2x128xf32>
    %28 = arith.addf %26, %27 : vector<2x128xf32>
    %cst_14 = arith.constant 0.000000e+00 : f32
    %29 = vector.broadcast %cst_14 : f32 to vector<2x128xf32>
    %30 = arith.maximumf %28, %29 : vector<2x128xf32>
    %cst_15 = arith.constant dense<0.000000e+00> : vector<2x128xf32>
    %31 = tpu.matmul %30, %6, %cst_15 {dimension_numbers = #tpu.dot_dimension_numbers<[1], [0], [0], [1], [0, 0, 1, 1], [], []>} : vector<2x128xf32>, vector<128x128xf32>, vector<2x128xf32> -> vector<2x128xf32>
    %32 = vector.broadcast %7 : vector<1x128xf32> to vector<2x128xf32>
    %33 = arith.addf %31, %32 : vector<2x128xf32>
    %c0_16 = arith.constant 0 : index
    %c0_17 = arith.constant 0 : index
    %34 = vector.load %arg2[%c0_16, %c0_17] : memref<2x128xf32, #tpu.memory_space<vmem>>, vector<2x128xf32>
    tpu.vector_store %arg2[%c0_16, %c0_17], %33 {strides = array<i32>} : memref<2x128xf32, #tpu.memory_space<vmem>>, vector<2x128xf32>,
    return
  }
}

</mosaic_0001>

<bundles_post_ra>
// kernel: encoder_cnn_forward.4
= control target key start
LH: loop header
LB: loop body
LE: loop exit
PB: predicated region body
PF: predicated region fallthrough
CT: control target
= control target key end

     0   :  { %v8595_v0 = vmov 0.0|0.0   ;;  %vm2137_vm0 = vcmask 1040384   ;;  %vm8596_vm1 = vmmov 0   ;;  %v8597_v6 = vmov 0.0   ;;  %s14485_s1 = inlined_call_operand.vmem [shape: f32[26,8], index: 1, kind: input, shape index: {}]   ;;  %s14486_s0 = inlined_call_operand.vmem [shape: f32[4232,25], index: 0, kind: input, shape index: {}]   ;;  %s14487_s2 = inlined_call_operand.vmem [shape: f32[4232,8], index: 2, kind: output, shape index: {}]  }
   0x1   :  { %8573 = vmatprep.subr.bf16.mxu0 %v8595_v0  ;;  %v540_v1 = vld [vmem:[%s14485_s1] sm:$0xff]  ;;  %v541_v2 = vld [vmem:[%s14485_s1 + $0x8] sm:$0xff]  ;;  %8580 = vmatprep.subr.bf16.mxu1 %v8595_v0  ;;  %v542_v3 = vld [vmem:[%s14485_s1 + $0x10] sm:$0xff]  ;;  %vm8598_vm2 = vmmov 1   ;;  %vm549_vm4 = vcmask 203776   ;;  %vm5380_vm5 = vcmask 64512  }
   0x2   :  { %v8574_v4 = vpack.c.bf16 %v541_v2, %v540_v1  ;;  %v543_v5 = vld [vmem:[%s14485_s1 + $0x18] sm:$0x1]  ;;  %6986 = vmatprep.mubr.msk.f32.mxu0 %vm8596_vm1, %v8597_v6  ;;  %7781 = vmatprep.mubr.msk.f32.mxu1 %vm8596_vm1, %v8597_v6  ;;  %vm8578_vm3 = vmpackc.low %vm2137_vm0, %vm8598_vm2  ;;  %v11_v8 = vld [vmem:[%s14486_s0] sm:$0xff] }
   0x3   :  { %v8577_v7 = vpack.c.bf16 %v543_v5, %v542_v3  ;;  %v276_v9 = vld [vmem:[%s14486_s0 + $0x848] sm:$0xff]  ;;  %v277_v11 = vld [vmem:[%s14486_s0 + $0x850] sm:$0xff]  ;;  %v278_v13 = vld [vmem:[%s14486_s0 + $0x858] sm:$0xff] }
   0x4   :  { %8575 = vmatpush3.bf16.msra.mxu0 %v8574_v4  ;;  %8582 = vmatpush3.bf16.msra.mxu1 %v8574_v4  ;;  %v12_v10 = vld [vmem:[%s14486_s0 + $0x8] sm:$0xff]  ;;  %v13_v12 = vld [vmem:[%s14486_s0 + $0x10] sm:$0xff]  ;;  %v14_v14 = vld [vmem:[%s14486_s0 + $0x18] sm:$0xff] }
   0x5   :  { %8576 = vmatprep.subr.bf16.mxu0 %v8595_v0  ;;  %8581 = vmatprep.subr.bf16.mxu1 %v8595_v0  ;;  %v279_v15 = vld [vmem:[%s14486_s0 + $0x860] sm:$0xff]  ;;  %v280_v17 = vld [vmem:[%s14486_s0 + $0x868] sm:$0xff]  ;;  %v281_v19 = vld [vmem:[%s14486_s0 + $0x870] sm:$0xff] }
   0x6   :  { %v15_v16 = vld [vmem:[%s14486_s0 + $0x20] sm:$0xff]  ;;  %v16_v18 = vld [vmem:[%s14486_s0 + $0x28] sm:$0xff]  ;;  %v17_v20 = vld [vmem:[%s14486_s0 + $0x30] sm:$0xff] }
   0x7   :  { %v282_v21 = vld [vmem:[%s14486_s0 + $0x878] sm:$0xff]  ;;  %v283_v23 = vld [vmem:[%s14486_s0 + $0x880] sm:$0xff]  ;;  %v284_v25 = vld [vmem:[%s14486_s0 + $0x888] sm:$0xff] }
   0x8   :  { %8579 = vmatpush3.bf16.msk.msra.mxu0 %vm8578_vm3, %v8577_v7  ;;  %8583 = vmatpush3.bf16.msk.msra.mxu1 %vm8578_vm3, %v8577_v7  ;;  %v18_v22 = vld [vmem:[%s14486_s0 + $0x38] sm:$0xff]  ;;  %v19_v24 = vld [vmem:[%s14486_s0 + $0x40] sm:$0xff]  ;;  %v20_v26 = vld [vmem:[%s14486_s0 + $0x48] sm:$0xff] }
   0x9   :  { %v285_v27 = vld [vmem:[%s14486_s0 + $0x890] sm:$0xff]  ;;  %v286_v29 = vld [vmem:[%s14486_s0 + $0x898] sm:$0xff]  ;;  %v287_v31 = vld [vmem:[%s14486_s0 + $0x8a0] sm:$0xff] }
   0xa   :  { %v21_v28 = vld [vmem:[%s14486_s0 + $0x50] sm:$0xff]  ;;  %v22_v30 = vld [vmem:[%s14486_s0 + $0x58] sm:$0xff]  ;;  %v23_v32 = vld [vmem:[%s14486_s0 + $0x60] sm:$0xff] }
   0xb   :  { %6987 = vmatmul.mubr.msk.f32.vlgmr.msra.gmra.mrb[0].mxu0 %vm549_vm4, %v11_v8  ;;  %7782 = vmatmul.mubr.msk.f32.vlgmr.msra.gmra.mrb[0].mxu1 %vm549_vm4, %v276_v9  ;;  %v288_v33 = vld [vmem:[%s14486_s0 + $0x8a8] sm:$0xff]  ;;  %v289_v35 = vld [vmem:[%s14486_s0 + $0x8b0] sm:$0xff]  ;;  %v290_v37 = vld [vmem:[%s14486_s0 + $0x8b8] sm:$0xff] }
   0xc   :  { %6989 = vmatprep.mubr.msk.f32.mxu0 %vm8596_vm1, %v8597_v6  ;;  %7784 = vmatprep.mubr.msk.f32.mxu1 %vm8596_vm1, %v8597_v6  ;;  %v24_v34 = vld [vmem:[%s14486_s0 + $0x68] sm:$0xff]  ;;  %v25_v36 = vld [vmem:[%s14486_s0 + $0x70] sm:$0xff]  ;;  %v26_v38 = vld [vmem:[%s14486_s0 + $0x78] sm:$0xff] }
   0xd   :  { %v291_v39 = vld [vmem:[%s14486_s0 + $0x8c0] sm:$0xff]  ;;  %v292_v41 = vld [vmem:[%s14486_s0 + $0x8c8] sm:$0xff]  ;;  %v293_v43 = vld [vmem:[%s14486_s0 + $0x8d0] sm:$0xff] }
   0xe   :  { %v27_v40 = vld [vmem:[%s14486_s0 + $0x80] sm:$0xff]  ;;  %v28_v42 = vld [vmem:[%s14486_s0 + $0x88] sm:$0xff]  ;;  %v29_v44 = vld [vmem:[%s14486_s0 + $0x90] sm:$0xff] }
   0xf   :  { %6990 = vmatmul.mubr.msk.f32.gmra.mrb[2].mxu0 %vm549_vm4, %v12_v10  ;;  %7785 = vmatmul.mubr.msk.f32.gmra.mrb[2].mxu1 %vm549_vm4, %v277_v11  ;;  %v294_v45 = vld [vmem:[%s14486_s0 + $0x8d8] sm:$0xff]  ;;  %v295_v47 = vld [vmem:[%s14486_s0 + $0x8e0] sm:$0xff]  ;;  %v296_v49 = vld [vmem:[%s14486_s0 + $0x8e8] sm:$0xff] }
  0x10   :  { %6992 = vmatprep.mubr.msk.f32.mxu0 %vm8596_vm1, %v8597_v6  ;;  %7787 = vmatprep.mubr.msk.f32.mxu1 %vm8596_vm1, %v8597_v6  ;;  %v30_v46 = vld [vmem:[%s14486_s0 + $0x98] sm:$0xff]  ;;  %v31_v48 = vld [vmem:[%s14486_s0 + $0xa0] sm:$0xff]  ;;  %v32_v50 = vld [vmem:[%s14486_s0 + $0xa8] sm:$0xff] }
  0x11   :  { %v297_v51 = vld [vmem:[%s14486_s0 + $0x8f0] sm:$0xff]  ;;  %v298_v53 = vld [vmem:[%s14486_s0 + $0x8f8] sm:$0xff]  ;;  %v299_v55 = vld [vmem:[%s14486_s0 + $0x900] sm:$0xff] }
  0x12   :  { %v33_v52 = vld [vmem:[%s14486_s0 + $0xb0] sm:$0xff]  ;;  %v34_v54 = vld [vmem:[%s14486_s0 + $0xb8] sm:$0xff]  ;;  %v35_v56 = vld [vmem:[%s14486_s0 + $0xc0] sm:$0xff] }
  0x13   :  { %6993 = vmatmul.mubr.msk.f32.gmra.mrb[4].mxu0 %vm549_vm4, %v13_v12  ;;  %7788 = vmatmul.mubr.msk.f32.gmra.mrb[4].mxu1 %vm549_vm4, %v278_v13  ;;  %v300_v57 = vld [vmem:[%s14486_s0 + $0x908] sm:$0xff]  ;;  %v301_v59 = vld [vmem:[%s14486_s0 + $0x910] sm:$0xff]  ;;  %v302_v61 = vld [vmem:[%s14486_s0 + $0x918] sm:$0xff] }
  0x14   :  { %6995 = vmatprep.mubr.msk.f32.mxu0 %vm8596_vm1, %v8597_v6  ;;  %7790 = vmatprep.mubr.msk.f32.mxu1 %vm8596_vm1, %v8597_v6  ;;  %v36_v58 = vld [vmem:[%s14486_s0 + $0xc8] sm:$0xff]  ;;  %v37_v60 = vld [vmem:[%s14486_s0 + $0xd0] sm:$0xff]  ;;  %v38_v62 = vld [vmem:[%s14486_s0 + $0xd8] sm:$0xff] }
  0x15   :  { %v303_v63 = vld [vmem:[%s14486_s0 + $0x920] sm:$0xff]  ;;  %v304_v1 = vld [vmem:[%s14486_s0 + $0x928] sm:$0xff]  ;;  %v305_v3 = vld [vmem:[%s14486_s0 + $0x930] sm:$0xff] }
  0x16   :  { %v39_v0 = vld [vmem:[%s14486_s0 + $0xe0] sm:$0xff]  ;;  %v40_v2 = vld [vmem:[%s14486_s0 + $0xe8] sm:$0xff]  ;;  %v41_v4 = vld [vmem:[%s14486_s0 + $0xf0] sm:$0xff] }
  0x17   :  { %6996 = vmatmul.mubr.msk.f32.gmra.mrb[6].mxu0 %vm549_vm4, %v14_v14  ;;  %7791 = vmatmul.mubr.msk.f32.gmra.mrb[6].mxu1 %vm549_vm4, %v279_v15  ;;  %v306_v5 = vld [vmem:[%s14486_s0 + $0x938] sm:$0xff]  ;;  %v307_v8 = vld [vmem:[%s14486_s0 + $0x940] sm:$0xff]  ;;  %v308_v10 = vld [vmem:[%s14486_s0 + $0x948] sm:$0xff] }
  0x18   :  { %6998 = vmatprep.mubr.msk.f32.mxu0 %vm8596_vm1, %v8597_v6  ;;  %7793 = vmatprep.mubr.msk.f32.mxu1 %vm8596_vm1, %v8597_v6  ;;  %v42_v7 = vld [vmem:[%s14486_s0 + $0xf8] sm:$0xff]  ;;  %v43_v9 = vld [vmem:[%s14486_s0 + $0x100] sm:$0xff]  ;;  %v44_v11 = vld [vmem:[%s14486_s0 + $0x108] sm:$0xff] }
  0x19   :  { %v309_v12 = vld [vmem:[%s14486_s0 + $0x950] sm:$0xff]  ;;  %v310_v14 = vld [vmem:[%s14486_s0 + $0x958] sm:$0xff] }
  0x1a   :  { %v45_v13 = vld [vmem:[%s14486_s0 + $0x110] sm:$0xff]  ;;  %v46_v15 = vld [vmem:[%s14486_s0 + $0x118] sm:$0xff] }
  0x1b   :  { %6999 = vmatmul.mubr.msk.f32.gmra.mrb[8].mxu0 %vm549_vm4, %v15_v16  ;;  %7794 = vmatmul.mubr.msk.f32.gmra.mrb[8].mxu1 %vm549_vm4, %v280_v17  ;;  %v311_v16 = vld [vmem:[%s14486_s0 + $0x960] sm:$0xff] }
  0x1c   :  { %7001 = vmatprep.mubr.msk.f32.mxu0 %vm8596_vm1, %v8597_v6  ;;  %7796 = vmatprep.mubr.msk.f32.mxu1 %vm8596_vm1, %v8597_v6  ;;  %v47_v17 = vld [vmem:[%s14486_s0 + $0x120] sm:$0xff] }
  0x1f   :  { %7002 = vmatmul.mubr.msk.f32.gmra.mrb[10].mxu0 %vm549_vm4, %v16_v18  ;;  %7797 = vmatmul.mubr.msk.f32.gmra.mrb[10].mxu1 %vm549_vm4, %v281_v19  ;;  %v312_v18 = vld [vmem:[%s14486_s0 + $0x968] sm:$0xff] }
  0x20   :  { %7004 = vmatprep.mubr.msk.f32.mxu0 %vm8596_vm1, %v8597_v6  ;;  %7799 = vmatprep.mubr.msk.f32.mxu1 %vm8596_vm1, %v8597_v6  ;;  %v48_v19 = vld [vmem:[%s14486_s0 + $0x128] sm:$0xff] }
  0x23   :  { %7005 = vmatmul.mubr.msk.f32.gmra.mrb[12].mxu0 %vm549_vm4, %v17_v20  ;;  %7800 = vmatmul.mubr.msk.f32.gmra.mrb[12].mxu1 %vm549_vm4, %v282_v21  ;;  %v313_v20 = vld [vmem:[%s14486_s0 + $0x970] sm:$0xff] }
  0x24   :  { %7007 = vmatprep.mubr.msk.f32.mxu0 %vm8596_vm1, %v8597_v6  ;;  %7802 = vmatprep.mubr.msk.f32.mxu1 %vm8596_vm1, %v8597_v6  ;;  %v49_v21 = vld [vmem:[%s14486_s0 + $0x130] sm:$0xff] }
  0x27   :  { %7008 = vmatmul.mubr.msk.f32.gmra.mrb[14].mxu0 %vm549_vm4, %v18_v22  ;;  %7803 = vmatmul.mubr.msk.f32.gmra.mrb[14].mxu1 %vm549_vm4, %v283_v23  ;;  %v314_v22 = vld [vmem:[%s14486_s0 + $0x978] sm:$0xff] }
  0x28   :  { %7010 = vmatprep.mubr.msk.f32.mxu0 %vm8596_vm1, %v8597_v6  ;;  %7805 = vmatprep.mubr.msk.f32.mxu1 %vm8596_vm1, %v8597_v6  ;;  %v50_v23 = vld [vmem:[%s14486_s0 + $0x138] sm:$0xff] }
  0x2b   :  { %7011 = vmatmul.mubr.msk.f32.gmra.mrb[16].mxu0 %vm549_vm4, %v19_v24  ;;  %7806 = vmatmul.mubr.msk.f32.gmra.mrb[16].mxu1 %vm549_vm4, %v284_v25  ;;  %v315_v24 = vld [vmem:[%s14486_s0 + $0x980] sm:$0xff] }
  0x2c   :  { %7013 = vmatprep.mubr.msk.f32.mxu0 %vm8596_vm1, %v8597_v6  ;;  %7808 = vmatprep.mubr.msk.f32.mxu1 %vm8596_vm1, %v8597_v6  ;;  %v51_v25 = vld [vmem:[%s14486_s0 + $0x140] sm:$0xff] }
  0x2f   :  { %7014 = vmatmul.mubr.msk.f32.gmra.mrb[18].mxu0 %vm549_vm4, %v20_v26  ;;  %7809 = vmatmul.mubr.msk.f32.gmra.mrb[18].mxu1 %vm549_vm4, %v285_v27  ;;  %v316_v26 = vld [vmem:[%s14486_s0 + $0x988] sm:$0xff] }
  0x30   :  { %7016 = vmatprep.mubr.msk.f32.mxu0 %vm8596_vm1, %v8597_v6  ;;  %7811 = vmatprep.mubr.msk.f32.mxu1 %vm8596_vm1, %v8597_v6  ;;  %v52_v27 = vld [vmem:[%s14486_s0 + $0x148] sm:$0xff] }
  0x33   :  { %7017 = vmatmul.mubr.msk.f32.gmra.mrb[20].mxu0 %vm549_vm4, %v21_v28  ;;  %7812 = vmatmul.mubr.msk.f32.gmra.mrb[20].mxu1 %vm549_vm4, %v286_v29  ;;  %v317_v28 = vld [vmem:[%s14486_s0 + $0x990] sm:$0xff] }
  0x34   :  { %7019 = vmatprep.mubr.msk.f32.mxu0 %vm8596_vm1, %v8597_v6  ;;  %7814 = vmatprep.mubr.msk.f32.mxu1 %vm8596_vm1, %v8597_v6  ;;  %v53_v29 = vld [vmem:[%s14486_s0 + $0x150] sm:$0xff] }
  0x37   :  { %7020 = vmatmul.mubr.msk.f32.gmra.mrb[22].mxu0 %vm549_vm4, %v22_v30  ;;  %7815 = vmatmul.mubr.msk.f32.gmra.mrb[22].mxu1 %vm549_vm4, %v287_v31  ;;  %v318_v30 = vld [vmem:[%s14486_s0 + $0x998] sm:$0xff] }
  0x38   :  { %7022 = vmatprep.mubr.msk.f32.mxu0 %vm8596_vm1, %v8597_v6  ;;  %7817 = vmatprep.mubr.msk.f32.mxu1 %vm8596_vm1, %v8597_v6  ;;  %v54_v31 = vld [vmem:[%s14486_s0 + $0x158] sm:$0xff] }
  0x3b   :  { %7023 = vmatmul.mubr.msk.f32.gmra.mrb[24].mxu0 %vm549_vm4, %v23_v32  ;;  %7818 = vmatmul.mubr.msk.f32.gmra.mrb[24].mxu1 %vm549_vm4, %v288_v33  ;;  %v319_v32 = vld [vmem:[%s14486_s0 + $0x9a0] sm:$0xff] }
  0x3c   :  { %7025 = vmatprep.mubr.msk.f32.mxu0 %vm8596_vm1, %v8597_v6  ;;  %7820 = vmatprep.mubr.msk.f32.mxu1 %vm8596_vm1, %v8597_v6  ;;  %v55_v33 = vld [vmem:[%s14486_s0 + $0x160] sm:$0xff] }
  0x3f   :  { %7026 = vmatmul.mubr.msk.f32.gmra.mrb[26].mxu0 %vm549_vm4, %v24_v34  ;;  %7821 = vmatmul.mubr.msk.f32.gmra.mrb[26].mxu1 %vm549_vm4, %v289_v35  ;;  %v320_v34 = vld [vmem:[%s14486_s0 + $0x9a8] sm:$0xff] }
  0x40   :  { %7028 = vmatprep.mubr.msk.f32.mxu0 %vm8596_vm1, %v8597_v6  ;;  %7823 = vmatprep.mubr.msk.f32.mxu1 %vm8596_vm1, %v8597_v6  ;;  %v56_v35 = vld [vmem:[%s14486_s0 + $0x168] sm:$0xff] }
  0x43   :  { %7029 = vmatmul.mubr.msk.f32.gmra.mrb[28].mxu0 %vm549_vm4, %v25_v36  ;;  %7824 = vmatmul.mubr.msk.f32.gmra.mrb[28].mxu1 %vm549_vm4, %v290_v37  ;;  %v321_v36 = vld [vmem:[%s14486_s0 + $0x9b0] sm:$0xff] }
  0x44   :  { %7031 = vmatprep.mubr.msk.f32.mxu0 %vm8596_vm1, %v8597_v6  ;;  %7826 = vmatprep.mubr.msk.f32.mxu1 %vm8596_vm1, %v8597_v6  ;;  %v57_v37 = vld [vmem:[%s14486_s0 + $0x170] sm:$0xff] }
  0x47   :  { %7032 = vmatmul.mubr.msk.f32.gmra.mrb[30].mxu0 %vm549_vm4, %v26_v38  ;;  %7827 = vmatmul.mubr.msk.f32.gmra.mrb[30].mxu1 %vm549_vm4, %v291_v39  ;;  %v322_v38 = vld [vmem:[%s14486_s0 + $0x9b8] sm:$0xff] }
  0x48   :  { %7034 = vmatprep.mubr.msk.f32.mxu0 %vm8596_vm1, %v8597_v6  ;;  %7829 = vmatprep.mubr.msk.f32.mxu1 %vm8596_vm1, %v8597_v6  ;;  %v58_v39 = vld [vmem:[%s14486_s0 + $0x178] sm:$0xff] }
  0x4b   :  { %7035 = vmatmul.mubr.msk.f32.gmra.mrb[32].mxu0 %vm549_vm4, %v27_v40  ;;  %7830 = vmatmul.mubr.msk.f32.gmra.mrb[32].mxu1 %vm549_vm4, %v292_v41  ;;  %v323_v40 = vld [vmem:[%s14486_s0 + $0x9c0] sm:$0xff] }
  0x4c   :  { %7037 = vmatprep.mubr.msk.f32.mxu0 %vm8596_vm1, %v8597_v6  ;;  %7832 = vmatprep.mubr.msk.f32.mxu1 %vm8596_vm1, %v8597_v6  ;;  %v59_v41 = vld [vmem:[%s14486_s0 + $0x180] sm:$0xff] }
  0x4f   :  { %7038 = vmatmul.mubr.msk.f32.gmra.mrb[34].mxu0 %vm549_vm4, %v28_v42  ;;  %7833 = vmatmul.mubr.msk.f32.gmra.mrb[34].mxu1 %vm549_vm4, %v293_v43  ;;  %v324_v42 = vld [vmem:[%s14486_s0 + $0x9c8] sm:$0xff] }
  0x50   :  { %7040 = vmatprep.mubr.msk.f32.mxu0 %vm8596_vm1, %v8597_v6  ;;  %7835 = vmatprep.mubr.msk.f32.mxu1 %vm8596_vm1, %v8597_v6  ;;  %v60_v43 = vld [vmem:[%s14486_s0 + $0x188] sm:$0xff] }
  0x53   :  { %7041 = vmatmul.mubr.msk.f32.gmra.mrb[36].mxu0 %vm549_vm4, %v29_v44  ;;  %7836 = vmatmul.mubr.msk.f32.gmra.mrb[36].mxu1 %vm549_vm4, %v294_v45  ;;  %v325_v44 = vld [vmem:[%s14486_s0 + $0x9d0] sm:$0xff] }
  0x54   :  { %7043 = vmatprep.mubr.msk.f32.mxu0 %vm8596_vm1, %v8597_v6  ;;  %7838 = vmatprep.mubr.msk.f32.mxu1 %vm8596_vm1, %v8597_v6  ;;  %v61_v45 = vld [vmem:[%s14486_s0 + $0x190] sm:$0xff] }
  0x57   :  { %7044 = vmatmul.mubr.msk.f32.gmra.mrb[38].mxu0 %vm549_vm4, %v30_v46  ;;  %7839 = vmatmul.mubr.msk.f32.gmra.mrb[38].mxu1 %vm549_vm4, %v295_v47  ;;  %v326_v46 = vld [vmem:[%s14486_s0 + $0x9d8] sm:$0xff] }
  0x58   :  { %7046 = vmatprep.mubr.msk.f32.mxu0 %vm8596_vm1, %v8597_v6  ;;  %7841 = vmatprep.mubr.msk.f32.mxu1 %vm8596_vm1, %v8597_v6  ;;  %v62_v47 = vld [vmem:[%s14486_s0 + $0x198] sm:$0xff] }
  0x5b   :  { %7047 = vmatmul.mubr.msk.f32.gmra.mrb[40].mxu0 %vm549_vm4, %v31_v48  ;;  %7842 = vmatmul.mubr.msk.f32.gmra.mrb[40].mxu1 %vm549_vm4, %v296_v49  ;;  %v327_v48 = vld [vmem:[%s14486_s0 + $0x9e0] sm:$0xff] }
  0x5c   :  { %7049 = vmatprep.mubr.msk.f32.mxu0 %vm8596_vm1, %v8597_v6  ;;  %7844 = vmatprep.mubr.msk.f32.mxu1 %vm8596_vm1, %v8597_v6  ;;  %v63_v49 = vld [vmem:[%s14486_s0 + $0x1a0] sm:$0xff] }
  0x5f   :  { %7050 = vmatmul.mubr.msk.f32.gmra.mrb[42].mxu0 %vm549_vm4, %v32_v50  ;;  %7845 = vmatmul.mubr.msk.f32.gmra.mrb[42].mxu1 %vm549_vm4, %v297_v51  ;;  %v328_v50 = vld [vmem:[%s14486_s0 + $0x9e8] sm:$0xff]  ;;  %v9265_v51 = vld [vmem:[%s14485_s1 + $0x19] ss:$0 sm:$0xff] }
  0x60   :  { %7052 = vmatprep.mubr.msk.f32.mxu0 %vm8596_vm1, %v8597_v6  ;;  %7847 = vmatprep.mubr.msk.f32.mxu1 %vm8596_vm1, %v8597_v6 }
  0x63   :  { %7053 = vmatmul.mubr.msk.f32.gmra.mrb[44].mxu0 %vm549_vm4, %v33_v52  ;;  %7848 = vmatmul.mubr.msk.f32.gmra.mrb[44].mxu1 %vm549_vm4, %v298_v53  ;;  %v64_v52 = vld [vmem:[%s14486_s0 + $0x1a8] sm:$0xff]  ;;  %v329_v53 = vld [vmem:[%s14486_s0 + $0x9f0] sm:$0xff] }
  0x64   :  { %7055 = vmatprep.mubr.msk.f32.mxu0 %vm8596_vm1, %v8597_v6  ;;  %7850 = vmatprep.mubr.msk.f32.mxu1 %vm8596_vm1, %v8597_v6 }
  0x67   :  { %7056 = vmatmul.mubr.msk.f32.gmra.mrb[46].mxu0 %vm549_vm4, %v34_v54  ;;  %7851 = vmatmul.mubr.msk.f32.gmra.mrb[46].mxu1 %vm549_vm4, %v299_v55 }
  0x68   :  { %7058 = vmatprep.mubr.msk.f32.mxu0 %vm8596_vm1, %v8597_v6  ;;  %7853 = vmatprep.mubr.msk.f32.mxu1 %vm8596_vm1, %v8597_v6 }
  0x6b   :  { %7059 = vmatmul.mubr.msk.f32.gmra.mrb[48].mxu0 %vm549_vm4, %v35_v56  ;;  %7854 = vmatmul.mubr.msk.f32.gmra.mrb[48].mxu1 %vm549_vm4, %v300_v57 }
  0x6c   :  { %7061 = vmatprep.mubr.msk.f32.mxu0 %vm8596_vm1, %v8597_v6  ;;  %7856 = vmatprep.mubr.msk.f32.mxu1 %vm8596_vm1, %v8597_v6 }
  0x6f   :  { %7062 = vmatmul.mubr.msk.f32.gmra.mrb[50].mxu0 %vm549_vm4, %v36_v58  ;;  %7857 = vmatmul.mubr.msk.f32.gmra.mrb[50].mxu1 %vm549_vm4, %v301_v59 }
  0x70   :  { %7064 = vmatprep.mubr.msk.f32.mxu0 %vm8596_vm1, %v8597_v6  ;;  %7859 = vmatprep.mubr.msk.f32.mxu1 %vm8596_vm1, %v8597_v6 }
  0x73   :  { %7065 = vmatmul.mubr.msk.f32.gmra.mrb[52].mxu0 %vm549_vm4, %v37_v60  ;;  %7860 = vmatmul.mubr.msk.f32.gmra.mrb[52].mxu1 %vm549_vm4, %v302_v61  ;;  %v65_v60 = vld [vmem:[%s14486_s0 + $0x1b0] sm:$0xff]  ;;  %v330_v61 = vld [vmem:[%s14486_s0 + $0x9f8] sm:$0xff] }
  0x74   :  { %7067 = vmatprep.mubr.msk.f32.mxu0 %vm8596_vm1, %v8597_v6  ;;  %7862 = vmatprep.mubr.msk.f32.mxu1 %vm8596_vm1, %v8597_v6 }
  0x77   :  { %7068 = vmatmul.mubr.msk.f32.gmra.mrb[54].mxu0 %vm549_vm4, %v38_v62  ;;  %7863 = vmatmul.mubr.msk.f32.gmra.mrb[54].mxu1 %vm549_vm4, %v303_v63 }
  0x78   :  { %7070 = vmatprep.mubr.msk.f32.mxu0 %vm8596_vm1, %v8597_v6  ;;  %7865 = vmatprep.mubr.msk.f32.mxu1 %vm8596_vm1, %v8597_v6 }
  0x7b   :  { %7071 = vmatmul.mubr.msk.f32.gmra.mrb[56].mxu0 %vm549_vm4, %v39_v0  ;;  %7866 = vmatmul.mubr.msk.f32.gmra.mrb[56].mxu1 %vm549_vm4, %v304_v1 }
  0x7c   :  { %7073 = vmatprep.mubr.msk.f32.mxu0 %vm8596_vm1, %v8597_v6  ;;  %7868 = vmatprep.mubr.msk.f32.mxu1 %vm8596_vm1, %v8597_v6 }
  0x7f   :  { %7074 = vmatmul.mubr.msk.f32.gmra.mrb[58].mxu0 %vm549_vm4, %v40_v2  ;;  %7869 = vmatmul.mubr.msk.f32.gmra.mrb[58].mxu1 %vm549_vm4, %v305_v3 }
  0x80   :  { %7076 = vmatprep.mubr.msk.f32.mxu0 %vm8596_vm1, %v8597_v6  ;;  %7871 = vmatprep.mubr.msk.f32.mxu1 %vm8596_vm1, %v8597_v6 }
  0x83   :  { %7077 = vmatmul.mubr.msk.f32.gmra.mrb[60].mxu0 %vm549_vm4, %v41_v4  ;;  %7872 = vmatmul.mubr.msk.f32.gmra.mrb[60].mxu1 %vm549_vm4, %v306_v5 }
  0x84   :  { %7079 = vmatprep.mubr.msk.f32.mxu0 %vm8596_vm1, %v8597_v6  ;;  %7874 = vmatprep.mubr.msk.f32.mxu1 %vm8596_vm1, %v8597_v6 }
  0x87   :  { %7080 = vmatmul.mubr.msk.f32.gmra.mrb[62].mxu0 %vm549_vm4, %v42_v7  ;;  %7875 = vmatmul.mubr.msk.f32.gmra.mrb[62].mxu1 %vm549_vm4, %v307_v8  ;;  %v66_v7 = vld [vmem:[%s14486_s0 + $0x1b8] sm:$0xff]  ;;  %v331_v8 = vld [vmem:[%s14486_s0 + $0xa00] sm:$0xff] }
  0x88   :  { %7082 = vmatprep.mubr.msk.f32.mxu0 %vm8596_vm1, %v8597_v6  ;;  %7877 = vmatprep.mubr.msk.f32.mxu1 %vm8596_vm1, %v8597_v6 }
  0x8b   :  { %7083 = vmatmul.mubr.msk.f32.gmra.mrb[64].mxu0 %vm549_vm4, %v43_v9  ;;  %7878 = vmatmul.mubr.msk.f32.gmra.mrb[64].mxu1 %vm549_vm4, %v308_v10 }
  0x8c   :  { %7085 = vmatprep.mubr.msk.f32.mxu0 %vm8596_vm1, %v8597_v6  ;;  %7880 = vmatprep.mubr.msk.f32.mxu1 %vm8596_vm1, %v8597_v6 }
  0x8f   :  { %7086 = vmatmul.mubr.msk.f32.gmra.mrb[66].mxu0 %vm549_vm4, %v44_v11  ;;  %7881 = vmatmul.mubr.msk.f32.gmra.mrb[66].mxu1 %vm549_vm4, %v309_v12 }
  0x90   :  { %7088 = vmatprep.mubr.msk.f32.mxu0 %vm8596_vm1, %v8597_v6  ;;  %7883 = vmatprep.mubr.msk.f32.mxu1 %vm8596_vm1, %v8597_v6 }
  0x93   :  { %7089 = vmatmul.mubr.msk.f32.gmra.mrb[68].mxu0 %vm549_vm4, %v45_v13  ;;  %7884 = vmatmul.mubr.msk.f32.gmra.mrb[68].mxu1 %vm549_vm4, %v310_v14 }
  0x94   :  { %7091 = vmatprep.mubr.msk.f32.mxu0 %vm8596_vm1, %v8597_v6  ;;  %7886 = vmatprep.mubr.msk.f32.mxu1 %vm8596_vm1, %v8597_v6 }
  0x97   :  { %7092 = vmatmul.mubr.msk.f32.gmra.mrb[70].mxu0 %vm549_vm4, %v46_v15  ;;  %7887 = vmatmul.mubr.msk.f32.gmra.mrb[70].mxu1 %vm549_vm4, %v311_v16 }
  0x98   :  { %7094 = vmatprep.mubr.msk.f32.mxu0 %vm8596_vm1, %v8597_v6  ;;  %7889 = vmatprep.mubr.msk.f32.mxu1 %vm8596_vm1, %v8597_v6 }
  0x9b   :  { %7095 = vmatmul.mubr.msk.f32.gmra.mrb[72].mxu0 %vm549_vm4, %v47_v17  ;;  %7890 = vmatmul.mubr.msk.f32.gmra.mrb[72].mxu1 %vm549_vm4, %v312_v18  ;;  %v67_v17 = vld [vmem:[%s14486_s0 + $0x1c0] sm:$0xff]  ;;  %v332_v18 = vld [vmem:[%s14486_s0 + $0xa08] sm:$0xff] }
  0x9c   :  { %7097 = vmatprep.mubr.msk.f32.mxu0 %vm8596_vm1, %v8597_v6  ;;  %7892 = vmatprep.mubr.msk.f32.mxu1 %vm8596_vm1, %v8597_v6 }
  0x9f   :  { %7098 = vmatmul.mubr.msk.f32.gmra.mrb[74].mxu0 %vm549_vm4, %v48_v19  ;;  %7893 = vmatmul.mubr.msk.f32.gmra.mrb[74].mxu1 %vm549_vm4, %v313_v20 }
  0xa0   :  { %7100 = vmatprep.mubr.msk.f32.mxu0 %vm8596_vm1, %v8597_v6  ;;  %7895 = vmatprep.mubr.msk.f32.mxu1 %vm8596_vm1, %v8597_v6 }
  0xa3   :  { %7101 = vmatmul.mubr.msk.f32.gmra.mrb[76].mxu0 %vm549_vm4, %v49_v21  ;;  %7896 = vmatmul.mubr.msk.f32.gmra.mrb[76].mxu1 %vm549_vm4, %v314_v22 }
  0xa4   :  { %7103 = vmatprep.mubr.msk.f32.mxu0 %vm8596_vm1, %v8597_v6  ;;  %7898 = vmatprep.mubr.msk.f32.mxu1 %vm8596_vm1, %v8597_v6 }
  0xa7   :  { %7104 = vmatmul.mubr.msk.f32.gmra.mrb[78].mxu0 %vm549_vm4, %v50_v23  ;;  %7899 = vmatmul.mubr.msk.f32.gmra.mrb[78].mxu1 %vm549_vm4, %v315_v24 }
  0xa8   :  { %7106 = vmatprep.mubr.msk.f32.mxu0 %vm8596_vm1, %v8597_v6  ;;  %7901 = vmatprep.mubr.msk.f32.mxu1 %vm8596_vm1, %v8597_v6 }
  0xab   :  { %7107 = vmatmul.mubr.msk.f32.gmra.mrb[80].mxu0 %vm549_vm4, %v51_v25  ;;  %7902 = vmatmul.mubr.msk.f32.gmra.mrb[80].mxu1 %vm549_vm4, %v316_v26 }
  0xac   :  { %7109 = vmatprep.mubr.msk.f32.mxu0 %vm8596_vm1, %v8597_v6  ;;  %7904 = vmatprep.mubr.msk.f32.mxu1 %vm8596_vm1, %v8597_v6 }
  0xaf   :  { %7110 = vmatmul.mubr.msk.f32.gmra.mrb[82].mxu0 %vm549_vm4, %v52_v27  ;;  %7905 = vmatmul.mubr.msk.f32.gmra.mrb[82].mxu1 %vm549_vm4, %v317_v28  ;;  %v68_v27 = vld [vmem:[%s14486_s0 + $0x1c8] sm:$0xff]  ;;  %v333_v28 = vld [vmem:[%s14486_s0 + $0xa10] sm:$0xff] }
  0xb0   :  { %7112 = vmatprep.mubr.msk.f32.mxu0 %vm8596_vm1, %v8597_v6  ;;  %7907 = vmatprep.mubr.msk.f32.mxu1 %vm8596_vm1, %v8597_v6 }
  0xb3   :  { %7113 = vmatmul.mubr.msk.f32.gmra.mrb[84].mxu0 %vm549_vm4, %v53_v29  ;;  %7908 = vmatmul.mubr.msk.f32.gmra.mrb[84].mxu1 %vm549_vm4, %v318_v30 }
  0xb4   :  { %7115 = vmatprep.mubr.msk.f32.mxu0 %vm8596_vm1, %v8597_v6  ;;  %7910 = vmatprep.mubr.msk.f32.mxu1 %vm8596_vm1, %v8597_v6 }
  0xb7   :  { %7116 = vmatmul.mubr.msk.f32.gmra.mrb[86].mxu0 %vm549_vm4, %v54_v31  ;;  %7911 = vmatmul.mubr.msk.f32.gmra.mrb[86].mxu1 %vm549_vm4, %v319_v32 }
  0xb8   :  { %7118 = vmatprep.mubr.msk.f32.mxu0 %vm8596_vm1, %v8597_v6  ;;  %7913 = vmatprep.mubr.msk.f32.mxu1 %vm8596_vm1, %v8597_v6 }
  0xbb   :  { %7119 = vmatmul.mubr.msk.f32.gmra.mrb[88].mxu0 %vm549_vm4, %v55_v33  ;;  %7914 = vmatmul.mubr.msk.f32.gmra.mrb[88].mxu1 %vm549_vm4, %v320_v34 }
  0xbc   :  { %7121 = vmatprep.mubr.msk.f32.mxu0 %vm8596_vm1, %v8597_v6  ;;  %7916 = vmatprep.mubr.msk.f32.mxu1 %vm8596_vm1, %v8597_v6 }
  0xbf   :  { %7122 = vmatmul.mubr.msk.f32.gmra.mrb[90].mxu0 %vm549_vm4, %v56_v35  ;;  %7917 = vmatmul.mubr.msk.f32.gmra.mrb[90].mxu1 %vm549_vm4, %v321_v36 }
  0xc0   :  { %7124 = vmatprep.mubr.msk.f32.mxu0 %vm8596_vm1, %v8597_v6  ;;  %7919 = vmatprep.mubr.msk.f32.mxu1 %vm8596_vm1, %v8597_v6 }
  0xc3   :  { %7125 = vmatmul.mubr.msk.f32.gmra.mrb[92].mxu0 %vm549_vm4, %v57_v37  ;;  %7920 = vmatmul.mubr.msk.f32.gmra.mrb[92].mxu1 %vm549_vm4, %v322_v38  ;;  %v69_v37 = vld [vmem:[%s14486_s0 + $0x1d0] sm:$0xff]  ;;  %v334_v38 = vld [vmem:[%s14486_s0 + $0xa18] sm:$0xff] }
  0xc4   :  { %7127 = vmatprep.mubr.msk.f32.mxu0 %vm8596_vm1, %v8597_v6  ;;  %7922 = vmatprep.mubr.msk.f32.mxu1 %vm8596_vm1, %v8597_v6 }
  0xc7   :  { %7128 = vmatmul.mubr.msk.f32.gmra.mrb[94].mxu0 %vm549_vm4, %v58_v39  ;;  %7923 = vmatmul.mubr.msk.f32.gmra.mrb[94].mxu1 %vm549_vm4, %v323_v40 }
  0xc8   :  { %7130 = vmatprep.mubr.msk.f32.mxu0 %vm8596_vm1, %v8597_v6  ;;  %7925 = vmatprep.mubr.msk.f32.mxu1 %vm8596_vm1, %v8597_v6 }
  0xcb   :  { %7131 = vmatmul.mubr.msk.f32.gmra.mrb[96].mxu0 %vm549_vm4, %v59_v41  ;;  %7926 = vmatmul.mubr.msk.f32.gmra.mrb[96].mxu1 %vm549_vm4, %v324_v42 }
  0xcc   :  { %7133 = vmatprep.mubr.msk.f32.mxu0 %vm8596_vm1, %v8597_v6  ;;  %7928 = vmatprep.mubr.msk.f32.mxu1 %vm8596_vm1, %v8597_v6 }
  0xcf   :  { %7134 = vmatmul.mubr.msk.f32.gmra.mrb[98].mxu0 %vm549_vm4, %v60_v43  ;;  %7929 = vmatmul.mubr.msk.f32.gmra.mrb[98].mxu1 %vm549_vm4, %v325_v44 }
  0xd0   :  { %7136 = vmatprep.mubr.msk.f32.mxu0 %vm8596_vm1, %v8597_v6  ;;  %7931 = vmatprep.mubr.msk.f32.mxu1 %vm8596_vm1, %v8597_v6 }
  0xd3   :  { %7137 = vmatmul.mubr.msk.f32.gmra.mrb[100].mxu0 %vm549_vm4, %v61_v45  ;;  %7932 = vmatmul.mubr.msk.f32.gmra.mrb[100].mxu1 %vm549_vm4, %v326_v46 }
  0xd4   :  { %7139 = vmatprep.mubr.msk.f32.mxu0 %vm8596_vm1, %v8597_v6  ;;  %7934 = vmatprep.mubr.msk.f32.mxu1 %vm8596_vm1, %v8597_v6 }
  0xd7   :  { %7140 = vmatmul.mubr.msk.f32.gmra.mrb[102].mxu0 %vm549_vm4, %v62_v47  ;;  %7935 = vmatmul.mubr.msk.f32.gmra.mrb[102].mxu1 %vm549_vm4, %v327_v48  ;;  %v70_v47 = vld [vmem:[%s14486_s0 + $0x1d8] sm:$0xff]  ;;  %v335_v48 = vld [vmem:[%s14486_s0 + $0xa20] sm:$0xff] }
  0xd8   :  { %7142 = vmatprep.mubr.msk.f32.mxu0 %vm8596_vm1, %v8597_v6  ;;  %7937 = vmatprep.mubr.msk.f32.mxu1 %vm8596_vm1, %v8597_v6 }
  0xdb   :  { %7143 = vmatmul.mubr.msk.f32.gmra.mrb[104].mxu0 %vm549_vm4, %v63_v49  ;;  %7938 = vmatmul.mubr.msk.f32.gmra.mrb[104].mxu1 %vm549_vm4, %v328_v50 }
  0xdc   :  { %7145 = vmatprep.mubr.msk.f32.mxu0 %vm8596_vm1, %v8597_v6  ;;  %7940 = vmatprep.mubr.msk.f32.mxu1 %vm8596_vm1, %v8597_v6 }
  0xde   :  { %v2207_v54 = vpop.f32.mrb[0].mxu0  ;;  %v3532_v55 = vpop.f32.mrb[0].mxu1 }
  0xdf   :  { %v2208_v56 = vadd.f32 %v9265_v51, %v2207_v54  ;;  %v6988_v57 = vpop.f32.mrb[1].mxu0  ;;  %7146 = vmatmul.mubr.msk.f32.gmra.mrb[106].mxu0 %vm549_vm4, %v64_v52  ;;  %v3533_v58 = vadd.f32 %v9265_v51, %v3532_v55  ;;  %v7783_v59 = vpop.f32.mrb[1].mxu1  ;;  %7941 = vmatmul.mubr.msk.f32.gmra.mrb[106].mxu1 %vm549_vm4, %v329_v53 }
  0xe0   :  { %7148 = vmatprep.mubr.msk.f32.mxu0 %vm8596_vm1, %v8597_v6  ;;  %7943 = vmatprep.mubr.msk.f32.mxu1 %vm8596_vm1, %v8597_v6  ;;  %v336_v59 = vld [vmem:[%s14486_s0 + $0xa28] sm:$0xff] }
  0xe1   :  { %v4851_v62 = vmax.f32 %v2208_v56, 0.0  ;;  %v5116_v63 = vmax.f32 %v3533_v58, 0.0  ;;  %v71_v58 = vld [vmem:[%s14486_s0 + $0x1e0] sm:$0xff] }
  0xe2   :  { %v2212_v0 = vpop.f32.mrb[2].mxu0  ;;  %v3537_v1 = vpop.f32.mrb[2].mxu1 }
  0xe3   :  { %5381 = vst.msk [vmem:[%s14487_s2] sm:$0xff] %vm5380_vm5, %v4851_v62  ;;  %5646 = vst.msk [vmem:[%s14487_s2 + $0x848] sm:$0xff] %vm5380_vm5, %v5116_v63  ;;  %v2213_v2 = vadd.f32 %v9265_v51, %v2212_v0  ;;  %v6991_v3 = vpop.f32.mrb[3].mxu0  ;;  %7149 = vmatmul.mubr.msk.f32.gmra.mrb[108].mxu0 %vm549_vm4, %v65_v60  ;;  %v3538_v4 = vadd.f32 %v9265_v51, %v3537_v1  ;;  %v7786_v5 = vpop.f32.mrb[3].mxu1  ;;  %7944 = vmatmul.mubr.msk.f32.gmra.mrb[108].mxu1 %vm549_vm4, %v330_v61 }
  0xe4   :  { %7151 = vmatprep.mubr.msk.f32.mxu0 %vm8596_vm1, %v8597_v6  ;;  %7946 = vmatprep.mubr.msk.f32.mxu1 %vm8596_vm1, %v8597_v6  ;;  %v337_v5 = vld [vmem:[%s14486_s0 + $0xa30] sm:$0xff] }
  0xe5   :  { %v4852_v9 = vmax.f32 %v2213_v2, 0.0  ;;  %v5117_v10 = vmax.f32 %v3538_v4, 0.0  ;;  %v72_v4 = vld [vmem:[%s14486_s0 + $0x1e8] sm:$0xff] }
  0xe6   :  { %v2217_v11 = vpop.f32.mrb[4].mxu0  ;;  %v3542_v12 = vpop.f32.mrb[4].mxu1 }
  0xe7   :  { %5382 = vst.msk [vmem:[%s14487_s2 + $0x8] sm:$0xff] %vm5380_vm5, %v4852_v9  ;;  %5647 = vst.msk [vmem:[%s14487_s2 + $0x850] sm:$0xff] %vm5380_vm5, %v5117_v10  ;;  %v2218_v13 = vadd.f32 %v9265_v51, %v2217_v11  ;;  %v6994_v14 = vpop.f32.mrb[5].mxu0  ;;  %7152 = vmatmul.mubr.msk.f32.gmra.mrb[110].mxu0 %vm549_vm4, %v66_v7  ;;  %v3543_v15 = vadd.f32 %v9265_v51, %v3542_v12  ;;  %v7789_v16 = vpop.f32.mrb[5].mxu1  ;;  %7947 = vmatmul.mubr.msk.f32.gmra.mrb[110].mxu1 %vm549_vm4, %v331_v8 }
  0xe8   :  { %7154 = vmatprep.mubr.msk.f32.mxu0 %vm8596_vm1, %v8597_v6  ;;  %7949 = vmatprep.mubr.msk.f32.mxu1 %vm8596_vm1, %v8597_v6  ;;  %v338_v16 = vld [vmem:[%s14486_s0 + $0xa38] sm:$0xff] }
  0xe9   :  { %v4853_v19 = vmax.f32 %v2218_v13, 0.0  ;;  %v5118_v20 = vmax.f32 %v3543_v15, 0.0  ;;  %v73_v15 = vld [vmem:[%s14486_s0 + $0x1f0] sm:$0xff] }
  0xea   :  { %v2222_v21 = vpop.f32.mrb[6].mxu0  ;;  %v3547_v22 = vpop.f32.mrb[6].mxu1 }
  0xeb   :  { %5383 = vst.msk [vmem:[%s14487_s2 + $0x10] sm:$0xff] %vm5380_vm5, %v4853_v19  ;;  %5648 = vst.msk [vmem:[%s14487_s2 + $0x858] sm:$0xff] %vm5380_vm5, %v5118_v20  ;;  %v2223_v23 = vadd.f32 %v9265_v51, %v2222_v21  ;;  %v6997_v24 = vpop.f32.mrb[7].mxu0  ;;  %7155 = vmatmul.mubr.msk.f32.gmra.mrb[112].mxu0 %vm549_vm4, %v67_v17  ;;  %v3548_v25 = vadd.f32 %v9265_v51, %v3547_v22  ;;  %v7792_v26 = vpop.f32.mrb[7].mxu1  ;;  %7950 = vmatmul.mubr.msk.f32.gmra.mrb[112].mxu1 %vm549_vm4, %v332_v18 }
  0xec   :  { %7157 = vmatprep.mubr.msk.f32.mxu0 %vm8596_vm1, %v8597_v6  ;;  %7952 = vmatprep.mubr.msk.f32.mxu1 %vm8596_vm1, %v8597_v6  ;;  %v339_v26 = vld [vmem:[%s14486_s0 + $0xa40] sm:$0xff] }
  0xed   :  { %v4854_v29 = vmax.f32 %v2223_v23, 0.0  ;;  %v5119_v30 = vmax.f32 %v3548_v25, 0.0  ;;  %v74_v25 = vld [vmem:[%s14486_s0 + $0x1f8] sm:$0xff] }
  0xee   :  { %v2227_v31 = vpop.f32.mrb[8].mxu0  ;;  %v3552_v32 = vpop.f32.mrb[8].mxu1 }
  0xef   :  { %5384 = vst.msk [vmem:[%s14487_s2 + $0x18] sm:$0xff] %vm5380_vm5, %v4854_v29  ;;  %5649 = vst.msk [vmem:[%s14487_s2 + $0x860] sm:$0xff] %vm5380_vm5, %v5119_v30  ;;  %v2228_v33 = vadd.f32 %v9265_v51, %v2227_v31  ;;  %v7000_v34 = vpop.f32.mrb[9].mxu0  ;;  %7158 = vmatmul.mubr.msk.f32.gmra.mrb[114].mxu0 %vm549_vm4, %v68_v27  ;;  %v3553_v35 = vadd.f32 %v9265_v51, %v3552_v32  ;;  %v7795_v36 = vpop.f32.mrb[9].mxu1  ;;  %7953 = vmatmul.mubr.msk.f32.gmra.mrb[114].mxu1 %vm549_vm4, %v333_v28 }
  0xf0   :  { %7160 = vmatprep.mubr.msk.f32.mxu0 %vm8596_vm1, %v8597_v6  ;;  %7955 = vmatprep.mubr.msk.f32.mxu1 %vm8596_vm1, %v8597_v6  ;;  %v340_v36 = vld [vmem:[%s14486_s0 + $0xa48] sm:$0xff] }
  0xf1   :  { %v4855_v39 = vmax.f32 %v2228_v33, 0.0  ;;  %v5120_v40 = vmax.f32 %v3553_v35, 0.0  ;;  %v75_v35 = vld [vmem:[%s14486_s0 + $0x200] sm:$0xff] }
  0xf2   :  { %v2232_v41 = vpop.f32.mrb[10].mxu0  ;;  %v3557_v42 = vpop.f32.mrb[10].mxu1 }
  0xf3   :  { %5385 = vst.msk [vmem:[%s14487_s2 + $0x20] sm:$0xff] %vm5380_vm5, %v4855_v39  ;;  %5650 = vst.msk [vmem:[%s14487_s2 + $0x868] sm:$0xff] %vm5380_vm5, %v5120_v40  ;;  %v2233_v43 = vadd.f32 %v9265_v51, %v2232_v41  ;;  %v7003_v44 = vpop.f32.mrb[11].mxu0  ;;  %7161 = vmatmul.mubr.msk.f32.gmra.mrb[116].mxu0 %vm549_vm4, %v69_v37  ;;  %v3558_v45 = vadd.f32 %v9265_v51, %v3557_v42  ;;  %v7798_v46 = vpop.f32.mrb[11].mxu1  ;;  %7956 = vmatmul.mubr.msk.f32.gmra.mrb[116].mxu1 %vm549_vm4, %v334_v38 }
  0xf4   :  { %7163 = vmatprep.mubr.msk.f32.mxu0 %vm8596_vm1, %v8597_v6  ;;  %7958 = vmatprep.mubr.msk.f32.mxu1 %vm8596_vm1, %v8597_v6  ;;  %v341_v46 = vld [vmem:[%s14486_s0 + $0xa50] sm:$0xff] }
  0xf5   :  { %v4856_v49 = vmax.f32 %v2233_v43, 0.0  ;;  %v5121_v50 = vmax.f32 %v3558_v45, 0.0  ;;  %v76_v45 = vld [vmem:[%s14486_s0 + $0x208] sm:$0xff] }
  0xf6   :  { %v2237_v52 = vpop.f32.mrb[12].mxu0  ;;  %v3562_v53 = vpop.f32.mrb[12].mxu1 }
  0xf7   :  { %5386 = vst.msk [vmem:[%s14487_s2 + $0x28] sm:$0xff] %vm5380_vm5, %v4856_v49  ;;  %5651 = vst.msk [vmem:[%s14487_s2 + $0x870] sm:$0xff] %vm5380_vm5, %v5121_v50  ;;  %v2238_v54 = vadd.f32 %v9265_v51, %v2237_v52  ;;  %v7006_v55 = vpop.f32.mrb[13].mxu0  ;;  %7164 = vmatmul.mubr.msk.f32.gmra.mrb[118].mxu0 %vm549_vm4, %v70_v47  ;;  %v3563_v56 = vadd.f32 %v9265_v51, %v3562_v53  ;;  %v7801_v57 = vpop.f32.mrb[13].mxu1  ;;  %7959 = vmatmul.mubr.msk.f32.gmra.mrb[118].mxu1 %vm549_vm4, %v335_v48 }
  0xf8   :  { %7166 = vmatprep.mubr.msk.f32.mxu0 %vm8596_vm1, %v8597_v6  ;;  %7961 = vmatprep.mubr.msk.f32.mxu1 %vm8596_vm1, %v8597_v6  ;;  %v342_v57 = vld [vmem:[%s14486_s0 + $0xa58] sm:$0xff] }
  0xf9   :  { %v4857_v60 = vmax.f32 %v2238_v54, 0.0  ;;  %v5122_v61 = vmax.f32 %v3563_v56, 0.0  ;;  %v77_v56 = vld [vmem:[%s14486_s0 + $0x210] sm:$0xff] }
  0xfa   :  { %v2242_v62 = vpop.f32.mrb[14].mxu0  ;;  %v3567_v63 = vpop.f32.mrb[14].mxu1 }
  0xfb   :  { %5387 = vst.msk [vmem:[%s14487_s2 + $0x30] sm:$0xff] %vm5380_vm5, %v4857_v60  ;;  %5652 = vst.msk [vmem:[%s14487_s2 + $0x878] sm:$0xff] %vm5380_vm5, %v5122_v61  ;;  %v2243_v0 = vadd.f32 %v9265_v51, %v2242_v62  ;;  %v7009_v1 = vpop.f32.mrb[15].mxu0  ;;  %7167 = vmatmul.mubr.msk.f32.gmra.mrb[120].mxu0 %vm549_vm4, %v71_v58  ;;  %v3568_v2 = vadd.f32 %v9265_v51, %v3567_v63  ;;  %v7804_v3 = vpop.f32.mrb[15].mxu1  ;;  %7962 = vmatmul.mubr.msk.f32.gmra.mrb[120].mxu1 %vm549_vm4, %v336_v59 }
  0xfc   :  { %7169 = vmatprep.mubr.msk.f32.mxu0 %vm8596_vm1, %v8597_v6  ;;  %7964 = vmatprep.mubr.msk.f32.mxu1 %vm8596_vm1, %v8597_v6  ;;  %v343_v3 = vld [vmem:[%s14486_s0 + $0xa60] sm:$0xff] }
  0xfd   :  { %v4858_v7 = vmax.f32 %v2243_v0, 0.0  ;;  %v5123_v8 = vmax.f32 %v3568_v2, 0.0  ;;  %v78_v2 = vld [vmem:[%s14486_s0 + $0x218] sm:$0xff] }
  0xfe   :  { %v2247_v9 = vpop.f32.mrb[16].mxu0  ;;  %v3572_v10 = vpop.f32.mrb[16].mxu1 }
  0xff   :  { %5388 = vst.msk [vmem:[%s14487_s2 + $0x38] sm:$0xff] %vm5380_vm5, %v4858_v7  ;;  %5653 = vst.msk [vmem:[%s14487_s2 + $0x880] sm:$0xff] %vm5380_vm5, %v5123_v8  ;;  %v2248_v11 = vadd.f32 %v9265_v51, %v2247_v9  ;;  %v7012_v12 = vpop.f32.mrb[17].mxu0  ;;  %7170 = vmatmul.mubr.msk.f32.gmra.mrb[122].mxu0 %vm549_vm4, %v72_v4  ;;  %v3573_v13 = vadd.f32 %v9265_v51, %v3572_v10  ;;  %v7807_v14 = vpop.f32.mrb[17].mxu1  ;;  %7965 = vmatmul.mubr.msk.f32.gmra.mrb[122].mxu1 %vm549_vm4, %v337_v5 }
 0x100   :  { %7172 = vmatprep.mubr.msk.f32.mxu0 %vm8596_vm1, %v8597_v6  ;;  %7967 = vmatprep.mubr.msk.f32.mxu1 %vm8596_vm1, %v8597_v6  ;;  %v344_v14 = vld [vmem:[%s14486_s0 + $0xa68] sm:$0xff] }
 0x101   :  { %v4859_v17 = vmax.f32 %v2248_v11, 0.0  ;;  %v5124_v18 = vmax.f32 %v3573_v13, 0.0  ;;  %v79_v13 = vld [vmem:[%s14486_s0 + $0x220] sm:$0xff] }
 0x102   :  { %v2252_v19 = vpop.f32.mrb[18].mxu0  ;;  %v3577_v20 = vpop.f32.mrb[18].mxu1 }
 0x103   :  { %5389 = vst.msk [vmem:[%s14487_s2 + $0x40] sm:$0xff] %vm5380_vm5, %v4859_v17  ;;  %5654 = vst.msk [vmem:[%s14487_s2 + $0x888] sm:$0xff] %vm5380_vm5, %v5124_v18  ;;  %v2253_v21 = vadd.f32 %v9265_v51, %v2252_v19  ;;  %v7015_v22 = vpop.f32.mrb[19].mxu0  ;;  %7173 = vmatmul.mubr.msk.f32.gmra.mrb[124].mxu0 %vm549_vm4, %v73_v15  ;;  %v3578_v23 = vadd.f32 %v9265_v51, %v3577_v20  ;;  %v7810_v24 = vpop.f32.mrb[19].mxu1  ;;  %7968 = vmatmul.mubr.msk.f32.gmra.mrb[124].mxu1 %vm549_vm4, %v338_v16 }
 0x104   :  { %7175 = vmatprep.mubr.msk.f32.mxu0 %vm8596_vm1, %v8597_v6  ;;  %7970 = vmatprep.mubr.msk.f32.mxu1 %vm8596_vm1, %v8597_v6  ;;  %v345_v24 = vld [vmem:[%s14486_s0 + $0xa70] sm:$0xff] }
 0x105   :  { %v4860_v27 = vmax.f32 %v2253_v21, 0.0  ;;  %v5125_v28 = vmax.f32 %v3578_v23, 0.0  ;;  %v80_v23 = vld [vmem:[%s14486_s0 + $0x228] sm:$0xff] }
 0x106   :  { %v2257_v29 = vpop.f32.mrb[20].mxu0  ;;  %v3582_v30 = vpop.f32.mrb[20].mxu1 }
 0x107   :  { %5390 = vst.msk [vmem:[%s14487_s2 + $0x48] sm:$0xff] %vm5380_vm5, %v4860_v27  ;;  %5655 = vst.msk [vmem:[%s14487_s2 + $0x890] sm:$0xff] %vm5380_vm5, %v5125_v28  ;;  %v2258_v31 = vadd.f32 %v9265_v51, %v2257_v29  ;;  %v7018_v32 = vpop.f32.mrb[21].mxu0  ;;  %7176 = vmatmul.mubr.msk.f32.gmra.mrb[126].mxu0 %vm549_vm4, %v74_v25  ;;  %v3583_v33 = vadd.f32 %v9265_v51, %v3582_v30  ;;  %v7813_v34 = vpop.f32.mrb[21].mxu1  ;;  %7971 = vmatmul.mubr.msk.f32.gmra.mrb[126].mxu1 %vm549_vm4, %v339_v26 }
 0x108   :  { %7178 = vmatprep.mubr.msk.f32.mxu0 %vm8596_vm1, %v8597_v6  ;;  %7973 = vmatprep.mubr.msk.f32.mxu1 %vm8596_vm1, %v8597_v6  ;;  %v346_v34 = vld [vmem:[%s14486_s0 + $0xa78] sm:$0xff] }
 0x109   :  { %v4861_v37 = vmax.f32 %v2258_v31, 0.0  ;;  %v5126_v38 = vmax.f32 %v3583_v33, 0.0  ;;  %v81_v33 = vld [vmem:[%s14486_s0 + $0x230] sm:$0xff] }
 0x10a   :  { %v2262_v39 = vpop.f32.mrb[22].mxu0  ;;  %v3587_v40 = vpop.f32.mrb[22].mxu1 }
 0x10b   :  { %5391 = vst.msk [vmem:[%s14487_s2 + $0x50] sm:$0xff] %vm5380_vm5, %v4861_v37  ;;  %5656 = vst.msk [vmem:[%s14487_s2 + $0x898] sm:$0xff] %vm5380_vm5, %v5126_v38  ;;  %v2263_v41 = vadd.f32 %v9265_v51, %v2262_v39  ;;  %v7021_v42 = vpop.f32.mrb[23].mxu0  ;;  %7179 = vmatmul.mubr.msk.f32.gmra.mrb[128].mxu0 %vm549_vm4, %v75_v35  ;;  %v3588_v43 = vadd.f32 %v9265_v51, %v3587_v40  ;;  %v7816_v44 = vpop.f32.mrb[23].mxu1  ;;  %7974 = vmatmul.mubr.msk.f32.gmra.mrb[128].mxu1 %vm549_vm4, %v340_v36 }
 0x10c   :  { %7181 = vmatprep.mubr.msk.f32.mxu0 %vm8596_vm1, %v8597_v6  ;;  %7976 = vmatprep.mubr.msk.f32.mxu1 %vm8596_vm1, %v8597_v6  ;;  %v347_v44 = vld [vmem:[%s14486_s0 + $0xa80] sm:$0xff] }
 0x10d   :  { %v4862_v47 = vmax.f32 %v2263_v41, 0.0  ;;  %v5127_v48 = vmax.f32 %v3588_v43, 0.0  ;;  %v82_v43 = vld [vmem:[%s14486_s0 + $0x238] sm:$0xff] }
 0x10e   :  { %v2267_v49 = vpop.f32.mrb[24].mxu0  ;;  %v3592_v50 = vpop.f32.mrb[24].mxu1 }
 0x10f   :  { %5392 = vst.msk [vmem:[%s14487_s2 + $0x58] sm:$0xff] %vm5380_vm5, %v4862_v47  ;;  %5657 = vst.msk [vmem:[%s14487_s2 + $0x8a0] sm:$0xff] %vm5380_vm5, %v5127_v48  ;;  %v2268_v52 = vadd.f32 %v9265_v51, %v2267_v49  ;;  %v7024_v53 = vpop.f32.mrb[25].mxu0  ;;  %7182 = vmatmul.mubr.msk.f32.gmra.mrb[130].mxu0 %vm549_vm4, %v76_v45  ;;  %v3593_v54 = vadd.f32 %v9265_v51, %v3592_v50  ;;  %v7819_v55 = vpop.f32.mrb[25].mxu1  ;;  %7977 = vmatmul.mubr.msk.f32.gmra.mrb[130].mxu1 %vm549_vm4, %v341_v46 }
 0x110   :  { %7184 = vmatprep.mubr.msk.f32.mxu0 %vm8596_vm1, %v8597_v6  ;;  %7979 = vmatprep.mubr.msk.f32.mxu1 %vm8596_vm1, %v8597_v6  ;;  %v348_v55 = vld [vmem:[%s14486_s0 + $0xa88] sm:$0xff] }
 0x111   :  { %v4863_v58 = vmax.f32 %v2268_v52, 0.0  ;;  %v5128_v59 = vmax.f32 %v3593_v54, 0.0  ;;  %v83_v54 = vld [vmem:[%s14486_s0 + $0x240] sm:$0xff] }
 0x112   :  { %v2272_v60 = vpop.f32.mrb[26].mxu0  ;;  %v3597_v61 = vpop.f32.mrb[26].mxu1 }
 0x113   :  { %5393 = vst.msk [vmem:[%s14487_s2 + $0x60] sm:$0xff] %vm5380_vm5, %v4863_v58  ;;  %5658 = vst.msk [vmem:[%s14487_s2 + $0x8a8] sm:$0xff] %vm5380_vm5, %v5128_v59  ;;  %v2273_v62 = vadd.f32 %v9265_v51, %v2272_v60  ;;  %v7027_v63 = vpop.f32.mrb[27].mxu0  ;;  %7185 = vmatmul.mubr.msk.f32.gmra.mrb[132].mxu0 %vm549_vm4, %v77_v56  ;;  %v3598_v0 = vadd.f32 %v9265_v51, %v3597_v61  ;;  %v7822_v1 = vpop.f32.mrb[27].mxu1  ;;  %7980 = vmatmul.mubr.msk.f32.gmra.mrb[132].mxu1 %vm549_vm4, %v342_v57 }
 0x114   :  { %7187 = vmatprep.mubr.msk.f32.mxu0 %vm8596_vm1, %v8597_v6  ;;  %7982 = vmatprep.mubr.msk.f32.mxu1 %vm8596_vm1, %v8597_v6  ;;  %v349_v1 = vld [vmem:[%s14486_s0 + $0xa90] sm:$0xff] }
 0x115   :  { %v4864_v4 = vmax.f32 %v2273_v62, 0.0  ;;  %v5129_v5 = vmax.f32 %v3598_v0, 0.0  ;;  %v84_v0 = vld [vmem:[%s14486_s0 + $0x248] sm:$0xff] }
 0x116   :  { %v2277_v7 = vpop.f32.mrb[28].mxu0  ;;  %v3602_v8 = vpop.f32.mrb[28].mxu1 }
 0x117   :  { %5394 = vst.msk [vmem:[%s14487_s2 + $0x68] sm:$0xff] %vm5380_vm5, %v4864_v4  ;;  %5659 = vst.msk [vmem:[%s14487_s2 + $0x8b0] sm:$0xff] %vm5380_vm5, %v5129_v5  ;;  %v2278_v9 = vadd.f32 %v9265_v51, %v2277_v7  ;;  %v7030_v10 = vpop.f32.mrb[29].mxu0  ;;  %7188 = vmatmul.mubr.msk.f32.gmra.mrb[134].mxu0 %vm549_vm4, %v78_v2  ;;  %v3603_v11 = vadd.f32 %v9265_v51, %v3602_v8  ;;  %v7825_v12 = vpop.f32.mrb[29].mxu1  ;;  %7983 = vmatmul.mubr.msk.f32.gmra.mrb[134].mxu1 %vm549_vm4, %v343_v3 }
 0x118   :  { %7190 = vmatprep.mubr.msk.f32.mxu0 %vm8596_vm1, %v8597_v6  ;;  %7985 = vmatprep.mubr.msk.f32.mxu1 %vm8596_vm1, %v8597_v6  ;;  %v350_v12 = vld [vmem:[%s14486_s0 + $0xa98] sm:$0xff] }
 0x119   :  { %v4865_v15 = vmax.f32 %v2278_v9, 0.0  ;;  %v5130_v16 = vmax.f32 %v3603_v11, 0.0  ;;  %v85_v11 = vld [vmem:[%s14486_s0 + $0x250] sm:$0xff] }
 0x11a   :  { %v2282_v17 = vpop.f32.mrb[30].mxu0  ;;  %v3607_v18 = vpop.f32.mrb[30].mxu1 }
 0x11b   :  { %5395 = vst.msk [vmem:[%s14487_s2 + $0x70] sm:$0xff] %vm5380_vm5, %v4865_v15  ;;  %5660 = vst.msk [vmem:[%s14487_s2 + $0x8b8] sm:$0xff] %vm5380_vm5, %v5130_v16  ;;  %v2283_v19 = vadd.f32 %v9265_v51, %v2282_v17  ;;  %v7033_v20 = vpop.f32.mrb[31].mxu0  ;;  %7191 = vmatmul.mubr.msk.f32.gmra.mrb[136].mxu0 %vm549_vm4, %v79_v13  ;;  %v3608_v21 = vadd.f32 %v9265_v51, %v3607_v18  ;;  %v7828_v22 = vpop.f32.mrb[31].mxu1  ;;  %7986 = vmatmul.mubr.msk.f32.gmra.mrb[136].mxu1 %vm549_vm4, %v344_v14 }
 0x11c   :  { %7193 = vmatprep.mubr.msk.f32.mxu0 %vm8596_vm1, %v8597_v6  ;;  %7988 = vmatprep.mubr.msk.f32.mxu1 %vm8596_vm1, %v8597_v6  ;;  %v351_v22 = vld [vmem:[%s14486_s0 + $0xaa0] sm:$0xff] }
 0x11d   :  { %v4866_v25 = vmax.f32 %v2283_v19, 0.0  ;;  %v5131_v26 = vmax.f32 %v3608_v21, 0.0  ;;  %v86_v21 = vld [vmem:[%s14486_s0 + $0x258] sm:$0xff] }
 0x11e   :  { %v2287_v27 = vpop.f32.mrb[32].mxu0  ;;  %v3612_v28 = vpop.f32.mrb[32].mxu1 }
 0x11f   :  { %5396 = vst.msk [vmem:[%s14487_s2 + $0x78] sm:$0xff] %vm5380_vm5, %v4866_v25  ;;  %5661 = vst.msk [vmem:[%s14487_s2 + $0x8c0] sm:$0xff] %vm5380_vm5, %v5131_v26  ;;  %v2288_v29 = vadd.f32 %v9265_v51, %v2287_v27  ;;  %v7036_v30 = vpop.f32.mrb[33].mxu0  ;;  %7194 = vmatmul.mubr.msk.f32.gmra.mrb[138].mxu0 %vm549_vm4, %v80_v23  ;;  %v3613_v31 = vadd.f32 %v9265_v51, %v3612_v28  ;;  %v7831_v32 = vpop.f32.mrb[33].mxu1  ;;  %7989 = vmatmul.mubr.msk.f32.gmra.mrb[138].mxu1 %vm549_vm4, %v345_v24 }
 0x120   :  { %7196 = vmatprep.mubr.msk.f32.mxu0 %vm8596_vm1, %v8597_v6  ;;  %7991 = vmatprep.mubr.msk.f32.mxu1 %vm8596_vm1, %v8597_v6  ;;  %v352_v32 = vld [vmem:[%s14486_s0 + $0xaa8] sm:$0xff] }
 0x121   :  { %v4867_v35 = vmax.f32 %v2288_v29, 0.0  ;;  %v5132_v36 = vmax.f32 %v3613_v31, 0.0  ;;  %v87_v31 = vld [vmem:[%s14486_s0 + $0x260] sm:$0xff] }
 0x122   :  { %v2292_v37 = vpop.f32.mrb[34].mxu0  ;;  %v3617_v38 = vpop.f32.mrb[34].mxu1 }
 0x123   :  { %5397 = vst.msk [vmem:[%s14487_s2 + $0x80] sm:$0xff] %vm5380_vm5, %v4867_v35  ;;  %5662 = vst.msk [vmem:[%s14487_s2 + $0x8c8] sm:$0xff] %vm5380_vm5, %v5132_v36  ;;  %v2293_v39 = vadd.f32 %v9265_v51, %v2292_v37  ;;  %v7039_v40 = vpop.f32.mrb[35].mxu0  ;;  %7197 = vmatmul.mubr.msk.f32.gmra.mrb[140].mxu0 %vm549_vm4, %v81_v33  ;;  %v3618_v41 = vadd.f32 %v9265_v51, %v3617_v38  ;;  %v7834_v42 = vpop.f32.mrb[35].mxu1  ;;  %7992 = vmatmul.mubr.msk.f32.gmra.mrb[140].mxu1 %vm549_vm4, %v346_v34 }
 0x124   :  { %7199 = vmatprep.mubr.msk.f32.mxu0 %vm8596_vm1, %v8597_v6  ;;  %7994 = vmatprep.mubr.msk.f32.mxu1 %vm8596_vm1, %v8597_v6  ;;  %v353_v42 = vld [vmem:[%s14486_s0 + $0xab0] sm:$0xff] }
 0x125   :  { %v4868_v45 = vmax.f32 %v2293_v39, 0.0  ;;  %v5133_v46 = vmax.f32 %v3618_v41, 0.0  ;;  %v88_v41 = vld [vmem:[%s14486_s0 + $0x268] sm:$0xff] }
 0x126   :  { %v2297_v47 = vpop.f32.mrb[36].mxu0  ;;  %v3622_v48 = vpop.f32.mrb[36].mxu1 }
 0x127   :  { %5398 = vst.msk [vmem:[%s14487_s2 + $0x88] sm:$0xff] %vm5380_vm5, %v4868_v45  ;;  %5663 = vst.msk [vmem:[%s14487_s2 + $0x8d0] sm:$0xff] %vm5380_vm5, %v5133_v46  ;;  %v2298_v49 = vadd.f32 %v9265_v51, %v2297_v47  ;;  %v7042_v50 = vpop.f32.mrb[37].mxu0  ;;  %7200 = vmatmul.mubr.msk.f32.gmra.mrb[142].mxu0 %vm549_vm4, %v82_v43  ;;  %v3623_v52 = vadd.f32 %v9265_v51, %v3622_v48  ;;  %v7837_v53 = vpop.f32.mrb[37].mxu1  ;;  %7995 = vmatmul.mubr.msk.f32.gmra.mrb[142].mxu1 %vm549_vm4, %v347_v44 }
 0x128   :  { %7202 = vmatprep.mubr.msk.f32.mxu0 %vm8596_vm1, %v8597_v6  ;;  %7997 = vmatprep.mubr.msk.f32.mxu1 %vm8596_vm1, %v8597_v6  ;;  %v354_v53 = vld [vmem:[%s14486_s0 + $0xab8] sm:$0xff] }
 0x129   :  { %v4869_v56 = vmax.f32 %v2298_v49, 0.0  ;;  %v5134_v57 = vmax.f32 %v3623_v52, 0.0  ;;  %v89_v52 = vld [vmem:[%s14486_s0 + $0x270] sm:$0xff] }
 0x12a   :  { %v2302_v58 = vpop.f32.mrb[38].mxu0  ;;  %v3627_v59 = vpop.f32.mrb[38].mxu1 }
 0x12b   :  { %5399 = vst.msk [vmem:[%s14487_s2 + $0x90] sm:$0xff] %vm5380_vm5, %v4869_v56  ;;  %5664 = vst.msk [vmem:[%s14487_s2 + $0x8d8] sm:$0xff] %vm5380_vm5, %v5134_v57  ;;  %v2303_v60 = vadd.f32 %v9265_v51, %v2302_v58  ;;  %v7045_v61 = vpop.f32.mrb[39].mxu0  ;;  %7203 = vmatmul.mubr.msk.f32.gmra.mrb[144].mxu0 %vm549_vm4, %v83_v54  ;;  %v3628_v62 = vadd.f32 %v9265_v51, %v3627_v59  ;;  %v7840_v63 = vpop.f32.mrb[39].mxu1  ;;  %7998 = vmatmul.mubr.msk.f32.gmra.mrb[144].mxu1 %vm549_vm4, %v348_v55 }
 0x12c   :  { %7205 = vmatprep.mubr.msk.f32.mxu0 %vm8596_vm1, %v8597_v6  ;;  %8000 = vmatprep.mubr.msk.f32.mxu1 %vm8596_vm1, %v8597_v6  ;;  %v355_v63 = vld [vmem:[%s14486_s0 + $0xac0] sm:$0xff] }
 0x12d   :  { %v4870_v2 = vmax.f32 %v2303_v60, 0.0  ;;  %v5135_v3 = vmax.f32 %v3628_v62, 0.0  ;;  %v90_v62 = vld [vmem:[%s14486_s0 + $0x278] sm:$0xff] }
 0x12e   :  { %v2307_v4 = vpop.f32.mrb[40].mxu0  ;;  %v3632_v5 = vpop.f32.mrb[40].mxu1 }
 0x12f   :  { %5400 = vst.msk [vmem:[%s14487_s2 + $0x98] sm:$0xff] %vm5380_vm5, %v4870_v2  ;;  %5665 = vst.msk [vmem:[%s14487_s2 + $0x8e0] sm:$0xff] %vm5380_vm5, %v5135_v3  ;;  %v2308_v7 = vadd.f32 %v9265_v51, %v2307_v4  ;;  %v7048_v8 = vpop.f32.mrb[41].mxu0  ;;  %7206 = vmatmul.mubr.msk.f32.gmra.mrb[146].mxu0 %vm549_vm4, %v84_v0  ;;  %v3633_v9 = vadd.f32 %v9265_v51, %v3632_v5  ;;  %v7843_v10 = vpop.f32.mrb[41].mxu1  ;;  %8001 = vmatmul.mubr.msk.f32.gmra.mrb[146].mxu1 %vm549_vm4, %v349_v1 }
 0x130   :  { %7208 = vmatprep.mubr.msk.f32.mxu0 %vm8596_vm1, %v8597_v6  ;;  %8003 = vmatprep.mubr.msk.f32.mxu1 %vm8596_vm1, %v8597_v6  ;;  %v356_v10 = vld [vmem:[%s14486_s0 + $0xac8] sm:$0xff] }
 0x131   :  { %v4871_v13 = vmax.f32 %v2308_v7, 0.0  ;;  %v5136_v14 = vmax.f32 %v3633_v9, 0.0  ;;  %v91_v9 = vld [vmem:[%s14486_s0 + $0x280] sm:$0xff] }
 0x132   :  { %v2312_v15 = vpop.f32.mrb[42].mxu0  ;;  %v3637_v16 = vpop.f32.mrb[42].mxu1 }
 0x133   :  { %5401 = vst.msk [vmem:[%s14487_s2 + $0xa0] sm:$0xff] %vm5380_vm5, %v4871_v13  ;;  %5666 = vst.msk [vmem:[%s14487_s2 + $0x8e8] sm:$0xff] %vm5380_vm5, %v5136_v14  ;;  %v2313_v17 = vadd.f32 %v9265_v51, %v2312_v15  ;;  %v7051_v18 = vpop.f32.mrb[43].mxu0  ;;  %7209 = vmatmul.mubr.msk.f32.gmra.mrb[148].mxu0 %vm549_vm4, %v85_v11  ;;  %v3638_v19 = vadd.f32 %v9265_v51, %v3637_v16  ;;  %v7846_v20 = vpop.f32.mrb[43].mxu1  ;;  %8004 = vmatmul.mubr.msk.f32.gmra.mrb[148].mxu1 %vm549_vm4, %v350_v12 }
 0x134   :  { %7211 = vmatprep.mubr.msk.f32.mxu0 %vm8596_vm1, %v8597_v6  ;;  %8006 = vmatprep.mubr.msk.f32.mxu1 %vm8596_vm1, %v8597_v6  ;;  %v357_v20 = vld [vmem:[%s14486_s0 + $0xad0] sm:$0xff] }
 0x135   :  { %v4872_v23 = vmax.f32 %v2313_v17, 0.0  ;;  %v5137_v24 = vmax.f32 %v3638_v19, 0.0  ;;  %v92_v19 = vld [vmem:[%s14486_s0 + $0x288] sm:$0xff] }
 0x136   :  { %v2317_v25 = vpop.f32.mrb[44].mxu0  ;;  %v3642_v26 = vpop.f32.mrb[44].mxu1 }
 0x137   :  { %5402 = vst.msk [vmem:[%s14487_s2 + $0xa8] sm:$0xff] %vm5380_vm5, %v4872_v23  ;;  %5667 = vst.msk [vmem:[%s14487_s2 + $0x8f0] sm:$0xff] %vm5380_vm5, %v5137_v24  ;;  %v2318_v27 = vadd.f32 %v9265_v51, %v2317_v25  ;;  %v7054_v28 = vpop.f32.mrb[45].mxu0  ;;  %7212 = vmatmul.mubr.msk.f32.gmra.mrb[150].mxu0 %vm549_vm4, %v86_v21  ;;  %v3643_v29 = vadd.f32 %v9265_v51, %v3642_v26  ;;  %v7849_v30 = vpop.f32.mrb[45].mxu1  ;;  %8007 = vmatmul.mubr.msk.f32.gmra.mrb[150].mxu1 %vm549_vm4, %v351_v22 }
 0x138   :  { %7214 = vmatprep.mubr.msk.f32.mxu0 %vm8596_vm1, %v8597_v6  ;;  %8009 = vmatprep.mubr.msk.f32.mxu1 %vm8596_vm1, %v8597_v6  ;;  %v358_v30 = vld [vmem:[%s14486_s0 + $0xad8] sm:$0xff] }
 0x139   :  { %v4873_v33 = vmax.f32 %v2318_v27, 0.0  ;;  %v5138_v34 = vmax.f32 %v3643_v29, 0.0  ;;  %v93_v29 = vld [vmem:[%s14486_s0 + $0x290] sm:$0xff] }
 0x13a   :  { %v2322_v35 = vpop.f32.mrb[46].mxu0  ;;  %v3647_v36 = vpop.f32.mrb[46].mxu1 }
 0x13b   :  { %5403 = vst.msk [vmem:[%s14487_s2 + $0xb0] sm:$0xff] %vm5380_vm5, %v4873_v33  ;;  %5668 = vst.msk [vmem:[%s14487_s2 + $0x8f8] sm:$0xff] %vm5380_vm5, %v5138_v34  ;;  %v2323_v37 = vadd.f32 %v9265_v51, %v2322_v35  ;;  %v7057_v38 = vpop.f32.mrb[47].mxu0  ;;  %7215 = vmatmul.mubr.msk.f32.gmra.mrb[152].mxu0 %vm549_vm4, %v87_v31  ;;  %v3648_v39 = vadd.f32 %v9265_v51, %v3647_v36  ;;  %v7852_v40 = vpop.f32.mrb[47].mxu1  ;;  %8010 = vmatmul.mubr.msk.f32.gmra.mrb[152].mxu1 %vm549_vm4, %v352_v32 }
 0x13c   :  { %7217 = vmatprep.mubr.msk.f32.mxu0 %vm8596_vm1, %v8597_v6  ;;  %8012 = vmatprep.mubr.msk.f32.mxu1 %vm8596_vm1, %v8597_v6  ;;  %v359_v40 = vld [vmem:[%s14486_s0 + $0xae0] sm:$0xff] }
 0x13d   :  { %v4874_v43 = vmax.f32 %v2323_v37, 0.0  ;;  %v5139_v44 = vmax.f32 %v3648_v39, 0.0  ;;  %v94_v39 = vld [vmem:[%s14486_s0 + $0x298] sm:$0xff] }
 0x13e   :  { %v2327_v45 = vpop.f32.mrb[48].mxu0  ;;  %v3652_v46 = vpop.f32.mrb[48].mxu1 }
 0x13f   :  { %5404 = vst.msk [vmem:[%s14487_s2 + $0xb8] sm:$0xff] %vm5380_vm5, %v4874_v43  ;;  %5669 = vst.msk [vmem:[%s14487_s2 + $0x900] sm:$0xff] %vm5380_vm5, %v5139_v44  ;;  %v2328_v47 = vadd.f32 %v9265_v51, %v2327_v45  ;;  %v7060_v48 = vpop.f32.mrb[49].mxu0  ;;  %7218 = vmatmul.mubr.msk.f32.gmra.mrb[154].mxu0 %vm549_vm4, %v88_v41  ;;  %v3653_v49 = vadd.f32 %v9265_v51, %v3652_v46  ;;  %v7855_v50 = vpop.f32.mrb[49].mxu1  ;;  %8013 = vmatmul.mubr.msk.f32.gmra.mrb[154].mxu1 %vm549_vm4, %v353_v42 }
 0x140   :  { %7220 = vmatprep.mubr.msk.f32.mxu0 %vm8596_vm1, %v8597_v6  ;;  %8015 = vmatprep.mubr.msk.f32.mxu1 %vm8596_vm1, %v8597_v6  ;;  %v360_v50 = vld [vmem:[%s14486_s0 + $0xae8] sm:$0xff] }
 0x141   :  { %v4875_v54 = vmax.f32 %v2328_v47, 0.0  ;;  %v5140_v55 = vmax.f32 %v3653_v49, 0.0  ;;  %v95_v49 = vld [vmem:[%s14486_s0 + $0x2a0] sm:$0xff] }
 0x142   :  { %v2332_v56 = vpop.f32.mrb[50].mxu0  ;;  %v3657_v57 = vpop.f32.mrb[50].mxu1 }
 0x143   :  { %5405 = vst.msk [vmem:[%s14487_s2 + $0xc0] sm:$0xff] %vm5380_vm5, %v4875_v54  ;;  %5670 = vst.msk [vmem:[%s14487_s2 + $0x908] sm:$0xff] %vm5380_vm5, %v5140_v55  ;;  %v2333_v58 = vadd.f32 %v9265_v51, %v2332_v56  ;;  %v7063_v59 = vpop.f32.mrb[51].mxu0  ;;  %7221 = vmatmul.mubr.msk.f32.gmra.mrb[156].mxu0 %vm549_vm4, %v89_v52  ;;  %v3658_v60 = vadd.f32 %v9265_v51, %v3657_v57  ;;  %v7858_v61 = vpop.f32.mrb[51].mxu1  ;;  %8016 = vmatmul.mubr.msk.f32.gmra.mrb[156].mxu1 %vm549_vm4, %v354_v53 }
 0x144   :  { %7223 = vmatprep.mubr.msk.f32.mxu0 %vm8596_vm1, %v8597_v6  ;;  %8018 = vmatprep.mubr.msk.f32.mxu1 %vm8596_vm1, %v8597_v6  ;;  %v361_v61 = vld [vmem:[%s14486_s0 + $0xaf0] sm:$0xff] }
 0x145   :  { %v4876_v0 = vmax.f32 %v2333_v58, 0.0  ;;  %v5141_v1 = vmax.f32 %v3658_v60, 0.0  ;;  %v96_v60 = vld [vmem:[%s14486_s0 + $0x2a8] sm:$0xff] }
 0x146   :  { %v2337_v2 = vpop.f32.mrb[52].mxu0  ;;  %v3662_v3 = vpop.f32.mrb[52].mxu1 }
 0x147   :  { %5406 = vst.msk [vmem:[%s14487_s2 + $0xc8] sm:$0xff] %vm5380_vm5, %v4876_v0  ;;  %5671 = vst.msk [vmem:[%s14487_s2 + $0x910] sm:$0xff] %vm5380_vm5, %v5141_v1  ;;  %v2338_v4 = vadd.f32 %v9265_v51, %v2337_v2  ;;  %v7066_v5 = vpop.f32.mrb[53].mxu0  ;;  %7224 = vmatmul.mubr.msk.f32.gmra.mrb[158].mxu0 %vm549_vm4, %v90_v62  ;;  %v3663_v7 = vadd.f32 %v9265_v51, %v3662_v3  ;;  %v7861_v8 = vpop.f32.mrb[53].mxu1  ;;  %8019 = vmatmul.mubr.msk.f32.gmra.mrb[158].mxu1 %vm549_vm4, %v355_v63  ;;  %v9984_v1 = vld [vmem:[%s14485_s1 + $0x19] ss:$0 sm:$0xff] }
 0x148   :  { %7226 = vmatprep.mubr.msk.f32.mxu0 %vm8596_vm1, %v8597_v6  ;;  %8021 = vmatprep.mubr.msk.f32.mxu1 %vm8596_vm1, %v8597_v6  ;;  %v362_v8 = vld [vmem:[%s14486_s0 + $0xaf8] sm:$0xff] }
 0x149   :  { %v4877_v11 = vmax.f32 %v2338_v4, 0.0  ;;  %v5142_v12 = vmax.f32 %v3663_v7, 0.0  ;;  %v97_v7 = vld [vmem:[%s14486_s0 + $0x2b0] sm:$0xff] }
 0x14a   :  { %v2342_v13 = vpop.f32.mrb[54].mxu0  ;;  %v3667_v14 = vpop.f32.mrb[54].mxu1 }
 0x14b   :  { %5407 = vst.msk [vmem:[%s14487_s2 + $0xd0] sm:$0xff] %vm5380_vm5, %v4877_v11  ;;  %5672 = vst.msk [vmem:[%s14487_s2 + $0x918] sm:$0xff] %vm5380_vm5, %v5142_v12  ;;  %v2343_v15 = vadd.f32 %v9265_v51, %v2342_v13  ;;  %v7069_v16 = vpop.f32.mrb[55].mxu0  ;;  %7227 = vmatmul.mubr.msk.f32.gmra.mrb[160].mxu0 %vm549_vm4, %v91_v9  ;;  %v3668_v17 = vadd.f32 %v9265_v51, %v3667_v14  ;;  %v7864_v18 = vpop.f32.mrb[55].mxu1  ;;  %8022 = vmatmul.mubr.msk.f32.gmra.mrb[160].mxu1 %vm549_vm4, %v356_v10 }
 0x14c   :  { %7229 = vmatprep.mubr.msk.f32.mxu0 %vm8596_vm1, %v8597_v6  ;;  %8024 = vmatprep.mubr.msk.f32.mxu1 %vm8596_vm1, %v8597_v6  ;;  %v363_v18 = vld [vmem:[%s14486_s0 + $0xb00] sm:$0xff] }
 0x14d   :  { %v4878_v21 = vmax.f32 %v2343_v15, 0.0  ;;  %v5143_v22 = vmax.f32 %v3668_v17, 0.0  ;;  %v98_v17 = vld [vmem:[%s14486_s0 + $0x2b8] sm:$0xff] }
 0x14e   :  { %v2347_v23 = vpop.f32.mrb[56].mxu0  ;;  %v3672_v24 = vpop.f32.mrb[56].mxu1 }
 0x14f   :  { %5408 = vst.msk [vmem:[%s14487_s2 + $0xd8] sm:$0xff] %vm5380_vm5, %v4878_v21  ;;  %5673 = vst.msk [vmem:[%s14487_s2 + $0x920] sm:$0xff] %vm5380_vm5, %v5143_v22  ;;  %v2348_v25 = vadd.f32 %v9265_v51, %v2347_v23  ;;  %v7072_v26 = vpop.f32.mrb[57].mxu0  ;;  %7230 = vmatmul.mubr.msk.f32.gmra.mrb[162].mxu0 %vm549_vm4, %v92_v19  ;;  %v3673_v27 = vadd.f32 %v9265_v51, %v3672_v24  ;;  %v7867_v28 = vpop.f32.mrb[57].mxu1  ;;  %8025 = vmatmul.mubr.msk.f32.gmra.mrb[162].mxu1 %vm549_vm4, %v357_v20 }
 0x150   :  { %7232 = vmatprep.mubr.msk.f32.mxu0 %vm8596_vm1, %v8597_v6  ;;  %8027 = vmatprep.mubr.msk.f32.mxu1 %vm8596_vm1, %v8597_v6  ;;  %v364_v28 = vld [vmem:[%s14486_s0 + $0xb08] sm:$0xff] }
 0x151   :  { %v4879_v31 = vmax.f32 %v2348_v25, 0.0  ;;  %v5144_v32 = vmax.f32 %v3673_v27, 0.0  ;;  %v99_v27 = vld [vmem:[%s14486_s0 + $0x2c0] sm:$0xff] }
 0x152   :  { %v2352_v33 = vpop.f32.mrb[58].mxu0  ;;  %v3677_v34 = vpop.f32.mrb[58].mxu1 }
 0x153   :  { %5409 = vst.msk [vmem:[%s14487_s2 + $0xe0] sm:$0xff] %vm5380_vm5, %v4879_v31  ;;  %5674 = vst.msk [vmem:[%s14487_s2 + $0x928] sm:$0xff] %vm5380_vm5, %v5144_v32  ;;  %v2353_v35 = vadd.f32 %v9265_v51, %v2352_v33  ;;  %v7075_v36 = vpop.f32.mrb[59].mxu0  ;;  %7233 = vmatmul.mubr.msk.f32.gmra.mrb[164].mxu0 %vm549_vm4, %v93_v29  ;;  %v3678_v37 = vadd.f32 %v9265_v51, %v3677_v34  ;;  %v7870_v38 = vpop.f32.mrb[59].mxu1  ;;  %8028 = vmatmul.mubr.msk.f32.gmra.mrb[164].mxu1 %vm549_vm4, %v358_v30 }
 0x154   :  { %7235 = vmatprep.mubr.msk.f32.mxu0 %vm8596_vm1, %v8597_v6  ;;  %8030 = vmatprep.mubr.msk.f32.mxu1 %vm8596_vm1, %v8597_v6  ;;  %v365_v38 = vld [vmem:[%s14486_s0 + $0xb10] sm:$0xff] }
 0x155   :  { %v4880_v41 = vmax.f32 %v2353_v35, 0.0  ;;  %v5145_v42 = vmax.f32 %v3678_v37, 0.0  ;;  %v100_v37 = vld [vmem:[%s14486_s0 + $0x2c8] sm:$0xff] }
 0x156   :  { %v2357_v43 = vpop.f32.mrb[60].mxu0  ;;  %v3682_v44 = vpop.f32.mrb[60].mxu1 }
 0x157   :  { %5410 = vst.msk [vmem:[%s14487_s2 + $0xe8] sm:$0xff] %vm5380_vm5, %v4880_v41  ;;  %5675 = vst.msk [vmem:[%s14487_s2 + $0x930] sm:$0xff] %vm5380_vm5, %v5145_v42  ;;  %v2358_v45 = vadd.f32 %v9265_v51, %v2357_v43  ;;  %v7078_v46 = vpop.f32.mrb[61].mxu0  ;;  %7236 = vmatmul.mubr.msk.f32.gmra.mrb[166].mxu0 %vm549_vm4, %v94_v39  ;;  %v3683_v47 = vadd.f32 %v9265_v51, %v3682_v44  ;;  %v7873_v48 = vpop.f32.mrb[61].mxu1  ;;  %8031 = vmatmul.mubr.msk.f32.gmra.mrb[166].mxu1 %vm549_vm4, %v359_v40 }
 0x158   :  { %7238 = vmatprep.mubr.msk.f32.mxu0 %vm8596_vm1, %v8597_v6  ;;  %8033 = vmatprep.mubr.msk.f32.mxu1 %vm8596_vm1, %v8597_v6  ;;  %v366_v48 = vld [vmem:[%s14486_s0 + $0xb18] sm:$0xff] }
 0x159   :  { %v4881_v52 = vmax.f32 %v2358_v45, 0.0  ;;  %v5146_v53 = vmax.f32 %v3683_v47, 0.0  ;;  %v101_v47 = vld [vmem:[%s14486_s0 + $0x2d0] sm:$0xff] }
 0x15a   :  { %v2362_v54 = vpop.f32.mrb[62].mxu0  ;;  %v3687_v55 = vpop.f32.mrb[62].mxu1 }
 0x15b   :  { %5411 = vst.msk [vmem:[%s14487_s2 + $0xf0] sm:$0xff] %vm5380_vm5, %v4881_v52  ;;  %5676 = vst.msk [vmem:[%s14487_s2 + $0x938] sm:$0xff] %vm5380_vm5, %v5146_v53  ;;  %v2363_v56 = vadd.f32 %v9265_v51, %v2362_v54  ;;  %v7081_v57 = vpop.f32.mrb[63].mxu0  ;;  %7239 = vmatmul.mubr.msk.f32.gmra.mrb[168].mxu0 %vm549_vm4, %v95_v49  ;;  %v3688_v58 = vadd.f32 %v9265_v51, %v3687_v55  ;;  %v7876_v59 = vpop.f32.mrb[63].mxu1  ;;  %8034 = vmatmul.mubr.msk.f32.gmra.mrb[168].mxu1 %vm549_vm4, %v360_v50 }
 0x15c   :  { %7241 = vmatprep.mubr.msk.f32.mxu0 %vm8596_vm1, %v8597_v6  ;;  %8036 = vmatprep.mubr.msk.f32.mxu1 %vm8596_vm1, %v8597_v6  ;;  %v367_v59 = vld [vmem:[%s14486_s0 + $0xb20] sm:$0xff] }
 0x15d   :  { %v4882_v62 = vmax.f32 %v2363_v56, 0.0  ;;  %v5147_v63 = vmax.f32 %v3688_v58, 0.0  ;;  %v102_v58 = vld [vmem:[%s14486_s0 + $0x2d8] sm:$0xff] }
 0x15e   :  { %v2367_v51 = vpop.f32.mrb[64].mxu0  ;;  %v3692_v0 = vpop.f32.mrb[64].mxu1 }
 0x15f   :  { %5412 = vst.msk [vmem:[%s14487_s2 + $0xf8] sm:$0xff] %vm5380_vm5, %v4882_v62  ;;  %5677 = vst.msk [vmem:[%s14487_s2 + $0x940] sm:$0xff] %vm5380_vm5, %v5147_v63  ;;  %v2368_v2 = vadd.f32 %v9984_v1, %v2367_v51  ;;  %v7084_v3 = vpop.f32.mrb[65].mxu0  ;;  %7242 = vmatmul.mubr.msk.f32.gmra.mrb[170].mxu0 %vm549_vm4, %v96_v60  ;;  %v3693_v4 = vadd.f32 %v9984_v1, %v3692_v0  ;;  %v7879_v5 = vpop.f32.mrb[65].mxu1  ;;  %8037 = vmatmul.mubr.msk.f32.gmra.mrb[170].mxu1 %vm549_vm4, %v361_v61 }
 0x160   :  { %7244 = vmatprep.mubr.msk.f32.mxu0 %vm8596_vm1, %v8597_v6  ;;  %8039 = vmatprep.mubr.msk.f32.mxu1 %vm8596_vm1, %v8597_v6  ;;  %v368_v5 = vld [vmem:[%s14486_s0 + $0xb28] sm:$0xff] }
 0x161   :  { %v4883_v9 = vmax.f32 %v2368_v2, 0.0  ;;  %v5148_v10 = vmax.f32 %v3693_v4, 0.0  ;;  %v103_v4 = vld [vmem:[%s14486_s0 + $0x2e0] sm:$0xff] }
 0x162   :  { %v2372_v11 = vpop.f32.mrb[66].mxu0  ;;  %v3697_v12 = vpop.f32.mrb[66].mxu1 }
 0x163   :  { %5413 = vst.msk [vmem:[%s14487_s2 + $0x100] sm:$0xff] %vm5380_vm5, %v4883_v9  ;;  %5678 = vst.msk [vmem:[%s14487_s2 + $0x948] sm:$0xff] %vm5380_vm5, %v5148_v10  ;;  %v2373_v13 = vadd.f32 %v9984_v1, %v2372_v11  ;;  %v7087_v14 = vpop.f32.mrb[67].mxu0  ;;  %7245 = vmatmul.mubr.msk.f32.gmra.mrb[172].mxu0 %vm549_vm4, %v97_v7  ;;  %v3698_v15 = vadd.f32 %v9984_v1, %v3697_v12  ;;  %v7882_v16 = vpop.f32.mrb[67].mxu1  ;;  %8040 = vmatmul.mubr.msk.f32.gmra.mrb[172].mxu1 %vm549_vm4, %v362_v8 }
 0x164   :  { %7247 = vmatprep.mubr.msk.f32.mxu0 %vm8596_vm1, %v8597_v6  ;;  %8042 = vmatprep.mubr.msk.f32.mxu1 %vm8596_vm1, %v8597_v6  ;;  %v369_v16 = vld [vmem:[%s14486_s0 + $0xb30] sm:$0xff] }
 0x165   :  { %v4884_v19 = vmax.f32 %v2373_v13, 0.0  ;;  %v5149_v20 = vmax.f32 %v3698_v15, 0.0  ;;  %v104_v15 = vld [vmem:[%s14486_s0 + $0x2e8] sm:$0xff] }
 0x166   :  { %v2377_v21 = vpop.f32.mrb[68].mxu0  ;;  %v3702_v22 = vpop.f32.mrb[68].mxu1 }
 0x167   :  { %5414 = vst.msk [vmem:[%s14487_s2 + $0x108] sm:$0xff] %vm5380_vm5, %v4884_v19  ;;  %5679 = vst.msk [vmem:[%s14487_s2 + $0x950] sm:$0xff] %vm5380_vm5, %v5149_v20  ;;  %v2378_v23 = vadd.f32 %v9984_v1, %v2377_v21  ;;  %v7090_v24 = vpop.f32.mrb[69].mxu0  ;;  %7248 = vmatmul.mubr.msk.f32.gmra.mrb[174].mxu0 %vm549_vm4, %v98_v17  ;;  %v3703_v25 = vadd.f32 %v9984_v1, %v3702_v22  ;;  %v7885_v26 = vpop.f32.mrb[69].mxu1  ;;  %8043 = vmatmul.mubr.msk.f32.gmra.mrb[174].mxu1 %vm549_vm4, %v363_v18 }
 0x168   :  { %7250 = vmatprep.mubr.msk.f32.mxu0 %vm8596_vm1, %v8597_v6  ;;  %8045 = vmatprep.mubr.msk.f32.mxu1 %vm8596_vm1, %v8597_v6  ;;  %v370_v26 = vld [vmem:[%s14486_s0 + $0xb38] sm:$0xff] }
 0x169   :  { %v4885_v29 = vmax.f32 %v2378_v23, 0.0  ;;  %v5150_v30 = vmax.f32 %v3703_v25, 0.0  ;;  %v105_v25 = vld [vmem:[%s14486_s0 + $0x2f0] sm:$0xff] }
 0x16a   :  { %v2382_v31 = vpop.f32.mrb[70].mxu0  ;;  %v3707_v32 = vpop.f32.mrb[70].mxu1 }
 0x16b   :  { %5415 = vst.msk [vmem:[%s14487_s2 + $0x110] sm:$0xff] %vm5380_vm5, %v4885_v29  ;;  %5680 = vst.msk [vmem:[%s14487_s2 + $0x958] sm:$0xff] %vm5380_vm5, %v5150_v30  ;;  %v2383_v33 = vadd.f32 %v9984_v1, %v2382_v31  ;;  %v7093_v34 = vpop.f32.mrb[71].mxu0  ;;  %7251 = vmatmul.mubr.msk.f32.gmra.mrb[176].mxu0 %vm549_vm4, %v99_v27  ;;  %v3708_v35 = vadd.f32 %v9984_v1, %v3707_v32  ;;  %v7888_v36 = vpop.f32.mrb[71].mxu1  ;;  %8046 = vmatmul.mubr.msk.f32.gmra.mrb[176].mxu1 %vm549_vm4, %v364_v28 }
 0x16c   :  { %7253 = vmatprep.mubr.msk.f32.mxu0 %vm8596_vm1, %v8597_v6  ;;  %8048 = vmatprep.mubr.msk.f32.mxu1 %vm8596_vm1, %v8597_v6  ;;  %v371_v36 = vld [vmem:[%s14486_s0 + $0xb40] sm:$0xff] }
 0x16d   :  { %v4886_v39 = vmax.f32 %v2383_v33, 0.0  ;;  %v5151_v40 = vmax.f32 %v3708_v35, 0.0  ;;  %v106_v35 = vld [vmem:[%s14486_s0 + $0x2f8] sm:$0xff] }
 0x16e   :  { %v2387_v41 = vpop.f32.mrb[72].mxu0  ;;  %v3712_v42 = vpop.f32.mrb[72].mxu1 }
 0x16f   :  { %5416 = vst.msk [vmem:[%s14487_s2 + $0x118] sm:$0xff] %vm5380_vm5, %v4886_v39  ;;  %5681 = vst.msk [vmem:[%s14487_s2 + $0x960] sm:$0xff] %vm5380_vm5, %v5151_v40  ;;  %v2388_v43 = vadd.f32 %v9984_v1, %v2387_v41  ;;  %v7096_v44 = vpop.f32.mrb[73].mxu0  ;;  %7254 = vmatmul.mubr.msk.f32.gmra.mrb[178].mxu0 %vm549_vm4, %v100_v37  ;;  %v3713_v45 = vadd.f32 %v9984_v1, %v3712_v42  ;;  %v7891_v46 = vpop.f32.mrb[73].mxu1  ;;  %8049 = vmatmul.mubr.msk.f32.gmra.mrb[178].mxu1 %vm549_vm4, %v365_v38 }
 0x170   :  { %7256 = vmatprep.mubr.msk.f32.mxu0 %vm8596_vm1, %v8597_v6  ;;  %8051 = vmatprep.mubr.msk.f32.mxu1 %vm8596_vm1, %v8597_v6  ;;  %v372_v46 = vld [vmem:[%s14486_s0 + $0xb48] sm:$0xff] }
 0x171   :  { %v4887_v49 = vmax.f32 %v2388_v43, 0.0  ;;  %v5152_v50 = vmax.f32 %v3713_v45, 0.0  ;;  %v107_v45 = vld [vmem:[%s14486_s0 + $0x300] sm:$0xff] }
 0x172   :  { %v2392_v52 = vpop.f32.mrb[74].mxu0  ;;  %v3717_v53 = vpop.f32.mrb[74].mxu1 }
 0x173   :  { %5417 = vst.msk [vmem:[%s14487_s2 + $0x120] sm:$0xff] %vm5380_vm5, %v4887_v49  ;;  %5682 = vst.msk [vmem:[%s14487_s2 + $0x968] sm:$0xff] %vm5380_vm5, %v5152_v50  ;;  %v2393_v54 = vadd.f32 %v9984_v1, %v2392_v52  ;;  %v7099_v55 = vpop.f32.mrb[75].mxu0  ;;  %7257 = vmatmul.mubr.msk.f32.gmra.mrb[180].mxu0 %vm549_vm4, %v101_v47  ;;  %v3718_v56 = vadd.f32 %v9984_v1, %v3717_v53  ;;  %v7894_v57 = vpop.f32.mrb[75].mxu1  ;;  %8052 = vmatmul.mubr.msk.f32.gmra.mrb[180].mxu1 %vm549_vm4, %v366_v48 }
 0x174   :  { %7259 = vmatprep.mubr.msk.f32.mxu0 %vm8596_vm1, %v8597_v6  ;;  %8054 = vmatprep.mubr.msk.f32.mxu1 %vm8596_vm1, %v8597_v6  ;;  %v373_v57 = vld [vmem:[%s14486_s0 + $0xb50] sm:$0xff] }
 0x175   :  { %v4888_v60 = vmax.f32 %v2393_v54, 0.0  ;;  %v5153_v61 = vmax.f32 %v3718_v56, 0.0  ;;  %v108_v56 = vld [vmem:[%s14486_s0 + $0x308] sm:$0xff] }
 0x176   :  { %v2397_v62 = vpop.f32.mrb[76].mxu0  ;;  %v3722_v63 = vpop.f32.mrb[76].mxu1 }
 0x177   :  { %5418 = vst.msk [vmem:[%s14487_s2 + $0x128] sm:$0xff] %vm5380_vm5, %v4888_v60  ;;  %5683 = vst.msk [vmem:[%s14487_s2 + $0x970] sm:$0xff] %vm5380_vm5, %v5153_v61  ;;  %v2398_v51 = vadd.f32 %v9984_v1, %v2397_v62  ;;  %v7102_v0 = vpop.f32.mrb[77].mxu0  ;;  %7260 = vmatmul.mubr.msk.f32.gmra.mrb[182].mxu0 %vm549_vm4, %v102_v58  ;;  %v3723_v2 = vadd.f32 %v9984_v1, %v3722_v63  ;;  %v7897_v3 = vpop.f32.mrb[77].mxu1  ;;  %8055 = vmatmul.mubr.msk.f32.gmra.mrb[182].mxu1 %vm549_vm4, %v367_v59 }
 0x178   :  { %7262 = vmatprep.mubr.msk.f32.mxu0 %vm8596_vm1, %v8597_v6  ;;  %8057 = vmatprep.mubr.msk.f32.mxu1 %vm8596_vm1, %v8597_v6  ;;  %v374_v3 = vld [vmem:[%s14486_s0 + $0xb58] sm:$0xff] }
 0x179   :  { %v4889_v7 = vmax.f32 %v2398_v51, 0.0  ;;  %v5154_v8 = vmax.f32 %v3723_v2, 0.0  ;;  %v109_v2 = vld [vmem:[%s14486_s0 + $0x310] sm:$0xff] }
 0x17a   :  { %v2402_v9 = vpop.f32.mrb[78].mxu0  ;;  %v3727_v10 = vpop.f32.mrb[78].mxu1 }
 0x17b   :  { %5419 = vst.msk [vmem:[%s14487_s2 + $0x130] sm:$0xff] %vm5380_vm5, %v4889_v7  ;;  %5684 = vst.msk [vmem:[%s14487_s2 + $0x978] sm:$0xff] %vm5380_vm5, %v5154_v8  ;;  %v2403_v11 = vadd.f32 %v9984_v1, %v2402_v9  ;;  %v7105_v12 = vpop.f32.mrb[79].mxu0  ;;  %7263 = vmatmul.mubr.msk.f32.gmra.mrb[184].mxu0 %vm549_vm4, %v103_v4  ;;  %v3728_v13 = vadd.f32 %v9984_v1, %v3727_v10  ;;  %v7900_v14 = vpop.f32.mrb[79].mxu1  ;;  %8058 = vmatmul.mubr.msk.f32.gmra.mrb[184].mxu1 %vm549_vm4, %v368_v5 }
 0x17c   :  { %7265 = vmatprep.mubr.msk.f32.mxu0 %vm8596_vm1, %v8597_v6  ;;  %8060 = vmatprep.mubr.msk.f32.mxu1 %vm8596_vm1, %v8597_v6  ;;  %v375_v14 = vld [vmem:[%s14486_s0 + $0xb60] sm:$0xff] }
 0x17d   :  { %v4890_v17 = vmax.f32 %v2403_v11, 0.0  ;;  %v5155_v18 = vmax.f32 %v3728_v13, 0.0  ;;  %v110_v13 = vld [vmem:[%s14486_s0 + $0x318] sm:$0xff] }
 0x17e   :  { %v2407_v19 = vpop.f32.mrb[80].mxu0  ;;  %v3732_v20 = vpop.f32.mrb[80].mxu1 }
 0x17f   :  { %5420 = vst.msk [vmem:[%s14487_s2 + $0x138] sm:$0xff] %vm5380_vm5, %v4890_v17  ;;  %5685 = vst.msk [vmem:[%s14487_s2 + $0x980] sm:$0xff] %vm5380_vm5, %v5155_v18  ;;  %v2408_v21 = vadd.f32 %v9984_v1, %v2407_v19  ;;  %v7108_v22 = vpop.f32.mrb[81].mxu0  ;;  %7266 = vmatmul.mubr.msk.f32.gmra.mrb[186].mxu0 %vm549_vm4, %v104_v15  ;;  %v3733_v23 = vadd.f32 %v9984_v1, %v3732_v20  ;;  %v7903_v24 = vpop.f32.mrb[81].mxu1  ;;  %8061 = vmatmul.mubr.msk.f32.gmra.mrb[186].mxu1 %vm549_vm4, %v369_v16 }
 0x180   :  { %7268 = vmatprep.mubr.msk.f32.mxu0 %vm8596_vm1, %v8597_v6  ;;  %8063 = vmatprep.mubr.msk.f32.mxu1 %vm8596_vm1, %v8597_v6  ;;  %v376_v24 = vld [vmem:[%s14486_s0 + $0xb68] sm:$0xff] }
 0x181   :  { %v4891_v27 = vmax.f32 %v2408_v21, 0.0  ;;  %v5156_v28 = vmax.f32 %v3733_v23, 0.0  ;;  %v111_v23 = vld [vmem:[%s14486_s0 + $0x320] sm:$0xff] }
 0x182   :  { %v2412_v29 = vpop.f32.mrb[82].mxu0  ;;  %v3737_v30 = vpop.f32.mrb[82].mxu1 }
 0x183   :  { %5421 = vst.msk [vmem:[%s14487_s2 + $0x140] sm:$0xff] %vm5380_vm5, %v4891_v27  ;;  %5686 = vst.msk [vmem:[%s14487_s2 + $0x988] sm:$0xff] %vm5380_vm5, %v5156_v28  ;;  %v2413_v31 = vadd.f32 %v9984_v1, %v2412_v29  ;;  %v7111_v32 = vpop.f32.mrb[83].mxu0  ;;  %7269 = vmatmul.mubr.msk.f32.gmra.mrb[188].mxu0 %vm549_vm4, %v105_v25  ;;  %v3738_v33 = vadd.f32 %v9984_v1, %v3737_v30  ;;  %v7906_v34 = vpop.f32.mrb[83].mxu1  ;;  %8064 = vmatmul.mubr.msk.f32.gmra.mrb[188].mxu1 %vm549_vm4, %v370_v26 }
 0x184   :  { %7271 = vmatprep.mubr.msk.f32.mxu0 %vm8596_vm1, %v8597_v6  ;;  %8066 = vmatprep.mubr.msk.f32.mxu1 %vm8596_vm1, %v8597_v6  ;;  %v377_v34 = vld [vmem:[%s14486_s0 + $0xb70] sm:$0xff] }
 0x185   :  { %v4892_v37 = vmax.f32 %v2413_v31, 0.0  ;;  %v5157_v38 = vmax.f32 %v3738_v33, 0.0  ;;  %v112_v33 = vld [vmem:[%s14486_s0 + $0x328] sm:$0xff] }
 0x186   :  { %v2417_v39 = vpop.f32.mrb[84].mxu0  ;;  %v3742_v40 = vpop.f32.mrb[84].mxu1 }
 0x187   :  { %5422 = vst.msk [vmem:[%s14487_s2 + $0x148] sm:$0xff] %vm5380_vm5, %v4892_v37  ;;  %5687 = vst.msk [vmem:[%s14487_s2 + $0x990] sm:$0xff] %vm5380_vm5, %v5157_v38  ;;  %v2418_v41 = vadd.f32 %v9984_v1, %v2417_v39  ;;  %v7114_v42 = vpop.f32.mrb[85].mxu0  ;;  %7272 = vmatmul.mubr.msk.f32.gmra.mrb[190].mxu0 %vm549_vm4, %v106_v35  ;;  %v3743_v43 = vadd.f32 %v9984_v1, %v3742_v40  ;;  %v7909_v44 = vpop.f32.mrb[85].mxu1  ;;  %8067 = vmatmul.mubr.msk.f32.gmra.mrb[190].mxu1 %vm549_vm4, %v371_v36 }
 0x188   :  { %7274 = vmatprep.mubr.msk.f32.mxu0 %vm8596_vm1, %v8597_v6  ;;  %8069 = vmatprep.mubr.msk.f32.mxu1 %vm8596_vm1, %v8597_v6  ;;  %v378_v44 = vld [vmem:[%s14486_s0 + $0xb78] sm:$0xff] }
 0x189   :  { %v4893_v47 = vmax.f32 %v2418_v41, 0.0  ;;  %v5158_v48 = vmax.f32 %v3743_v43, 0.0  ;;  %v113_v43 = vld [vmem:[%s14486_s0 + $0x330] sm:$0xff] }
 0x18a   :  { %v2422_v49 = vpop.f32.mrb[86].mxu0  ;;  %v3747_v50 = vpop.f32.mrb[86].mxu1 }
 0x18b   :  { %5423 = vst.msk [vmem:[%s14487_s2 + $0x150] sm:$0xff] %vm5380_vm5, %v4893_v47  ;;  %5688 = vst.msk [vmem:[%s14487_s2 + $0x998] sm:$0xff] %vm5380_vm5, %v5158_v48  ;;  %v2423_v52 = vadd.f32 %v9984_v1, %v2422_v49  ;;  %v7117_v53 = vpop.f32.mrb[87].mxu0  ;;  %7275 = vmatmul.mubr.msk.f32.gmra.mrb[192].mxu0 %vm549_vm4, %v107_v45  ;;  %v3748_v54 = vadd.f32 %v9984_v1, %v3747_v50  ;;  %v7912_v55 = vpop.f32.mrb[87].mxu1  ;;  %8070 = vmatmul.mubr.msk.f32.gmra.mrb[192].mxu1 %vm549_vm4, %v372_v46 }
 0x18c   :  { %7277 = vmatprep.mubr.msk.f32.mxu0 %vm8596_vm1, %v8597_v6  ;;  %8072 = vmatprep.mubr.msk.f32.mxu1 %vm8596_vm1, %v8597_v6  ;;  %v379_v55 = vld [vmem:[%s14486_s0 + $0xb80] sm:$0xff] }
 0x18d   :  { %v4894_v58 = vmax.f32 %v2423_v52, 0.0  ;;  %v5159_v59 = vmax.f32 %v3748_v54, 0.0  ;;  %v114_v54 = vld [vmem:[%s14486_s0 + $0x338] sm:$0xff] }
 0x18e   :  { %v2427_v60 = vpop.f32.mrb[88].mxu0  ;;  %v3752_v61 = vpop.f32.mrb[88].mxu1 }
 0x18f   :  { %5424 = vst.msk [vmem:[%s14487_s2 + $0x158] sm:$0xff] %vm5380_vm5, %v4894_v58  ;;  %5689 = vst.msk [vmem:[%s14487_s2 + $0x9a0] sm:$0xff] %vm5380_vm5, %v5159_v59  ;;  %v2428_v62 = vadd.f32 %v9984_v1, %v2427_v60  ;;  %v7120_v63 = vpop.f32.mrb[89].mxu0  ;;  %7278 = vmatmul.mubr.msk.f32.gmra.mrb[194].mxu0 %vm549_vm4, %v108_v56  ;;  %v3753_v51 = vadd.f32 %v9984_v1, %v3752_v61  ;;  %v7915_v0 = vpop.f32.mrb[89].mxu1  ;;  %8073 = vmatmul.mubr.msk.f32.gmra.mrb[194].mxu1 %vm549_vm4, %v373_v57 }
 0x190   :  { %7280 = vmatprep.mubr.msk.f32.mxu0 %vm8596_vm1, %v8597_v6  ;;  %8075 = vmatprep.mubr.msk.f32.mxu1 %vm8596_vm1, %v8597_v6  ;;  %v380_v0 = vld [vmem:[%s14486_s0 + $0xb88] sm:$0xff] }
 0x191   :  { %v4895_v4 = vmax.f32 %v2428_v62, 0.0  ;;  %v5160_v5 = vmax.f32 %v3753_v51, 0.0  ;;  %v115_v51 = vld [vmem:[%s14486_s0 + $0x340] sm:$0xff] }
 0x192   :  { %v2432_v7 = vpop.f32.mrb[90].mxu0  ;;  %v3757_v8 = vpop.f32.mrb[90].mxu1 }
 0x193   :  { %5425 = vst.msk [vmem:[%s14487_s2 + $0x160] sm:$0xff] %vm5380_vm5, %v4895_v4  ;;  %5690 = vst.msk [vmem:[%s14487_s2 + $0x9a8] sm:$0xff] %vm5380_vm5, %v5160_v5  ;;  %v2433_v9 = vadd.f32 %v9984_v1, %v2432_v7  ;;  %v7123_v10 = vpop.f32.mrb[91].mxu0  ;;  %7281 = vmatmul.mubr.msk.f32.gmra.mrb[196].mxu0 %vm549_vm4, %v109_v2  ;;  %v3758_v11 = vadd.f32 %v9984_v1, %v3757_v8  ;;  %v7918_v12 = vpop.f32.mrb[91].mxu1  ;;  %8076 = vmatmul.mubr.msk.f32.gmra.mrb[196].mxu1 %vm549_vm4, %v374_v3 }
 0x194   :  { %7283 = vmatprep.mubr.msk.f32.mxu0 %vm8596_vm1, %v8597_v6  ;;  %8078 = vmatprep.mubr.msk.f32.mxu1 %vm8596_vm1, %v8597_v6  ;;  %v381_v12 = vld [vmem:[%s14486_s0 + $0xb90] sm:$0xff] }
 0x195   :  { %v4896_v15 = vmax.f32 %v2433_v9, 0.0  ;;  %v5161_v16 = vmax.f32 %v3758_v11, 0.0  ;;  %v116_v11 = vld [vmem:[%s14486_s0 + $0x348] sm:$0xff] }
 0x196   :  { %v2437_v17 = vpop.f32.mrb[92].mxu0  ;;  %v3762_v18 = vpop.f32.mrb[92].mxu1 }
 0x197   :  { %5426 = vst.msk [vmem:[%s14487_s2 + $0x168] sm:$0xff] %vm5380_vm5, %v4896_v15  ;;  %5691 = vst.msk [vmem:[%s14487_s2 + $0x9b0] sm:$0xff] %vm5380_vm5, %v5161_v16  ;;  %v2438_v19 = vadd.f32 %v9984_v1, %v2437_v17  ;;  %v7126_v20 = vpop.f32.mrb[93].mxu0  ;;  %7284 = vmatmul.mubr.msk.f32.gmra.mrb[198].mxu0 %vm549_vm4, %v110_v13  ;;  %v3763_v21 = vadd.f32 %v9984_v1, %v3762_v18  ;;  %v7921_v22 = vpop.f32.mrb[93].mxu1  ;;  %8079 = vmatmul.mubr.msk.f32.gmra.mrb[198].mxu1 %vm549_vm4, %v375_v14 }
 0x198   :  { %7286 = vmatprep.mubr.msk.f32.mxu0 %vm8596_vm1, %v8597_v6  ;;  %8081 = vmatprep.mubr.msk.f32.mxu1 %vm8596_vm1, %v8597_v6  ;;  %v382_v22 = vld [vmem:[%s14486_s0 + $0xb98] sm:$0xff] }
 0x199   :  { %v4897_v25 = vmax.f32 %v2438_v19, 0.0  ;;  %v5162_v26 = vmax.f32 %v3763_v21, 0.0  ;;  %v117_v21 = vld [vmem:[%s14486_s0 + $0x350] sm:$0xff] }
 0x19a   :  { %v2442_v27 = vpop.f32.mrb[94].mxu0  ;;  %v3767_v28 = vpop.f32.mrb[94].mxu1 }
 0x19b   :  { %5427 = vst.msk [vmem:[%s14487_s2 + $0x170] sm:$0xff] %vm5380_vm5, %v4897_v25  ;;  %5692 = vst.msk [vmem:[%s14487_s2 + $0x9b8] sm:$0xff] %vm5380_vm5, %v5162_v26  ;;  %v2443_v29 = vadd.f32 %v9984_v1, %v2442_v27  ;;  %v7129_v30 = vpop.f32.mrb[95].mxu0  ;;  %7287 = vmatmul.mubr.msk.f32.gmra.mrb[200].mxu0 %vm549_vm4, %v111_v23  ;;  %v3768_v31 = vadd.f32 %v9984_v1, %v3767_v28  ;;  %v7924_v32 = vpop.f32.mrb[95].mxu1  ;;  %8082 = vmatmul.mubr.msk.f32.gmra.mrb[200].mxu1 %vm549_vm4, %v376_v24 }
 0x19c   :  { %7289 = vmatprep.mubr.msk.f32.mxu0 %vm8596_vm1, %v8597_v6  ;;  %8084 = vmatprep.mubr.msk.f32.mxu1 %vm8596_vm1, %v8597_v6  ;;  %v383_v32 = vld [vmem:[%s14486_s0 + $0xba0] sm:$0xff] }
 0x19d   :  { %v4898_v35 = vmax.f32 %v2443_v29, 0.0  ;;  %v5163_v36 = vmax.f32 %v3768_v31, 0.0  ;;  %v118_v31 = vld [vmem:[%s14486_s0 + $0x358] sm:$0xff] }
 0x19e   :  { %v2447_v37 = vpop.f32.mrb[96].mxu0  ;;  %v3772_v38 = vpop.f32.mrb[96].mxu1 }
 0x19f   :  { %5428 = vst.msk [vmem:[%s14487_s2 + $0x178] sm:$0xff] %vm5380_vm5, %v4898_v35  ;;  %5693 = vst.msk [vmem:[%s14487_s2 + $0x9c0] sm:$0xff] %vm5380_vm5, %v5163_v36  ;;  %v2448_v39 = vadd.f32 %v9984_v1, %v2447_v37  ;;  %v7132_v40 = vpop.f32.mrb[97].mxu0  ;;  %7290 = vmatmul.mubr.msk.f32.gmra.mrb[202].mxu0 %vm549_vm4, %v112_v33  ;;  %v3773_v41 = vadd.f32 %v9984_v1, %v3772_v38  ;;  %v7927_v42 = vpop.f32.mrb[97].mxu1  ;;  %8085 = vmatmul.mubr.msk.f32.gmra.mrb[202].mxu1 %vm549_vm4, %v377_v34 }
 0x1a0   :  { %7292 = vmatprep.mubr.msk.f32.mxu0 %vm8596_vm1, %v8597_v6  ;;  %8087 = vmatprep.mubr.msk.f32.mxu1 %vm8596_vm1, %v8597_v6  ;;  %v384_v42 = vld [vmem:[%s14486_s0 + $0xba8] sm:$0xff] }
 0x1a1   :  { %v4899_v45 = vmax.f32 %v2448_v39, 0.0  ;;  %v5164_v46 = vmax.f32 %v3773_v41, 0.0  ;;  %v119_v41 = vld [vmem:[%s14486_s0 + $0x360] sm:$0xff] }
 0x1a2   :  { %v2452_v47 = vpop.f32.mrb[98].mxu0  ;;  %v3777_v48 = vpop.f32.mrb[98].mxu1 }
 0x1a3   :  { %5429 = vst.msk [vmem:[%s14487_s2 + $0x180] sm:$0xff] %vm5380_vm5, %v4899_v45  ;;  %5694 = vst.msk [vmem:[%s14487_s2 + $0x9c8] sm:$0xff] %vm5380_vm5, %v5164_v46  ;;  %v2453_v49 = vadd.f32 %v9984_v1, %v2452_v47  ;;  %v7135_v50 = vpop.f32.mrb[99].mxu0  ;;  %7293 = vmatmul.mubr.msk.f32.gmra.mrb[204].mxu0 %vm549_vm4, %v113_v43  ;;  %v3778_v52 = vadd.f32 %v9984_v1, %v3777_v48  ;;  %v7930_v53 = vpop.f32.mrb[99].mxu1  ;;  %8088 = vmatmul.mubr.msk.f32.gmra.mrb[204].mxu1 %vm549_vm4, %v378_v44 }
 0x1a4   :  { %7295 = vmatprep.mubr.msk.f32.mxu0 %vm8596_vm1, %v8597_v6  ;;  %8090 = vmatprep.mubr.msk.f32.mxu1 %vm8596_vm1, %v8597_v6  ;;  %v385_v53 = vld [vmem:[%s14486_s0 + $0xbb0] sm:$0xff] }
 0x1a5   :  { %v4900_v56 = vmax.f32 %v2453_v49, 0.0  ;;  %v5165_v57 = vmax.f32 %v3778_v52, 0.0  ;;  %v120_v52 = vld [vmem:[%s14486_s0 + $0x368] sm:$0xff] }
 0x1a6   :  { %v2457_v58 = vpop.f32.mrb[100].mxu0  ;;  %v3782_v59 = vpop.f32.mrb[100].mxu1 }
 0x1a7   :  { %5430 = vst.msk [vmem:[%s14487_s2 + $0x188] sm:$0xff] %vm5380_vm5, %v4900_v56  ;;  %5695 = vst.msk [vmem:[%s14487_s2 + $0x9d0] sm:$0xff] %vm5380_vm5, %v5165_v57  ;;  %v2458_v60 = vadd.f32 %v9984_v1, %v2457_v58  ;;  %v7138_v61 = vpop.f32.mrb[101].mxu0  ;;  %7296 = vmatmul.mubr.msk.f32.gmra.mrb[206].mxu0 %vm549_vm4, %v114_v54  ;;  %v3783_v62 = vadd.f32 %v9984_v1, %v3782_v59  ;;  %v7933_v63 = vpop.f32.mrb[101].mxu1  ;;  %8091 = vmatmul.mubr.msk.f32.gmra.mrb[206].mxu1 %vm549_vm4, %v379_v55 }
 0x1a8   :  { %7298 = vmatprep.mubr.msk.f32.mxu0 %vm8596_vm1, %v8597_v6  ;;  %8093 = vmatprep.mubr.msk.f32.mxu1 %vm8596_vm1, %v8597_v6  ;;  %v386_v63 = vld [vmem:[%s14486_s0 + $0xbb8] sm:$0xff] }
 0x1a9   :  { %v4901_v2 = vmax.f32 %v2458_v60, 0.0  ;;  %v5166_v3 = vmax.f32 %v3783_v62, 0.0  ;;  %v121_v62 = vld [vmem:[%s14486_s0 + $0x370] sm:$0xff] }
 0x1aa   :  { %v2462_v4 = vpop.f32.mrb[102].mxu0  ;;  %v3787_v5 = vpop.f32.mrb[102].mxu1 }
 0x1ab   :  { %5431 = vst.msk [vmem:[%s14487_s2 + $0x190] sm:$0xff] %vm5380_vm5, %v4901_v2  ;;  %5696 = vst.msk [vmem:[%s14487_s2 + $0x9d8] sm:$0xff] %vm5380_vm5, %v5166_v3  ;;  %v2463_v7 = vadd.f32 %v9984_v1, %v2462_v4  ;;  %v7141_v8 = vpop.f32.mrb[103].mxu0  ;;  %7299 = vmatmul.mubr.msk.f32.gmra.mrb[208].mxu0 %vm549_vm4, %v115_v51  ;;  %v3788_v9 = vadd.f32 %v9984_v1, %v3787_v5  ;;  %v7936_v10 = vpop.f32.mrb[103].mxu1  ;;  %8094 = vmatmul.mubr.msk.f32.gmra.mrb[208].mxu1 %vm549_vm4, %v380_v0 }
 0x1ac   :  { %7301 = vmatprep.mubr.msk.f32.mxu0 %vm8596_vm1, %v8597_v6  ;;  %8096 = vmatprep.mubr.msk.f32.mxu1 %vm8596_vm1, %v8597_v6  ;;  %v387_v10 = vld [vmem:[%s14486_s0 + $0xbc0] sm:$0xff] }
 0x1ad   :  { %v4902_v13 = vmax.f32 %v2463_v7, 0.0  ;;  %v5167_v14 = vmax.f32 %v3788_v9, 0.0  ;;  %v122_v9 = vld [vmem:[%s14486_s0 + $0x378] sm:$0xff] }
 0x1ae   :  { %v2467_v15 = vpop.f32.mrb[104].mxu0  ;;  %v3792_v16 = vpop.f32.mrb[104].mxu1 }
 0x1af   :  { %5432 = vst.msk [vmem:[%s14487_s2 + $0x198] sm:$0xff] %vm5380_vm5, %v4902_v13  ;;  %5697 = vst.msk [vmem:[%s14487_s2 + $0x9e0] sm:$0xff] %vm5380_vm5, %v5167_v14  ;;  %v2468_v17 = vadd.f32 %v9984_v1, %v2467_v15  ;;  %v7144_v18 = vpop.f32.mrb[105].mxu0  ;;  %7302 = vmatmul.mubr.msk.f32.gmra.mrb[210].mxu0 %vm549_vm4, %v116_v11  ;;  %v3793_v19 = vadd.f32 %v9984_v1, %v3792_v16  ;;  %v7939_v20 = vpop.f32.mrb[105].mxu1  ;;  %8097 = vmatmul.mubr.msk.f32.gmra.mrb[210].mxu1 %vm549_vm4, %v381_v12 }
 0x1b0   :  { %7304 = vmatprep.mubr.msk.f32.mxu0 %vm8596_vm1, %v8597_v6  ;;  %8099 = vmatprep.mubr.msk.f32.mxu1 %vm8596_vm1, %v8597_v6  ;;  %v388_v20 = vld [vmem:[%s14486_s0 + $0xbc8] sm:$0xff] }
 0x1b1   :  { %v4903_v23 = vmax.f32 %v2468_v17, 0.0  ;;  %v5168_v24 = vmax.f32 %v3793_v19, 0.0  ;;  %v123_v19 = vld [vmem:[%s14486_s0 + $0x380] sm:$0xff] }
 0x1b2   :  { %v2472_v25 = vpop.f32.mrb[106].mxu0  ;;  %v3797_v26 = vpop.f32.mrb[106].mxu1 }
 0x1b3   :  { %5433 = vst.msk [vmem:[%s14487_s2 + $0x1a0] sm:$0xff] %vm5380_vm5, %v4903_v23  ;;  %5698 = vst.msk [vmem:[%s14487_s2 + $0x9e8] sm:$0xff] %vm5380_vm5, %v5168_v24  ;;  %v2473_v27 = vadd.f32 %v9984_v1, %v2472_v25  ;;  %v7147_v28 = vpop.f32.mrb[107].mxu0  ;;  %7305 = vmatmul.mubr.msk.f32.gmra.mrb[212].mxu0 %vm549_vm4, %v117_v21  ;;  %v3798_v29 = vadd.f32 %v9984_v1, %v3797_v26  ;;  %v7942_v30 = vpop.f32.mrb[107].mxu1  ;;  %8100 = vmatmul.mubr.msk.f32.gmra.mrb[212].mxu1 %vm549_vm4, %v382_v22 }
 0x1b4   :  { %7307 = vmatprep.mubr.msk.f32.mxu0 %vm8596_vm1, %v8597_v6  ;;  %8102 = vmatprep.mubr.msk.f32.mxu1 %vm8596_vm1, %v8597_v6  ;;  %v389_v30 = vld [vmem:[%s14486_s0 + $0xbd0] sm:$0xff] }
 0x1b5   :  { %v4904_v33 = vmax.f32 %v2473_v27, 0.0  ;;  %v5169_v34 = vmax.f32 %v3798_v29, 0.0  ;;  %v124_v29 = vld [vmem:[%s14486_s0 + $0x388] sm:$0xff] }
 0x1b6   :  { %v2477_v35 = vpop.f32.mrb[108].mxu0  ;;  %v3802_v36 = vpop.f32.mrb[108].mxu1 }
 0x1b7   :  { %5434 = vst.msk [vmem:[%s14487_s2 + $0x1a8] sm:$0xff] %vm5380_vm5, %v4904_v33  ;;  %5699 = vst.msk [vmem:[%s14487_s2 + $0x9f0] sm:$0xff] %vm5380_vm5, %v5169_v34  ;;  %v2478_v37 = vadd.f32 %v9984_v1, %v2477_v35  ;;  %v7150_v38 = vpop.f32.mrb[109].mxu0  ;;  %7308 = vmatmul.mubr.msk.f32.gmra.mrb[214].mxu0 %vm549_vm4, %v118_v31  ;;  %v3803_v39 = vadd.f32 %v9984_v1, %v3802_v36  ;;  %v7945_v40 = vpop.f32.mrb[109].mxu1  ;;  %8103 = vmatmul.mubr.msk.f32.gmra.mrb[214].mxu1 %vm549_vm4, %v383_v32 }
 0x1b8   :  { %7310 = vmatprep.mubr.msk.f32.mxu0 %vm8596_vm1, %v8597_v6  ;;  %8105 = vmatprep.mubr.msk.f32.mxu1 %vm8596_vm1, %v8597_v6  ;;  %v390_v40 = vld [vmem:[%s14486_s0 + $0xbd8] sm:$0xff] }
 0x1b9   :  { %v4905_v43 = vmax.f32 %v2478_v37, 0.0  ;;  %v5170_v44 = vmax.f32 %v3803_v39, 0.0  ;;  %v125_v39 = vld [vmem:[%s14486_s0 + $0x390] sm:$0xff] }
 0x1ba   :  { %v2482_v45 = vpop.f32.mrb[110].mxu0  ;;  %v3807_v46 = vpop.f32.mrb[110].mxu1 }
 0x1bb   :  { %5435 = vst.msk [vmem:[%s14487_s2 + $0x1b0] sm:$0xff] %vm5380_vm5, %v4905_v43  ;;  %5700 = vst.msk [vmem:[%s14487_s2 + $0x9f8] sm:$0xff] %vm5380_vm5, %v5170_v44  ;;  %v2483_v47 = vadd.f32 %v9984_v1, %v2482_v45  ;;  %v7153_v48 = vpop.f32.mrb[111].mxu0  ;;  %7311 = vmatmul.mubr.msk.f32.gmra.mrb[216].mxu0 %vm549_vm4, %v119_v41  ;;  %v3808_v49 = vadd.f32 %v9984_v1, %v3807_v46  ;;  %v7948_v50 = vpop.f32.mrb[111].mxu1  ;;  %8106 = vmatmul.mubr.msk.f32.gmra.mrb[216].mxu1 %vm549_vm4, %v384_v42 }
 0x1bc   :  { %7313 = vmatprep.mubr.msk.f32.mxu0 %vm8596_vm1, %v8597_v6  ;;  %8108 = vmatprep.mubr.msk.f32.mxu1 %vm8596_vm1, %v8597_v6  ;;  %v391_v50 = vld [vmem:[%s14486_s0 + $0xbe0] sm:$0xff] }
 0x1bd   :  { %v4906_v54 = vmax.f32 %v2483_v47, 0.0  ;;  %v5171_v55 = vmax.f32 %v3808_v49, 0.0  ;;  %v126_v49 = vld [vmem:[%s14486_s0 + $0x398] sm:$0xff] }
 0x1be   :  { %v2487_v56 = vpop.f32.mrb[112].mxu0  ;;  %v3812_v57 = vpop.f32.mrb[112].mxu1 }
 0x1bf   :  { %5436 = vst.msk [vmem:[%s14487_s2 + $0x1b8] sm:$0xff] %vm5380_vm5, %v4906_v54  ;;  %5701 = vst.msk [vmem:[%s14487_s2 + $0xa00] sm:$0xff] %vm5380_vm5, %v5171_v55  ;;  %v2488_v58 = vadd.f32 %v9984_v1, %v2487_v56  ;;  %v7156_v59 = vpop.f32.mrb[113].mxu0  ;;  %7314 = vmatmul.mubr.msk.f32.gmra.mrb[218].mxu0 %vm549_vm4, %v120_v52  ;;  %v3813_v60 = vadd.f32 %v9984_v1, %v3812_v57  ;;  %v7951_v61 = vpop.f32.mrb[113].mxu1  ;;  %8109 = vmatmul.mubr.msk.f32.gmra.mrb[218].mxu1 %vm549_vm4, %v385_v53 }
 0x1c0   :  { %7316 = vmatprep.mubr.msk.f32.mxu0 %vm8596_vm1, %v8597_v6  ;;  %8111 = vmatprep.mubr.msk.f32.mxu1 %vm8596_vm1, %v8597_v6  ;;  %v392_v61 = vld [vmem:[%s14486_s0 + $0xbe8] sm:$0xff] }
 0x1c1   :  { %v4907_v51 = vmax.f32 %v2488_v58, 0.0  ;;  %v5172_v0 = vmax.f32 %v3813_v60, 0.0  ;;  %v127_v60 = vld [vmem:[%s14486_s0 + $0x3a0] sm:$0xff] }
 0x1c2   :  { %v2492_v2 = vpop.f32.mrb[114].mxu0  ;;  %v3817_v3 = vpop.f32.mrb[114].mxu1 }
 0x1c3   :  { %5437 = vst.msk [vmem:[%s14487_s2 + $0x1c0] sm:$0xff] %vm5380_vm5, %v4907_v51  ;;  %5702 = vst.msk [vmem:[%s14487_s2 + $0xa08] sm:$0xff] %vm5380_vm5, %v5172_v0  ;;  %v2493_v4 = vadd.f32 %v9984_v1, %v2492_v2  ;;  %v7159_v5 = vpop.f32.mrb[115].mxu0  ;;  %7317 = vmatmul.mubr.msk.f32.gmra.mrb[220].mxu0 %vm549_vm4, %v121_v62  ;;  %v3818_v7 = vadd.f32 %v9984_v1, %v3817_v3  ;;  %v7954_v8 = vpop.f32.mrb[115].mxu1  ;;  %8112 = vmatmul.mubr.msk.f32.gmra.mrb[220].mxu1 %vm549_vm4, %v386_v63 }
 0x1c4   :  { %7319 = vmatprep.mubr.msk.f32.mxu0 %vm8596_vm1, %v8597_v6  ;;  %8114 = vmatprep.mubr.msk.f32.mxu1 %vm8596_vm1, %v8597_v6  ;;  %v393_v8 = vld [vmem:[%s14486_s0 + $0xbf0] sm:$0xff] }
 0x1c5   :  { %v4908_v11 = vmax.f32 %v2493_v4, 0.0  ;;  %v5173_v12 = vmax.f32 %v3818_v7, 0.0  ;;  %v128_v7 = vld [vmem:[%s14486_s0 + $0x3a8] sm:$0xff] }
 0x1c6   :  { %v2497_v13 = vpop.f32.mrb[116].mxu0  ;;  %v3822_v14 = vpop.f32.mrb[116].mxu1 }
 0x1c7   :  { %5438 = vst.msk [vmem:[%s14487_s2 + $0x1c8] sm:$0xff] %vm5380_vm5, %v4908_v11  ;;  %5703 = vst.msk [vmem:[%s14487_s2 + $0xa10] sm:$0xff] %vm5380_vm5, %v5173_v12  ;;  %v2498_v15 = vadd.f32 %v9984_v1, %v2497_v13  ;;  %v7162_v16 = vpop.f32.mrb[117].mxu0  ;;  %7320 = vmatmul.mubr.msk.f32.gmra.mrb[222].mxu0 %vm549_vm4, %v122_v9  ;;  %v3823_v17 = vadd.f32 %v9984_v1, %v3822_v14  ;;  %v7957_v18 = vpop.f32.mrb[117].mxu1  ;;  %8115 = vmatmul.mubr.msk.f32.gmra.mrb[222].mxu1 %vm549_vm4, %v387_v10  ;;  %v10693_v12 = vld [vmem:[%s14485_s1 + $0x19] ss:$0 sm:$0xff] }
 0x1c8   :  { %7322 = vmatprep.mubr.msk.f32.mxu0 %vm8596_vm1, %v8597_v6  ;;  %8117 = vmatprep.mubr.msk.f32.mxu1 %vm8596_vm1, %v8597_v6  ;;  %v394_v18 = vld [vmem:[%s14486_s0 + $0xbf8] sm:$0xff] }
 0x1c9   :  { %v4909_v21 = vmax.f32 %v2498_v15, 0.0  ;;  %v5174_v22 = vmax.f32 %v3823_v17, 0.0  ;;  %v129_v17 = vld [vmem:[%s14486_s0 + $0x3b0] sm:$0xff] }
 0x1ca   :  { %v2502_v23 = vpop.f32.mrb[118].mxu0  ;;  %v3827_v24 = vpop.f32.mrb[118].mxu1 }
 0x1cb   :  { %5439 = vst.msk [vmem:[%s14487_s2 + $0x1d0] sm:$0xff] %vm5380_vm5, %v4909_v21  ;;  %5704 = vst.msk [vmem:[%s14487_s2 + $0xa18] sm:$0xff] %vm5380_vm5, %v5174_v22  ;;  %v2503_v25 = vadd.f32 %v9984_v1, %v2502_v23  ;;  %v7165_v26 = vpop.f32.mrb[119].mxu0  ;;  %7323 = vmatmul.mubr.msk.f32.gmra.mrb[224].mxu0 %vm549_vm4, %v123_v19  ;;  %v3828_v27 = vadd.f32 %v9984_v1, %v3827_v24  ;;  %v7960_v28 = vpop.f32.mrb[119].mxu1  ;;  %8118 = vmatmul.mubr.msk.f32.gmra.mrb[224].mxu1 %vm549_vm4, %v388_v20 }
 0x1cc   :  { %7325 = vmatprep.mubr.msk.f32.mxu0 %vm8596_vm1, %v8597_v6  ;;  %8120 = vmatprep.mubr.msk.f32.mxu1 %vm8596_vm1, %v8597_v6  ;;  %v395_v28 = vld [vmem:[%s14486_s0 + $0xc00] sm:$0xff] }
 0x1cd   :  { %v4910_v31 = vmax.f32 %v2503_v25, 0.0  ;;  %v5175_v32 = vmax.f32 %v3828_v27, 0.0  ;;  %v130_v27 = vld [vmem:[%s14486_s0 + $0x3b8] sm:$0xff] }
 0x1ce   :  { %v2507_v33 = vpop.f32.mrb[120].mxu0  ;;  %v3832_v34 = vpop.f32.mrb[120].mxu1 }
 0x1cf   :  { %5440 = vst.msk [vmem:[%s14487_s2 + $0x1d8] sm:$0xff] %vm5380_vm5, %v4910_v31  ;;  %5705 = vst.msk [vmem:[%s14487_s2 + $0xa20] sm:$0xff] %vm5380_vm5, %v5175_v32  ;;  %v2508_v35 = vadd.f32 %v9984_v1, %v2507_v33  ;;  %v7168_v36 = vpop.f32.mrb[121].mxu0  ;;  %7326 = vmatmul.mubr.msk.f32.gmra.mrb[226].mxu0 %vm549_vm4, %v124_v29  ;;  %v3833_v37 = vadd.f32 %v9984_v1, %v3832_v34  ;;  %v7963_v38 = vpop.f32.mrb[121].mxu1  ;;  %8121 = vmatmul.mubr.msk.f32.gmra.mrb[226].mxu1 %vm549_vm4, %v389_v30 }
 0x1d0   :  { %7328 = vmatprep.mubr.msk.f32.mxu0 %vm8596_vm1, %v8597_v6  ;;  %8123 = vmatprep.mubr.msk.f32.mxu1 %vm8596_vm1, %v8597_v6  ;;  %v396_v38 = vld [vmem:[%s14486_s0 + $0xc08] sm:$0xff] }
 0x1d1   :  { %v4911_v41 = vmax.f32 %v2508_v35, 0.0  ;;  %v5176_v42 = vmax.f32 %v3833_v37, 0.0  ;;  %v131_v37 = vld [vmem:[%s14486_s0 + $0x3c0] sm:$0xff] }
 0x1d2   :  { %v2512_v43 = vpop.f32.mrb[122].mxu0  ;;  %v3837_v44 = vpop.f32.mrb[122].mxu1 }
 0x1d3   :  { %5441 = vst.msk [vmem:[%s14487_s2 + $0x1e0] sm:$0xff] %vm5380_vm5, %v4911_v41  ;;  %5706 = vst.msk [vmem:[%s14487_s2 + $0xa28] sm:$0xff] %vm5380_vm5, %v5176_v42  ;;  %v2513_v45 = vadd.f32 %v9984_v1, %v2512_v43  ;;  %v7171_v46 = vpop.f32.mrb[123].mxu0  ;;  %7329 = vmatmul.mubr.msk.f32.gmra.mrb[228].mxu0 %vm549_vm4, %v125_v39  ;;  %v3838_v47 = vadd.f32 %v9984_v1, %v3837_v44  ;;  %v7966_v48 = vpop.f32.mrb[123].mxu1  ;;  %8124 = vmatmul.mubr.msk.f32.gmra.mrb[228].mxu1 %vm549_vm4, %v390_v40 }
 0x1d4   :  { %7331 = vmatprep.mubr.msk.f32.mxu0 %vm8596_vm1, %v8597_v6  ;;  %8126 = vmatprep.mubr.msk.f32.mxu1 %vm8596_vm1, %v8597_v6  ;;  %v397_v48 = vld [vmem:[%s14486_s0 + $0xc10] sm:$0xff] }
 0x1d5   :  { %v4912_v52 = vmax.f32 %v2513_v45, 0.0  ;;  %v5177_v53 = vmax.f32 %v3838_v47, 0.0  ;;  %v132_v47 = vld [vmem:[%s14486_s0 + $0x3c8] sm:$0xff] }
 0x1d6   :  { %v2517_v54 = vpop.f32.mrb[124].mxu0  ;;  %v3842_v55 = vpop.f32.mrb[124].mxu1 }
 0x1d7   :  { %5442 = vst.msk [vmem:[%s14487_s2 + $0x1e8] sm:$0xff] %vm5380_vm5, %v4912_v52  ;;  %5707 = vst.msk [vmem:[%s14487_s2 + $0xa30] sm:$0xff] %vm5380_vm5, %v5177_v53  ;;  %v2518_v56 = vadd.f32 %v9984_v1, %v2517_v54  ;;  %v7174_v57 = vpop.f32.mrb[125].mxu0  ;;  %7332 = vmatmul.mubr.msk.f32.gmra.mrb[230].mxu0 %vm549_vm4, %v126_v49  ;;  %v3843_v58 = vadd.f32 %v9984_v1, %v3842_v55  ;;  %v7969_v59 = vpop.f32.mrb[125].mxu1  ;;  %8127 = vmatmul.mubr.msk.f32.gmra.mrb[230].mxu1 %vm549_vm4, %v391_v50 }
 0x1d8   :  { %7334 = vmatprep.mubr.msk.f32.mxu0 %vm8596_vm1, %v8597_v6  ;;  %8129 = vmatprep.mubr.msk.f32.mxu1 %vm8596_vm1, %v8597_v6  ;;  %v398_v59 = vld [vmem:[%s14486_s0 + $0xc18] sm:$0xff] }
 0x1d9   :  { %v4913_v62 = vmax.f32 %v2518_v56, 0.0  ;;  %v5178_v63 = vmax.f32 %v3843_v58, 0.0  ;;  %v133_v58 = vld [vmem:[%s14486_s0 + $0x3d0] sm:$0xff] }
 0x1da   :  { %v2522_v51 = vpop.f32.mrb[126].mxu0  ;;  %v3847_v0 = vpop.f32.mrb[126].mxu1 }
 0x1db   :  { %5443 = vst.msk [vmem:[%s14487_s2 + $0x1f0] sm:$0xff] %vm5380_vm5, %v4913_v62  ;;  %5708 = vst.msk [vmem:[%s14487_s2 + $0xa38] sm:$0xff] %vm5380_vm5, %v5178_v63  ;;  %v2523_v2 = vadd.f32 %v9984_v1, %v2522_v51  ;;  %v7177_v3 = vpop.f32.mrb[127].mxu0  ;;  %7335 = vmatmul.mubr.msk.f32.gmra.mrb[232].mxu0 %vm549_vm4, %v127_v60  ;;  %v3848_v4 = vadd.f32 %v9984_v1, %v3847_v0  ;;  %v7972_v5 = vpop.f32.mrb[127].mxu1  ;;  %8130 = vmatmul.mubr.msk.f32.gmra.mrb[232].mxu1 %vm549_vm4, %v392_v61 }
 0x1dc   :  { %7337 = vmatprep.mubr.msk.f32.mxu0 %vm8596_vm1, %v8597_v6  ;;  %8132 = vmatprep.mubr.msk.f32.mxu1 %vm8596_vm1, %v8597_v6  ;;  %v399_v5 = vld [vmem:[%s14486_s0 + $0xc20] sm:$0xff] }
 0x1dd   :  { %v4914_v9 = vmax.f32 %v2523_v2, 0.0  ;;  %v5179_v10 = vmax.f32 %v3848_v4, 0.0  ;;  %v134_v4 = vld [vmem:[%s14486_s0 + $0x3d8] sm:$0xff] }
 0x1de   :  { %v2527_v1 = vpop.f32.mrb[128].mxu0  ;;  %v3852_v11 = vpop.f32.mrb[128].mxu1 }
 0x1df   :  { %5444 = vst.msk [vmem:[%s14487_s2 + $0x1f8] sm:$0xff] %vm5380_vm5, %v4914_v9  ;;  %5709 = vst.msk [vmem:[%s14487_s2 + $0xa40] sm:$0xff] %vm5380_vm5, %v5179_v10  ;;  %v2528_v13 = vadd.f32 %v10693_v12, %v2527_v1  ;;  %v7180_v14 = vpop.f32.mrb[129].mxu0  ;;  %7338 = vmatmul.mubr.msk.f32.gmra.mrb[234].mxu0 %vm549_vm4, %v128_v7  ;;  %v3853_v15 = vadd.f32 %v10693_v12, %v3852_v11  ;;  %v7975_v16 = vpop.f32.mrb[129].mxu1  ;;  %8133 = vmatmul.mubr.msk.f32.gmra.mrb[234].mxu1 %vm549_vm4, %v393_v8 }
 0x1e0   :  { %7340 = vmatprep.mubr.msk.f32.mxu0 %vm8596_vm1, %v8597_v6  ;;  %8135 = vmatprep.mubr.msk.f32.mxu1 %vm8596_vm1, %v8597_v6  ;;  %v400_v16 = vld [vmem:[%s14486_s0 + $0xc28] sm:$0xff] }
 0x1e1   :  { %v4915_v19 = vmax.f32 %v2528_v13, 0.0  ;;  %v5180_v20 = vmax.f32 %v3853_v15, 0.0  ;;  %v135_v15 = vld [vmem:[%s14486_s0 + $0x3e0] sm:$0xff] }
 0x1e2   :  { %v2532_v21 = vpop.f32.mrb[130].mxu0  ;;  %v3857_v22 = vpop.f32.mrb[130].mxu1 }
 0x1e3   :  { %5445 = vst.msk [vmem:[%s14487_s2 + $0x200] sm:$0xff] %vm5380_vm5, %v4915_v19  ;;  %5710 = vst.msk [vmem:[%s14487_s2 + $0xa48] sm:$0xff] %vm5380_vm5, %v5180_v20  ;;  %v2533_v23 = vadd.f32 %v10693_v12, %v2532_v21  ;;  %v7183_v24 = vpop.f32.mrb[131].mxu0  ;;  %7341 = vmatmul.mubr.msk.f32.gmra.mrb[236].mxu0 %vm549_vm4, %v129_v17  ;;  %v3858_v25 = vadd.f32 %v10693_v12, %v3857_v22  ;;  %v7978_v26 = vpop.f32.mrb[131].mxu1  ;;  %8136 = vmatmul.mubr.msk.f32.gmra.mrb[236].mxu1 %vm549_vm4, %v394_v18 }
 0x1e4   :  { %7343 = vmatprep.mubr.msk.f32.mxu0 %vm8596_vm1, %v8597_v6  ;;  %8138 = vmatprep.mubr.msk.f32.mxu1 %vm8596_vm1, %v8597_v6  ;;  %v401_v26 = vld [vmem:[%s14486_s0 + $0xc30] sm:$0xff] }
 0x1e5   :  { %v4916_v29 = vmax.f32 %v2533_v23, 0.0  ;;  %v5181_v30 = vmax.f32 %v3858_v25, 0.0  ;;  %v136_v25 = vld [vmem:[%s14486_s0 + $0x3e8] sm:$0xff] }
 0x1e6   :  { %v2537_v31 = vpop.f32.mrb[132].mxu0  ;;  %v3862_v32 = vpop.f32.mrb[132].mxu1 }
 0x1e7   :  { %5446 = vst.msk [vmem:[%s14487_s2 + $0x208] sm:$0xff] %vm5380_vm5, %v4916_v29  ;;  %5711 = vst.msk [vmem:[%s14487_s2 + $0xa50] sm:$0xff] %vm5380_vm5, %v5181_v30  ;;  %v2538_v33 = vadd.f32 %v10693_v12, %v2537_v31  ;;  %v7186_v34 = vpop.f32.mrb[133].mxu0  ;;  %7344 = vmatmul.mubr.msk.f32.gmra.mrb[238].mxu0 %vm549_vm4, %v130_v27  ;;  %v3863_v35 = vadd.f32 %v10693_v12, %v3862_v32  ;;  %v7981_v36 = vpop.f32.mrb[133].mxu1  ;;  %8139 = vmatmul.mubr.msk.f32.gmra.mrb[238].mxu1 %vm549_vm4, %v395_v28 }
 0x1e8   :  { %7346 = vmatprep.mubr.msk.f32.mxu0 %vm8596_vm1, %v8597_v6  ;;  %8141 = vmatprep.mubr.msk.f32.mxu1 %vm8596_vm1, %v8597_v6  ;;  %v402_v36 = vld [vmem:[%s14486_s0 + $0xc38] sm:$0xff] }
 0x1e9   :  { %v4917_v39 = vmax.f32 %v2538_v33, 0.0  ;;  %v5182_v40 = vmax.f32 %v3863_v35, 0.0  ;;  %v137_v35 = vld [vmem:[%s14486_s0 + $0x3f0] sm:$0xff] }
 0x1ea   :  { %v2542_v41 = vpop.f32.mrb[134].mxu0  ;;  %v3867_v42 = vpop.f32.mrb[134].mxu1 }
 0x1eb   :  { %5447 = vst.msk [vmem:[%s14487_s2 + $0x210] sm:$0xff] %vm5380_vm5, %v4917_v39  ;;  %5712 = vst.msk [vmem:[%s14487_s2 + $0xa58] sm:$0xff] %vm5380_vm5, %v5182_v40  ;;  %v2543_v43 = vadd.f32 %v10693_v12, %v2542_v41  ;;  %v7189_v44 = vpop.f32.mrb[135].mxu0  ;;  %7347 = vmatmul.mubr.msk.f32.gmra.mrb[240].mxu0 %vm549_vm4, %v131_v37  ;;  %v3868_v45 = vadd.f32 %v10693_v12, %v3867_v42  ;;  %v7984_v46 = vpop.f32.mrb[135].mxu1  ;;  %8142 = vmatmul.mubr.msk.f32.gmra.mrb[240].mxu1 %vm549_vm4, %v396_v38 }
 0x1ec   :  { %7349 = vmatprep.mubr.msk.f32.mxu0 %vm8596_vm1, %v8597_v6  ;;  %8144 = vmatprep.mubr.msk.f32.mxu1 %vm8596_vm1, %v8597_v6  ;;  %v403_v46 = vld [vmem:[%s14486_s0 + $0xc40] sm:$0xff] }
 0x1ed   :  { %v4918_v49 = vmax.f32 %v2543_v43, 0.0  ;;  %v5183_v50 = vmax.f32 %v3868_v45, 0.0  ;;  %v138_v45 = vld [vmem:[%s14486_s0 + $0x3f8] sm:$0xff] }
 0x1ee   :  { %v2547_v52 = vpop.f32.mrb[136].mxu0  ;;  %v3872_v53 = vpop.f32.mrb[136].mxu1 }
 0x1ef   :  { %5448 = vst.msk [vmem:[%s14487_s2 + $0x218] sm:$0xff] %vm5380_vm5, %v4918_v49  ;;  %5713 = vst.msk [vmem:[%s14487_s2 + $0xa60] sm:$0xff] %vm5380_vm5, %v5183_v50  ;;  %v2548_v54 = vadd.f32 %v10693_v12, %v2547_v52  ;;  %v7192_v55 = vpop.f32.mrb[137].mxu0  ;;  %7350 = vmatmul.mubr.msk.f32.gmra.mrb[242].mxu0 %vm549_vm4, %v132_v47  ;;  %v3873_v56 = vadd.f32 %v10693_v12, %v3872_v53  ;;  %v7987_v57 = vpop.f32.mrb[137].mxu1  ;;  %8145 = vmatmul.mubr.msk.f32.gmra.mrb[242].mxu1 %vm549_vm4, %v397_v48 }
 0x1f0   :  { %7352 = vmatprep.mubr.msk.f32.mxu0 %vm8596_vm1, %v8597_v6  ;;  %8147 = vmatprep.mubr.msk.f32.mxu1 %vm8596_vm1, %v8597_v6  ;;  %v404_v57 = vld [vmem:[%s14486_s0 + $0xc48] sm:$0xff] }
 0x1f1   :  { %v4919_v60 = vmax.f32 %v2548_v54, 0.0  ;;  %v5184_v61 = vmax.f32 %v3873_v56, 0.0  ;;  %v139_v56 = vld [vmem:[%s14486_s0 + $0x400] sm:$0xff] }
 0x1f2   :  { %v2552_v62 = vpop.f32.mrb[138].mxu0  ;;  %v3877_v63 = vpop.f32.mrb[138].mxu1 }
 0x1f3   :  { %5449 = vst.msk [vmem:[%s14487_s2 + $0x220] sm:$0xff] %vm5380_vm5, %v4919_v60  ;;  %5714 = vst.msk [vmem:[%s14487_s2 + $0xa68] sm:$0xff] %vm5380_vm5, %v5184_v61  ;;  %v2553_v51 = vadd.f32 %v10693_v12, %v2552_v62  ;;  %v7195_v0 = vpop.f32.mrb[139].mxu0  ;;  %7353 = vmatmul.mubr.msk.f32.gmra.mrb[244].mxu0 %vm549_vm4, %v133_v58  ;;  %v3878_v2 = vadd.f32 %v10693_v12, %v3877_v63  ;;  %v7990_v3 = vpop.f32.mrb[139].mxu1  ;;  %8148 = vmatmul.mubr.msk.f32.gmra.mrb[244].mxu1 %vm549_vm4, %v398_v59 }
 0x1f4   :  { %7355 = vmatprep.mubr.msk.f32.mxu0 %vm8596_vm1, %v8597_v6  ;;  %8150 = vmatprep.mubr.msk.f32.mxu1 %vm8596_vm1, %v8597_v6  ;;  %v405_v3 = vld [vmem:[%s14486_s0 + $0xc50] sm:$0xff] }
 0x1f5   :  { %v4920_v7 = vmax.f32 %v2553_v51, 0.0  ;;  %v5185_v8 = vmax.f32 %v3878_v2, 0.0  ;;  %v140_v2 = vld [vmem:[%s14486_s0 + $0x408] sm:$0xff] }
 0x1f6   :  { %v2557_v9 = vpop.f32.mrb[140].mxu0  ;;  %v3882_v10 = vpop.f32.mrb[140].mxu1 }
 0x1f7   :  { %5450 = vst.msk [vmem:[%s14487_s2 + $0x228] sm:$0xff] %vm5380_vm5, %v4920_v7  ;;  %5715 = vst.msk [vmem:[%s14487_s2 + $0xa70] sm:$0xff] %vm5380_vm5, %v5185_v8  ;;  %v2558_v1 = vadd.f32 %v10693_v12, %v2557_v9  ;;  %v7198_v11 = vpop.f32.mrb[141].mxu0  ;;  %7356 = vmatmul.mubr.msk.f32.gmra.mrb[246].mxu0 %vm549_vm4, %v134_v4  ;;  %v3883_v13 = vadd.f32 %v10693_v12, %v3882_v10  ;;  %v7993_v14 = vpop.f32.mrb[141].mxu1  ;;  %8151 = vmatmul.mubr.msk.f32.gmra.mrb[246].mxu1 %vm549_vm4, %v399_v5 }
 0x1f8   :  { %7358 = vmatprep.mubr.msk.f32.mxu0 %vm8596_vm1, %v8597_v6  ;;  %8153 = vmatprep.mubr.msk.f32.mxu1 %vm8596_vm1, %v8597_v6  ;;  %v406_v14 = vld [vmem:[%s14486_s0 + $0xc58] sm:$0xff] }
 0x1f9   :  { %v4921_v17 = vmax.f32 %v2558_v1, 0.0  ;;  %v5186_v18 = vmax.f32 %v3883_v13, 0.0  ;;  %v141_v13 = vld [vmem:[%s14486_s0 + $0x410] sm:$0xff] }
 0x1fa   :  { %v2562_v19 = vpop.f32.mrb[142].mxu0  ;;  %v3887_v20 = vpop.f32.mrb[142].mxu1 }
 0x1fb   :  { %5451 = vst.msk [vmem:[%s14487_s2 + $0x230] sm:$0xff] %vm5380_vm5, %v4921_v17  ;;  %5716 = vst.msk [vmem:[%s14487_s2 + $0xa78] sm:$0xff] %vm5380_vm5, %v5186_v18  ;;  %v2563_v21 = vadd.f32 %v10693_v12, %v2562_v19  ;;  %v7201_v22 = vpop.f32.mrb[143].mxu0  ;;  %7359 = vmatmul.mubr.msk.f32.gmra.mrb[248].mxu0 %vm549_vm4, %v135_v15  ;;  %v3888_v23 = vadd.f32 %v10693_v12, %v3887_v20  ;;  %v7996_v24 = vpop.f32.mrb[143].mxu1  ;;  %8154 = vmatmul.mubr.msk.f32.gmra.mrb[248].mxu1 %vm549_vm4, %v400_v16 }
 0x1fc   :  { %7361 = vmatprep.mubr.msk.f32.mxu0 %vm8596_vm1, %v8597_v6  ;;  %8156 = vmatprep.mubr.msk.f32.mxu1 %vm8596_vm1, %v8597_v6  ;;  %v407_v24 = vld [vmem:[%s14486_s0 + $0xc60] sm:$0xff] }
 0x1fd   :  { %v4922_v27 = vmax.f32 %v2563_v21, 0.0  ;;  %v5187_v28 = vmax.f32 %v3888_v23, 0.0  ;;  %v142_v23 = vld [vmem:[%s14486_s0 + $0x418] sm:$0xff] }
 0x1fe   :  { %v2567_v29 = vpop.f32.mrb[144].mxu0  ;;  %v3892_v30 = vpop.f32.mrb[144].mxu1 }
 0x1ff   :  { %5452 = vst.msk [vmem:[%s14487_s2 + $0x238] sm:$0xff] %vm5380_vm5, %v4922_v27  ;;  %5717 = vst.msk [vmem:[%s14487_s2 + $0xa80] sm:$0xff] %vm5380_vm5, %v5187_v28  ;;  %v2568_v31 = vadd.f32 %v10693_v12, %v2567_v29  ;;  %v7204_v32 = vpop.f32.mrb[145].mxu0  ;;  %7362 = vmatmul.mubr.msk.f32.gmra.mrb[250].mxu0 %vm549_vm4, %v136_v25  ;;  %v3893_v33 = vadd.f32 %v10693_v12, %v3892_v30  ;;  %v7999_v34 = vpop.f32.mrb[145].mxu1  ;;  %8157 = vmatmul.mubr.msk.f32.gmra.mrb[250].mxu1 %vm549_vm4, %v401_v26 }
 0x200   :  { %7364 = vmatprep.mubr.msk.f32.mxu0 %vm8596_vm1, %v8597_v6  ;;  %8159 = vmatprep.mubr.msk.f32.mxu1 %vm8596_vm1, %v8597_v6  ;;  %v408_v34 = vld [vmem:[%s14486_s0 + $0xc68] sm:$0xff] }
 0x201   :  { %v4923_v37 = vmax.f32 %v2568_v31, 0.0  ;;  %v5188_v38 = vmax.f32 %v3893_v33, 0.0  ;;  %v143_v33 = vld [vmem:[%s14486_s0 + $0x420] sm:$0xff] }
 0x202   :  { %v2572_v39 = vpop.f32.mrb[146].mxu0  ;;  %v3897_v40 = vpop.f32.mrb[146].mxu1 }
 0x203   :  { %5453 = vst.msk [vmem:[%s14487_s2 + $0x240] sm:$0xff] %vm5380_vm5, %v4923_v37  ;;  %5718 = vst.msk [vmem:[%s14487_s2 + $0xa88] sm:$0xff] %vm5380_vm5, %v5188_v38  ;;  %v2573_v41 = vadd.f32 %v10693_v12, %v2572_v39  ;;  %v7207_v42 = vpop.f32.mrb[147].mxu0  ;;  %7365 = vmatmul.mubr.msk.f32.gmra.mrb[252].mxu0 %vm549_vm4, %v137_v35  ;;  %v3898_v43 = vadd.f32 %v10693_v12, %v3897_v40  ;;  %v8002_v44 = vpop.f32.mrb[147].mxu1  ;;  %8160 = vmatmul.mubr.msk.f32.gmra.mrb[252].mxu1 %vm549_vm4, %v402_v36 }
 0x204   :  { %7367 = vmatprep.mubr.msk.f32.mxu0 %vm8596_vm1, %v8597_v6  ;;  %8162 = vmatprep.mubr.msk.f32.mxu1 %vm8596_vm1, %v8597_v6  ;;  %v409_v44 = vld [vmem:[%s14486_s0 + $0xc70] sm:$0xff] }
 0x205   :  { %v4924_v47 = vmax.f32 %v2573_v41, 0.0  ;;  %v5189_v48 = vmax.f32 %v3898_v43, 0.0  ;;  %v144_v43 = vld [vmem:[%s14486_s0 + $0x428] sm:$0xff] }
 0x206   :  { %v2577_v49 = vpop.f32.mrb[148].mxu0  ;;  %v3902_v50 = vpop.f32.mrb[148].mxu1 }
 0x207   :  { %5454 = vst.msk [vmem:[%s14487_s2 + $0x248] sm:$0xff] %vm5380_vm5, %v4924_v47  ;;  %5719 = vst.msk [vmem:[%s14487_s2 + $0xa90] sm:$0xff] %vm5380_vm5, %v5189_v48  ;;  %v2578_v52 = vadd.f32 %v10693_v12, %v2577_v49  ;;  %v7210_v53 = vpop.f32.mrb[149].mxu0  ;;  %7368 = vmatmul.mubr.msk.f32.gmra.mrb[254].mxu0 %vm549_vm4, %v138_v45  ;;  %v3903_v54 = vadd.f32 %v10693_v12, %v3902_v50  ;;  %v8005_v55 = vpop.f32.mrb[149].mxu1  ;;  %8163 = vmatmul.mubr.msk.f32.gmra.mrb[254].mxu1 %vm549_vm4, %v403_v46 }
 0x208   :  { %7370 = vmatprep.mubr.msk.f32.mxu0 %vm8596_vm1, %v8597_v6  ;;  %8165 = vmatprep.mubr.msk.f32.mxu1 %vm8596_vm1, %v8597_v6  ;;  %v410_v55 = vld [vmem:[%s14486_s0 + $0xc78] sm:$0xff] }
 0x209   :  { %v4925_v58 = vmax.f32 %v2578_v52, 0.0  ;;  %v5190_v59 = vmax.f32 %v3903_v54, 0.0  ;;  %v145_v54 = vld [vmem:[%s14486_s0 + $0x430] sm:$0xff] }
 0x20a   :  { %v2582_v60 = vpop.f32.mrb[150].mxu0  ;;  %v3907_v61 = vpop.f32.mrb[150].mxu1 }
 0x20b   :  { %5455 = vst.msk [vmem:[%s14487_s2 + $0x250] sm:$0xff] %vm5380_vm5, %v4925_v58  ;;  %5720 = vst.msk [vmem:[%s14487_s2 + $0xa98] sm:$0xff] %vm5380_vm5, %v5190_v59  ;;  %v2583_v62 = vadd.f32 %v10693_v12, %v2582_v60  ;;  %v7213_v63 = vpop.f32.mrb[151].mxu0  ;;  %7371 = vmatmul.mubr.msk.f32.gmra.mrb[0].mxu0 %vm549_vm4, %v139_v56  ;;  %v3908_v51 = vadd.f32 %v10693_v12, %v3907_v61  ;;  %v8008_v0 = vpop.f32.mrb[151].mxu1  ;;  %8166 = vmatmul.mubr.msk.f32.gmra.mrb[0].mxu1 %vm549_vm4, %v404_v57 }
 0x20c   :  { %7373 = vmatprep.mubr.msk.f32.mxu0 %vm8596_vm1, %v8597_v6  ;;  %8168 = vmatprep.mubr.msk.f32.mxu1 %vm8596_vm1, %v8597_v6  ;;  %v411_v0 = vld [vmem:[%s14486_s0 + $0xc80] sm:$0xff] }
 0x20d   :  { %v4926_v4 = vmax.f32 %v2583_v62, 0.0  ;;  %v5191_v5 = vmax.f32 %v3908_v51, 0.0  ;;  %v146_v51 = vld [vmem:[%s14486_s0 + $0x438] sm:$0xff] }
 0x20e   :  { %v2587_v7 = vpop.f32.mrb[152].mxu0  ;;  %v3912_v8 = vpop.f32.mrb[152].mxu1 }
 0x20f   :  { %5456 = vst.msk [vmem:[%s14487_s2 + $0x258] sm:$0xff] %vm5380_vm5, %v4926_v4  ;;  %5721 = vst.msk [vmem:[%s14487_s2 + $0xaa0] sm:$0xff] %vm5380_vm5, %v5191_v5  ;;  %v2588_v9 = vadd.f32 %v10693_v12, %v2587_v7  ;;  %v7216_v10 = vpop.f32.mrb[153].mxu0  ;;  %7374 = vmatmul.mubr.msk.f32.gmra.mrb[2].mxu0 %vm549_vm4, %v140_v2  ;;  %v3913_v1 = vadd.f32 %v10693_v12, %v3912_v8  ;;  %v8011_v11 = vpop.f32.mrb[153].mxu1  ;;  %8169 = vmatmul.mubr.msk.f32.gmra.mrb[2].mxu1 %vm549_vm4, %v405_v3 }
 0x210   :  { %7376 = vmatprep.mubr.msk.f32.mxu0 %vm8596_vm1, %v8597_v6  ;;  %8171 = vmatprep.mubr.msk.f32.mxu1 %vm8596_vm1, %v8597_v6  ;;  %v412_v11 = vld [vmem:[%s14486_s0 + $0xc88] sm:$0xff] }
 0x211   :  { %v4927_v15 = vmax.f32 %v2588_v9, 0.0  ;;  %v5192_v16 = vmax.f32 %v3913_v1, 0.0  ;;  %v147_v1 = vld [vmem:[%s14486_s0 + $0x440] sm:$0xff] }
 0x212   :  { %v2592_v17 = vpop.f32.mrb[154].mxu0  ;;  %v3917_v18 = vpop.f32.mrb[154].mxu1 }
 0x213   :  { %5457 = vst.msk [vmem:[%s14487_s2 + $0x260] sm:$0xff] %vm5380_vm5, %v4927_v15  ;;  %5722 = vst.msk [vmem:[%s14487_s2 + $0xaa8] sm:$0xff] %vm5380_vm5, %v5192_v16  ;;  %v2593_v19 = vadd.f32 %v10693_v12, %v2592_v17  ;;  %v7219_v20 = vpop.f32.mrb[155].mxu0  ;;  %7377 = vmatmul.mubr.msk.f32.gmra.mrb[4].mxu0 %vm549_vm4, %v141_v13  ;;  %v3918_v21 = vadd.f32 %v10693_v12, %v3917_v18  ;;  %v8014_v22 = vpop.f32.mrb[155].mxu1  ;;  %8172 = vmatmul.mubr.msk.f32.gmra.mrb[4].mxu1 %vm549_vm4, %v406_v14 }
 0x214   :  { %7379 = vmatprep.mubr.msk.f32.mxu0 %vm8596_vm1, %v8597_v6  ;;  %8174 = vmatprep.mubr.msk.f32.mxu1 %vm8596_vm1, %v8597_v6  ;;  %v413_v22 = vld [vmem:[%s14486_s0 + $0xc90] sm:$0xff] }
 0x215   :  { %v4928_v25 = vmax.f32 %v2593_v19, 0.0  ;;  %v5193_v26 = vmax.f32 %v3918_v21, 0.0  ;;  %v148_v21 = vld [vmem:[%s14486_s0 + $0x448] sm:$0xff] }
 0x216   :  { %v2597_v27 = vpop.f32.mrb[156].mxu0  ;;  %v3922_v28 = vpop.f32.mrb[156].mxu1 }
 0x217   :  { %5458 = vst.msk [vmem:[%s14487_s2 + $0x268] sm:$0xff] %vm5380_vm5, %v4928_v25  ;;  %5723 = vst.msk [vmem:[%s14487_s2 + $0xab0] sm:$0xff] %vm5380_vm5, %v5193_v26  ;;  %v2598_v29 = vadd.f32 %v10693_v12, %v2597_v27  ;;  %v7222_v30 = vpop.f32.mrb[157].mxu0  ;;  %7380 = vmatmul.mubr.msk.f32.gmra.mrb[6].mxu0 %vm549_vm4, %v142_v23  ;;  %v3923_v31 = vadd.f32 %v10693_v12, %v3922_v28  ;;  %v8017_v32 = vpop.f32.mrb[157].mxu1  ;;  %8175 = vmatmul.mubr.msk.f32.gmra.mrb[6].mxu1 %vm549_vm4, %v407_v24 }
 0x218   :  { %7382 = vmatprep.mubr.msk.f32.mxu0 %vm8596_vm1, %v8597_v6  ;;  %8177 = vmatprep.mubr.msk.f32.mxu1 %vm8596_vm1, %v8597_v6  ;;  %v414_v32 = vld [vmem:[%s14486_s0 + $0xc98] sm:$0xff] }
 0x219   :  { %v4929_v35 = vmax.f32 %v2598_v29, 0.0  ;;  %v5194_v36 = vmax.f32 %v3923_v31, 0.0  ;;  %v149_v31 = vld [vmem:[%s14486_s0 + $0x450] sm:$0xff] }
 0x21a   :  { %v2602_v37 = vpop.f32.mrb[158].mxu0  ;;  %v3927_v38 = vpop.f32.mrb[158].mxu1 }
 0x21b   :  { %5459 = vst.msk [vmem:[%s14487_s2 + $0x270] sm:$0xff] %vm5380_vm5, %v4929_v35  ;;  %5724 = vst.msk [vmem:[%s14487_s2 + $0xab8] sm:$0xff] %vm5380_vm5, %v5194_v36  ;;  %v2603_v39 = vadd.f32 %v10693_v12, %v2602_v37  ;;  %v7225_v40 = vpop.f32.mrb[159].mxu0  ;;  %7383 = vmatmul.mubr.msk.f32.gmra.mrb[8].mxu0 %vm549_vm4, %v143_v33  ;;  %v3928_v41 = vadd.f32 %v10693_v12, %v3927_v38  ;;  %v8020_v42 = vpop.f32.mrb[159].mxu1  ;;  %8178 = vmatmul.mubr.msk.f32.gmra.mrb[8].mxu1 %vm549_vm4, %v408_v34 }
 0x21c   :  { %7385 = vmatprep.mubr.msk.f32.mxu0 %vm8596_vm1, %v8597_v6  ;;  %8180 = vmatprep.mubr.msk.f32.mxu1 %vm8596_vm1, %v8597_v6  ;;  %v415_v42 = vld [vmem:[%s14486_s0 + $0xca0] sm:$0xff] }
 0x21d   :  { %v4930_v45 = vmax.f32 %v2603_v39, 0.0  ;;  %v5195_v46 = vmax.f32 %v3928_v41, 0.0  ;;  %v150_v41 = vld [vmem:[%s14486_s0 + $0x458] sm:$0xff] }
 0x21e   :  { %v2607_v47 = vpop.f32.mrb[160].mxu0  ;;  %v3932_v48 = vpop.f32.mrb[160].mxu1 }
 0x21f   :  { %5460 = vst.msk [vmem:[%s14487_s2 + $0x278] sm:$0xff] %vm5380_vm5, %v4930_v45  ;;  %5725 = vst.msk [vmem:[%s14487_s2 + $0xac0] sm:$0xff] %vm5380_vm5, %v5195_v46  ;;  %v2608_v49 = vadd.f32 %v10693_v12, %v2607_v47  ;;  %v7228_v50 = vpop.f32.mrb[161].mxu0  ;;  %7386 = vmatmul.mubr.msk.f32.gmra.mrb[10].mxu0 %vm549_vm4, %v144_v43  ;;  %v3933_v52 = vadd.f32 %v10693_v12, %v3932_v48  ;;  %v8023_v53 = vpop.f32.mrb[161].mxu1  ;;  %8181 = vmatmul.mubr.msk.f32.gmra.mrb[10].mxu1 %vm549_vm4, %v409_v44 }
 0x220   :  { %7388 = vmatprep.mubr.msk.f32.mxu0 %vm8596_vm1, %v8597_v6  ;;  %8183 = vmatprep.mubr.msk.f32.mxu1 %vm8596_vm1, %v8597_v6  ;;  %v416_v53 = vld [vmem:[%s14486_s0 + $0xca8] sm:$0xff] }
 0x221   :  { %v4931_v56 = vmax.f32 %v2608_v49, 0.0  ;;  %v5196_v57 = vmax.f32 %v3933_v52, 0.0  ;;  %v151_v52 = vld [vmem:[%s14486_s0 + $0x460] sm:$0xff] }
 0x222   :  { %v2612_v58 = vpop.f32.mrb[162].mxu0  ;;  %v3937_v59 = vpop.f32.mrb[162].mxu1 }
 0x223   :  { %5461 = vst.msk [vmem:[%s14487_s2 + $0x280] sm:$0xff] %vm5380_vm5, %v4931_v56  ;;  %5726 = vst.msk [vmem:[%s14487_s2 + $0xac8] sm:$0xff] %vm5380_vm5, %v5196_v57  ;;  %v2613_v60 = vadd.f32 %v10693_v12, %v2612_v58  ;;  %v7231_v61 = vpop.f32.mrb[163].mxu0  ;;  %7389 = vmatmul.mubr.msk.f32.gmra.mrb[12].mxu0 %vm549_vm4, %v145_v54  ;;  %v3938_v62 = vadd.f32 %v10693_v12, %v3937_v59  ;;  %v8026_v63 = vpop.f32.mrb[163].mxu1  ;;  %8184 = vmatmul.mubr.msk.f32.gmra.mrb[12].mxu1 %vm549_vm4, %v410_v55 }
 0x224   :  { %7391 = vmatprep.mubr.msk.f32.mxu0 %vm8596_vm1, %v8597_v6  ;;  %8186 = vmatprep.mubr.msk.f32.mxu1 %vm8596_vm1, %v8597_v6  ;;  %v417_v63 = vld [vmem:[%s14486_s0 + $0xcb0] sm:$0xff] }
 0x225   :  { %v4932_v2 = vmax.f32 %v2613_v60, 0.0  ;;  %v5197_v3 = vmax.f32 %v3938_v62, 0.0  ;;  %v152_v62 = vld [vmem:[%s14486_s0 + $0x468] sm:$0xff] }
 0x226   :  { %v2617_v4 = vpop.f32.mrb[164].mxu0  ;;  %v3942_v5 = vpop.f32.mrb[164].mxu1 }
 0x227   :  { %5462 = vst.msk [vmem:[%s14487_s2 + $0x288] sm:$0xff] %vm5380_vm5, %v4932_v2  ;;  %5727 = vst.msk [vmem:[%s14487_s2 + $0xad0] sm:$0xff] %vm5380_vm5, %v5197_v3  ;;  %v2618_v7 = vadd.f32 %v10693_v12, %v2617_v4  ;;  %v7234_v8 = vpop.f32.mrb[165].mxu0  ;;  %7392 = vmatmul.mubr.msk.f32.gmra.mrb[14].mxu0 %vm549_vm4, %v146_v51  ;;  %v3943_v9 = vadd.f32 %v10693_v12, %v3942_v5  ;;  %v8029_v10 = vpop.f32.mrb[165].mxu1  ;;  %8187 = vmatmul.mubr.msk.f32.gmra.mrb[14].mxu1 %vm549_vm4, %v411_v0 }
 0x228   :  { %7394 = vmatprep.mubr.msk.f32.mxu0 %vm8596_vm1, %v8597_v6  ;;  %8189 = vmatprep.mubr.msk.f32.mxu1 %vm8596_vm1, %v8597_v6  ;;  %v418_v10 = vld [vmem:[%s14486_s0 + $0xcb8] sm:$0xff] }
 0x229   :  { %v4933_v13 = vmax.f32 %v2618_v7, 0.0  ;;  %v5198_v14 = vmax.f32 %v3943_v9, 0.0  ;;  %v153_v9 = vld [vmem:[%s14486_s0 + $0x470] sm:$0xff] }
 0x22a   :  { %v2622_v15 = vpop.f32.mrb[166].mxu0  ;;  %v3947_v16 = vpop.f32.mrb[166].mxu1 }
 0x22b   :  { %5463 = vst.msk [vmem:[%s14487_s2 + $0x290] sm:$0xff] %vm5380_vm5, %v4933_v13  ;;  %5728 = vst.msk [vmem:[%s14487_s2 + $0xad8] sm:$0xff] %vm5380_vm5, %v5198_v14  ;;  %v2623_v17 = vadd.f32 %v10693_v12, %v2622_v15  ;;  %v7237_v18 = vpop.f32.mrb[167].mxu0  ;;  %7395 = vmatmul.mubr.msk.f32.gmra.mrb[16].mxu0 %vm549_vm4, %v147_v1  ;;  %v3948_v19 = vadd.f32 %v10693_v12, %v3947_v16  ;;  %v8032_v20 = vpop.f32.mrb[167].mxu1  ;;  %8190 = vmatmul.mubr.msk.f32.gmra.mrb[16].mxu1 %vm549_vm4, %v412_v11 }
 0x22c   :  { %7397 = vmatprep.mubr.msk.f32.mxu0 %vm8596_vm1, %v8597_v6  ;;  %8192 = vmatprep.mubr.msk.f32.mxu1 %vm8596_vm1, %v8597_v6  ;;  %v419_v20 = vld [vmem:[%s14486_s0 + $0xcc0] sm:$0xff] }
 0x22d   :  { %v4934_v23 = vmax.f32 %v2623_v17, 0.0  ;;  %v5199_v24 = vmax.f32 %v3948_v19, 0.0  ;;  %v154_v19 = vld [vmem:[%s14486_s0 + $0x478] sm:$0xff] }
 0x22e   :  { %v2627_v25 = vpop.f32.mrb[168].mxu0  ;;  %v3952_v26 = vpop.f32.mrb[168].mxu1 }
 0x22f   :  { %5464 = vst.msk [vmem:[%s14487_s2 + $0x298] sm:$0xff] %vm5380_vm5, %v4934_v23  ;;  %5729 = vst.msk [vmem:[%s14487_s2 + $0xae0] sm:$0xff] %vm5380_vm5, %v5199_v24  ;;  %v2628_v27 = vadd.f32 %v10693_v12, %v2627_v25  ;;  %v7240_v28 = vpop.f32.mrb[169].mxu0  ;;  %7398 = vmatmul.mubr.msk.f32.gmra.mrb[18].mxu0 %vm549_vm4, %v148_v21  ;;  %v3953_v29 = vadd.f32 %v10693_v12, %v3952_v26  ;;  %v8035_v30 = vpop.f32.mrb[169].mxu1  ;;  %8193 = vmatmul.mubr.msk.f32.gmra.mrb[18].mxu1 %vm549_vm4, %v413_v22 }
 0x230   :  { %7400 = vmatprep.mubr.msk.f32.mxu0 %vm8596_vm1, %v8597_v6  ;;  %8195 = vmatprep.mubr.msk.f32.mxu1 %vm8596_vm1, %v8597_v6  ;;  %v420_v30 = vld [vmem:[%s14486_s0 + $0xcc8] sm:$0xff] }
 0x231   :  { %v4935_v33 = vmax.f32 %v2628_v27, 0.0  ;;  %v5200_v34 = vmax.f32 %v3953_v29, 0.0  ;;  %v155_v29 = vld [vmem:[%s14486_s0 + $0x480] sm:$0xff] }
 0x232   :  { %v2632_v35 = vpop.f32.mrb[170].mxu0  ;;  %v3957_v36 = vpop.f32.mrb[170].mxu1 }
 0x233   :  { %5465 = vst.msk [vmem:[%s14487_s2 + $0x2a0] sm:$0xff] %vm5380_vm5, %v4935_v33  ;;  %5730 = vst.msk [vmem:[%s14487_s2 + $0xae8] sm:$0xff] %vm5380_vm5, %v5200_v34  ;;  %v2633_v37 = vadd.f32 %v10693_v12, %v2632_v35  ;;  %v7243_v38 = vpop.f32.mrb[171].mxu0  ;;  %7401 = vmatmul.mubr.msk.f32.gmra.mrb[20].mxu0 %vm549_vm4, %v149_v31  ;;  %v3958_v39 = vadd.f32 %v10693_v12, %v3957_v36  ;;  %v8038_v40 = vpop.f32.mrb[171].mxu1  ;;  %8196 = vmatmul.mubr.msk.f32.gmra.mrb[20].mxu1 %vm549_vm4, %v414_v32 }
 0x234   :  { %7403 = vmatprep.mubr.msk.f32.mxu0 %vm8596_vm1, %v8597_v6  ;;  %8198 = vmatprep.mubr.msk.f32.mxu1 %vm8596_vm1, %v8597_v6  ;;  %v421_v40 = vld [vmem:[%s14486_s0 + $0xcd0] sm:$0xff] }
 0x235   :  { %v4936_v43 = vmax.f32 %v2633_v37, 0.0  ;;  %v5201_v44 = vmax.f32 %v3958_v39, 0.0  ;;  %v156_v39 = vld [vmem:[%s14486_s0 + $0x488] sm:$0xff] }
 0x236   :  { %v2637_v45 = vpop.f32.mrb[172].mxu0  ;;  %v3962_v46 = vpop.f32.mrb[172].mxu1 }
 0x237   :  { %5466 = vst.msk [vmem:[%s14487_s2 + $0x2a8] sm:$0xff] %vm5380_vm5, %v4936_v43  ;;  %5731 = vst.msk [vmem:[%s14487_s2 + $0xaf0] sm:$0xff] %vm5380_vm5, %v5201_v44  ;;  %v2638_v47 = vadd.f32 %v10693_v12, %v2637_v45  ;;  %v7246_v48 = vpop.f32.mrb[173].mxu0  ;;  %7404 = vmatmul.mubr.msk.f32.gmra.mrb[22].mxu0 %vm549_vm4, %v150_v41  ;;  %v3963_v49 = vadd.f32 %v10693_v12, %v3962_v46  ;;  %v8041_v50 = vpop.f32.mrb[173].mxu1  ;;  %8199 = vmatmul.mubr.msk.f32.gmra.mrb[22].mxu1 %vm549_vm4, %v415_v42 }
 0x238   :  { %7406 = vmatprep.mubr.msk.f32.mxu0 %vm8596_vm1, %v8597_v6  ;;  %8201 = vmatprep.mubr.msk.f32.mxu1 %vm8596_vm1, %v8597_v6  ;;  %v422_v50 = vld [vmem:[%s14486_s0 + $0xcd8] sm:$0xff] }
 0x239   :  { %v4937_v54 = vmax.f32 %v2638_v47, 0.0  ;;  %v5202_v55 = vmax.f32 %v3963_v49, 0.0  ;;  %v157_v49 = vld [vmem:[%s14486_s0 + $0x490] sm:$0xff] }
 0x23a   :  { %v2642_v56 = vpop.f32.mrb[174].mxu0  ;;  %v3967_v57 = vpop.f32.mrb[174].mxu1 }
 0x23b   :  { %5467 = vst.msk [vmem:[%s14487_s2 + $0x2b0] sm:$0xff] %vm5380_vm5, %v4937_v54  ;;  %5732 = vst.msk [vmem:[%s14487_s2 + $0xaf8] sm:$0xff] %vm5380_vm5, %v5202_v55  ;;  %v2643_v58 = vadd.f32 %v10693_v12, %v2642_v56  ;;  %v7249_v59 = vpop.f32.mrb[175].mxu0  ;;  %7407 = vmatmul.mubr.msk.f32.gmra.mrb[24].mxu0 %vm549_vm4, %v151_v52  ;;  %v3968_v60 = vadd.f32 %v10693_v12, %v3967_v57  ;;  %v8044_v61 = vpop.f32.mrb[175].mxu1  ;;  %8202 = vmatmul.mubr.msk.f32.gmra.mrb[24].mxu1 %vm549_vm4, %v416_v53 }
 0x23c   :  { %7409 = vmatprep.mubr.msk.f32.mxu0 %vm8596_vm1, %v8597_v6  ;;  %8204 = vmatprep.mubr.msk.f32.mxu1 %vm8596_vm1, %v8597_v6  ;;  %v423_v61 = vld [vmem:[%s14486_s0 + $0xce0] sm:$0xff] }
 0x23d   :  { %v4938_v51 = vmax.f32 %v2643_v58, 0.0  ;;  %v5203_v0 = vmax.f32 %v3968_v60, 0.0  ;;  %v158_v60 = vld [vmem:[%s14486_s0 + $0x498] sm:$0xff] }
 0x23e   :  { %v2647_v2 = vpop.f32.mrb[176].mxu0  ;;  %v3972_v3 = vpop.f32.mrb[176].mxu1 }
 0x23f   :  { %5468 = vst.msk [vmem:[%s14487_s2 + $0x2b8] sm:$0xff] %vm5380_vm5, %v4938_v51  ;;  %5733 = vst.msk [vmem:[%s14487_s2 + $0xb00] sm:$0xff] %vm5380_vm5, %v5203_v0  ;;  %v2648_v4 = vadd.f32 %v10693_v12, %v2647_v2  ;;  %v7252_v5 = vpop.f32.mrb[177].mxu0  ;;  %7410 = vmatmul.mubr.msk.f32.gmra.mrb[26].mxu0 %vm549_vm4, %v152_v62  ;;  %v3973_v7 = vadd.f32 %v10693_v12, %v3972_v3  ;;  %v8047_v8 = vpop.f32.mrb[177].mxu1  ;;  %8205 = vmatmul.mubr.msk.f32.gmra.mrb[26].mxu1 %vm549_vm4, %v417_v63 }
 0x240   :  { %7412 = vmatprep.mubr.msk.f32.mxu0 %vm8596_vm1, %v8597_v6  ;;  %8207 = vmatprep.mubr.msk.f32.mxu1 %vm8596_vm1, %v8597_v6  ;;  %v424_v8 = vld [vmem:[%s14486_s0 + $0xce8] sm:$0xff] }
 0x241   :  { %v4939_v1 = vmax.f32 %v2648_v4, 0.0  ;;  %v5204_v11 = vmax.f32 %v3973_v7, 0.0  ;;  %v159_v7 = vld [vmem:[%s14486_s0 + $0x4a0] sm:$0xff] }
 0x242   :  { %v2652_v13 = vpop.f32.mrb[178].mxu0  ;;  %v3977_v14 = vpop.f32.mrb[178].mxu1 }
 0x243   :  { %5469 = vst.msk [vmem:[%s14487_s2 + $0x2c0] sm:$0xff] %vm5380_vm5, %v4939_v1  ;;  %5734 = vst.msk [vmem:[%s14487_s2 + $0xb08] sm:$0xff] %vm5380_vm5, %v5204_v11  ;;  %v2653_v15 = vadd.f32 %v10693_v12, %v2652_v13  ;;  %v7255_v16 = vpop.f32.mrb[179].mxu0  ;;  %7413 = vmatmul.mubr.msk.f32.gmra.mrb[28].mxu0 %vm549_vm4, %v153_v9  ;;  %v3978_v17 = vadd.f32 %v10693_v12, %v3977_v14  ;;  %v8050_v18 = vpop.f32.mrb[179].mxu1  ;;  %8208 = vmatmul.mubr.msk.f32.gmra.mrb[28].mxu1 %vm549_vm4, %v418_v10 }
 0x244   :  { %7415 = vmatprep.mubr.msk.f32.mxu0 %vm8596_vm1, %v8597_v6  ;;  %8210 = vmatprep.mubr.msk.f32.mxu1 %vm8596_vm1, %v8597_v6  ;;  %v425_v18 = vld [vmem:[%s14486_s0 + $0xcf0] sm:$0xff] }
 0x245   :  { %v4940_v21 = vmax.f32 %v2653_v15, 0.0  ;;  %v5205_v22 = vmax.f32 %v3978_v17, 0.0  ;;  %v160_v17 = vld [vmem:[%s14486_s0 + $0x4a8] sm:$0xff] }
 0x246   :  { %v2657_v23 = vpop.f32.mrb[180].mxu0  ;;  %v3982_v24 = vpop.f32.mrb[180].mxu1 }
 0x247   :  { %5470 = vst.msk [vmem:[%s14487_s2 + $0x2c8] sm:$0xff] %vm5380_vm5, %v4940_v21  ;;  %5735 = vst.msk [vmem:[%s14487_s2 + $0xb10] sm:$0xff] %vm5380_vm5, %v5205_v22  ;;  %v2658_v25 = vadd.f32 %v10693_v12, %v2657_v23  ;;  %v7258_v26 = vpop.f32.mrb[181].mxu0  ;;  %7416 = vmatmul.mubr.msk.f32.gmra.mrb[30].mxu0 %vm549_vm4, %v154_v19  ;;  %v3983_v27 = vadd.f32 %v10693_v12, %v3982_v24  ;;  %v8053_v28 = vpop.f32.mrb[181].mxu1  ;;  %8211 = vmatmul.mubr.msk.f32.gmra.mrb[30].mxu1 %vm549_vm4, %v419_v20  ;;  %v11402_v22 = vld [vmem:[%s14485_s1 + $0x19] ss:$0 sm:$0xff] }
 0x248   :  { %7418 = vmatprep.mubr.msk.f32.mxu0 %vm8596_vm1, %v8597_v6  ;;  %8213 = vmatprep.mubr.msk.f32.mxu1 %vm8596_vm1, %v8597_v6  ;;  %v426_v28 = vld [vmem:[%s14486_s0 + $0xcf8] sm:$0xff] }
 0x249   :  { %v4941_v31 = vmax.f32 %v2658_v25, 0.0  ;;  %v5206_v32 = vmax.f32 %v3983_v27, 0.0  ;;  %v161_v27 = vld [vmem:[%s14486_s0 + $0x4b0] sm:$0xff] }
 0x24a   :  { %v2662_v33 = vpop.f32.mrb[182].mxu0  ;;  %v3987_v34 = vpop.f32.mrb[182].mxu1 }
 0x24b   :  { %5471 = vst.msk [vmem:[%s14487_s2 + $0x2d0] sm:$0xff] %vm5380_vm5, %v4941_v31  ;;  %5736 = vst.msk [vmem:[%s14487_s2 + $0xb18] sm:$0xff] %vm5380_vm5, %v5206_v32  ;;  %v2663_v35 = vadd.f32 %v10693_v12, %v2662_v33  ;;  %v7261_v36 = vpop.f32.mrb[183].mxu0  ;;  %7419 = vmatmul.mubr.msk.f32.gmra.mrb[32].mxu0 %vm549_vm4, %v155_v29  ;;  %v3988_v37 = vadd.f32 %v10693_v12, %v3987_v34  ;;  %v8056_v38 = vpop.f32.mrb[183].mxu1  ;;  %8214 = vmatmul.mubr.msk.f32.gmra.mrb[32].mxu1 %vm549_vm4, %v420_v30 }
 0x24c   :  { %7421 = vmatprep.mubr.msk.f32.mxu0 %vm8596_vm1, %v8597_v6  ;;  %8216 = vmatprep.mubr.msk.f32.mxu1 %vm8596_vm1, %v8597_v6  ;;  %v427_v38 = vld [vmem:[%s14486_s0 + $0xd00] sm:$0xff] }
 0x24d   :  { %v4942_v41 = vmax.f32 %v2663_v35, 0.0  ;;  %v5207_v42 = vmax.f32 %v3988_v37, 0.0  ;;  %v162_v37 = vld [vmem:[%s14486_s0 + $0x4b8] sm:$0xff] }
 0x24e   :  { %v2667_v43 = vpop.f32.mrb[184].mxu0  ;;  %v3992_v44 = vpop.f32.mrb[184].mxu1 }
 0x24f   :  { %5472 = vst.msk [vmem:[%s14487_s2 + $0x2d8] sm:$0xff] %vm5380_vm5, %v4942_v41  ;;  %5737 = vst.msk [vmem:[%s14487_s2 + $0xb20] sm:$0xff] %vm5380_vm5, %v5207_v42  ;;  %v2668_v45 = vadd.f32 %v10693_v12, %v2667_v43  ;;  %v7264_v46 = vpop.f32.mrb[185].mxu0  ;;  %7422 = vmatmul.mubr.msk.f32.gmra.mrb[34].mxu0 %vm549_vm4, %v156_v39  ;;  %v3993_v47 = vadd.f32 %v10693_v12, %v3992_v44  ;;  %v8059_v48 = vpop.f32.mrb[185].mxu1  ;;  %8217 = vmatmul.mubr.msk.f32.gmra.mrb[34].mxu1 %vm549_vm4, %v421_v40 }
 0x250   :  { %7424 = vmatprep.mubr.msk.f32.mxu0 %vm8596_vm1, %v8597_v6  ;;  %8219 = vmatprep.mubr.msk.f32.mxu1 %vm8596_vm1, %v8597_v6  ;;  %v428_v48 = vld [vmem:[%s14486_s0 + $0xd08] sm:$0xff] }
 0x251   :  { %v4943_v52 = vmax.f32 %v2668_v45, 0.0  ;;  %v5208_v53 = vmax.f32 %v3993_v47, 0.0  ;;  %v163_v47 = vld [vmem:[%s14486_s0 + $0x4c0] sm:$0xff] }
 0x252   :  { %v2672_v54 = vpop.f32.mrb[186].mxu0  ;;  %v3997_v55 = vpop.f32.mrb[186].mxu1 }
 0x253   :  { %5473 = vst.msk [vmem:[%s14487_s2 + $0x2e0] sm:$0xff] %vm5380_vm5, %v4943_v52  ;;  %5738 = vst.msk [vmem:[%s14487_s2 + $0xb28] sm:$0xff] %vm5380_vm5, %v5208_v53  ;;  %v2673_v56 = vadd.f32 %v10693_v12, %v2672_v54  ;;  %v7267_v57 = vpop.f32.mrb[187].mxu0  ;;  %7425 = vmatmul.mubr.msk.f32.gmra.mrb[36].mxu0 %vm549_vm4, %v157_v49  ;;  %v3998_v58 = vadd.f32 %v10693_v12, %v3997_v55  ;;  %v8062_v59 = vpop.f32.mrb[187].mxu1  ;;  %8220 = vmatmul.mubr.msk.f32.gmra.mrb[36].mxu1 %vm549_vm4, %v422_v50 }
 0x254   :  { %7427 = vmatprep.mubr.msk.f32.mxu0 %vm8596_vm1, %v8597_v6  ;;  %8222 = vmatprep.mubr.msk.f32.mxu1 %vm8596_vm1, %v8597_v6  ;;  %v429_v59 = vld [vmem:[%s14486_s0 + $0xd10] sm:$0xff] }
 0x255   :  { %v4944_v62 = vmax.f32 %v2673_v56, 0.0  ;;  %v5209_v63 = vmax.f32 %v3998_v58, 0.0  ;;  %v164_v58 = vld [vmem:[%s14486_s0 + $0x4c8] sm:$0xff] }
 0x256   :  { %v2677_v51 = vpop.f32.mrb[188].mxu0  ;;  %v4002_v0 = vpop.f32.mrb[188].mxu1 }
 0x257   :  { %5474 = vst.msk [vmem:[%s14487_s2 + $0x2e8] sm:$0xff] %vm5380_vm5, %v4944_v62  ;;  %5739 = vst.msk [vmem:[%s14487_s2 + $0xb30] sm:$0xff] %vm5380_vm5, %v5209_v63  ;;  %v2678_v2 = vadd.f32 %v10693_v12, %v2677_v51  ;;  %v7270_v3 = vpop.f32.mrb[189].mxu0  ;;  %7428 = vmatmul.mubr.msk.f32.gmra.mrb[38].mxu0 %vm549_vm4, %v158_v60  ;;  %v4003_v4 = vadd.f32 %v10693_v12, %v4002_v0  ;;  %v8065_v5 = vpop.f32.mrb[189].mxu1  ;;  %8223 = vmatmul.mubr.msk.f32.gmra.mrb[38].mxu1 %vm549_vm4, %v423_v61 }
 0x258   :  { %7430 = vmatprep.mubr.msk.f32.mxu0 %vm8596_vm1, %v8597_v6  ;;  %8225 = vmatprep.mubr.msk.f32.mxu1 %vm8596_vm1, %v8597_v6  ;;  %v430_v5 = vld [vmem:[%s14486_s0 + $0xd18] sm:$0xff] }
 0x259   :  { %v4945_v9 = vmax.f32 %v2678_v2, 0.0  ;;  %v5210_v10 = vmax.f32 %v4003_v4, 0.0  ;;  %v165_v4 = vld [vmem:[%s14486_s0 + $0x4d0] sm:$0xff] }
 0x25a   :  { %v2682_v1 = vpop.f32.mrb[190].mxu0  ;;  %v4007_v11 = vpop.f32.mrb[190].mxu1 }
 0x25b   :  { %5475 = vst.msk [vmem:[%s14487_s2 + $0x2f0] sm:$0xff] %vm5380_vm5, %v4945_v9  ;;  %5740 = vst.msk [vmem:[%s14487_s2 + $0xb38] sm:$0xff] %vm5380_vm5, %v5210_v10  ;;  %v2683_v13 = vadd.f32 %v10693_v12, %v2682_v1  ;;  %v7273_v14 = vpop.f32.mrb[191].mxu0  ;;  %7431 = vmatmul.mubr.msk.f32.gmra.mrb[40].mxu0 %vm549_vm4, %v159_v7  ;;  %v4008_v15 = vadd.f32 %v10693_v12, %v4007_v11  ;;  %v8068_v16 = vpop.f32.mrb[191].mxu1  ;;  %8226 = vmatmul.mubr.msk.f32.gmra.mrb[40].mxu1 %vm549_vm4, %v424_v8 }
 0x25c   :  { %7433 = vmatprep.mubr.msk.f32.mxu0 %vm8596_vm1, %v8597_v6  ;;  %8228 = vmatprep.mubr.msk.f32.mxu1 %vm8596_vm1, %v8597_v6  ;;  %v431_v16 = vld [vmem:[%s14486_s0 + $0xd20] sm:$0xff] }
 0x25d   :  { %v4946_v19 = vmax.f32 %v2683_v13, 0.0  ;;  %v5211_v20 = vmax.f32 %v4008_v15, 0.0  ;;  %v166_v15 = vld [vmem:[%s14486_s0 + $0x4d8] sm:$0xff] }
 0x25e   :  { %v2687_v12 = vpop.f32.mrb[192].mxu0  ;;  %v4012_v21 = vpop.f32.mrb[192].mxu1 }
 0x25f   :  { %5476 = vst.msk [vmem:[%s14487_s2 + $0x2f8] sm:$0xff] %vm5380_vm5, %v4946_v19  ;;  %5741 = vst.msk [vmem:[%s14487_s2 + $0xb40] sm:$0xff] %vm5380_vm5, %v5211_v20  ;;  %v2688_v23 = vadd.f32 %v11402_v22, %v2687_v12  ;;  %v7276_v24 = vpop.f32.mrb[193].mxu0  ;;  %7434 = vmatmul.mubr.msk.f32.gmra.mrb[42].mxu0 %vm549_vm4, %v160_v17  ;;  %v4013_v25 = vadd.f32 %v11402_v22, %v4012_v21  ;;  %v8071_v26 = vpop.f32.mrb[193].mxu1  ;;  %8229 = vmatmul.mubr.msk.f32.gmra.mrb[42].mxu1 %vm549_vm4, %v425_v18 }
 0x260   :  { %7436 = vmatprep.mubr.msk.f32.mxu0 %vm8596_vm1, %v8597_v6  ;;  %8231 = vmatprep.mubr.msk.f32.mxu1 %vm8596_vm1, %v8597_v6  ;;  %v432_v26 = vld [vmem:[%s14486_s0 + $0xd28] sm:$0xff] }
 0x261   :  { %v4947_v29 = vmax.f32 %v2688_v23, 0.0  ;;  %v5212_v30 = vmax.f32 %v4013_v25, 0.0  ;;  %v167_v25 = vld [vmem:[%s14486_s0 + $0x4e0] sm:$0xff] }
 0x262   :  { %v2692_v31 = vpop.f32.mrb[194].mxu0  ;;  %v4017_v32 = vpop.f32.mrb[194].mxu1 }
 0x263   :  { %5477 = vst.msk [vmem:[%s14487_s2 + $0x300] sm:$0xff] %vm5380_vm5, %v4947_v29  ;;  %5742 = vst.msk [vmem:[%s14487_s2 + $0xb48] sm:$0xff] %vm5380_vm5, %v5212_v30  ;;  %v2693_v33 = vadd.f32 %v11402_v22, %v2692_v31  ;;  %v7279_v34 = vpop.f32.mrb[195].mxu0  ;;  %7437 = vmatmul.mubr.msk.f32.gmra.mrb[44].mxu0 %vm549_vm4, %v161_v27  ;;  %v4018_v35 = vadd.f32 %v11402_v22, %v4017_v32  ;;  %v8074_v36 = vpop.f32.mrb[195].mxu1  ;;  %8232 = vmatmul.mubr.msk.f32.gmra.mrb[44].mxu1 %vm549_vm4, %v426_v28 }
 0x264   :  { %7439 = vmatprep.mubr.msk.f32.mxu0 %vm8596_vm1, %v8597_v6  ;;  %8234 = vmatprep.mubr.msk.f32.mxu1 %vm8596_vm1, %v8597_v6  ;;  %v433_v36 = vld [vmem:[%s14486_s0 + $0xd30] sm:$0xff] }
 0x265   :  { %v4948_v39 = vmax.f32 %v2693_v33, 0.0  ;;  %v5213_v40 = vmax.f32 %v4018_v35, 0.0  ;;  %v168_v35 = vld [vmem:[%s14486_s0 + $0x4e8] sm:$0xff] }
 0x266   :  { %v2697_v41 = vpop.f32.mrb[196].mxu0  ;;  %v4022_v42 = vpop.f32.mrb[196].mxu1 }
 0x267   :  { %5478 = vst.msk [vmem:[%s14487_s2 + $0x308] sm:$0xff] %vm5380_vm5, %v4948_v39  ;;  %5743 = vst.msk [vmem:[%s14487_s2 + $0xb50] sm:$0xff] %vm5380_vm5, %v5213_v40  ;;  %v2698_v43 = vadd.f32 %v11402_v22, %v2697_v41  ;;  %v7282_v44 = vpop.f32.mrb[197].mxu0  ;;  %7440 = vmatmul.mubr.msk.f32.gmra.mrb[46].mxu0 %vm549_vm4, %v162_v37  ;;  %v4023_v45 = vadd.f32 %v11402_v22, %v4022_v42  ;;  %v8077_v46 = vpop.f32.mrb[197].mxu1  ;;  %8235 = vmatmul.mubr.msk.f32.gmra.mrb[46].mxu1 %vm549_vm4, %v427_v38 }
 0x268   :  { %7442 = vmatprep.mubr.msk.f32.mxu0 %vm8596_vm1, %v8597_v6  ;;  %8237 = vmatprep.mubr.msk.f32.mxu1 %vm8596_vm1, %v8597_v6  ;;  %v434_v46 = vld [vmem:[%s14486_s0 + $0xd38] sm:$0xff] }
 0x269   :  { %v4949_v49 = vmax.f32 %v2698_v43, 0.0  ;;  %v5214_v50 = vmax.f32 %v4023_v45, 0.0  ;;  %v169_v45 = vld [vmem:[%s14486_s0 + $0x4f0] sm:$0xff] }
 0x26a   :  { %v2702_v52 = vpop.f32.mrb[198].mxu0  ;;  %v4027_v53 = vpop.f32.mrb[198].mxu1 }
 0x26b   :  { %5479 = vst.msk [vmem:[%s14487_s2 + $0x310] sm:$0xff] %vm5380_vm5, %v4949_v49  ;;  %5744 = vst.msk [vmem:[%s14487_s2 + $0xb58] sm:$0xff] %vm5380_vm5, %v5214_v50  ;;  %v2703_v54 = vadd.f32 %v11402_v22, %v2702_v52  ;;  %v7285_v55 = vpop.f32.mrb[199].mxu0  ;;  %7443 = vmatmul.mubr.msk.f32.gmra.mrb[48].mxu0 %vm549_vm4, %v163_v47  ;;  %v4028_v56 = vadd.f32 %v11402_v22, %v4027_v53  ;;  %v8080_v57 = vpop.f32.mrb[199].mxu1  ;;  %8238 = vmatmul.mubr.msk.f32.gmra.mrb[48].mxu1 %vm549_vm4, %v428_v48 }
 0x26c   :  { %7445 = vmatprep.mubr.msk.f32.mxu0 %vm8596_vm1, %v8597_v6  ;;  %8240 = vmatprep.mubr.msk.f32.mxu1 %vm8596_vm1, %v8597_v6  ;;  %v435_v57 = vld [vmem:[%s14486_s0 + $0xd40] sm:$0xff] }
 0x26d   :  { %v4950_v60 = vmax.f32 %v2703_v54, 0.0  ;;  %v5215_v61 = vmax.f32 %v4028_v56, 0.0  ;;  %v170_v56 = vld [vmem:[%s14486_s0 + $0x4f8] sm:$0xff] }
 0x26e   :  { %v2707_v62 = vpop.f32.mrb[200].mxu0  ;;  %v4032_v63 = vpop.f32.mrb[200].mxu1 }
 0x26f   :  { %5480 = vst.msk [vmem:[%s14487_s2 + $0x318] sm:$0xff] %vm5380_vm5, %v4950_v60  ;;  %5745 = vst.msk [vmem:[%s14487_s2 + $0xb60] sm:$0xff] %vm5380_vm5, %v5215_v61  ;;  %v2708_v51 = vadd.f32 %v11402_v22, %v2707_v62  ;;  %v7288_v0 = vpop.f32.mrb[201].mxu0  ;;  %7446 = vmatmul.mubr.msk.f32.gmra.mrb[50].mxu0 %vm549_vm4, %v164_v58  ;;  %v4033_v2 = vadd.f32 %v11402_v22, %v4032_v63  ;;  %v8083_v3 = vpop.f32.mrb[201].mxu1  ;;  %8241 = vmatmul.mubr.msk.f32.gmra.mrb[50].mxu1 %vm549_vm4, %v429_v59 }
 0x270   :  { %7448 = vmatprep.mubr.msk.f32.mxu0 %vm8596_vm1, %v8597_v6  ;;  %8243 = vmatprep.mubr.msk.f32.mxu1 %vm8596_vm1, %v8597_v6  ;;  %v436_v3 = vld [vmem:[%s14486_s0 + $0xd48] sm:$0xff] }
 0x271   :  { %v4951_v7 = vmax.f32 %v2708_v51, 0.0  ;;  %v5216_v8 = vmax.f32 %v4033_v2, 0.0  ;;  %v171_v2 = vld [vmem:[%s14486_s0 + $0x500] sm:$0xff] }
 0x272   :  { %v2712_v9 = vpop.f32.mrb[202].mxu0  ;;  %v4037_v10 = vpop.f32.mrb[202].mxu1 }
 0x273   :  { %5481 = vst.msk [vmem:[%s14487_s2 + $0x320] sm:$0xff] %vm5380_vm5, %v4951_v7  ;;  %5746 = vst.msk [vmem:[%s14487_s2 + $0xb68] sm:$0xff] %vm5380_vm5, %v5216_v8  ;;  %v2713_v1 = vadd.f32 %v11402_v22, %v2712_v9  ;;  %v7291_v11 = vpop.f32.mrb[203].mxu0  ;;  %7449 = vmatmul.mubr.msk.f32.gmra.mrb[52].mxu0 %vm549_vm4, %v165_v4  ;;  %v4038_v13 = vadd.f32 %v11402_v22, %v4037_v10  ;;  %v8086_v14 = vpop.f32.mrb[203].mxu1  ;;  %8244 = vmatmul.mubr.msk.f32.gmra.mrb[52].mxu1 %vm549_vm4, %v430_v5 }
 0x274   :  { %7451 = vmatprep.mubr.msk.f32.mxu0 %vm8596_vm1, %v8597_v6  ;;  %8246 = vmatprep.mubr.msk.f32.mxu1 %vm8596_vm1, %v8597_v6  ;;  %v437_v14 = vld [vmem:[%s14486_s0 + $0xd50] sm:$0xff] }
 0x275   :  { %v4952_v17 = vmax.f32 %v2713_v1, 0.0  ;;  %v5217_v18 = vmax.f32 %v4038_v13, 0.0  ;;  %v172_v13 = vld [vmem:[%s14486_s0 + $0x508] sm:$0xff] }
 0x276   :  { %v2717_v19 = vpop.f32.mrb[204].mxu0  ;;  %v4042_v20 = vpop.f32.mrb[204].mxu1 }
 0x277   :  { %5482 = vst.msk [vmem:[%s14487_s2 + $0x328] sm:$0xff] %vm5380_vm5, %v4952_v17  ;;  %5747 = vst.msk [vmem:[%s14487_s2 + $0xb70] sm:$0xff] %vm5380_vm5, %v5217_v18  ;;  %v2718_v12 = vadd.f32 %v11402_v22, %v2717_v19  ;;  %v7294_v21 = vpop.f32.mrb[205].mxu0  ;;  %7452 = vmatmul.mubr.msk.f32.gmra.mrb[54].mxu0 %vm549_vm4, %v166_v15  ;;  %v4043_v23 = vadd.f32 %v11402_v22, %v4042_v20  ;;  %v8089_v24 = vpop.f32.mrb[205].mxu1  ;;  %8247 = vmatmul.mubr.msk.f32.gmra.mrb[54].mxu1 %vm549_vm4, %v431_v16 }
 0x278   :  { %7454 = vmatprep.mubr.msk.f32.mxu0 %vm8596_vm1, %v8597_v6  ;;  %8249 = vmatprep.mubr.msk.f32.mxu1 %vm8596_vm1, %v8597_v6  ;;  %v438_v24 = vld [vmem:[%s14486_s0 + $0xd58] sm:$0xff] }
 0x279   :  { %v4953_v27 = vmax.f32 %v2718_v12, 0.0  ;;  %v5218_v28 = vmax.f32 %v4043_v23, 0.0  ;;  %v173_v23 = vld [vmem:[%s14486_s0 + $0x510] sm:$0xff] }
 0x27a   :  { %v2722_v29 = vpop.f32.mrb[206].mxu0  ;;  %v4047_v30 = vpop.f32.mrb[206].mxu1 }
 0x27b   :  { %5483 = vst.msk [vmem:[%s14487_s2 + $0x330] sm:$0xff] %vm5380_vm5, %v4953_v27  ;;  %5748 = vst.msk [vmem:[%s14487_s2 + $0xb78] sm:$0xff] %vm5380_vm5, %v5218_v28  ;;  %v2723_v31 = vadd.f32 %v11402_v22, %v2722_v29  ;;  %v7297_v32 = vpop.f32.mrb[207].mxu0  ;;  %7455 = vmatmul.mubr.msk.f32.gmra.mrb[56].mxu0 %vm549_vm4, %v167_v25  ;;  %v4048_v33 = vadd.f32 %v11402_v22, %v4047_v30  ;;  %v8092_v34 = vpop.f32.mrb[207].mxu1  ;;  %8250 = vmatmul.mubr.msk.f32.gmra.mrb[56].mxu1 %vm549_vm4, %v432_v26 }
 0x27c   :  { %7457 = vmatprep.mubr.msk.f32.mxu0 %vm8596_vm1, %v8597_v6  ;;  %8252 = vmatprep.mubr.msk.f32.mxu1 %vm8596_vm1, %v8597_v6  ;;  %v439_v34 = vld [vmem:[%s14486_s0 + $0xd60] sm:$0xff] }
 0x27d   :  { %v4954_v37 = vmax.f32 %v2723_v31, 0.0  ;;  %v5219_v38 = vmax.f32 %v4048_v33, 0.0  ;;  %v174_v33 = vld [vmem:[%s14486_s0 + $0x518] sm:$0xff] }
 0x27e   :  { %v2727_v39 = vpop.f32.mrb[208].mxu0  ;;  %v4052_v40 = vpop.f32.mrb[208].mxu1 }
 0x27f   :  { %5484 = vst.msk [vmem:[%s14487_s2 + $0x338] sm:$0xff] %vm5380_vm5, %v4954_v37  ;;  %5749 = vst.msk [vmem:[%s14487_s2 + $0xb80] sm:$0xff] %vm5380_vm5, %v5219_v38  ;;  %v2728_v41 = vadd.f32 %v11402_v22, %v2727_v39  ;;  %v7300_v42 = vpop.f32.mrb[209].mxu0  ;;  %7458 = vmatmul.mubr.msk.f32.gmra.mrb[58].mxu0 %vm549_vm4, %v168_v35  ;;  %v4053_v43 = vadd.f32 %v11402_v22, %v4052_v40  ;;  %v8095_v44 = vpop.f32.mrb[209].mxu1  ;;  %8253 = vmatmul.mubr.msk.f32.gmra.mrb[58].mxu1 %vm549_vm4, %v433_v36 }
 0x280   :  { %7460 = vmatprep.mubr.msk.f32.mxu0 %vm8596_vm1, %v8597_v6  ;;  %8255 = vmatprep.mubr.msk.f32.mxu1 %vm8596_vm1, %v8597_v6  ;;  %v440_v44 = vld [vmem:[%s14486_s0 + $0xd68] sm:$0xff] }
 0x281   :  { %v4955_v47 = vmax.f32 %v2728_v41, 0.0  ;;  %v5220_v48 = vmax.f32 %v4053_v43, 0.0  ;;  %v175_v43 = vld [vmem:[%s14486_s0 + $0x520] sm:$0xff] }
 0x282   :  { %v2732_v49 = vpop.f32.mrb[210].mxu0  ;;  %v4057_v50 = vpop.f32.mrb[210].mxu1 }
 0x283   :  { %5485 = vst.msk [vmem:[%s14487_s2 + $0x340] sm:$0xff] %vm5380_vm5, %v4955_v47  ;;  %5750 = vst.msk [vmem:[%s14487_s2 + $0xb88] sm:$0xff] %vm5380_vm5, %v5220_v48  ;;  %v2733_v52 = vadd.f32 %v11402_v22, %v2732_v49  ;;  %v7303_v53 = vpop.f32.mrb[211].mxu0  ;;  %7461 = vmatmul.mubr.msk.f32.gmra.mrb[60].mxu0 %vm549_vm4, %v169_v45  ;;  %v4058_v54 = vadd.f32 %v11402_v22, %v4057_v50  ;;  %v8098_v55 = vpop.f32.mrb[211].mxu1  ;;  %8256 = vmatmul.mubr.msk.f32.gmra.mrb[60].mxu1 %vm549_vm4, %v434_v46 }
 0x284   :  { %7463 = vmatprep.mubr.msk.f32.mxu0 %vm8596_vm1, %v8597_v6  ;;  %8258 = vmatprep.mubr.msk.f32.mxu1 %vm8596_vm1, %v8597_v6  ;;  %v441_v55 = vld [vmem:[%s14486_s0 + $0xd70] sm:$0xff] }
 0x285   :  { %v4956_v58 = vmax.f32 %v2733_v52, 0.0  ;;  %v5221_v59 = vmax.f32 %v4058_v54, 0.0  ;;  %v176_v54 = vld [vmem:[%s14486_s0 + $0x528] sm:$0xff] }
 0x286   :  { %v2737_v60 = vpop.f32.mrb[212].mxu0  ;;  %v4062_v61 = vpop.f32.mrb[212].mxu1 }
 0x287   :  { %5486 = vst.msk [vmem:[%s14487_s2 + $0x348] sm:$0xff] %vm5380_vm5, %v4956_v58  ;;  %5751 = vst.msk [vmem:[%s14487_s2 + $0xb90] sm:$0xff] %vm5380_vm5, %v5221_v59  ;;  %v2738_v62 = vadd.f32 %v11402_v22, %v2737_v60  ;;  %v7306_v63 = vpop.f32.mrb[213].mxu0  ;;  %7464 = vmatmul.mubr.msk.f32.gmra.mrb[62].mxu0 %vm549_vm4, %v170_v56  ;;  %v4063_v51 = vadd.f32 %v11402_v22, %v4062_v61  ;;  %v8101_v0 = vpop.f32.mrb[213].mxu1  ;;  %8259 = vmatmul.mubr.msk.f32.gmra.mrb[62].mxu1 %vm549_vm4, %v435_v57 }
 0x288   :  { %7466 = vmatprep.mubr.msk.f32.mxu0 %vm8596_vm1, %v8597_v6  ;;  %8261 = vmatprep.mubr.msk.f32.mxu1 %vm8596_vm1, %v8597_v6  ;;  %v442_v0 = vld [vmem:[%s14486_s0 + $0xd78] sm:$0xff] }
 0x289   :  { %v4957_v4 = vmax.f32 %v2738_v62, 0.0  ;;  %v5222_v5 = vmax.f32 %v4063_v51, 0.0  ;;  %v177_v51 = vld [vmem:[%s14486_s0 + $0x530] sm:$0xff] }
 0x28a   :  { %v2742_v7 = vpop.f32.mrb[214].mxu0  ;;  %v4067_v8 = vpop.f32.mrb[214].mxu1 }
 0x28b   :  { %5487 = vst.msk [vmem:[%s14487_s2 + $0x350] sm:$0xff] %vm5380_vm5, %v4957_v4  ;;  %5752 = vst.msk [vmem:[%s14487_s2 + $0xb98] sm:$0xff] %vm5380_vm5, %v5222_v5  ;;  %v2743_v9 = vadd.f32 %v11402_v22, %v2742_v7  ;;  %v7309_v10 = vpop.f32.mrb[215].mxu0  ;;  %7467 = vmatmul.mubr.msk.f32.gmra.mrb[64].mxu0 %vm549_vm4, %v171_v2  ;;  %v4068_v1 = vadd.f32 %v11402_v22, %v4067_v8  ;;  %v8104_v11 = vpop.f32.mrb[215].mxu1  ;;  %8262 = vmatmul.mubr.msk.f32.gmra.mrb[64].mxu1 %vm549_vm4, %v436_v3 }
 0x28c   :  { %7469 = vmatprep.mubr.msk.f32.mxu0 %vm8596_vm1, %v8597_v6  ;;  %8264 = vmatprep.mubr.msk.f32.mxu1 %vm8596_vm1, %v8597_v6  ;;  %v443_v11 = vld [vmem:[%s14486_s0 + $0xd80] sm:$0xff] }
 0x28d   :  { %v4958_v15 = vmax.f32 %v2743_v9, 0.0  ;;  %v5223_v16 = vmax.f32 %v4068_v1, 0.0  ;;  %v178_v1 = vld [vmem:[%s14486_s0 + $0x538] sm:$0xff] }
 0x28e   :  { %v2747_v17 = vpop.f32.mrb[216].mxu0  ;;  %v4072_v18 = vpop.f32.mrb[216].mxu1 }
 0x28f   :  { %5488 = vst.msk [vmem:[%s14487_s2 + $0x358] sm:$0xff] %vm5380_vm5, %v4958_v15  ;;  %5753 = vst.msk [vmem:[%s14487_s2 + $0xba0] sm:$0xff] %vm5380_vm5, %v5223_v16  ;;  %v2748_v19 = vadd.f32 %v11402_v22, %v2747_v17  ;;  %v7312_v20 = vpop.f32.mrb[217].mxu0  ;;  %7470 = vmatmul.mubr.msk.f32.gmra.mrb[66].mxu0 %vm549_vm4, %v172_v13  ;;  %v4073_v12 = vadd.f32 %v11402_v22, %v4072_v18  ;;  %v8107_v21 = vpop.f32.mrb[217].mxu1  ;;  %8265 = vmatmul.mubr.msk.f32.gmra.mrb[66].mxu1 %vm549_vm4, %v437_v14 }
 0x290   :  { %7472 = vmatprep.mubr.msk.f32.mxu0 %vm8596_vm1, %v8597_v6  ;;  %8267 = vmatprep.mubr.msk.f32.mxu1 %vm8596_vm1, %v8597_v6  ;;  %v444_v21 = vld [vmem:[%s14486_s0 + $0xd88] sm:$0xff] }
 0x291   :  { %v4959_v25 = vmax.f32 %v2748_v19, 0.0  ;;  %v5224_v26 = vmax.f32 %v4073_v12, 0.0  ;;  %v179_v12 = vld [vmem:[%s14486_s0 + $0x540] sm:$0xff] }
 0x292   :  { %v2752_v27 = vpop.f32.mrb[218].mxu0  ;;  %v4077_v28 = vpop.f32.mrb[218].mxu1 }
 0x293   :  { %5489 = vst.msk [vmem:[%s14487_s2 + $0x360] sm:$0xff] %vm5380_vm5, %v4959_v25  ;;  %5754 = vst.msk [vmem:[%s14487_s2 + $0xba8] sm:$0xff] %vm5380_vm5, %v5224_v26  ;;  %v2753_v29 = vadd.f32 %v11402_v22, %v2752_v27  ;;  %v7315_v30 = vpop.f32.mrb[219].mxu0  ;;  %7473 = vmatmul.mubr.msk.f32.gmra.mrb[68].mxu0 %vm549_vm4, %v173_v23  ;;  %v4078_v31 = vadd.f32 %v11402_v22, %v4077_v28  ;;  %v8110_v32 = vpop.f32.mrb[219].mxu1  ;;  %8268 = vmatmul.mubr.msk.f32.gmra.mrb[68].mxu1 %vm549_vm4, %v438_v24 }
 0x294   :  { %7475 = vmatprep.mubr.msk.f32.mxu0 %vm8596_vm1, %v8597_v6  ;;  %8270 = vmatprep.mubr.msk.f32.mxu1 %vm8596_vm1, %v8597_v6  ;;  %v445_v32 = vld [vmem:[%s14486_s0 + $0xd90] sm:$0xff] }
 0x295   :  { %v4960_v35 = vmax.f32 %v2753_v29, 0.0  ;;  %v5225_v36 = vmax.f32 %v4078_v31, 0.0  ;;  %v180_v31 = vld [vmem:[%s14486_s0 + $0x548] sm:$0xff] }
 0x296   :  { %v2757_v37 = vpop.f32.mrb[220].mxu0  ;;  %v4082_v38 = vpop.f32.mrb[220].mxu1 }
 0x297   :  { %5490 = vst.msk [vmem:[%s14487_s2 + $0x368] sm:$0xff] %vm5380_vm5, %v4960_v35  ;;  %5755 = vst.msk [vmem:[%s14487_s2 + $0xbb0] sm:$0xff] %vm5380_vm5, %v5225_v36  ;;  %v2758_v39 = vadd.f32 %v11402_v22, %v2757_v37  ;;  %v7318_v40 = vpop.f32.mrb[221].mxu0  ;;  %7476 = vmatmul.mubr.msk.f32.gmra.mrb[70].mxu0 %vm549_vm4, %v174_v33  ;;  %v4083_v41 = vadd.f32 %v11402_v22, %v4082_v38  ;;  %v8113_v42 = vpop.f32.mrb[221].mxu1  ;;  %8271 = vmatmul.mubr.msk.f32.gmra.mrb[70].mxu1 %vm549_vm4, %v439_v34 }
 0x298   :  { %7478 = vmatprep.mubr.msk.f32.mxu0 %vm8596_vm1, %v8597_v6  ;;  %8273 = vmatprep.mubr.msk.f32.mxu1 %vm8596_vm1, %v8597_v6  ;;  %v446_v42 = vld [vmem:[%s14486_s0 + $0xd98] sm:$0xff] }
 0x299   :  { %v4961_v45 = vmax.f32 %v2758_v39, 0.0  ;;  %v5226_v46 = vmax.f32 %v4083_v41, 0.0  ;;  %v181_v41 = vld [vmem:[%s14486_s0 + $0x550] sm:$0xff] }
 0x29a   :  { %v2762_v47 = vpop.f32.mrb[222].mxu0  ;;  %v4087_v48 = vpop.f32.mrb[222].mxu1 }
 0x29b   :  { %5491 = vst.msk [vmem:[%s14487_s2 + $0x370] sm:$0xff] %vm5380_vm5, %v4961_v45  ;;  %5756 = vst.msk [vmem:[%s14487_s2 + $0xbb8] sm:$0xff] %vm5380_vm5, %v5226_v46  ;;  %v2763_v49 = vadd.f32 %v11402_v22, %v2762_v47  ;;  %v7321_v50 = vpop.f32.mrb[223].mxu0  ;;  %7479 = vmatmul.mubr.msk.f32.gmra.mrb[72].mxu0 %vm549_vm4, %v175_v43  ;;  %v4088_v52 = vadd.f32 %v11402_v22, %v4087_v48  ;;  %v8116_v53 = vpop.f32.mrb[223].mxu1  ;;  %8274 = vmatmul.mubr.msk.f32.gmra.mrb[72].mxu1 %vm549_vm4, %v440_v44 }
 0x29c   :  { %7481 = vmatprep.mubr.msk.f32.mxu0 %vm8596_vm1, %v8597_v6  ;;  %8276 = vmatprep.mubr.msk.f32.mxu1 %vm8596_vm1, %v8597_v6  ;;  %v447_v53 = vld [vmem:[%s14486_s0 + $0xda0] sm:$0xff] }
 0x29d   :  { %v4962_v56 = vmax.f32 %v2763_v49, 0.0  ;;  %v5227_v57 = vmax.f32 %v4088_v52, 0.0  ;;  %v182_v52 = vld [vmem:[%s14486_s0 + $0x558] sm:$0xff] }
 0x29e   :  { %v2767_v58 = vpop.f32.mrb[224].mxu0  ;;  %v4092_v59 = vpop.f32.mrb[224].mxu1 }
 0x29f   :  { %5492 = vst.msk [vmem:[%s14487_s2 + $0x378] sm:$0xff] %vm5380_vm5, %v4962_v56  ;;  %5757 = vst.msk [vmem:[%s14487_s2 + $0xbc0] sm:$0xff] %vm5380_vm5, %v5227_v57  ;;  %v2768_v60 = vadd.f32 %v11402_v22, %v2767_v58  ;;  %v7324_v61 = vpop.f32.mrb[225].mxu0  ;;  %7482 = vmatmul.mubr.msk.f32.gmra.mrb[74].mxu0 %vm549_vm4, %v176_v54  ;;  %v4093_v62 = vadd.f32 %v11402_v22, %v4092_v59  ;;  %v8119_v63 = vpop.f32.mrb[225].mxu1  ;;  %8277 = vmatmul.mubr.msk.f32.gmra.mrb[74].mxu1 %vm549_vm4, %v441_v55 }
 0x2a0   :  { %7484 = vmatprep.mubr.msk.f32.mxu0 %vm8596_vm1, %v8597_v6  ;;  %8279 = vmatprep.mubr.msk.f32.mxu1 %vm8596_vm1, %v8597_v6  ;;  %v448_v63 = vld [vmem:[%s14486_s0 + $0xda8] sm:$0xff] }
 0x2a1   :  { %v4963_v2 = vmax.f32 %v2768_v60, 0.0  ;;  %v5228_v3 = vmax.f32 %v4093_v62, 0.0  ;;  %v183_v62 = vld [vmem:[%s14486_s0 + $0x560] sm:$0xff] }
 0x2a2   :  { %v2772_v4 = vpop.f32.mrb[226].mxu0  ;;  %v4097_v5 = vpop.f32.mrb[226].mxu1 }
 0x2a3   :  { %5493 = vst.msk [vmem:[%s14487_s2 + $0x380] sm:$0xff] %vm5380_vm5, %v4963_v2  ;;  %5758 = vst.msk [vmem:[%s14487_s2 + $0xbc8] sm:$0xff] %vm5380_vm5, %v5228_v3  ;;  %v2773_v7 = vadd.f32 %v11402_v22, %v2772_v4  ;;  %v7327_v8 = vpop.f32.mrb[227].mxu0  ;;  %7485 = vmatmul.mubr.msk.f32.gmra.mrb[76].mxu0 %vm549_vm4, %v177_v51  ;;  %v4098_v9 = vadd.f32 %v11402_v22, %v4097_v5  ;;  %v8122_v10 = vpop.f32.mrb[227].mxu1  ;;  %8280 = vmatmul.mubr.msk.f32.gmra.mrb[76].mxu1 %vm549_vm4, %v442_v0 }
 0x2a4   :  { %7487 = vmatprep.mubr.msk.f32.mxu0 %vm8596_vm1, %v8597_v6  ;;  %8282 = vmatprep.mubr.msk.f32.mxu1 %vm8596_vm1, %v8597_v6  ;;  %v449_v10 = vld [vmem:[%s14486_s0 + $0xdb0] sm:$0xff] }
 0x2a5   :  { %v4964_v13 = vmax.f32 %v2773_v7, 0.0  ;;  %v5229_v14 = vmax.f32 %v4098_v9, 0.0  ;;  %v184_v9 = vld [vmem:[%s14486_s0 + $0x568] sm:$0xff] }
 0x2a6   :  { %v2777_v15 = vpop.f32.mrb[228].mxu0  ;;  %v4102_v16 = vpop.f32.mrb[228].mxu1 }
 0x2a7   :  { %5494 = vst.msk [vmem:[%s14487_s2 + $0x388] sm:$0xff] %vm5380_vm5, %v4964_v13  ;;  %5759 = vst.msk [vmem:[%s14487_s2 + $0xbd0] sm:$0xff] %vm5380_vm5, %v5229_v14  ;;  %v2778_v17 = vadd.f32 %v11402_v22, %v2777_v15  ;;  %v7330_v18 = vpop.f32.mrb[229].mxu0  ;;  %7488 = vmatmul.mubr.msk.f32.gmra.mrb[78].mxu0 %vm549_vm4, %v178_v1  ;;  %v4103_v19 = vadd.f32 %v11402_v22, %v4102_v16  ;;  %v8125_v20 = vpop.f32.mrb[229].mxu1  ;;  %8283 = vmatmul.mubr.msk.f32.gmra.mrb[78].mxu1 %vm549_vm4, %v443_v11 }
 0x2a8   :  { %7490 = vmatprep.mubr.msk.f32.mxu0 %vm8596_vm1, %v8597_v6  ;;  %8285 = vmatprep.mubr.msk.f32.mxu1 %vm8596_vm1, %v8597_v6  ;;  %v450_v20 = vld [vmem:[%s14486_s0 + $0xdb8] sm:$0xff] }
 0x2a9   :  { %v4965_v23 = vmax.f32 %v2778_v17, 0.0  ;;  %v5230_v24 = vmax.f32 %v4103_v19, 0.0  ;;  %v185_v19 = vld [vmem:[%s14486_s0 + $0x570] sm:$0xff] }
 0x2aa   :  { %v2782_v25 = vpop.f32.mrb[230].mxu0  ;;  %v4107_v26 = vpop.f32.mrb[230].mxu1 }
 0x2ab   :  { %5495 = vst.msk [vmem:[%s14487_s2 + $0x390] sm:$0xff] %vm5380_vm5, %v4965_v23  ;;  %5760 = vst.msk [vmem:[%s14487_s2 + $0xbd8] sm:$0xff] %vm5380_vm5, %v5230_v24  ;;  %v2783_v27 = vadd.f32 %v11402_v22, %v2782_v25  ;;  %v7333_v28 = vpop.f32.mrb[231].mxu0  ;;  %7491 = vmatmul.mubr.msk.f32.gmra.mrb[80].mxu0 %vm549_vm4, %v179_v12  ;;  %v4108_v29 = vadd.f32 %v11402_v22, %v4107_v26  ;;  %v8128_v30 = vpop.f32.mrb[231].mxu1  ;;  %8286 = vmatmul.mubr.msk.f32.gmra.mrb[80].mxu1 %vm549_vm4, %v444_v21 }
 0x2ac   :  { %7493 = vmatprep.mubr.msk.f32.mxu0 %vm8596_vm1, %v8597_v6  ;;  %8288 = vmatprep.mubr.msk.f32.mxu1 %vm8596_vm1, %v8597_v6  ;;  %v451_v30 = vld [vmem:[%s14486_s0 + $0xdc0] sm:$0xff] }
 0x2ad   :  { %v4966_v33 = vmax.f32 %v2783_v27, 0.0  ;;  %v5231_v34 = vmax.f32 %v4108_v29, 0.0  ;;  %v186_v29 = vld [vmem:[%s14486_s0 + $0x578] sm:$0xff] }
 0x2ae   :  { %v2787_v35 = vpop.f32.mrb[232].mxu0  ;;  %v4112_v36 = vpop.f32.mrb[232].mxu1 }
 0x2af   :  { %5496 = vst.msk [vmem:[%s14487_s2 + $0x398] sm:$0xff] %vm5380_vm5, %v4966_v33  ;;  %5761 = vst.msk [vmem:[%s14487_s2 + $0xbe0] sm:$0xff] %vm5380_vm5, %v5231_v34  ;;  %v2788_v37 = vadd.f32 %v11402_v22, %v2787_v35  ;;  %v7336_v38 = vpop.f32.mrb[233].mxu0  ;;  %7494 = vmatmul.mubr.msk.f32.gmra.mrb[82].mxu0 %vm549_vm4, %v180_v31  ;;  %v4113_v39 = vadd.f32 %v11402_v22, %v4112_v36  ;;  %v8131_v40 = vpop.f32.mrb[233].mxu1  ;;  %8289 = vmatmul.mubr.msk.f32.gmra.mrb[82].mxu1 %vm549_vm4, %v445_v32 }
 0x2b0   :  { %7496 = vmatprep.mubr.msk.f32.mxu0 %vm8596_vm1, %v8597_v6  ;;  %8291 = vmatprep.mubr.msk.f32.mxu1 %vm8596_vm1, %v8597_v6  ;;  %v452_v40 = vld [vmem:[%s14486_s0 + $0xdc8] sm:$0xff] }
 0x2b1   :  { %v4967_v43 = vmax.f32 %v2788_v37, 0.0  ;;  %v5232_v44 = vmax.f32 %v4113_v39, 0.0  ;;  %v187_v39 = vld [vmem:[%s14486_s0 + $0x580] sm:$0xff] }
 0x2b2   :  { %v2792_v45 = vpop.f32.mrb[234].mxu0  ;;  %v4117_v46 = vpop.f32.mrb[234].mxu1 }
 0x2b3   :  { %5497 = vst.msk [vmem:[%s14487_s2 + $0x3a0] sm:$0xff] %vm5380_vm5, %v4967_v43  ;;  %5762 = vst.msk [vmem:[%s14487_s2 + $0xbe8] sm:$0xff] %vm5380_vm5, %v5232_v44  ;;  %v2793_v47 = vadd.f32 %v11402_v22, %v2792_v45  ;;  %v7339_v48 = vpop.f32.mrb[235].mxu0  ;;  %7497 = vmatmul.mubr.msk.f32.gmra.mrb[84].mxu0 %vm549_vm4, %v181_v41  ;;  %v4118_v49 = vadd.f32 %v11402_v22, %v4117_v46  ;;  %v8134_v50 = vpop.f32.mrb[235].mxu1  ;;  %8292 = vmatmul.mubr.msk.f32.gmra.mrb[84].mxu1 %vm549_vm4, %v446_v42 }
 0x2b4   :  { %7499 = vmatprep.mubr.msk.f32.mxu0 %vm8596_vm1, %v8597_v6  ;;  %8294 = vmatprep.mubr.msk.f32.mxu1 %vm8596_vm1, %v8597_v6  ;;  %v453_v50 = vld [vmem:[%s14486_s0 + $0xdd0] sm:$0xff] }
 0x2b5   :  { %v4968_v54 = vmax.f32 %v2793_v47, 0.0  ;;  %v5233_v55 = vmax.f32 %v4118_v49, 0.0  ;;  %v188_v49 = vld [vmem:[%s14486_s0 + $0x588] sm:$0xff] }
 0x2b6   :  { %v2797_v56 = vpop.f32.mrb[236].mxu0  ;;  %v4122_v57 = vpop.f32.mrb[236].mxu1 }
 0x2b7   :  { %5498 = vst.msk [vmem:[%s14487_s2 + $0x3a8] sm:$0xff] %vm5380_vm5, %v4968_v54  ;;  %5763 = vst.msk [vmem:[%s14487_s2 + $0xbf0] sm:$0xff] %vm5380_vm5, %v5233_v55  ;;  %v2798_v58 = vadd.f32 %v11402_v22, %v2797_v56  ;;  %v7342_v59 = vpop.f32.mrb[237].mxu0  ;;  %7500 = vmatmul.mubr.msk.f32.gmra.mrb[86].mxu0 %vm549_vm4, %v182_v52  ;;  %v4123_v60 = vadd.f32 %v11402_v22, %v4122_v57  ;;  %v8137_v61 = vpop.f32.mrb[237].mxu1  ;;  %8295 = vmatmul.mubr.msk.f32.gmra.mrb[86].mxu1 %vm549_vm4, %v447_v53 }
 0x2b8   :  { %7502 = vmatprep.mubr.msk.f32.mxu0 %vm8596_vm1, %v8597_v6  ;;  %8297 = vmatprep.mubr.msk.f32.mxu1 %vm8596_vm1, %v8597_v6  ;;  %v454_v61 = vld [vmem:[%s14486_s0 + $0xdd8] sm:$0xff] }
 0x2b9   :  { %v4969_v51 = vmax.f32 %v2798_v58, 0.0  ;;  %v5234_v0 = vmax.f32 %v4123_v60, 0.0  ;;  %v189_v60 = vld [vmem:[%s14486_s0 + $0x590] sm:$0xff] }
 0x2ba   :  { %v2802_v2 = vpop.f32.mrb[238].mxu0  ;;  %v4127_v3 = vpop.f32.mrb[238].mxu1 }
 0x2bb   :  { %5499 = vst.msk [vmem:[%s14487_s2 + $0x3b0] sm:$0xff] %vm5380_vm5, %v4969_v51  ;;  %5764 = vst.msk [vmem:[%s14487_s2 + $0xbf8] sm:$0xff] %vm5380_vm5, %v5234_v0  ;;  %v2803_v4 = vadd.f32 %v11402_v22, %v2802_v2  ;;  %v7345_v5 = vpop.f32.mrb[239].mxu0  ;;  %7503 = vmatmul.mubr.msk.f32.gmra.mrb[88].mxu0 %vm549_vm4, %v183_v62  ;;  %v4128_v7 = vadd.f32 %v11402_v22, %v4127_v3  ;;  %v8140_v8 = vpop.f32.mrb[239].mxu1  ;;  %8298 = vmatmul.mubr.msk.f32.gmra.mrb[88].mxu1 %vm549_vm4, %v448_v63 }
 0x2bc   :  { %7505 = vmatprep.mubr.msk.f32.mxu0 %vm8596_vm1, %v8597_v6  ;;  %8300 = vmatprep.mubr.msk.f32.mxu1 %vm8596_vm1, %v8597_v6  ;;  %v455_v8 = vld [vmem:[%s14486_s0 + $0xde0] sm:$0xff] }
 0x2bd   :  { %v4970_v1 = vmax.f32 %v2803_v4, 0.0  ;;  %v5235_v11 = vmax.f32 %v4128_v7, 0.0  ;;  %v190_v7 = vld [vmem:[%s14486_s0 + $0x598] sm:$0xff] }
 0x2be   :  { %v2807_v13 = vpop.f32.mrb[240].mxu0  ;;  %v4132_v14 = vpop.f32.mrb[240].mxu1 }
 0x2bf   :  { %5500 = vst.msk [vmem:[%s14487_s2 + $0x3b8] sm:$0xff] %vm5380_vm5, %v4970_v1  ;;  %5765 = vst.msk [vmem:[%s14487_s2 + $0xc00] sm:$0xff] %vm5380_vm5, %v5235_v11  ;;  %v2808_v15 = vadd.f32 %v11402_v22, %v2807_v13  ;;  %v7348_v16 = vpop.f32.mrb[241].mxu0  ;;  %7506 = vmatmul.mubr.msk.f32.gmra.mrb[90].mxu0 %vm549_vm4, %v184_v9  ;;  %v4133_v17 = vadd.f32 %v11402_v22, %v4132_v14  ;;  %v8143_v18 = vpop.f32.mrb[241].mxu1  ;;  %8301 = vmatmul.mubr.msk.f32.gmra.mrb[90].mxu1 %vm549_vm4, %v449_v10 }
 0x2c0   :  { %7508 = vmatprep.mubr.msk.f32.mxu0 %vm8596_vm1, %v8597_v6  ;;  %8303 = vmatprep.mubr.msk.f32.mxu1 %vm8596_vm1, %v8597_v6  ;;  %v456_v18 = vld [vmem:[%s14486_s0 + $0xde8] sm:$0xff] }
 0x2c1   :  { %v4971_v12 = vmax.f32 %v2808_v15, 0.0  ;;  %v5236_v21 = vmax.f32 %v4133_v17, 0.0  ;;  %v191_v17 = vld [vmem:[%s14486_s0 + $0x5a0] sm:$0xff] }
 0x2c2   :  { %v2812_v23 = vpop.f32.mrb[242].mxu0  ;;  %v4137_v24 = vpop.f32.mrb[242].mxu1 }
 0x2c3   :  { %5501 = vst.msk [vmem:[%s14487_s2 + $0x3c0] sm:$0xff] %vm5380_vm5, %v4971_v12  ;;  %5766 = vst.msk [vmem:[%s14487_s2 + $0xc08] sm:$0xff] %vm5380_vm5, %v5236_v21  ;;  %v2813_v25 = vadd.f32 %v11402_v22, %v2812_v23  ;;  %v7351_v26 = vpop.f32.mrb[243].mxu0  ;;  %7509 = vmatmul.mubr.msk.f32.gmra.mrb[92].mxu0 %vm549_vm4, %v185_v19  ;;  %v4138_v27 = vadd.f32 %v11402_v22, %v4137_v24  ;;  %v8146_v28 = vpop.f32.mrb[243].mxu1  ;;  %8304 = vmatmul.mubr.msk.f32.gmra.mrb[92].mxu1 %vm549_vm4, %v450_v20 }
 0x2c4   :  { %7511 = vmatprep.mubr.msk.f32.mxu0 %vm8596_vm1, %v8597_v6  ;;  %8306 = vmatprep.mubr.msk.f32.mxu1 %vm8596_vm1, %v8597_v6  ;;  %v457_v28 = vld [vmem:[%s14486_s0 + $0xdf0] sm:$0xff] }
 0x2c5   :  { %v4972_v31 = vmax.f32 %v2813_v25, 0.0  ;;  %v5237_v32 = vmax.f32 %v4138_v27, 0.0  ;;  %v192_v27 = vld [vmem:[%s14486_s0 + $0x5a8] sm:$0xff] }
 0x2c6   :  { %v2817_v33 = vpop.f32.mrb[244].mxu0  ;;  %v4142_v34 = vpop.f32.mrb[244].mxu1 }
 0x2c7   :  { %5502 = vst.msk [vmem:[%s14487_s2 + $0x3c8] sm:$0xff] %vm5380_vm5, %v4972_v31  ;;  %5767 = vst.msk [vmem:[%s14487_s2 + $0xc10] sm:$0xff] %vm5380_vm5, %v5237_v32  ;;  %v2818_v35 = vadd.f32 %v11402_v22, %v2817_v33  ;;  %v7354_v36 = vpop.f32.mrb[245].mxu0  ;;  %7512 = vmatmul.mubr.msk.f32.gmra.mrb[94].mxu0 %vm549_vm4, %v186_v29  ;;  %v4143_v37 = vadd.f32 %v11402_v22, %v4142_v34  ;;  %v8149_v38 = vpop.f32.mrb[245].mxu1  ;;  %8307 = vmatmul.mubr.msk.f32.gmra.mrb[94].mxu1 %vm549_vm4, %v451_v30  ;;  %v12111_v32 = vld [vmem:[%s14485_s1 + $0x19] ss:$0 sm:$0xff] }
 0x2c8   :  { %7514 = vmatprep.mubr.msk.f32.mxu0 %vm8596_vm1, %v8597_v6  ;;  %8309 = vmatprep.mubr.msk.f32.mxu1 %vm8596_vm1, %v8597_v6  ;;  %v458_v38 = vld [vmem:[%s14486_s0 + $0xdf8] sm:$0xff] }
 0x2c9   :  { %v4973_v41 = vmax.f32 %v2818_v35, 0.0  ;;  %v5238_v42 = vmax.f32 %v4143_v37, 0.0  ;;  %v193_v37 = vld [vmem:[%s14486_s0 + $0x5b0] sm:$0xff] }
 0x2ca   :  { %v2822_v43 = vpop.f32.mrb[246].mxu0  ;;  %v4147_v44 = vpop.f32.mrb[246].mxu1 }
 0x2cb   :  { %5503 = vst.msk [vmem:[%s14487_s2 + $0x3d0] sm:$0xff] %vm5380_vm5, %v4973_v41  ;;  %5768 = vst.msk [vmem:[%s14487_s2 + $0xc18] sm:$0xff] %vm5380_vm5, %v5238_v42  ;;  %v2823_v45 = vadd.f32 %v11402_v22, %v2822_v43  ;;  %v7357_v46 = vpop.f32.mrb[247].mxu0  ;;  %7515 = vmatmul.mubr.msk.f32.gmra.mrb[96].mxu0 %vm549_vm4, %v187_v39  ;;  %v4148_v47 = vadd.f32 %v11402_v22, %v4147_v44  ;;  %v8152_v48 = vpop.f32.mrb[247].mxu1  ;;  %8310 = vmatmul.mubr.msk.f32.gmra.mrb[96].mxu1 %vm549_vm4, %v452_v40 }
 0x2cc   :  { %7517 = vmatprep.mubr.msk.f32.mxu0 %vm8596_vm1, %v8597_v6  ;;  %8312 = vmatprep.mubr.msk.f32.mxu1 %vm8596_vm1, %v8597_v6  ;;  %v459_v48 = vld [vmem:[%s14486_s0 + $0xe00] sm:$0xff] }
 0x2cd   :  { %v4974_v52 = vmax.f32 %v2823_v45, 0.0  ;;  %v5239_v53 = vmax.f32 %v4148_v47, 0.0  ;;  %v194_v47 = vld [vmem:[%s14486_s0 + $0x5b8] sm:$0xff] }
 0x2ce   :  { %v2827_v54 = vpop.f32.mrb[248].mxu0  ;;  %v4152_v55 = vpop.f32.mrb[248].mxu1 }
 0x2cf   :  { %5504 = vst.msk [vmem:[%s14487_s2 + $0x3d8] sm:$0xff] %vm5380_vm5, %v4974_v52  ;;  %5769 = vst.msk [vmem:[%s14487_s2 + $0xc20] sm:$0xff] %vm5380_vm5, %v5239_v53  ;;  %v2828_v56 = vadd.f32 %v11402_v22, %v2827_v54  ;;  %v7360_v57 = vpop.f32.mrb[249].mxu0  ;;  %7518 = vmatmul.mubr.msk.f32.gmra.mrb[98].mxu0 %vm549_vm4, %v188_v49  ;;  %v4153_v58 = vadd.f32 %v11402_v22, %v4152_v55  ;;  %v8155_v59 = vpop.f32.mrb[249].mxu1  ;;  %8313 = vmatmul.mubr.msk.f32.gmra.mrb[98].mxu1 %vm549_vm4, %v453_v50 }
 0x2d0   :  { %7520 = vmatprep.mubr.msk.f32.mxu0 %vm8596_vm1, %v8597_v6  ;;  %8315 = vmatprep.mubr.msk.f32.mxu1 %vm8596_vm1, %v8597_v6  ;;  %v460_v59 = vld [vmem:[%s14486_s0 + $0xe08] sm:$0xff] }
 0x2d1   :  { %v4975_v62 = vmax.f32 %v2828_v56, 0.0  ;;  %v5240_v63 = vmax.f32 %v4153_v58, 0.0  ;;  %v195_v58 = vld [vmem:[%s14486_s0 + $0x5c0] sm:$0xff] }
 0x2d2   :  { %v2832_v51 = vpop.f32.mrb[250].mxu0  ;;  %v4157_v0 = vpop.f32.mrb[250].mxu1 }
 0x2d3   :  { %5505 = vst.msk [vmem:[%s14487_s2 + $0x3e0] sm:$0xff] %vm5380_vm5, %v4975_v62  ;;  %5770 = vst.msk [vmem:[%s14487_s2 + $0xc28] sm:$0xff] %vm5380_vm5, %v5240_v63  ;;  %v2833_v2 = vadd.f32 %v11402_v22, %v2832_v51  ;;  %v7363_v3 = vpop.f32.mrb[251].mxu0  ;;  %7521 = vmatmul.mubr.msk.f32.gmra.mrb[100].mxu0 %vm549_vm4, %v189_v60  ;;  %v4158_v4 = vadd.f32 %v11402_v22, %v4157_v0  ;;  %v8158_v5 = vpop.f32.mrb[251].mxu1  ;;  %8316 = vmatmul.mubr.msk.f32.gmra.mrb[100].mxu1 %vm549_vm4, %v454_v61 }
 0x2d4   :  { %7523 = vmatprep.mubr.msk.f32.mxu0 %vm8596_vm1, %v8597_v6  ;;  %8318 = vmatprep.mubr.msk.f32.mxu1 %vm8596_vm1, %v8597_v6  ;;  %v461_v5 = vld [vmem:[%s14486_s0 + $0xe10] sm:$0xff] }
 0x2d5   :  { %v4976_v9 = vmax.f32 %v2833_v2, 0.0  ;;  %v5241_v10 = vmax.f32 %v4158_v4, 0.0  ;;  %v196_v4 = vld [vmem:[%s14486_s0 + $0x5c8] sm:$0xff] }
 0x2d6   :  { %v2837_v1 = vpop.f32.mrb[252].mxu0  ;;  %v4162_v11 = vpop.f32.mrb[252].mxu1 }
 0x2d7   :  { %5506 = vst.msk [vmem:[%s14487_s2 + $0x3e8] sm:$0xff] %vm5380_vm5, %v4976_v9  ;;  %5771 = vst.msk [vmem:[%s14487_s2 + $0xc30] sm:$0xff] %vm5380_vm5, %v5241_v10  ;;  %v2838_v13 = vadd.f32 %v11402_v22, %v2837_v1  ;;  %v7366_v14 = vpop.f32.mrb[253].mxu0  ;;  %7524 = vmatmul.mubr.msk.f32.gmra.mrb[102].mxu0 %vm549_vm4, %v190_v7  ;;  %v4163_v15 = vadd.f32 %v11402_v22, %v4162_v11  ;;  %v8161_v16 = vpop.f32.mrb[253].mxu1  ;;  %8319 = vmatmul.mubr.msk.f32.gmra.mrb[102].mxu1 %vm549_vm4, %v455_v8 }
 0x2d8   :  { %7526 = vmatprep.mubr.msk.f32.mxu0 %vm8596_vm1, %v8597_v6  ;;  %8321 = vmatprep.mubr.msk.f32.mxu1 %vm8596_vm1, %v8597_v6  ;;  %v462_v16 = vld [vmem:[%s14486_s0 + $0xe18] sm:$0xff] }
 0x2d9   :  { %v4977_v19 = vmax.f32 %v2838_v13, 0.0  ;;  %v5242_v20 = vmax.f32 %v4163_v15, 0.0  ;;  %v197_v15 = vld [vmem:[%s14486_s0 + $0x5d0] sm:$0xff] }
 0x2da   :  { %v2842_v12 = vpop.f32.mrb[254].mxu0  ;;  %v4167_v21 = vpop.f32.mrb[254].mxu1 }
 0x2db   :  { %5507 = vst.msk [vmem:[%s14487_s2 + $0x3f0] sm:$0xff] %vm5380_vm5, %v4977_v19  ;;  %5772 = vst.msk [vmem:[%s14487_s2 + $0xc38] sm:$0xff] %vm5380_vm5, %v5242_v20  ;;  %v2843_v23 = vadd.f32 %v11402_v22, %v2842_v12  ;;  %v7369_v24 = vpop.f32.mrb[255].mxu0  ;;  %7527 = vmatmul.mubr.msk.f32.gmra.mrb[104].mxu0 %vm549_vm4, %v191_v17  ;;  %v4168_v25 = vadd.f32 %v11402_v22, %v4167_v21  ;;  %v8164_v26 = vpop.f32.mrb[255].mxu1  ;;  %8322 = vmatmul.mubr.msk.f32.gmra.mrb[104].mxu1 %vm549_vm4, %v456_v18 }
 0x2dc   :  { %7529 = vmatprep.mubr.msk.f32.mxu0 %vm8596_vm1, %v8597_v6  ;;  %8324 = vmatprep.mubr.msk.f32.mxu1 %vm8596_vm1, %v8597_v6  ;;  %v463_v26 = vld [vmem:[%s14486_s0 + $0xe20] sm:$0xff] }
 0x2dd   :  { %v4978_v29 = vmax.f32 %v2843_v23, 0.0  ;;  %v5243_v30 = vmax.f32 %v4168_v25, 0.0  ;;  %v198_v25 = vld [vmem:[%s14486_s0 + $0x5d8] sm:$0xff] }
 0x2de   :  { %v2847_v22 = vpop.f32.mrb[0].mxu0  ;;  %v4172_v31 = vpop.f32.mrb[0].mxu1 }
 0x2df   :  { %5508 = vst.msk [vmem:[%s14487_s2 + $0x3f8] sm:$0xff] %vm5380_vm5, %v4978_v29  ;;  %5773 = vst.msk [vmem:[%s14487_s2 + $0xc40] sm:$0xff] %vm5380_vm5, %v5243_v30  ;;  %v2848_v33 = vadd.f32 %v12111_v32, %v2847_v22  ;;  %v7372_v34 = vpop.f32.mrb[1].mxu0  ;;  %7530 = vmatmul.mubr.msk.f32.gmra.mrb[106].mxu0 %vm549_vm4, %v192_v27  ;;  %v4173_v35 = vadd.f32 %v12111_v32, %v4172_v31  ;;  %v8167_v36 = vpop.f32.mrb[1].mxu1  ;;  %8325 = vmatmul.mubr.msk.f32.gmra.mrb[106].mxu1 %vm549_vm4, %v457_v28 }
 0x2e0   :  { %7532 = vmatprep.mubr.msk.f32.mxu0 %vm8596_vm1, %v8597_v6  ;;  %8327 = vmatprep.mubr.msk.f32.mxu1 %vm8596_vm1, %v8597_v6  ;;  %v464_v36 = vld [vmem:[%s14486_s0 + $0xe28] sm:$0xff] }
 0x2e1   :  { %v4979_v39 = vmax.f32 %v2848_v33, 0.0  ;;  %v5244_v40 = vmax.f32 %v4173_v35, 0.0  ;;  %v199_v35 = vld [vmem:[%s14486_s0 + $0x5e0] sm:$0xff] }
 0x2e2   :  { %v2852_v41 = vpop.f32.mrb[2].mxu0  ;;  %v4177_v42 = vpop.f32.mrb[2].mxu1 }
 0x2e3   :  { %5509 = vst.msk [vmem:[%s14487_s2 + $0x400] sm:$0xff] %vm5380_vm5, %v4979_v39  ;;  %5774 = vst.msk [vmem:[%s14487_s2 + $0xc48] sm:$0xff] %vm5380_vm5, %v5244_v40  ;;  %v2853_v43 = vadd.f32 %v12111_v32, %v2852_v41  ;;  %v7375_v44 = vpop.f32.mrb[3].mxu0  ;;  %7533 = vmatmul.mubr.msk.f32.gmra.mrb[108].mxu0 %vm549_vm4, %v193_v37  ;;  %v4178_v45 = vadd.f32 %v12111_v32, %v4177_v42  ;;  %v8170_v46 = vpop.f32.mrb[3].mxu1  ;;  %8328 = vmatmul.mubr.msk.f32.gmra.mrb[108].mxu1 %vm549_vm4, %v458_v38 }
 0x2e4   :  { %7535 = vmatprep.mubr.msk.f32.mxu0 %vm8596_vm1, %v8597_v6  ;;  %8330 = vmatprep.mubr.msk.f32.mxu1 %vm8596_vm1, %v8597_v6  ;;  %v465_v46 = vld [vmem:[%s14486_s0 + $0xe30] sm:$0xff] }
 0x2e5   :  { %v4980_v49 = vmax.f32 %v2853_v43, 0.0  ;;  %v5245_v50 = vmax.f32 %v4178_v45, 0.0  ;;  %v200_v45 = vld [vmem:[%s14486_s0 + $0x5e8] sm:$0xff] }
 0x2e6   :  { %v2857_v52 = vpop.f32.mrb[4].mxu0  ;;  %v4182_v53 = vpop.f32.mrb[4].mxu1 }
 0x2e7   :  { %5510 = vst.msk [vmem:[%s14487_s2 + $0x408] sm:$0xff] %vm5380_vm5, %v4980_v49  ;;  %5775 = vst.msk [vmem:[%s14487_s2 + $0xc50] sm:$0xff] %vm5380_vm5, %v5245_v50  ;;  %v2858_v54 = vadd.f32 %v12111_v32, %v2857_v52  ;;  %v7378_v55 = vpop.f32.mrb[5].mxu0  ;;  %7536 = vmatmul.mubr.msk.f32.gmra.mrb[110].mxu0 %vm549_vm4, %v194_v47  ;;  %v4183_v56 = vadd.f32 %v12111_v32, %v4182_v53  ;;  %v8173_v57 = vpop.f32.mrb[5].mxu1  ;;  %8331 = vmatmul.mubr.msk.f32.gmra.mrb[110].mxu1 %vm549_vm4, %v459_v48 }
 0x2e8   :  { %7538 = vmatprep.mubr.msk.f32.mxu0 %vm8596_vm1, %v8597_v6  ;;  %8333 = vmatprep.mubr.msk.f32.mxu1 %vm8596_vm1, %v8597_v6  ;;  %v466_v57 = vld [vmem:[%s14486_s0 + $0xe38] sm:$0xff] }
 0x2e9   :  { %v4981_v60 = vmax.f32 %v2858_v54, 0.0  ;;  %v5246_v61 = vmax.f32 %v4183_v56, 0.0  ;;  %v201_v56 = vld [vmem:[%s14486_s0 + $0x5f0] sm:$0xff] }
 0x2ea   :  { %v2862_v62 = vpop.f32.mrb[6].mxu0  ;;  %v4187_v63 = vpop.f32.mrb[6].mxu1 }
 0x2eb   :  { %5511 = vst.msk [vmem:[%s14487_s2 + $0x410] sm:$0xff] %vm5380_vm5, %v4981_v60  ;;  %5776 = vst.msk [vmem:[%s14487_s2 + $0xc58] sm:$0xff] %vm5380_vm5, %v5246_v61  ;;  %v2863_v51 = vadd.f32 %v12111_v32, %v2862_v62  ;;  %v7381_v0 = vpop.f32.mrb[7].mxu0  ;;  %7539 = vmatmul.mubr.msk.f32.gmra.mrb[112].mxu0 %vm549_vm4, %v195_v58  ;;  %v4188_v2 = vadd.f32 %v12111_v32, %v4187_v63  ;;  %v8176_v3 = vpop.f32.mrb[7].mxu1  ;;  %8334 = vmatmul.mubr.msk.f32.gmra.mrb[112].mxu1 %vm549_vm4, %v460_v59 }
 0x2ec   :  { %7541 = vmatprep.mubr.msk.f32.mxu0 %vm8596_vm1, %v8597_v6  ;;  %8336 = vmatprep.mubr.msk.f32.mxu1 %vm8596_vm1, %v8597_v6  ;;  %v467_v3 = vld [vmem:[%s14486_s0 + $0xe40] sm:$0xff] }
 0x2ed   :  { %v4982_v7 = vmax.f32 %v2863_v51, 0.0  ;;  %v5247_v8 = vmax.f32 %v4188_v2, 0.0  ;;  %v202_v2 = vld [vmem:[%s14486_s0 + $0x5f8] sm:$0xff] }
 0x2ee   :  { %v2867_v9 = vpop.f32.mrb[8].mxu0  ;;  %v4192_v10 = vpop.f32.mrb[8].mxu1 }
 0x2ef   :  { %5512 = vst.msk [vmem:[%s14487_s2 + $0x418] sm:$0xff] %vm5380_vm5, %v4982_v7  ;;  %5777 = vst.msk [vmem:[%s14487_s2 + $0xc60] sm:$0xff] %vm5380_vm5, %v5247_v8  ;;  %v2868_v1 = vadd.f32 %v12111_v32, %v2867_v9  ;;  %v7384_v11 = vpop.f32.mrb[9].mxu0  ;;  %7542 = vmatmul.mubr.msk.f32.gmra.mrb[114].mxu0 %vm549_vm4, %v196_v4  ;;  %v4193_v13 = vadd.f32 %v12111_v32, %v4192_v10  ;;  %v8179_v14 = vpop.f32.mrb[9].mxu1  ;;  %8337 = vmatmul.mubr.msk.f32.gmra.mrb[114].mxu1 %vm549_vm4, %v461_v5 }
 0x2f0   :  { %7544 = vmatprep.mubr.msk.f32.mxu0 %vm8596_vm1, %v8597_v6  ;;  %8339 = vmatprep.mubr.msk.f32.mxu1 %vm8596_vm1, %v8597_v6  ;;  %v468_v14 = vld [vmem:[%s14486_s0 + $0xe48] sm:$0xff] }
 0x2f1   :  { %v4983_v17 = vmax.f32 %v2868_v1, 0.0  ;;  %v5248_v18 = vmax.f32 %v4193_v13, 0.0  ;;  %v203_v13 = vld [vmem:[%s14486_s0 + $0x600] sm:$0xff] }
 0x2f2   :  { %v2872_v19 = vpop.f32.mrb[10].mxu0  ;;  %v4197_v20 = vpop.f32.mrb[10].mxu1 }
 0x2f3   :  { %5513 = vst.msk [vmem:[%s14487_s2 + $0x420] sm:$0xff] %vm5380_vm5, %v4983_v17  ;;  %5778 = vst.msk [vmem:[%s14487_s2 + $0xc68] sm:$0xff] %vm5380_vm5, %v5248_v18  ;;  %v2873_v12 = vadd.f32 %v12111_v32, %v2872_v19  ;;  %v7387_v21 = vpop.f32.mrb[11].mxu0  ;;  %7545 = vmatmul.mubr.msk.f32.gmra.mrb[116].mxu0 %vm549_vm4, %v197_v15  ;;  %v4198_v23 = vadd.f32 %v12111_v32, %v4197_v20  ;;  %v8182_v24 = vpop.f32.mrb[11].mxu1  ;;  %8340 = vmatmul.mubr.msk.f32.gmra.mrb[116].mxu1 %vm549_vm4, %v462_v16 }
 0x2f4   :  { %7547 = vmatprep.mubr.msk.f32.mxu0 %vm8596_vm1, %v8597_v6  ;;  %8342 = vmatprep.mubr.msk.f32.mxu1 %vm8596_vm1, %v8597_v6  ;;  %v469_v24 = vld [vmem:[%s14486_s0 + $0xe50] sm:$0xff] }
 0x2f5   :  { %v4984_v27 = vmax.f32 %v2873_v12, 0.0  ;;  %v5249_v28 = vmax.f32 %v4198_v23, 0.0  ;;  %v204_v23 = vld [vmem:[%s14486_s0 + $0x608] sm:$0xff] }
 0x2f6   :  { %v2877_v29 = vpop.f32.mrb[12].mxu0  ;;  %v4202_v30 = vpop.f32.mrb[12].mxu1 }
 0x2f7   :  { %5514 = vst.msk [vmem:[%s14487_s2 + $0x428] sm:$0xff] %vm5380_vm5, %v4984_v27  ;;  %5779 = vst.msk [vmem:[%s14487_s2 + $0xc70] sm:$0xff] %vm5380_vm5, %v5249_v28  ;;  %v2878_v22 = vadd.f32 %v12111_v32, %v2877_v29  ;;  %v7390_v31 = vpop.f32.mrb[13].mxu0  ;;  %7548 = vmatmul.mubr.msk.f32.gmra.mrb[118].mxu0 %vm549_vm4, %v198_v25  ;;  %v4203_v33 = vadd.f32 %v12111_v32, %v4202_v30  ;;  %v8185_v34 = vpop.f32.mrb[13].mxu1  ;;  %8343 = vmatmul.mubr.msk.f32.gmra.mrb[118].mxu1 %vm549_vm4, %v463_v26 }
 0x2f8   :  { %7550 = vmatprep.mubr.msk.f32.mxu0 %vm8596_vm1, %v8597_v6  ;;  %8345 = vmatprep.mubr.msk.f32.mxu1 %vm8596_vm1, %v8597_v6  ;;  %v470_v34 = vld [vmem:[%s14486_s0 + $0xe58] sm:$0xff] }
 0x2f9   :  { %v4985_v37 = vmax.f32 %v2878_v22, 0.0  ;;  %v5250_v38 = vmax.f32 %v4203_v33, 0.0  ;;  %v205_v33 = vld [vmem:[%s14486_s0 + $0x610] sm:$0xff] }
 0x2fa   :  { %v2882_v39 = vpop.f32.mrb[14].mxu0  ;;  %v4207_v40 = vpop.f32.mrb[14].mxu1 }
 0x2fb   :  { %5515 = vst.msk [vmem:[%s14487_s2 + $0x430] sm:$0xff] %vm5380_vm5, %v4985_v37  ;;  %5780 = vst.msk [vmem:[%s14487_s2 + $0xc78] sm:$0xff] %vm5380_vm5, %v5250_v38  ;;  %v2883_v41 = vadd.f32 %v12111_v32, %v2882_v39  ;;  %v7393_v42 = vpop.f32.mrb[15].mxu0  ;;  %7551 = vmatmul.mubr.msk.f32.gmra.mrb[120].mxu0 %vm549_vm4, %v199_v35  ;;  %v4208_v43 = vadd.f32 %v12111_v32, %v4207_v40  ;;  %v8188_v44 = vpop.f32.mrb[15].mxu1  ;;  %8346 = vmatmul.mubr.msk.f32.gmra.mrb[120].mxu1 %vm549_vm4, %v464_v36 }
 0x2fc   :  { %7553 = vmatprep.mubr.msk.f32.mxu0 %vm8596_vm1, %v8597_v6  ;;  %8348 = vmatprep.mubr.msk.f32.mxu1 %vm8596_vm1, %v8597_v6  ;;  %v471_v44 = vld [vmem:[%s14486_s0 + $0xe60] sm:$0xff] }
 0x2fd   :  { %v4986_v47 = vmax.f32 %v2883_v41, 0.0  ;;  %v5251_v48 = vmax.f32 %v4208_v43, 0.0  ;;  %v206_v43 = vld [vmem:[%s14486_s0 + $0x618] sm:$0xff] }
 0x2fe   :  { %v2887_v49 = vpop.f32.mrb[16].mxu0  ;;  %v4212_v50 = vpop.f32.mrb[16].mxu1 }
 0x2ff   :  { %5516 = vst.msk [vmem:[%s14487_s2 + $0x438] sm:$0xff] %vm5380_vm5, %v4986_v47  ;;  %5781 = vst.msk [vmem:[%s14487_s2 + $0xc80] sm:$0xff] %vm5380_vm5, %v5251_v48  ;;  %v2888_v52 = vadd.f32 %v12111_v32, %v2887_v49  ;;  %v7396_v53 = vpop.f32.mrb[17].mxu0  ;;  %7554 = vmatmul.mubr.msk.f32.gmra.mrb[122].mxu0 %vm549_vm4, %v200_v45  ;;  %v4213_v54 = vadd.f32 %v12111_v32, %v4212_v50  ;;  %v8191_v55 = vpop.f32.mrb[17].mxu1  ;;  %8349 = vmatmul.mubr.msk.f32.gmra.mrb[122].mxu1 %vm549_vm4, %v465_v46 }
 0x300   :  { %7556 = vmatprep.mubr.msk.f32.mxu0 %vm8596_vm1, %v8597_v6  ;;  %8351 = vmatprep.mubr.msk.f32.mxu1 %vm8596_vm1, %v8597_v6  ;;  %v472_v55 = vld [vmem:[%s14486_s0 + $0xe68] sm:$0xff] }
 0x301   :  { %v4987_v58 = vmax.f32 %v2888_v52, 0.0  ;;  %v5252_v59 = vmax.f32 %v4213_v54, 0.0  ;;  %v207_v54 = vld [vmem:[%s14486_s0 + $0x620] sm:$0xff] }
 0x302   :  { %v2892_v60 = vpop.f32.mrb[18].mxu0  ;;  %v4217_v61 = vpop.f32.mrb[18].mxu1 }
 0x303   :  { %5517 = vst.msk [vmem:[%s14487_s2 + $0x440] sm:$0xff] %vm5380_vm5, %v4987_v58  ;;  %5782 = vst.msk [vmem:[%s14487_s2 + $0xc88] sm:$0xff] %vm5380_vm5, %v5252_v59  ;;  %v2893_v62 = vadd.f32 %v12111_v32, %v2892_v60  ;;  %v7399_v63 = vpop.f32.mrb[19].mxu0  ;;  %7557 = vmatmul.mubr.msk.f32.gmra.mrb[124].mxu0 %vm549_vm4, %v201_v56  ;;  %v4218_v51 = vadd.f32 %v12111_v32, %v4217_v61  ;;  %v8194_v0 = vpop.f32.mrb[19].mxu1  ;;  %8352 = vmatmul.mubr.msk.f32.gmra.mrb[124].mxu1 %vm549_vm4, %v466_v57 }
 0x304   :  { %7559 = vmatprep.mubr.msk.f32.mxu0 %vm8596_vm1, %v8597_v6  ;;  %8354 = vmatprep.mubr.msk.f32.mxu1 %vm8596_vm1, %v8597_v6  ;;  %v473_v0 = vld [vmem:[%s14486_s0 + $0xe70] sm:$0xff] }
 0x305   :  { %v4988_v4 = vmax.f32 %v2893_v62, 0.0  ;;  %v5253_v5 = vmax.f32 %v4218_v51, 0.0  ;;  %v208_v51 = vld [vmem:[%s14486_s0 + $0x628] sm:$0xff] }
 0x306   :  { %v2897_v7 = vpop.f32.mrb[20].mxu0  ;;  %v4222_v8 = vpop.f32.mrb[20].mxu1 }
 0x307   :  { %5518 = vst.msk [vmem:[%s14487_s2 + $0x448] sm:$0xff] %vm5380_vm5, %v4988_v4  ;;  %5783 = vst.msk [vmem:[%s14487_s2 + $0xc90] sm:$0xff] %vm5380_vm5, %v5253_v5  ;;  %v2898_v9 = vadd.f32 %v12111_v32, %v2897_v7  ;;  %v7402_v10 = vpop.f32.mrb[21].mxu0  ;;  %7560 = vmatmul.mubr.msk.f32.gmra.mrb[126].mxu0 %vm549_vm4, %v202_v2  ;;  %v4223_v1 = vadd.f32 %v12111_v32, %v4222_v8  ;;  %v8197_v11 = vpop.f32.mrb[21].mxu1  ;;  %8355 = vmatmul.mubr.msk.f32.gmra.mrb[126].mxu1 %vm549_vm4, %v467_v3 }
 0x308   :  { %7562 = vmatprep.mubr.msk.f32.mxu0 %vm8596_vm1, %v8597_v6  ;;  %8357 = vmatprep.mubr.msk.f32.mxu1 %vm8596_vm1, %v8597_v6  ;;  %v474_v11 = vld [vmem:[%s14486_s0 + $0xe78] sm:$0xff] }
 0x309   :  { %v4989_v15 = vmax.f32 %v2898_v9, 0.0  ;;  %v5254_v16 = vmax.f32 %v4223_v1, 0.0  ;;  %v209_v1 = vld [vmem:[%s14486_s0 + $0x630] sm:$0xff] }
 0x30a   :  { %v2902_v17 = vpop.f32.mrb[22].mxu0  ;;  %v4227_v18 = vpop.f32.mrb[22].mxu1 }
 0x30b   :  { %5519 = vst.msk [vmem:[%s14487_s2 + $0x450] sm:$0xff] %vm5380_vm5, %v4989_v15  ;;  %5784 = vst.msk [vmem:[%s14487_s2 + $0xc98] sm:$0xff] %vm5380_vm5, %v5254_v16  ;;  %v2903_v19 = vadd.f32 %v12111_v32, %v2902_v17  ;;  %v7405_v20 = vpop.f32.mrb[23].mxu0  ;;  %7563 = vmatmul.mubr.msk.f32.gmra.mrb[128].mxu0 %vm549_vm4, %v203_v13  ;;  %v4228_v12 = vadd.f32 %v12111_v32, %v4227_v18  ;;  %v8200_v21 = vpop.f32.mrb[23].mxu1  ;;  %8358 = vmatmul.mubr.msk.f32.gmra.mrb[128].mxu1 %vm549_vm4, %v468_v14 }
 0x30c   :  { %7565 = vmatprep.mubr.msk.f32.mxu0 %vm8596_vm1, %v8597_v6  ;;  %8360 = vmatprep.mubr.msk.f32.mxu1 %vm8596_vm1, %v8597_v6  ;;  %v475_v21 = vld [vmem:[%s14486_s0 + $0xe80] sm:$0xff] }
 0x30d   :  { %v4990_v25 = vmax.f32 %v2903_v19, 0.0  ;;  %v5255_v26 = vmax.f32 %v4228_v12, 0.0  ;;  %v210_v12 = vld [vmem:[%s14486_s0 + $0x638] sm:$0xff] }
 0x30e   :  { %v2907_v27 = vpop.f32.mrb[24].mxu0  ;;  %v4232_v28 = vpop.f32.mrb[24].mxu1 }
 0x30f   :  { %5520 = vst.msk [vmem:[%s14487_s2 + $0x458] sm:$0xff] %vm5380_vm5, %v4990_v25  ;;  %5785 = vst.msk [vmem:[%s14487_s2 + $0xca0] sm:$0xff] %vm5380_vm5, %v5255_v26  ;;  %v2908_v29 = vadd.f32 %v12111_v32, %v2907_v27  ;;  %v7408_v30 = vpop.f32.mrb[25].mxu0  ;;  %7566 = vmatmul.mubr.msk.f32.gmra.mrb[130].mxu0 %vm549_vm4, %v204_v23  ;;  %v4233_v22 = vadd.f32 %v12111_v32, %v4232_v28  ;;  %v8203_v31 = vpop.f32.mrb[25].mxu1  ;;  %8361 = vmatmul.mubr.msk.f32.gmra.mrb[130].mxu1 %vm549_vm4, %v469_v24 }
 0x310   :  { %7568 = vmatprep.mubr.msk.f32.mxu0 %vm8596_vm1, %v8597_v6  ;;  %8363 = vmatprep.mubr.msk.f32.mxu1 %vm8596_vm1, %v8597_v6  ;;  %v476_v31 = vld [vmem:[%s14486_s0 + $0xe88] sm:$0xff] }
 0x311   :  { %v4991_v35 = vmax.f32 %v2908_v29, 0.0  ;;  %v5256_v36 = vmax.f32 %v4233_v22, 0.0  ;;  %v211_v22 = vld [vmem:[%s14486_s0 + $0x640] sm:$0xff] }
 0x312   :  { %v2912_v37 = vpop.f32.mrb[26].mxu0  ;;  %v4237_v38 = vpop.f32.mrb[26].mxu1 }
 0x313   :  { %5521 = vst.msk [vmem:[%s14487_s2 + $0x460] sm:$0xff] %vm5380_vm5, %v4991_v35  ;;  %5786 = vst.msk [vmem:[%s14487_s2 + $0xca8] sm:$0xff] %vm5380_vm5, %v5256_v36  ;;  %v2913_v39 = vadd.f32 %v12111_v32, %v2912_v37  ;;  %v7411_v40 = vpop.f32.mrb[27].mxu0  ;;  %7569 = vmatmul.mubr.msk.f32.gmra.mrb[132].mxu0 %vm549_vm4, %v205_v33  ;;  %v4238_v41 = vadd.f32 %v12111_v32, %v4237_v38  ;;  %v8206_v42 = vpop.f32.mrb[27].mxu1  ;;  %8364 = vmatmul.mubr.msk.f32.gmra.mrb[132].mxu1 %vm549_vm4, %v470_v34 }
 0x314   :  { %7571 = vmatprep.mubr.msk.f32.mxu0 %vm8596_vm1, %v8597_v6  ;;  %8366 = vmatprep.mubr.msk.f32.mxu1 %vm8596_vm1, %v8597_v6  ;;  %v477_v42 = vld [vmem:[%s14486_s0 + $0xe90] sm:$0xff] }
 0x315   :  { %v4992_v45 = vmax.f32 %v2913_v39, 0.0  ;;  %v5257_v46 = vmax.f32 %v4238_v41, 0.0  ;;  %v212_v41 = vld [vmem:[%s14486_s0 + $0x648] sm:$0xff] }
 0x316   :  { %v2917_v47 = vpop.f32.mrb[28].mxu0  ;;  %v4242_v48 = vpop.f32.mrb[28].mxu1 }
 0x317   :  { %5522 = vst.msk [vmem:[%s14487_s2 + $0x468] sm:$0xff] %vm5380_vm5, %v4992_v45  ;;  %5787 = vst.msk [vmem:[%s14487_s2 + $0xcb0] sm:$0xff] %vm5380_vm5, %v5257_v46  ;;  %v2918_v49 = vadd.f32 %v12111_v32, %v2917_v47  ;;  %v7414_v50 = vpop.f32.mrb[29].mxu0  ;;  %7572 = vmatmul.mubr.msk.f32.gmra.mrb[134].mxu0 %vm549_vm4, %v206_v43  ;;  %v4243_v52 = vadd.f32 %v12111_v32, %v4242_v48  ;;  %v8209_v53 = vpop.f32.mrb[29].mxu1  ;;  %8367 = vmatmul.mubr.msk.f32.gmra.mrb[134].mxu1 %vm549_vm4, %v471_v44 }
 0x318   :  { %7574 = vmatprep.mubr.msk.f32.mxu0 %vm8596_vm1, %v8597_v6  ;;  %8369 = vmatprep.mubr.msk.f32.mxu1 %vm8596_vm1, %v8597_v6  ;;  %v478_v53 = vld [vmem:[%s14486_s0 + $0xe98] sm:$0xff] }
 0x319   :  { %v4993_v56 = vmax.f32 %v2918_v49, 0.0  ;;  %v5258_v57 = vmax.f32 %v4243_v52, 0.0  ;;  %v213_v52 = vld [vmem:[%s14486_s0 + $0x650] sm:$0xff] }
 0x31a   :  { %v2922_v58 = vpop.f32.mrb[30].mxu0  ;;  %v4247_v59 = vpop.f32.mrb[30].mxu1 }
 0x31b   :  { %5523 = vst.msk [vmem:[%s14487_s2 + $0x470] sm:$0xff] %vm5380_vm5, %v4993_v56  ;;  %5788 = vst.msk [vmem:[%s14487_s2 + $0xcb8] sm:$0xff] %vm5380_vm5, %v5258_v57  ;;  %v2923_v60 = vadd.f32 %v12111_v32, %v2922_v58  ;;  %v7417_v61 = vpop.f32.mrb[31].mxu0  ;;  %7575 = vmatmul.mubr.msk.f32.gmra.mrb[136].mxu0 %vm549_vm4, %v207_v54  ;;  %v4248_v62 = vadd.f32 %v12111_v32, %v4247_v59  ;;  %v8212_v63 = vpop.f32.mrb[31].mxu1  ;;  %8370 = vmatmul.mubr.msk.f32.gmra.mrb[136].mxu1 %vm549_vm4, %v472_v55 }
 0x31c   :  { %7577 = vmatprep.mubr.msk.f32.mxu0 %vm8596_vm1, %v8597_v6  ;;  %8372 = vmatprep.mubr.msk.f32.mxu1 %vm8596_vm1, %v8597_v6  ;;  %v479_v63 = vld [vmem:[%s14486_s0 + $0xea0] sm:$0xff] }
 0x31d   :  { %v4994_v2 = vmax.f32 %v2923_v60, 0.0  ;;  %v5259_v3 = vmax.f32 %v4248_v62, 0.0  ;;  %v214_v62 = vld [vmem:[%s14486_s0 + $0x658] sm:$0xff] }
 0x31e   :  { %v2927_v4 = vpop.f32.mrb[32].mxu0  ;;  %v4252_v5 = vpop.f32.mrb[32].mxu1 }
 0x31f   :  { %5524 = vst.msk [vmem:[%s14487_s2 + $0x478] sm:$0xff] %vm5380_vm5, %v4994_v2  ;;  %5789 = vst.msk [vmem:[%s14487_s2 + $0xcc0] sm:$0xff] %vm5380_vm5, %v5259_v3  ;;  %v2928_v7 = vadd.f32 %v12111_v32, %v2927_v4  ;;  %v7420_v8 = vpop.f32.mrb[33].mxu0  ;;  %7578 = vmatmul.mubr.msk.f32.gmra.mrb[138].mxu0 %vm549_vm4, %v208_v51  ;;  %v4253_v9 = vadd.f32 %v12111_v32, %v4252_v5  ;;  %v8215_v10 = vpop.f32.mrb[33].mxu1  ;;  %8373 = vmatmul.mubr.msk.f32.gmra.mrb[138].mxu1 %vm549_vm4, %v473_v0 }
 0x320   :  { %7580 = vmatprep.mubr.msk.f32.mxu0 %vm8596_vm1, %v8597_v6  ;;  %8375 = vmatprep.mubr.msk.f32.mxu1 %vm8596_vm1, %v8597_v6  ;;  %v480_v10 = vld [vmem:[%s14486_s0 + $0xea8] sm:$0xff] }
 0x321   :  { %v4995_v13 = vmax.f32 %v2928_v7, 0.0  ;;  %v5260_v14 = vmax.f32 %v4253_v9, 0.0  ;;  %v215_v9 = vld [vmem:[%s14486_s0 + $0x660] sm:$0xff] }
 0x322   :  { %v2932_v15 = vpop.f32.mrb[34].mxu0  ;;  %v4257_v16 = vpop.f32.mrb[34].mxu1 }
 0x323   :  { %5525 = vst.msk [vmem:[%s14487_s2 + $0x480] sm:$0xff] %vm5380_vm5, %v4995_v13  ;;  %5790 = vst.msk [vmem:[%s14487_s2 + $0xcc8] sm:$0xff] %vm5380_vm5, %v5260_v14  ;;  %v2933_v17 = vadd.f32 %v12111_v32, %v2932_v15  ;;  %v7423_v18 = vpop.f32.mrb[35].mxu0  ;;  %7581 = vmatmul.mubr.msk.f32.gmra.mrb[140].mxu0 %vm549_vm4, %v209_v1  ;;  %v4258_v19 = vadd.f32 %v12111_v32, %v4257_v16  ;;  %v8218_v20 = vpop.f32.mrb[35].mxu1  ;;  %8376 = vmatmul.mubr.msk.f32.gmra.mrb[140].mxu1 %vm549_vm4, %v474_v11 }
 0x324   :  { %7583 = vmatprep.mubr.msk.f32.mxu0 %vm8596_vm1, %v8597_v6  ;;  %8378 = vmatprep.mubr.msk.f32.mxu1 %vm8596_vm1, %v8597_v6  ;;  %v481_v20 = vld [vmem:[%s14486_s0 + $0xeb0] sm:$0xff] }
 0x325   :  { %v4996_v23 = vmax.f32 %v2933_v17, 0.0  ;;  %v5261_v24 = vmax.f32 %v4258_v19, 0.0  ;;  %v216_v19 = vld [vmem:[%s14486_s0 + $0x668] sm:$0xff] }
 0x326   :  { %v2937_v25 = vpop.f32.mrb[36].mxu0  ;;  %v4262_v26 = vpop.f32.mrb[36].mxu1 }
 0x327   :  { %5526 = vst.msk [vmem:[%s14487_s2 + $0x488] sm:$0xff] %vm5380_vm5, %v4996_v23  ;;  %5791 = vst.msk [vmem:[%s14487_s2 + $0xcd0] sm:$0xff] %vm5380_vm5, %v5261_v24  ;;  %v2938_v27 = vadd.f32 %v12111_v32, %v2937_v25  ;;  %v7426_v28 = vpop.f32.mrb[37].mxu0  ;;  %7584 = vmatmul.mubr.msk.f32.gmra.mrb[142].mxu0 %vm549_vm4, %v210_v12  ;;  %v4263_v29 = vadd.f32 %v12111_v32, %v4262_v26  ;;  %v8221_v30 = vpop.f32.mrb[37].mxu1  ;;  %8379 = vmatmul.mubr.msk.f32.gmra.mrb[142].mxu1 %vm549_vm4, %v475_v21 }
 0x328   :  { %7586 = vmatprep.mubr.msk.f32.mxu0 %vm8596_vm1, %v8597_v6  ;;  %8381 = vmatprep.mubr.msk.f32.mxu1 %vm8596_vm1, %v8597_v6  ;;  %v482_v30 = vld [vmem:[%s14486_s0 + $0xeb8] sm:$0xff] }
 0x329   :  { %v4997_v33 = vmax.f32 %v2938_v27, 0.0  ;;  %v5262_v34 = vmax.f32 %v4263_v29, 0.0  ;;  %v217_v29 = vld [vmem:[%s14486_s0 + $0x670] sm:$0xff] }
 0x32a   :  { %v2942_v35 = vpop.f32.mrb[38].mxu0  ;;  %v4267_v36 = vpop.f32.mrb[38].mxu1 }
 0x32b   :  { %5527 = vst.msk [vmem:[%s14487_s2 + $0x490] sm:$0xff] %vm5380_vm5, %v4997_v33  ;;  %5792 = vst.msk [vmem:[%s14487_s2 + $0xcd8] sm:$0xff] %vm5380_vm5, %v5262_v34  ;;  %v2943_v37 = vadd.f32 %v12111_v32, %v2942_v35  ;;  %v7429_v38 = vpop.f32.mrb[39].mxu0  ;;  %7587 = vmatmul.mubr.msk.f32.gmra.mrb[144].mxu0 %vm549_vm4, %v211_v22  ;;  %v4268_v39 = vadd.f32 %v12111_v32, %v4267_v36  ;;  %v8224_v40 = vpop.f32.mrb[39].mxu1  ;;  %8382 = vmatmul.mubr.msk.f32.gmra.mrb[144].mxu1 %vm549_vm4, %v476_v31 }
 0x32c   :  { %7589 = vmatprep.mubr.msk.f32.mxu0 %vm8596_vm1, %v8597_v6  ;;  %8384 = vmatprep.mubr.msk.f32.mxu1 %vm8596_vm1, %v8597_v6  ;;  %v483_v40 = vld [vmem:[%s14486_s0 + $0xec0] sm:$0xff] }
 0x32d   :  { %v4998_v43 = vmax.f32 %v2943_v37, 0.0  ;;  %v5263_v44 = vmax.f32 %v4268_v39, 0.0  ;;  %v218_v39 = vld [vmem:[%s14486_s0 + $0x678] sm:$0xff] }
 0x32e   :  { %v2947_v45 = vpop.f32.mrb[40].mxu0  ;;  %v4272_v46 = vpop.f32.mrb[40].mxu1 }
 0x32f   :  { %5528 = vst.msk [vmem:[%s14487_s2 + $0x498] sm:$0xff] %vm5380_vm5, %v4998_v43  ;;  %5793 = vst.msk [vmem:[%s14487_s2 + $0xce0] sm:$0xff] %vm5380_vm5, %v5263_v44  ;;  %v2948_v47 = vadd.f32 %v12111_v32, %v2947_v45  ;;  %v7432_v48 = vpop.f32.mrb[41].mxu0  ;;  %7590 = vmatmul.mubr.msk.f32.gmra.mrb[146].mxu0 %vm549_vm4, %v212_v41  ;;  %v4273_v49 = vadd.f32 %v12111_v32, %v4272_v46  ;;  %v8227_v50 = vpop.f32.mrb[41].mxu1  ;;  %8385 = vmatmul.mubr.msk.f32.gmra.mrb[146].mxu1 %vm549_vm4, %v477_v42 }
 0x330   :  { %7592 = vmatprep.mubr.msk.f32.mxu0 %vm8596_vm1, %v8597_v6  ;;  %8387 = vmatprep.mubr.msk.f32.mxu1 %vm8596_vm1, %v8597_v6  ;;  %v484_v50 = vld [vmem:[%s14486_s0 + $0xec8] sm:$0xff] }
 0x331   :  { %v4999_v54 = vmax.f32 %v2948_v47, 0.0  ;;  %v5264_v55 = vmax.f32 %v4273_v49, 0.0  ;;  %v219_v49 = vld [vmem:[%s14486_s0 + $0x680] sm:$0xff] }
 0x332   :  { %v2952_v56 = vpop.f32.mrb[42].mxu0  ;;  %v4277_v57 = vpop.f32.mrb[42].mxu1 }
 0x333   :  { %5529 = vst.msk [vmem:[%s14487_s2 + $0x4a0] sm:$0xff] %vm5380_vm5, %v4999_v54  ;;  %5794 = vst.msk [vmem:[%s14487_s2 + $0xce8] sm:$0xff] %vm5380_vm5, %v5264_v55  ;;  %v2953_v58 = vadd.f32 %v12111_v32, %v2952_v56  ;;  %v7435_v59 = vpop.f32.mrb[43].mxu0  ;;  %7593 = vmatmul.mubr.msk.f32.gmra.mrb[148].mxu0 %vm549_vm4, %v213_v52  ;;  %v4278_v60 = vadd.f32 %v12111_v32, %v4277_v57  ;;  %v8230_v61 = vpop.f32.mrb[43].mxu1  ;;  %8388 = vmatmul.mubr.msk.f32.gmra.mrb[148].mxu1 %vm549_vm4, %v478_v53 }
 0x334   :  { %7595 = vmatprep.mubr.msk.f32.mxu0 %vm8596_vm1, %v8597_v6  ;;  %8390 = vmatprep.mubr.msk.f32.mxu1 %vm8596_vm1, %v8597_v6  ;;  %v485_v61 = vld [vmem:[%s14486_s0 + $0xed0] sm:$0xff] }
 0x335   :  { %v5000_v51 = vmax.f32 %v2953_v58, 0.0  ;;  %v5265_v0 = vmax.f32 %v4278_v60, 0.0  ;;  %v220_v60 = vld [vmem:[%s14486_s0 + $0x688] sm:$0xff] }
 0x336   :  { %v2957_v2 = vpop.f32.mrb[44].mxu0  ;;  %v4282_v3 = vpop.f32.mrb[44].mxu1 }
 0x337   :  { %5530 = vst.msk [vmem:[%s14487_s2 + $0x4a8] sm:$0xff] %vm5380_vm5, %v5000_v51  ;;  %5795 = vst.msk [vmem:[%s14487_s2 + $0xcf0] sm:$0xff] %vm5380_vm5, %v5265_v0  ;;  %v2958_v4 = vadd.f32 %v12111_v32, %v2957_v2  ;;  %v7438_v5 = vpop.f32.mrb[45].mxu0  ;;  %7596 = vmatmul.mubr.msk.f32.gmra.mrb[150].mxu0 %vm549_vm4, %v214_v62  ;;  %v4283_v7 = vadd.f32 %v12111_v32, %v4282_v3  ;;  %v8233_v8 = vpop.f32.mrb[45].mxu1  ;;  %8391 = vmatmul.mubr.msk.f32.gmra.mrb[150].mxu1 %vm549_vm4, %v479_v63 }
 0x338   :  { %7598 = vmatprep.mubr.msk.f32.mxu0 %vm8596_vm1, %v8597_v6  ;;  %8393 = vmatprep.mubr.msk.f32.mxu1 %vm8596_vm1, %v8597_v6  ;;  %v486_v8 = vld [vmem:[%s14486_s0 + $0xed8] sm:$0xff] }
 0x339   :  { %v5001_v1 = vmax.f32 %v2958_v4, 0.0  ;;  %v5266_v11 = vmax.f32 %v4283_v7, 0.0  ;;  %v221_v7 = vld [vmem:[%s14486_s0 + $0x690] sm:$0xff] }
 0x33a   :  { %v2962_v13 = vpop.f32.mrb[46].mxu0  ;;  %v4287_v14 = vpop.f32.mrb[46].mxu1 }
 0x33b   :  { %5531 = vst.msk [vmem:[%s14487_s2 + $0x4b0] sm:$0xff] %vm5380_vm5, %v5001_v1  ;;  %5796 = vst.msk [vmem:[%s14487_s2 + $0xcf8] sm:$0xff] %vm5380_vm5, %v5266_v11  ;;  %v2963_v15 = vadd.f32 %v12111_v32, %v2962_v13  ;;  %v7441_v16 = vpop.f32.mrb[47].mxu0  ;;  %7599 = vmatmul.mubr.msk.f32.gmra.mrb[152].mxu0 %vm549_vm4, %v215_v9  ;;  %v4288_v17 = vadd.f32 %v12111_v32, %v4287_v14  ;;  %v8236_v18 = vpop.f32.mrb[47].mxu1  ;;  %8394 = vmatmul.mubr.msk.f32.gmra.mrb[152].mxu1 %vm549_vm4, %v480_v10 }
 0x33c   :  { %7601 = vmatprep.mubr.msk.f32.mxu0 %vm8596_vm1, %v8597_v6  ;;  %8396 = vmatprep.mubr.msk.f32.mxu1 %vm8596_vm1, %v8597_v6  ;;  %v487_v18 = vld [vmem:[%s14486_s0 + $0xee0] sm:$0xff] }
 0x33d   :  { %v5002_v12 = vmax.f32 %v2963_v15, 0.0  ;;  %v5267_v21 = vmax.f32 %v4288_v17, 0.0  ;;  %v222_v17 = vld [vmem:[%s14486_s0 + $0x698] sm:$0xff] }
 0x33e   :  { %v2967_v23 = vpop.f32.mrb[48].mxu0  ;;  %v4292_v24 = vpop.f32.mrb[48].mxu1 }
 0x33f   :  { %5532 = vst.msk [vmem:[%s14487_s2 + $0x4b8] sm:$0xff] %vm5380_vm5, %v5002_v12  ;;  %5797 = vst.msk [vmem:[%s14487_s2 + $0xd00] sm:$0xff] %vm5380_vm5, %v5267_v21  ;;  %v2968_v25 = vadd.f32 %v12111_v32, %v2967_v23  ;;  %v7444_v26 = vpop.f32.mrb[49].mxu0  ;;  %7602 = vmatmul.mubr.msk.f32.gmra.mrb[154].mxu0 %vm549_vm4, %v216_v19  ;;  %v4293_v27 = vadd.f32 %v12111_v32, %v4292_v24  ;;  %v8239_v28 = vpop.f32.mrb[49].mxu1  ;;  %8397 = vmatmul.mubr.msk.f32.gmra.mrb[154].mxu1 %vm549_vm4, %v481_v20 }
 0x340   :  { %7604 = vmatprep.mubr.msk.f32.mxu0 %vm8596_vm1, %v8597_v6  ;;  %8399 = vmatprep.mubr.msk.f32.mxu1 %vm8596_vm1, %v8597_v6  ;;  %v488_v28 = vld [vmem:[%s14486_s0 + $0xee8] sm:$0xff] }
 0x341   :  { %v5003_v22 = vmax.f32 %v2968_v25, 0.0  ;;  %v5268_v31 = vmax.f32 %v4293_v27, 0.0  ;;  %v223_v27 = vld [vmem:[%s14486_s0 + $0x6a0] sm:$0xff] }
 0x342   :  { %v2972_v33 = vpop.f32.mrb[50].mxu0  ;;  %v4297_v34 = vpop.f32.mrb[50].mxu1 }
 0x343   :  { %5533 = vst.msk [vmem:[%s14487_s2 + $0x4c0] sm:$0xff] %vm5380_vm5, %v5003_v22  ;;  %5798 = vst.msk [vmem:[%s14487_s2 + $0xd08] sm:$0xff] %vm5380_vm5, %v5268_v31  ;;  %v2973_v35 = vadd.f32 %v12111_v32, %v2972_v33  ;;  %v7447_v36 = vpop.f32.mrb[51].mxu0  ;;  %7605 = vmatmul.mubr.msk.f32.gmra.mrb[156].mxu0 %vm549_vm4, %v217_v29  ;;  %v4298_v37 = vadd.f32 %v12111_v32, %v4297_v34  ;;  %v8242_v38 = vpop.f32.mrb[51].mxu1  ;;  %8400 = vmatmul.mubr.msk.f32.gmra.mrb[156].mxu1 %vm549_vm4, %v482_v30 }
 0x344   :  { %7607 = vmatprep.mubr.msk.f32.mxu0 %vm8596_vm1, %v8597_v6  ;;  %8402 = vmatprep.mubr.msk.f32.mxu1 %vm8596_vm1, %v8597_v6  ;;  %v489_v38 = vld [vmem:[%s14486_s0 + $0xef0] sm:$0xff] }
 0x345   :  { %v5004_v41 = vmax.f32 %v2973_v35, 0.0  ;;  %v5269_v42 = vmax.f32 %v4298_v37, 0.0  ;;  %v224_v37 = vld [vmem:[%s14486_s0 + $0x6a8] sm:$0xff] }
 0x346   :  { %v2977_v43 = vpop.f32.mrb[52].mxu0  ;;  %v4302_v44 = vpop.f32.mrb[52].mxu1 }
 0x347   :  { %5534 = vst.msk [vmem:[%s14487_s2 + $0x4c8] sm:$0xff] %vm5380_vm5, %v5004_v41  ;;  %5799 = vst.msk [vmem:[%s14487_s2 + $0xd10] sm:$0xff] %vm5380_vm5, %v5269_v42  ;;  %v2978_v45 = vadd.f32 %v12111_v32, %v2977_v43  ;;  %v7450_v46 = vpop.f32.mrb[53].mxu0  ;;  %7608 = vmatmul.mubr.msk.f32.gmra.mrb[158].mxu0 %vm549_vm4, %v218_v39  ;;  %v4303_v47 = vadd.f32 %v12111_v32, %v4302_v44  ;;  %v8245_v48 = vpop.f32.mrb[53].mxu1  ;;  %8403 = vmatmul.mubr.msk.f32.gmra.mrb[158].mxu1 %vm549_vm4, %v483_v40  ;;  %v12820_v42 = vld [vmem:[%s14485_s1 + $0x19] ss:$0 sm:$0xff] }
 0x348   :  { %7610 = vmatprep.mubr.msk.f32.mxu0 %vm8596_vm1, %v8597_v6  ;;  %8405 = vmatprep.mubr.msk.f32.mxu1 %vm8596_vm1, %v8597_v6  ;;  %v490_v48 = vld [vmem:[%s14486_s0 + $0xef8] sm:$0xff] }
 0x349   :  { %v5005_v52 = vmax.f32 %v2978_v45, 0.0  ;;  %v5270_v53 = vmax.f32 %v4303_v47, 0.0  ;;  %v225_v47 = vld [vmem:[%s14486_s0 + $0x6b0] sm:$0xff] }
 0x34a   :  { %v2982_v54 = vpop.f32.mrb[54].mxu0  ;;  %v4307_v55 = vpop.f32.mrb[54].mxu1 }
 0x34b   :  { %5535 = vst.msk [vmem:[%s14487_s2 + $0x4d0] sm:$0xff] %vm5380_vm5, %v5005_v52  ;;  %5800 = vst.msk [vmem:[%s14487_s2 + $0xd18] sm:$0xff] %vm5380_vm5, %v5270_v53  ;;  %v2983_v56 = vadd.f32 %v12111_v32, %v2982_v54  ;;  %v7453_v57 = vpop.f32.mrb[55].mxu0  ;;  %7611 = vmatmul.mubr.msk.f32.gmra.mrb[160].mxu0 %vm549_vm4, %v219_v49  ;;  %v4308_v58 = vadd.f32 %v12111_v32, %v4307_v55  ;;  %v8248_v59 = vpop.f32.mrb[55].mxu1  ;;  %8406 = vmatmul.mubr.msk.f32.gmra.mrb[160].mxu1 %vm549_vm4, %v484_v50 }
 0x34c   :  { %7613 = vmatprep.mubr.msk.f32.mxu0 %vm8596_vm1, %v8597_v6  ;;  %8408 = vmatprep.mubr.msk.f32.mxu1 %vm8596_vm1, %v8597_v6  ;;  %v491_v59 = vld [vmem:[%s14486_s0 + $0xf00] sm:$0xff] }
 0x34d   :  { %v5006_v62 = vmax.f32 %v2983_v56, 0.0  ;;  %v5271_v63 = vmax.f32 %v4308_v58, 0.0  ;;  %v226_v58 = vld [vmem:[%s14486_s0 + $0x6b8] sm:$0xff] }
 0x34e   :  { %v2987_v51 = vpop.f32.mrb[56].mxu0  ;;  %v4312_v0 = vpop.f32.mrb[56].mxu1 }
 0x34f   :  { %5536 = vst.msk [vmem:[%s14487_s2 + $0x4d8] sm:$0xff] %vm5380_vm5, %v5006_v62  ;;  %5801 = vst.msk [vmem:[%s14487_s2 + $0xd20] sm:$0xff] %vm5380_vm5, %v5271_v63  ;;  %v2988_v2 = vadd.f32 %v12111_v32, %v2987_v51  ;;  %v7456_v3 = vpop.f32.mrb[57].mxu0  ;;  %7614 = vmatmul.mubr.msk.f32.gmra.mrb[162].mxu0 %vm549_vm4, %v220_v60  ;;  %v4313_v4 = vadd.f32 %v12111_v32, %v4312_v0  ;;  %v8251_v5 = vpop.f32.mrb[57].mxu1  ;;  %8409 = vmatmul.mubr.msk.f32.gmra.mrb[162].mxu1 %vm549_vm4, %v485_v61 }
 0x350   :  { %7616 = vmatprep.mubr.msk.f32.mxu0 %vm8596_vm1, %v8597_v6  ;;  %8411 = vmatprep.mubr.msk.f32.mxu1 %vm8596_vm1, %v8597_v6  ;;  %v492_v5 = vld [vmem:[%s14486_s0 + $0xf08] sm:$0xff] }
 0x351   :  { %v5007_v9 = vmax.f32 %v2988_v2, 0.0  ;;  %v5272_v10 = vmax.f32 %v4313_v4, 0.0  ;;  %v227_v4 = vld [vmem:[%s14486_s0 + $0x6c0] sm:$0xff] }
 0x352   :  { %v2992_v1 = vpop.f32.mrb[58].mxu0  ;;  %v4317_v11 = vpop.f32.mrb[58].mxu1 }
 0x353   :  { %5537 = vst.msk [vmem:[%s14487_s2 + $0x4e0] sm:$0xff] %vm5380_vm5, %v5007_v9  ;;  %5802 = vst.msk [vmem:[%s14487_s2 + $0xd28] sm:$0xff] %vm5380_vm5, %v5272_v10  ;;  %v2993_v13 = vadd.f32 %v12111_v32, %v2992_v1  ;;  %v7459_v14 = vpop.f32.mrb[59].mxu0  ;;  %7617 = vmatmul.mubr.msk.f32.gmra.mrb[164].mxu0 %vm549_vm4, %v221_v7  ;;  %v4318_v15 = vadd.f32 %v12111_v32, %v4317_v11  ;;  %v8254_v16 = vpop.f32.mrb[59].mxu1  ;;  %8412 = vmatmul.mubr.msk.f32.gmra.mrb[164].mxu1 %vm549_vm4, %v486_v8 }
 0x354   :  { %7619 = vmatprep.mubr.msk.f32.mxu0 %vm8596_vm1, %v8597_v6  ;;  %8414 = vmatprep.mubr.msk.f32.mxu1 %vm8596_vm1, %v8597_v6  ;;  %v493_v16 = vld [vmem:[%s14486_s0 + $0xf10] sm:$0xff] }
 0x355   :  { %v5008_v19 = vmax.f32 %v2993_v13, 0.0  ;;  %v5273_v20 = vmax.f32 %v4318_v15, 0.0  ;;  %v228_v15 = vld [vmem:[%s14486_s0 + $0x6c8] sm:$0xff] }
 0x356   :  { %v2997_v12 = vpop.f32.mrb[60].mxu0  ;;  %v4322_v21 = vpop.f32.mrb[60].mxu1 }
 0x357   :  { %5538 = vst.msk [vmem:[%s14487_s2 + $0x4e8] sm:$0xff] %vm5380_vm5, %v5008_v19  ;;  %5803 = vst.msk [vmem:[%s14487_s2 + $0xd30] sm:$0xff] %vm5380_vm5, %v5273_v20  ;;  %v2998_v23 = vadd.f32 %v12111_v32, %v2997_v12  ;;  %v7462_v24 = vpop.f32.mrb[61].mxu0  ;;  %7620 = vmatmul.mubr.msk.f32.gmra.mrb[166].mxu0 %vm549_vm4, %v222_v17  ;;  %v4323_v25 = vadd.f32 %v12111_v32, %v4322_v21  ;;  %v8257_v26 = vpop.f32.mrb[61].mxu1  ;;  %8415 = vmatmul.mubr.msk.f32.gmra.mrb[166].mxu1 %vm549_vm4, %v487_v18 }
 0x358   :  { %7622 = vmatprep.mubr.msk.f32.mxu0 %vm8596_vm1, %v8597_v6  ;;  %8417 = vmatprep.mubr.msk.f32.mxu1 %vm8596_vm1, %v8597_v6  ;;  %v494_v26 = vld [vmem:[%s14486_s0 + $0xf18] sm:$0xff] }
 0x359   :  { %v5009_v29 = vmax.f32 %v2998_v23, 0.0  ;;  %v5274_v30 = vmax.f32 %v4323_v25, 0.0  ;;  %v229_v25 = vld [vmem:[%s14486_s0 + $0x6d0] sm:$0xff] }
 0x35a   :  { %v3002_v22 = vpop.f32.mrb[62].mxu0  ;;  %v4327_v31 = vpop.f32.mrb[62].mxu1 }
 0x35b   :  { %5539 = vst.msk [vmem:[%s14487_s2 + $0x4f0] sm:$0xff] %vm5380_vm5, %v5009_v29  ;;  %5804 = vst.msk [vmem:[%s14487_s2 + $0xd38] sm:$0xff] %vm5380_vm5, %v5274_v30  ;;  %v3003_v33 = vadd.f32 %v12111_v32, %v3002_v22  ;;  %v7465_v34 = vpop.f32.mrb[63].mxu0  ;;  %7623 = vmatmul.mubr.msk.f32.gmra.mrb[168].mxu0 %vm549_vm4, %v223_v27  ;;  %v4328_v35 = vadd.f32 %v12111_v32, %v4327_v31  ;;  %v8260_v36 = vpop.f32.mrb[63].mxu1  ;;  %8418 = vmatmul.mubr.msk.f32.gmra.mrb[168].mxu1 %vm549_vm4, %v488_v28 }
 0x35c   :  { %7625 = vmatprep.mubr.msk.f32.mxu0 %vm8596_vm1, %v8597_v6  ;;  %8420 = vmatprep.mubr.msk.f32.mxu1 %vm8596_vm1, %v8597_v6  ;;  %v495_v36 = vld [vmem:[%s14486_s0 + $0xf20] sm:$0xff] }
 0x35d   :  { %v5010_v39 = vmax.f32 %v3003_v33, 0.0  ;;  %v5275_v40 = vmax.f32 %v4328_v35, 0.0  ;;  %v230_v35 = vld [vmem:[%s14486_s0 + $0x6d8] sm:$0xff] }
 0x35e   :  { %v3007_v32 = vpop.f32.mrb[64].mxu0  ;;  %v4332_v41 = vpop.f32.mrb[64].mxu1 }
 0x35f   :  { %5540 = vst.msk [vmem:[%s14487_s2 + $0x4f8] sm:$0xff] %vm5380_vm5, %v5010_v39  ;;  %5805 = vst.msk [vmem:[%s14487_s2 + $0xd40] sm:$0xff] %vm5380_vm5, %v5275_v40  ;;  %v3008_v43 = vadd.f32 %v12820_v42, %v3007_v32  ;;  %v7468_v44 = vpop.f32.mrb[65].mxu0  ;;  %7626 = vmatmul.mubr.msk.f32.gmra.mrb[170].mxu0 %vm549_vm4, %v224_v37  ;;  %v4333_v45 = vadd.f32 %v12820_v42, %v4332_v41  ;;  %v8263_v46 = vpop.f32.mrb[65].mxu1  ;;  %8421 = vmatmul.mubr.msk.f32.gmra.mrb[170].mxu1 %vm549_vm4, %v489_v38 }
 0x360   :  { %7628 = vmatprep.mubr.msk.f32.mxu0 %vm8596_vm1, %v8597_v6  ;;  %8423 = vmatprep.mubr.msk.f32.mxu1 %vm8596_vm1, %v8597_v6  ;;  %v496_v46 = vld [vmem:[%s14486_s0 + $0xf28] sm:$0xff] }
 0x361   :  { %v5011_v49 = vmax.f32 %v3008_v43, 0.0  ;;  %v5276_v50 = vmax.f32 %v4333_v45, 0.0  ;;  %v231_v45 = vld [vmem:[%s14486_s0 + $0x6e0] sm:$0xff] }
 0x362   :  { %v3012_v52 = vpop.f32.mrb[66].mxu0  ;;  %v4337_v53 = vpop.f32.mrb[66].mxu1 }
 0x363   :  { %5541 = vst.msk [vmem:[%s14487_s2 + $0x500] sm:$0xff] %vm5380_vm5, %v5011_v49  ;;  %5806 = vst.msk [vmem:[%s14487_s2 + $0xd48] sm:$0xff] %vm5380_vm5, %v5276_v50  ;;  %v3013_v54 = vadd.f32 %v12820_v42, %v3012_v52  ;;  %v7471_v55 = vpop.f32.mrb[67].mxu0  ;;  %7629 = vmatmul.mubr.msk.f32.gmra.mrb[172].mxu0 %vm549_vm4, %v225_v47  ;;  %v4338_v56 = vadd.f32 %v12820_v42, %v4337_v53  ;;  %v8266_v57 = vpop.f32.mrb[67].mxu1  ;;  %8424 = vmatmul.mubr.msk.f32.gmra.mrb[172].mxu1 %vm549_vm4, %v490_v48 }
 0x364   :  { %7631 = vmatprep.mubr.msk.f32.mxu0 %vm8596_vm1, %v8597_v6  ;;  %8426 = vmatprep.mubr.msk.f32.mxu1 %vm8596_vm1, %v8597_v6  ;;  %v497_v57 = vld [vmem:[%s14486_s0 + $0xf30] sm:$0xff] }
 0x365   :  { %v5012_v60 = vmax.f32 %v3013_v54, 0.0  ;;  %v5277_v61 = vmax.f32 %v4338_v56, 0.0  ;;  %v232_v56 = vld [vmem:[%s14486_s0 + $0x6e8] sm:$0xff] }
 0x366   :  { %v3017_v62 = vpop.f32.mrb[68].mxu0  ;;  %v4342_v63 = vpop.f32.mrb[68].mxu1 }
 0x367   :  { %5542 = vst.msk [vmem:[%s14487_s2 + $0x508] sm:$0xff] %vm5380_vm5, %v5012_v60  ;;  %5807 = vst.msk [vmem:[%s14487_s2 + $0xd50] sm:$0xff] %vm5380_vm5, %v5277_v61  ;;  %v3018_v51 = vadd.f32 %v12820_v42, %v3017_v62  ;;  %v7474_v0 = vpop.f32.mrb[69].mxu0  ;;  %7632 = vmatmul.mubr.msk.f32.gmra.mrb[174].mxu0 %vm549_vm4, %v226_v58  ;;  %v4343_v2 = vadd.f32 %v12820_v42, %v4342_v63  ;;  %v8269_v3 = vpop.f32.mrb[69].mxu1  ;;  %8427 = vmatmul.mubr.msk.f32.gmra.mrb[174].mxu1 %vm549_vm4, %v491_v59 }
 0x368   :  { %7634 = vmatprep.mubr.msk.f32.mxu0 %vm8596_vm1, %v8597_v6  ;;  %8429 = vmatprep.mubr.msk.f32.mxu1 %vm8596_vm1, %v8597_v6  ;;  %v498_v3 = vld [vmem:[%s14486_s0 + $0xf38] sm:$0xff] }
 0x369   :  { %v5013_v7 = vmax.f32 %v3018_v51, 0.0  ;;  %v5278_v8 = vmax.f32 %v4343_v2, 0.0  ;;  %v233_v2 = vld [vmem:[%s14486_s0 + $0x6f0] sm:$0xff] }
 0x36a   :  { %v3022_v9 = vpop.f32.mrb[70].mxu0  ;;  %v4347_v10 = vpop.f32.mrb[70].mxu1 }
 0x36b   :  { %5543 = vst.msk [vmem:[%s14487_s2 + $0x510] sm:$0xff] %vm5380_vm5, %v5013_v7  ;;  %5808 = vst.msk [vmem:[%s14487_s2 + $0xd58] sm:$0xff] %vm5380_vm5, %v5278_v8  ;;  %v3023_v1 = vadd.f32 %v12820_v42, %v3022_v9  ;;  %v7477_v11 = vpop.f32.mrb[71].mxu0  ;;  %7635 = vmatmul.mubr.msk.f32.gmra.mrb[176].mxu0 %vm549_vm4, %v227_v4  ;;  %v4348_v13 = vadd.f32 %v12820_v42, %v4347_v10  ;;  %v8272_v14 = vpop.f32.mrb[71].mxu1  ;;  %8430 = vmatmul.mubr.msk.f32.gmra.mrb[176].mxu1 %vm549_vm4, %v492_v5 }
 0x36c   :  { %7637 = vmatprep.mubr.msk.f32.mxu0 %vm8596_vm1, %v8597_v6  ;;  %8432 = vmatprep.mubr.msk.f32.mxu1 %vm8596_vm1, %v8597_v6  ;;  %v499_v14 = vld [vmem:[%s14486_s0 + $0xf40] sm:$0xff] }
 0x36d   :  { %v5014_v17 = vmax.f32 %v3023_v1, 0.0  ;;  %v5279_v18 = vmax.f32 %v4348_v13, 0.0  ;;  %v234_v13 = vld [vmem:[%s14486_s0 + $0x6f8] sm:$0xff] }
 0x36e   :  { %v3027_v19 = vpop.f32.mrb[72].mxu0  ;;  %v4352_v20 = vpop.f32.mrb[72].mxu1 }
 0x36f   :  { %5544 = vst.msk [vmem:[%s14487_s2 + $0x518] sm:$0xff] %vm5380_vm5, %v5014_v17  ;;  %5809 = vst.msk [vmem:[%s14487_s2 + $0xd60] sm:$0xff] %vm5380_vm5, %v5279_v18  ;;  %v3028_v12 = vadd.f32 %v12820_v42, %v3027_v19  ;;  %v7480_v21 = vpop.f32.mrb[73].mxu0  ;;  %7638 = vmatmul.mubr.msk.f32.gmra.mrb[178].mxu0 %vm549_vm4, %v228_v15  ;;  %v4353_v23 = vadd.f32 %v12820_v42, %v4352_v20  ;;  %v8275_v24 = vpop.f32.mrb[73].mxu1  ;;  %8433 = vmatmul.mubr.msk.f32.gmra.mrb[178].mxu1 %vm549_vm4, %v493_v16 }
 0x370   :  { %7640 = vmatprep.mubr.msk.f32.mxu0 %vm8596_vm1, %v8597_v6  ;;  %8435 = vmatprep.mubr.msk.f32.mxu1 %vm8596_vm1, %v8597_v6  ;;  %v500_v24 = vld [vmem:[%s14486_s0 + $0xf48] sm:$0xff] }
 0x371   :  { %v5015_v27 = vmax.f32 %v3028_v12, 0.0  ;;  %v5280_v28 = vmax.f32 %v4353_v23, 0.0  ;;  %v235_v23 = vld [vmem:[%s14486_s0 + $0x700] sm:$0xff] }
 0x372   :  { %v3032_v29 = vpop.f32.mrb[74].mxu0  ;;  %v4357_v30 = vpop.f32.mrb[74].mxu1 }
 0x373   :  { %5545 = vst.msk [vmem:[%s14487_s2 + $0x520] sm:$0xff] %vm5380_vm5, %v5015_v27  ;;  %5810 = vst.msk [vmem:[%s14487_s2 + $0xd68] sm:$0xff] %vm5380_vm5, %v5280_v28  ;;  %v3033_v22 = vadd.f32 %v12820_v42, %v3032_v29  ;;  %v7483_v31 = vpop.f32.mrb[75].mxu0  ;;  %7641 = vmatmul.mubr.msk.f32.gmra.mrb[180].mxu0 %vm549_vm4, %v229_v25  ;;  %v4358_v33 = vadd.f32 %v12820_v42, %v4357_v30  ;;  %v8278_v34 = vpop.f32.mrb[75].mxu1  ;;  %8436 = vmatmul.mubr.msk.f32.gmra.mrb[180].mxu1 %vm549_vm4, %v494_v26 }
 0x374   :  { %7643 = vmatprep.mubr.msk.f32.mxu0 %vm8596_vm1, %v8597_v6  ;;  %8438 = vmatprep.mubr.msk.f32.mxu1 %vm8596_vm1, %v8597_v6  ;;  %v501_v34 = vld [vmem:[%s14486_s0 + $0xf50] sm:$0xff] }
 0x375   :  { %v5016_v37 = vmax.f32 %v3033_v22, 0.0  ;;  %v5281_v38 = vmax.f32 %v4358_v33, 0.0  ;;  %v236_v33 = vld [vmem:[%s14486_s0 + $0x708] sm:$0xff] }
 0x376   :  { %v3037_v39 = vpop.f32.mrb[76].mxu0  ;;  %v4362_v40 = vpop.f32.mrb[76].mxu1 }
 0x377   :  { %5546 = vst.msk [vmem:[%s14487_s2 + $0x528] sm:$0xff] %vm5380_vm5, %v5016_v37  ;;  %5811 = vst.msk [vmem:[%s14487_s2 + $0xd70] sm:$0xff] %vm5380_vm5, %v5281_v38  ;;  %v3038_v32 = vadd.f32 %v12820_v42, %v3037_v39  ;;  %v7486_v41 = vpop.f32.mrb[77].mxu0  ;;  %7644 = vmatmul.mubr.msk.f32.gmra.mrb[182].mxu0 %vm549_vm4, %v230_v35  ;;  %v4363_v43 = vadd.f32 %v12820_v42, %v4362_v40  ;;  %v8281_v44 = vpop.f32.mrb[77].mxu1  ;;  %8439 = vmatmul.mubr.msk.f32.gmra.mrb[182].mxu1 %vm549_vm4, %v495_v36 }
 0x378   :  { %7646 = vmatprep.mubr.msk.f32.mxu0 %vm8596_vm1, %v8597_v6  ;;  %8441 = vmatprep.mubr.msk.f32.mxu1 %vm8596_vm1, %v8597_v6  ;;  %v502_v44 = vld [vmem:[%s14486_s0 + $0xf58] sm:$0xff] }
 0x379   :  { %v5017_v47 = vmax.f32 %v3038_v32, 0.0  ;;  %v5282_v48 = vmax.f32 %v4363_v43, 0.0  ;;  %v237_v43 = vld [vmem:[%s14486_s0 + $0x710] sm:$0xff] }
 0x37a   :  { %v3042_v49 = vpop.f32.mrb[78].mxu0  ;;  %v4367_v50 = vpop.f32.mrb[78].mxu1 }
 0x37b   :  { %5547 = vst.msk [vmem:[%s14487_s2 + $0x530] sm:$0xff] %vm5380_vm5, %v5017_v47  ;;  %5812 = vst.msk [vmem:[%s14487_s2 + $0xd78] sm:$0xff] %vm5380_vm5, %v5282_v48  ;;  %v3043_v52 = vadd.f32 %v12820_v42, %v3042_v49  ;;  %v7489_v53 = vpop.f32.mrb[79].mxu0  ;;  %7647 = vmatmul.mubr.msk.f32.gmra.mrb[184].mxu0 %vm549_vm4, %v231_v45  ;;  %v4368_v54 = vadd.f32 %v12820_v42, %v4367_v50  ;;  %v8284_v55 = vpop.f32.mrb[79].mxu1  ;;  %8442 = vmatmul.mubr.msk.f32.gmra.mrb[184].mxu1 %vm549_vm4, %v496_v46 }
 0x37c   :  { %7649 = vmatprep.mubr.msk.f32.mxu0 %vm8596_vm1, %v8597_v6  ;;  %8444 = vmatprep.mubr.msk.f32.mxu1 %vm8596_vm1, %v8597_v6  ;;  %v503_v55 = vld [vmem:[%s14486_s0 + $0xf60] sm:$0xff] }
 0x37d   :  { %v5018_v58 = vmax.f32 %v3043_v52, 0.0  ;;  %v5283_v59 = vmax.f32 %v4368_v54, 0.0  ;;  %v238_v54 = vld [vmem:[%s14486_s0 + $0x718] sm:$0xff] }
 0x37e   :  { %v3047_v60 = vpop.f32.mrb[80].mxu0  ;;  %v4372_v61 = vpop.f32.mrb[80].mxu1 }
 0x37f   :  { %5548 = vst.msk [vmem:[%s14487_s2 + $0x538] sm:$0xff] %vm5380_vm5, %v5018_v58  ;;  %5813 = vst.msk [vmem:[%s14487_s2 + $0xd80] sm:$0xff] %vm5380_vm5, %v5283_v59  ;;  %v3048_v62 = vadd.f32 %v12820_v42, %v3047_v60  ;;  %v7492_v63 = vpop.f32.mrb[81].mxu0  ;;  %7650 = vmatmul.mubr.msk.f32.gmra.mrb[186].mxu0 %vm549_vm4, %v232_v56  ;;  %v4373_v51 = vadd.f32 %v12820_v42, %v4372_v61  ;;  %v8287_v0 = vpop.f32.mrb[81].mxu1  ;;  %8445 = vmatmul.mubr.msk.f32.gmra.mrb[186].mxu1 %vm549_vm4, %v497_v57 }
 0x380   :  { %7652 = vmatprep.mubr.msk.f32.mxu0 %vm8596_vm1, %v8597_v6  ;;  %8447 = vmatprep.mubr.msk.f32.mxu1 %vm8596_vm1, %v8597_v6  ;;  %v504_v0 = vld [vmem:[%s14486_s0 + $0xf68] sm:$0xff] }
 0x381   :  { %v5019_v4 = vmax.f32 %v3048_v62, 0.0  ;;  %v5284_v5 = vmax.f32 %v4373_v51, 0.0  ;;  %v239_v51 = vld [vmem:[%s14486_s0 + $0x720] sm:$0xff] }
 0x382   :  { %v3052_v7 = vpop.f32.mrb[82].mxu0  ;;  %v4377_v8 = vpop.f32.mrb[82].mxu1 }
 0x383   :  { %5549 = vst.msk [vmem:[%s14487_s2 + $0x540] sm:$0xff] %vm5380_vm5, %v5019_v4  ;;  %5814 = vst.msk [vmem:[%s14487_s2 + $0xd88] sm:$0xff] %vm5380_vm5, %v5284_v5  ;;  %v3053_v9 = vadd.f32 %v12820_v42, %v3052_v7  ;;  %v7495_v10 = vpop.f32.mrb[83].mxu0  ;;  %7653 = vmatmul.mubr.msk.f32.gmra.mrb[188].mxu0 %vm549_vm4, %v233_v2  ;;  %v4378_v1 = vadd.f32 %v12820_v42, %v4377_v8  ;;  %v8290_v11 = vpop.f32.mrb[83].mxu1  ;;  %8448 = vmatmul.mubr.msk.f32.gmra.mrb[188].mxu1 %vm549_vm4, %v498_v3 }
 0x384   :  { %7655 = vmatprep.mubr.msk.f32.mxu0 %vm8596_vm1, %v8597_v6  ;;  %8450 = vmatprep.mubr.msk.f32.mxu1 %vm8596_vm1, %v8597_v6  ;;  %v505_v11 = vld [vmem:[%s14486_s0 + $0xf70] sm:$0xff] }
 0x385   :  { %v5020_v15 = vmax.f32 %v3053_v9, 0.0  ;;  %v5285_v16 = vmax.f32 %v4378_v1, 0.0  ;;  %v240_v1 = vld [vmem:[%s14486_s0 + $0x728] sm:$0xff] }
 0x386   :  { %v3057_v17 = vpop.f32.mrb[84].mxu0  ;;  %v4382_v18 = vpop.f32.mrb[84].mxu1 }
 0x387   :  { %5550 = vst.msk [vmem:[%s14487_s2 + $0x548] sm:$0xff] %vm5380_vm5, %v5020_v15  ;;  %5815 = vst.msk [vmem:[%s14487_s2 + $0xd90] sm:$0xff] %vm5380_vm5, %v5285_v16  ;;  %v3058_v19 = vadd.f32 %v12820_v42, %v3057_v17  ;;  %v7498_v20 = vpop.f32.mrb[85].mxu0  ;;  %7656 = vmatmul.mubr.msk.f32.gmra.mrb[190].mxu0 %vm549_vm4, %v234_v13  ;;  %v4383_v12 = vadd.f32 %v12820_v42, %v4382_v18  ;;  %v8293_v21 = vpop.f32.mrb[85].mxu1  ;;  %8451 = vmatmul.mubr.msk.f32.gmra.mrb[190].mxu1 %vm549_vm4, %v499_v14 }
 0x388   :  { %7658 = vmatprep.mubr.msk.f32.mxu0 %vm8596_vm1, %v8597_v6  ;;  %8453 = vmatprep.mubr.msk.f32.mxu1 %vm8596_vm1, %v8597_v6  ;;  %v506_v21 = vld [vmem:[%s14486_s0 + $0xf78] sm:$0xff] }
 0x389   :  { %v5021_v25 = vmax.f32 %v3058_v19, 0.0  ;;  %v5286_v26 = vmax.f32 %v4383_v12, 0.0  ;;  %v241_v12 = vld [vmem:[%s14486_s0 + $0x730] sm:$0xff] }
 0x38a   :  { %v3062_v27 = vpop.f32.mrb[86].mxu0  ;;  %v4387_v28 = vpop.f32.mrb[86].mxu1 }
 0x38b   :  { %5551 = vst.msk [vmem:[%s14487_s2 + $0x550] sm:$0xff] %vm5380_vm5, %v5021_v25  ;;  %5816 = vst.msk [vmem:[%s14487_s2 + $0xd98] sm:$0xff] %vm5380_vm5, %v5286_v26  ;;  %v3063_v29 = vadd.f32 %v12820_v42, %v3062_v27  ;;  %v7501_v30 = vpop.f32.mrb[87].mxu0  ;;  %7659 = vmatmul.mubr.msk.f32.gmra.mrb[192].mxu0 %vm549_vm4, %v235_v23  ;;  %v4388_v22 = vadd.f32 %v12820_v42, %v4387_v28  ;;  %v8296_v31 = vpop.f32.mrb[87].mxu1  ;;  %8454 = vmatmul.mubr.msk.f32.gmra.mrb[192].mxu1 %vm549_vm4, %v500_v24 }
 0x38c   :  { %7661 = vmatprep.mubr.msk.f32.mxu0 %vm8596_vm1, %v8597_v6  ;;  %8456 = vmatprep.mubr.msk.f32.mxu1 %vm8596_vm1, %v8597_v6  ;;  %v507_v31 = vld [vmem:[%s14486_s0 + $0xf80] sm:$0xff] }
 0x38d   :  { %v5022_v35 = vmax.f32 %v3063_v29, 0.0  ;;  %v5287_v36 = vmax.f32 %v4388_v22, 0.0  ;;  %v242_v22 = vld [vmem:[%s14486_s0 + $0x738] sm:$0xff] }
 0x38e   :  { %v3067_v37 = vpop.f32.mrb[88].mxu0  ;;  %v4392_v38 = vpop.f32.mrb[88].mxu1 }
 0x38f   :  { %5552 = vst.msk [vmem:[%s14487_s2 + $0x558] sm:$0xff] %vm5380_vm5, %v5022_v35  ;;  %5817 = vst.msk [vmem:[%s14487_s2 + $0xda0] sm:$0xff] %vm5380_vm5, %v5287_v36  ;;  %v3068_v39 = vadd.f32 %v12820_v42, %v3067_v37  ;;  %v7504_v40 = vpop.f32.mrb[89].mxu0  ;;  %7662 = vmatmul.mubr.msk.f32.gmra.mrb[194].mxu0 %vm549_vm4, %v236_v33  ;;  %v4393_v32 = vadd.f32 %v12820_v42, %v4392_v38  ;;  %v8299_v41 = vpop.f32.mrb[89].mxu1  ;;  %8457 = vmatmul.mubr.msk.f32.gmra.mrb[194].mxu1 %vm549_vm4, %v501_v34 }
 0x390   :  { %7664 = vmatprep.mubr.msk.f32.mxu0 %vm8596_vm1, %v8597_v6  ;;  %8459 = vmatprep.mubr.msk.f32.mxu1 %vm8596_vm1, %v8597_v6  ;;  %v508_v41 = vld [vmem:[%s14486_s0 + $0xf88] sm:$0xff] }
 0x391   :  { %v5023_v45 = vmax.f32 %v3068_v39, 0.0  ;;  %v5288_v46 = vmax.f32 %v4393_v32, 0.0  ;;  %v243_v32 = vld [vmem:[%s14486_s0 + $0x740] sm:$0xff] }
 0x392   :  { %v3072_v47 = vpop.f32.mrb[90].mxu0  ;;  %v4397_v48 = vpop.f32.mrb[90].mxu1 }
 0x393   :  { %5553 = vst.msk [vmem:[%s14487_s2 + $0x560] sm:$0xff] %vm5380_vm5, %v5023_v45  ;;  %5818 = vst.msk [vmem:[%s14487_s2 + $0xda8] sm:$0xff] %vm5380_vm5, %v5288_v46  ;;  %v3073_v49 = vadd.f32 %v12820_v42, %v3072_v47  ;;  %v7507_v50 = vpop.f32.mrb[91].mxu0  ;;  %7665 = vmatmul.mubr.msk.f32.gmra.mrb[196].mxu0 %vm549_vm4, %v237_v43  ;;  %v4398_v52 = vadd.f32 %v12820_v42, %v4397_v48  ;;  %v8302_v53 = vpop.f32.mrb[91].mxu1  ;;  %8460 = vmatmul.mubr.msk.f32.gmra.mrb[196].mxu1 %vm549_vm4, %v502_v44 }
 0x394   :  { %7667 = vmatprep.mubr.msk.f32.mxu0 %vm8596_vm1, %v8597_v6  ;;  %8462 = vmatprep.mubr.msk.f32.mxu1 %vm8596_vm1, %v8597_v6  ;;  %v509_v53 = vld [vmem:[%s14486_s0 + $0xf90] sm:$0xff] }
 0x395   :  { %v5024_v56 = vmax.f32 %v3073_v49, 0.0  ;;  %v5289_v57 = vmax.f32 %v4398_v52, 0.0  ;;  %v244_v52 = vld [vmem:[%s14486_s0 + $0x748] sm:$0xff] }
 0x396   :  { %v3077_v58 = vpop.f32.mrb[92].mxu0  ;;  %v4402_v59 = vpop.f32.mrb[92].mxu1 }
 0x397   :  { %5554 = vst.msk [vmem:[%s14487_s2 + $0x568] sm:$0xff] %vm5380_vm5, %v5024_v56  ;;  %5819 = vst.msk [vmem:[%s14487_s2 + $0xdb0] sm:$0xff] %vm5380_vm5, %v5289_v57  ;;  %v3078_v60 = vadd.f32 %v12820_v42, %v3077_v58  ;;  %v7510_v61 = vpop.f32.mrb[93].mxu0  ;;  %7668 = vmatmul.mubr.msk.f32.gmra.mrb[198].mxu0 %vm549_vm4, %v238_v54  ;;  %v4403_v62 = vadd.f32 %v12820_v42, %v4402_v59  ;;  %v8305_v63 = vpop.f32.mrb[93].mxu1  ;;  %8463 = vmatmul.mubr.msk.f32.gmra.mrb[198].mxu1 %vm549_vm4, %v503_v55 }
 0x398   :  { %7670 = vmatprep.mubr.msk.f32.mxu0 %vm8596_vm1, %v8597_v6  ;;  %8465 = vmatprep.mubr.msk.f32.mxu1 %vm8596_vm1, %v8597_v6  ;;  %v510_v63 = vld [vmem:[%s14486_s0 + $0xf98] sm:$0xff] }
 0x399   :  { %v5025_v2 = vmax.f32 %v3078_v60, 0.0  ;;  %v5290_v3 = vmax.f32 %v4403_v62, 0.0  ;;  %v245_v62 = vld [vmem:[%s14486_s0 + $0x750] sm:$0xff] }
 0x39a   :  { %v3082_v4 = vpop.f32.mrb[94].mxu0  ;;  %v4407_v5 = vpop.f32.mrb[94].mxu1 }
 0x39b   :  { %5555 = vst.msk [vmem:[%s14487_s2 + $0x570] sm:$0xff] %vm5380_vm5, %v5025_v2  ;;  %5820 = vst.msk [vmem:[%s14487_s2 + $0xdb8] sm:$0xff] %vm5380_vm5, %v5290_v3  ;;  %v3083_v7 = vadd.f32 %v12820_v42, %v3082_v4  ;;  %v7513_v8 = vpop.f32.mrb[95].mxu0  ;;  %7671 = vmatmul.mubr.msk.f32.gmra.mrb[200].mxu0 %vm549_vm4, %v239_v51  ;;  %v4408_v9 = vadd.f32 %v12820_v42, %v4407_v5  ;;  %v8308_v10 = vpop.f32.mrb[95].mxu1  ;;  %8466 = vmatmul.mubr.msk.f32.gmra.mrb[200].mxu1 %vm549_vm4, %v504_v0 }
 0x39c   :  { %7673 = vmatprep.mubr.msk.f32.mxu0 %vm8596_vm1, %v8597_v6  ;;  %8468 = vmatprep.mubr.msk.f32.mxu1 %vm8596_vm1, %v8597_v6  ;;  %v511_v10 = vld [vmem:[%s14486_s0 + $0xfa0] sm:$0xff] }
 0x39d   :  { %v5026_v13 = vmax.f32 %v3083_v7, 0.0  ;;  %v5291_v14 = vmax.f32 %v4408_v9, 0.0  ;;  %v246_v9 = vld [vmem:[%s14486_s0 + $0x758] sm:$0xff] }
 0x39e   :  { %v3087_v15 = vpop.f32.mrb[96].mxu0  ;;  %v4412_v16 = vpop.f32.mrb[96].mxu1 }
 0x39f   :  { %5556 = vst.msk [vmem:[%s14487_s2 + $0x578] sm:$0xff] %vm5380_vm5, %v5026_v13  ;;  %5821 = vst.msk [vmem:[%s14487_s2 + $0xdc0] sm:$0xff] %vm5380_vm5, %v5291_v14  ;;  %v3088_v17 = vadd.f32 %v12820_v42, %v3087_v15  ;;  %v7516_v18 = vpop.f32.mrb[97].mxu0  ;;  %7674 = vmatmul.mubr.msk.f32.gmra.mrb[202].mxu0 %vm549_vm4, %v240_v1  ;;  %v4413_v19 = vadd.f32 %v12820_v42, %v4412_v16  ;;  %v8311_v20 = vpop.f32.mrb[97].mxu1  ;;  %8469 = vmatmul.mubr.msk.f32.gmra.mrb[202].mxu1 %vm549_vm4, %v505_v11 }
 0x3a0   :  { %7676 = vmatprep.mubr.msk.f32.mxu0 %vm8596_vm1, %v8597_v6  ;;  %8471 = vmatprep.mubr.msk.f32.mxu1 %vm8596_vm1, %v8597_v6  ;;  %v512_v20 = vld [vmem:[%s14486_s0 + $0xfa8] sm:$0xff] }
 0x3a1   :  { %v5027_v23 = vmax.f32 %v3088_v17, 0.0  ;;  %v5292_v24 = vmax.f32 %v4413_v19, 0.0  ;;  %v247_v19 = vld [vmem:[%s14486_s0 + $0x760] sm:$0xff] }
 0x3a2   :  { %v3092_v25 = vpop.f32.mrb[98].mxu0  ;;  %v4417_v26 = vpop.f32.mrb[98].mxu1 }
 0x3a3   :  { %5557 = vst.msk [vmem:[%s14487_s2 + $0x580] sm:$0xff] %vm5380_vm5, %v5027_v23  ;;  %5822 = vst.msk [vmem:[%s14487_s2 + $0xdc8] sm:$0xff] %vm5380_vm5, %v5292_v24  ;;  %v3093_v27 = vadd.f32 %v12820_v42, %v3092_v25  ;;  %v7519_v28 = vpop.f32.mrb[99].mxu0  ;;  %7677 = vmatmul.mubr.msk.f32.gmra.mrb[204].mxu0 %vm549_vm4, %v241_v12  ;;  %v4418_v29 = vadd.f32 %v12820_v42, %v4417_v26  ;;  %v8314_v30 = vpop.f32.mrb[99].mxu1  ;;  %8472 = vmatmul.mubr.msk.f32.gmra.mrb[204].mxu1 %vm549_vm4, %v506_v21 }
 0x3a4   :  { %7679 = vmatprep.mubr.msk.f32.mxu0 %vm8596_vm1, %v8597_v6  ;;  %8474 = vmatprep.mubr.msk.f32.mxu1 %vm8596_vm1, %v8597_v6  ;;  %v513_v30 = vld [vmem:[%s14486_s0 + $0xfb0] sm:$0xff] }
 0x3a5   :  { %v5028_v33 = vmax.f32 %v3093_v27, 0.0  ;;  %v5293_v34 = vmax.f32 %v4418_v29, 0.0  ;;  %v248_v29 = vld [vmem:[%s14486_s0 + $0x768] sm:$0xff] }
 0x3a6   :  { %v3097_v35 = vpop.f32.mrb[100].mxu0  ;;  %v4422_v36 = vpop.f32.mrb[100].mxu1 }
 0x3a7   :  { %5558 = vst.msk [vmem:[%s14487_s2 + $0x588] sm:$0xff] %vm5380_vm5, %v5028_v33  ;;  %5823 = vst.msk [vmem:[%s14487_s2 + $0xdd0] sm:$0xff] %vm5380_vm5, %v5293_v34  ;;  %v3098_v37 = vadd.f32 %v12820_v42, %v3097_v35  ;;  %v7522_v38 = vpop.f32.mrb[101].mxu0  ;;  %7680 = vmatmul.mubr.msk.f32.gmra.mrb[206].mxu0 %vm549_vm4, %v242_v22  ;;  %v4423_v39 = vadd.f32 %v12820_v42, %v4422_v36  ;;  %v8317_v40 = vpop.f32.mrb[101].mxu1  ;;  %8475 = vmatmul.mubr.msk.f32.gmra.mrb[206].mxu1 %vm549_vm4, %v507_v31 }
 0x3a8   :  { %7682 = vmatprep.mubr.msk.f32.mxu0 %vm8596_vm1, %v8597_v6  ;;  %8477 = vmatprep.mubr.msk.f32.mxu1 %vm8596_vm1, %v8597_v6  ;;  %v514_v40 = vld [vmem:[%s14486_s0 + $0xfb8] sm:$0xff] }
 0x3a9   :  { %v5029_v43 = vmax.f32 %v3098_v37, 0.0  ;;  %v5294_v44 = vmax.f32 %v4423_v39, 0.0  ;;  %v249_v39 = vld [vmem:[%s14486_s0 + $0x770] sm:$0xff] }
 0x3aa   :  { %v3102_v45 = vpop.f32.mrb[102].mxu0  ;;  %v4427_v46 = vpop.f32.mrb[102].mxu1 }
 0x3ab   :  { %5559 = vst.msk [vmem:[%s14487_s2 + $0x590] sm:$0xff] %vm5380_vm5, %v5029_v43  ;;  %5824 = vst.msk [vmem:[%s14487_s2 + $0xdd8] sm:$0xff] %vm5380_vm5, %v5294_v44  ;;  %v3103_v47 = vadd.f32 %v12820_v42, %v3102_v45  ;;  %v7525_v48 = vpop.f32.mrb[103].mxu0  ;;  %7683 = vmatmul.mubr.msk.f32.gmra.mrb[208].mxu0 %vm549_vm4, %v243_v32  ;;  %v4428_v49 = vadd.f32 %v12820_v42, %v4427_v46  ;;  %v8320_v50 = vpop.f32.mrb[103].mxu1  ;;  %8478 = vmatmul.mubr.msk.f32.gmra.mrb[208].mxu1 %vm549_vm4, %v508_v41 }
 0x3ac   :  { %7685 = vmatprep.mubr.msk.f32.mxu0 %vm8596_vm1, %v8597_v6  ;;  %8480 = vmatprep.mubr.msk.f32.mxu1 %vm8596_vm1, %v8597_v6  ;;  %v515_v50 = vld [vmem:[%s14486_s0 + $0xfc0] sm:$0xff] }
 0x3ad   :  { %v5030_v54 = vmax.f32 %v3103_v47, 0.0  ;;  %v5295_v55 = vmax.f32 %v4428_v49, 0.0  ;;  %v250_v49 = vld [vmem:[%s14486_s0 + $0x778] sm:$0xff] }
 0x3ae   :  { %v3107_v56 = vpop.f32.mrb[104].mxu0  ;;  %v4432_v57 = vpop.f32.mrb[104].mxu1 }
 0x3af   :  { %5560 = vst.msk [vmem:[%s14487_s2 + $0x598] sm:$0xff] %vm5380_vm5, %v5030_v54  ;;  %5825 = vst.msk [vmem:[%s14487_s2 + $0xde0] sm:$0xff] %vm5380_vm5, %v5295_v55  ;;  %v3108_v58 = vadd.f32 %v12820_v42, %v3107_v56  ;;  %v7528_v59 = vpop.f32.mrb[105].mxu0  ;;  %7686 = vmatmul.mubr.msk.f32.gmra.mrb[210].mxu0 %vm549_vm4, %v244_v52  ;;  %v4433_v60 = vadd.f32 %v12820_v42, %v4432_v57  ;;  %v8323_v61 = vpop.f32.mrb[105].mxu1  ;;  %8481 = vmatmul.mubr.msk.f32.gmra.mrb[210].mxu1 %vm549_vm4, %v509_v53 }
 0x3b0   :  { %7688 = vmatprep.mubr.msk.f32.mxu0 %vm8596_vm1, %v8597_v6  ;;  %8483 = vmatprep.mubr.msk.f32.mxu1 %vm8596_vm1, %v8597_v6  ;;  %v516_v61 = vld [vmem:[%s14486_s0 + $0xfc8] sm:$0xff] }
 0x3b1   :  { %v5031_v51 = vmax.f32 %v3108_v58, 0.0  ;;  %v5296_v0 = vmax.f32 %v4433_v60, 0.0  ;;  %v251_v60 = vld [vmem:[%s14486_s0 + $0x780] sm:$0xff] }
 0x3b2   :  { %v3112_v2 = vpop.f32.mrb[106].mxu0  ;;  %v4437_v3 = vpop.f32.mrb[106].mxu1 }
 0x3b3   :  { %5561 = vst.msk [vmem:[%s14487_s2 + $0x5a0] sm:$0xff] %vm5380_vm5, %v5031_v51  ;;  %5826 = vst.msk [vmem:[%s14487_s2 + $0xde8] sm:$0xff] %vm5380_vm5, %v5296_v0  ;;  %v3113_v4 = vadd.f32 %v12820_v42, %v3112_v2  ;;  %v7531_v5 = vpop.f32.mrb[107].mxu0  ;;  %7689 = vmatmul.mubr.msk.f32.gmra.mrb[212].mxu0 %vm549_vm4, %v245_v62  ;;  %v4438_v7 = vadd.f32 %v12820_v42, %v4437_v3  ;;  %v8326_v8 = vpop.f32.mrb[107].mxu1  ;;  %8484 = vmatmul.mubr.msk.f32.gmra.mrb[212].mxu1 %vm549_vm4, %v510_v63 }
 0x3b4   :  { %7691 = vmatprep.mubr.msk.f32.mxu0 %vm8596_vm1, %v8597_v6  ;;  %8486 = vmatprep.mubr.msk.f32.mxu1 %vm8596_vm1, %v8597_v6  ;;  %v517_v8 = vld [vmem:[%s14486_s0 + $0xfd0] sm:$0xff] }
 0x3b5   :  { %v5032_v1 = vmax.f32 %v3113_v4, 0.0  ;;  %v5297_v11 = vmax.f32 %v4438_v7, 0.0  ;;  %v252_v7 = vld [vmem:[%s14486_s0 + $0x788] sm:$0xff] }
 0x3b6   :  { %v3117_v13 = vpop.f32.mrb[108].mxu0  ;;  %v4442_v14 = vpop.f32.mrb[108].mxu1 }
 0x3b7   :  { %5562 = vst.msk [vmem:[%s14487_s2 + $0x5a8] sm:$0xff] %vm5380_vm5, %v5032_v1  ;;  %5827 = vst.msk [vmem:[%s14487_s2 + $0xdf0] sm:$0xff] %vm5380_vm5, %v5297_v11  ;;  %v3118_v15 = vadd.f32 %v12820_v42, %v3117_v13  ;;  %v7534_v16 = vpop.f32.mrb[109].mxu0  ;;  %7692 = vmatmul.mubr.msk.f32.gmra.mrb[214].mxu0 %vm549_vm4, %v246_v9  ;;  %v4443_v17 = vadd.f32 %v12820_v42, %v4442_v14  ;;  %v8329_v18 = vpop.f32.mrb[109].mxu1  ;;  %8487 = vmatmul.mubr.msk.f32.gmra.mrb[214].mxu1 %vm549_vm4, %v511_v10 }
 0x3b8   :  { %7694 = vmatprep.mubr.msk.f32.mxu0 %vm8596_vm1, %v8597_v6  ;;  %8489 = vmatprep.mubr.msk.f32.mxu1 %vm8596_vm1, %v8597_v6  ;;  %v518_v18 = vld [vmem:[%s14486_s0 + $0xfd8] sm:$0xff] }
 0x3b9   :  { %v5033_v12 = vmax.f32 %v3118_v15, 0.0  ;;  %v5298_v21 = vmax.f32 %v4443_v17, 0.0  ;;  %v253_v17 = vld [vmem:[%s14486_s0 + $0x790] sm:$0xff] }
 0x3ba   :  { %v3122_v23 = vpop.f32.mrb[110].mxu0  ;;  %v4447_v24 = vpop.f32.mrb[110].mxu1 }
 0x3bb   :  { %5563 = vst.msk [vmem:[%s14487_s2 + $0x5b0] sm:$0xff] %vm5380_vm5, %v5033_v12  ;;  %5828 = vst.msk [vmem:[%s14487_s2 + $0xdf8] sm:$0xff] %vm5380_vm5, %v5298_v21  ;;  %v3123_v25 = vadd.f32 %v12820_v42, %v3122_v23  ;;  %v7537_v26 = vpop.f32.mrb[111].mxu0  ;;  %7695 = vmatmul.mubr.msk.f32.gmra.mrb[216].mxu0 %vm549_vm4, %v247_v19  ;;  %v4448_v27 = vadd.f32 %v12820_v42, %v4447_v24  ;;  %v8332_v28 = vpop.f32.mrb[111].mxu1  ;;  %8490 = vmatmul.mubr.msk.f32.gmra.mrb[216].mxu1 %vm549_vm4, %v512_v20 }
 0x3bc   :  { %7697 = vmatprep.mubr.msk.f32.mxu0 %vm8596_vm1, %v8597_v6  ;;  %8492 = vmatprep.mubr.msk.f32.mxu1 %vm8596_vm1, %v8597_v6  ;;  %v519_v28 = vld [vmem:[%s14486_s0 + $0xfe0] sm:$0xff] }
 0x3bd   :  { %v5034_v22 = vmax.f32 %v3123_v25, 0.0  ;;  %v5299_v31 = vmax.f32 %v4448_v27, 0.0  ;;  %v254_v27 = vld [vmem:[%s14486_s0 + $0x798] sm:$0xff] }
 0x3be   :  { %v3127_v33 = vpop.f32.mrb[112].mxu0  ;;  %v4452_v34 = vpop.f32.mrb[112].mxu1 }
 0x3bf   :  { %5564 = vst.msk [vmem:[%s14487_s2 + $0x5b8] sm:$0xff] %vm5380_vm5, %v5034_v22  ;;  %5829 = vst.msk [vmem:[%s14487_s2 + $0xe00] sm:$0xff] %vm5380_vm5, %v5299_v31  ;;  %v3128_v35 = vadd.f32 %v12820_v42, %v3127_v33  ;;  %v7540_v36 = vpop.f32.mrb[113].mxu0  ;;  %7698 = vmatmul.mubr.msk.f32.gmra.mrb[218].mxu0 %vm549_vm4, %v248_v29  ;;  %v4453_v37 = vadd.f32 %v12820_v42, %v4452_v34  ;;  %v8335_v38 = vpop.f32.mrb[113].mxu1  ;;  %8493 = vmatmul.mubr.msk.f32.gmra.mrb[218].mxu1 %vm549_vm4, %v513_v30 }
 0x3c0   :  { %7700 = vmatprep.mubr.msk.f32.mxu0 %vm8596_vm1, %v8597_v6  ;;  %8495 = vmatprep.mubr.msk.f32.mxu1 %vm8596_vm1, %v8597_v6  ;;  %v520_v38 = vld [vmem:[%s14486_s0 + $0xfe8] sm:$0xff] }
 0x3c1   :  { %v5035_v32 = vmax.f32 %v3128_v35, 0.0  ;;  %v5300_v41 = vmax.f32 %v4453_v37, 0.0  ;;  %v255_v37 = vld [vmem:[%s14486_s0 + $0x7a0] sm:$0xff] }
 0x3c2   :  { %v3132_v43 = vpop.f32.mrb[114].mxu0  ;;  %v4457_v44 = vpop.f32.mrb[114].mxu1 }
 0x3c3   :  { %5565 = vst.msk [vmem:[%s14487_s2 + $0x5c0] sm:$0xff] %vm5380_vm5, %v5035_v32  ;;  %5830 = vst.msk [vmem:[%s14487_s2 + $0xe08] sm:$0xff] %vm5380_vm5, %v5300_v41  ;;  %v3133_v45 = vadd.f32 %v12820_v42, %v3132_v43  ;;  %v7543_v46 = vpop.f32.mrb[115].mxu0  ;;  %7701 = vmatmul.mubr.msk.f32.gmra.mrb[220].mxu0 %vm549_vm4, %v249_v39  ;;  %v4458_v47 = vadd.f32 %v12820_v42, %v4457_v44  ;;  %v8338_v48 = vpop.f32.mrb[115].mxu1  ;;  %8496 = vmatmul.mubr.msk.f32.gmra.mrb[220].mxu1 %vm549_vm4, %v514_v40 }
 0x3c4   :  { %7703 = vmatprep.mubr.msk.f32.mxu0 %vm8596_vm1, %v8597_v6  ;;  %8498 = vmatprep.mubr.msk.f32.mxu1 %vm8596_vm1, %v8597_v6  ;;  %v521_v48 = vld [vmem:[%s14486_s0 + $0xff0] sm:$0xff] }
 0x3c5   :  { %v5036_v52 = vmax.f32 %v3133_v45, 0.0  ;;  %v5301_v53 = vmax.f32 %v4458_v47, 0.0  ;;  %v256_v47 = vld [vmem:[%s14486_s0 + $0x7a8] sm:$0xff] }
 0x3c6   :  { %v3137_v54 = vpop.f32.mrb[116].mxu0  ;;  %v4462_v55 = vpop.f32.mrb[116].mxu1 }
 0x3c7   :  { %5566 = vst.msk [vmem:[%s14487_s2 + $0x5c8] sm:$0xff] %vm5380_vm5, %v5036_v52  ;;  %5831 = vst.msk [vmem:[%s14487_s2 + $0xe10] sm:$0xff] %vm5380_vm5, %v5301_v53  ;;  %v3138_v56 = vadd.f32 %v12820_v42, %v3137_v54  ;;  %v7546_v57 = vpop.f32.mrb[117].mxu0  ;;  %7704 = vmatmul.mubr.msk.f32.gmra.mrb[222].mxu0 %vm549_vm4, %v250_v49  ;;  %v4463_v58 = vadd.f32 %v12820_v42, %v4462_v55  ;;  %v8341_v59 = vpop.f32.mrb[117].mxu1  ;;  %8499 = vmatmul.mubr.msk.f32.gmra.mrb[222].mxu1 %vm549_vm4, %v515_v50  ;;  %v13529_v53 = vld [vmem:[%s14485_s1 + $0x19] ss:$0 sm:$0xff] }
 0x3c8   :  { %7706 = vmatprep.mubr.msk.f32.mxu0 %vm8596_vm1, %v8597_v6  ;;  %8501 = vmatprep.mubr.msk.f32.mxu1 %vm8596_vm1, %v8597_v6  ;;  %v522_v59 = vld [vmem:[%s14486_s0 + $0xff8] sm:$0xff] }
 0x3c9   :  { %v5037_v62 = vmax.f32 %v3138_v56, 0.0  ;;  %v5302_v63 = vmax.f32 %v4463_v58, 0.0  ;;  %v257_v58 = vld [vmem:[%s14486_s0 + $0x7b0] sm:$0xff] }
 0x3ca   :  { %v3142_v51 = vpop.f32.mrb[118].mxu0  ;;  %v4467_v0 = vpop.f32.mrb[118].mxu1 }
 0x3cb   :  { %5567 = vst.msk [vmem:[%s14487_s2 + $0x5d0] sm:$0xff] %vm5380_vm5, %v5037_v62  ;;  %5832 = vst.msk [vmem:[%s14487_s2 + $0xe18] sm:$0xff] %vm5380_vm5, %v5302_v63  ;;  %v3143_v2 = vadd.f32 %v12820_v42, %v3142_v51  ;;  %v7549_v3 = vpop.f32.mrb[119].mxu0  ;;  %7707 = vmatmul.mubr.msk.f32.gmra.mrb[224].mxu0 %vm549_vm4, %v251_v60  ;;  %v4468_v4 = vadd.f32 %v12820_v42, %v4467_v0  ;;  %v8344_v5 = vpop.f32.mrb[119].mxu1  ;;  %8502 = vmatmul.mubr.msk.f32.gmra.mrb[224].mxu1 %vm549_vm4, %v516_v61 }
 0x3cc   :  { %7709 = vmatprep.mubr.msk.f32.mxu0 %vm8596_vm1, %v8597_v6  ;;  %8504 = vmatprep.mubr.msk.f32.mxu1 %vm8596_vm1, %v8597_v6  ;;  %v523_v5 = vld [vmem:[%s14486_s0 + $0x1000] sm:$0xff] }
 0x3cd   :  { %v5038_v9 = vmax.f32 %v3143_v2, 0.0  ;;  %v5303_v10 = vmax.f32 %v4468_v4, 0.0  ;;  %v258_v4 = vld [vmem:[%s14486_s0 + $0x7b8] sm:$0xff] }
 0x3ce   :  { %v3147_v1 = vpop.f32.mrb[120].mxu0  ;;  %v4472_v11 = vpop.f32.mrb[120].mxu1 }
 0x3cf   :  { %5568 = vst.msk [vmem:[%s14487_s2 + $0x5d8] sm:$0xff] %vm5380_vm5, %v5038_v9  ;;  %5833 = vst.msk [vmem:[%s14487_s2 + $0xe20] sm:$0xff] %vm5380_vm5, %v5303_v10  ;;  %v3148_v13 = vadd.f32 %v12820_v42, %v3147_v1  ;;  %v7552_v14 = vpop.f32.mrb[121].mxu0  ;;  %7710 = vmatmul.mubr.msk.f32.gmra.mrb[226].mxu0 %vm549_vm4, %v252_v7  ;;  %v4473_v15 = vadd.f32 %v12820_v42, %v4472_v11  ;;  %v8347_v16 = vpop.f32.mrb[121].mxu1  ;;  %8505 = vmatmul.mubr.msk.f32.gmra.mrb[226].mxu1 %vm549_vm4, %v517_v8 }
 0x3d0   :  { %7712 = vmatprep.mubr.msk.f32.mxu0 %vm8596_vm1, %v8597_v6  ;;  %8507 = vmatprep.mubr.msk.f32.mxu1 %vm8596_vm1, %v8597_v6  ;;  %v524_v16 = vld [vmem:[%s14486_s0 + $0x1008] sm:$0xff] }
 0x3d1   :  { %v5039_v19 = vmax.f32 %v3148_v13, 0.0  ;;  %v5304_v20 = vmax.f32 %v4473_v15, 0.0  ;;  %v259_v15 = vld [vmem:[%s14486_s0 + $0x7c0] sm:$0xff] }
 0x3d2   :  { %v3152_v12 = vpop.f32.mrb[122].mxu0  ;;  %v4477_v21 = vpop.f32.mrb[122].mxu1 }
 0x3d3   :  { %5569 = vst.msk [vmem:[%s14487_s2 + $0x5e0] sm:$0xff] %vm5380_vm5, %v5039_v19  ;;  %5834 = vst.msk [vmem:[%s14487_s2 + $0xe28] sm:$0xff] %vm5380_vm5, %v5304_v20  ;;  %v3153_v23 = vadd.f32 %v12820_v42, %v3152_v12  ;;  %v7555_v24 = vpop.f32.mrb[123].mxu0  ;;  %7713 = vmatmul.mubr.msk.f32.gmra.mrb[228].mxu0 %vm549_vm4, %v253_v17  ;;  %v4478_v25 = vadd.f32 %v12820_v42, %v4477_v21  ;;  %v8350_v26 = vpop.f32.mrb[123].mxu1  ;;  %8508 = vmatmul.mubr.msk.f32.gmra.mrb[228].mxu1 %vm549_vm4, %v518_v18 }
 0x3d4   :  { %7715 = vmatprep.mubr.msk.f32.mxu0 %vm8596_vm1, %v8597_v6  ;;  %8510 = vmatprep.mubr.msk.f32.mxu1 %vm8596_vm1, %v8597_v6  ;;  %v525_v26 = vld [vmem:[%s14486_s0 + $0x1010] sm:$0xff] }
 0x3d5   :  { %v5040_v29 = vmax.f32 %v3153_v23, 0.0  ;;  %v5305_v30 = vmax.f32 %v4478_v25, 0.0  ;;  %v260_v25 = vld [vmem:[%s14486_s0 + $0x7c8] sm:$0xff] }
 0x3d6   :  { %v3157_v22 = vpop.f32.mrb[124].mxu0  ;;  %v4482_v31 = vpop.f32.mrb[124].mxu1 }
 0x3d7   :  { %5570 = vst.msk [vmem:[%s14487_s2 + $0x5e8] sm:$0xff] %vm5380_vm5, %v5040_v29  ;;  %5835 = vst.msk [vmem:[%s14487_s2 + $0xe30] sm:$0xff] %vm5380_vm5, %v5305_v30  ;;  %v3158_v33 = vadd.f32 %v12820_v42, %v3157_v22  ;;  %v7558_v34 = vpop.f32.mrb[125].mxu0  ;;  %7716 = vmatmul.mubr.msk.f32.gmra.mrb[230].mxu0 %vm549_vm4, %v254_v27  ;;  %v4483_v35 = vadd.f32 %v12820_v42, %v4482_v31  ;;  %v8353_v36 = vpop.f32.mrb[125].mxu1  ;;  %8511 = vmatmul.mubr.msk.f32.gmra.mrb[230].mxu1 %vm549_vm4, %v519_v28 }
 0x3d8   :  { %7718 = vmatprep.mubr.msk.f32.mxu0 %vm8596_vm1, %v8597_v6  ;;  %8513 = vmatprep.mubr.msk.f32.mxu1 %vm8596_vm1, %v8597_v6  ;;  %v526_v36 = vld [vmem:[%s14486_s0 + $0x1018] sm:$0xff] }
 0x3d9   :  { %v5041_v39 = vmax.f32 %v3158_v33, 0.0  ;;  %v5306_v40 = vmax.f32 %v4483_v35, 0.0  ;;  %v261_v35 = vld [vmem:[%s14486_s0 + $0x7d0] sm:$0xff] }
 0x3da   :  { %v3162_v32 = vpop.f32.mrb[126].mxu0  ;;  %v4487_v41 = vpop.f32.mrb[126].mxu1 }
 0x3db   :  { %5571 = vst.msk [vmem:[%s14487_s2 + $0x5f0] sm:$0xff] %vm5380_vm5, %v5041_v39  ;;  %5836 = vst.msk [vmem:[%s14487_s2 + $0xe38] sm:$0xff] %vm5380_vm5, %v5306_v40  ;;  %v3163_v43 = vadd.f32 %v12820_v42, %v3162_v32  ;;  %v7561_v44 = vpop.f32.mrb[127].mxu0  ;;  %7719 = vmatmul.mubr.msk.f32.gmra.mrb[232].mxu0 %vm549_vm4, %v255_v37  ;;  %v4488_v45 = vadd.f32 %v12820_v42, %v4487_v41  ;;  %v8356_v46 = vpop.f32.mrb[127].mxu1  ;;  %8514 = vmatmul.mubr.msk.f32.gmra.mrb[232].mxu1 %vm549_vm4, %v520_v38 }
 0x3dc   :  { %7721 = vmatprep.mubr.msk.f32.mxu0 %vm8596_vm1, %v8597_v6  ;;  %8516 = vmatprep.mubr.msk.f32.mxu1 %vm8596_vm1, %v8597_v6  ;;  %v527_v46 = vld [vmem:[%s14486_s0 + $0x1020] sm:$0xff] }
 0x3dd   :  { %v5042_v49 = vmax.f32 %v3163_v43, 0.0  ;;  %v5307_v50 = vmax.f32 %v4488_v45, 0.0  ;;  %v262_v45 = vld [vmem:[%s14486_s0 + $0x7d8] sm:$0xff] }
 0x3de   :  { %v3167_v42 = vpop.f32.mrb[128].mxu0  ;;  %v4492_v52 = vpop.f32.mrb[128].mxu1 }
 0x3df   :  { %5572 = vst.msk [vmem:[%s14487_s2 + $0x5f8] sm:$0xff] %vm5380_vm5, %v5042_v49  ;;  %5837 = vst.msk [vmem:[%s14487_s2 + $0xe40] sm:$0xff] %vm5380_vm5, %v5307_v50  ;;  %v3168_v54 = vadd.f32 %v13529_v53, %v3167_v42  ;;  %v7564_v55 = vpop.f32.mrb[129].mxu0  ;;  %7722 = vmatmul.mubr.msk.f32.gmra.mrb[234].mxu0 %vm549_vm4, %v256_v47  ;;  %v4493_v56 = vadd.f32 %v13529_v53, %v4492_v52  ;;  %v8359_v57 = vpop.f32.mrb[129].mxu1  ;;  %8517 = vmatmul.mubr.msk.f32.gmra.mrb[234].mxu1 %vm549_vm4, %v521_v48 }
 0x3e0   :  { %7724 = vmatprep.mubr.msk.f32.mxu0 %vm8596_vm1, %v8597_v6  ;;  %8519 = vmatprep.mubr.msk.f32.mxu1 %vm8596_vm1, %v8597_v6  ;;  %v528_v57 = vld [vmem:[%s14486_s0 + $0x1028] sm:$0xff] }
 0x3e1   :  { %v5043_v60 = vmax.f32 %v3168_v54, 0.0  ;;  %v5308_v61 = vmax.f32 %v4493_v56, 0.0  ;;  %v263_v56 = vld [vmem:[%s14486_s0 + $0x7e0] sm:$0xff] }
 0x3e2   :  { %v3172_v62 = vpop.f32.mrb[130].mxu0  ;;  %v4497_v63 = vpop.f32.mrb[130].mxu1 }
 0x3e3   :  { %5573 = vst.msk [vmem:[%s14487_s2 + $0x600] sm:$0xff] %vm5380_vm5, %v5043_v60  ;;  %5838 = vst.msk [vmem:[%s14487_s2 + $0xe48] sm:$0xff] %vm5380_vm5, %v5308_v61  ;;  %v3173_v51 = vadd.f32 %v13529_v53, %v3172_v62  ;;  %v7567_v0 = vpop.f32.mrb[131].mxu0  ;;  %7725 = vmatmul.mubr.msk.f32.gmra.mrb[236].mxu0 %vm549_vm4, %v257_v58  ;;  %v4498_v2 = vadd.f32 %v13529_v53, %v4497_v63  ;;  %v8362_v3 = vpop.f32.mrb[131].mxu1  ;;  %8520 = vmatmul.mubr.msk.f32.gmra.mrb[236].mxu1 %vm549_vm4, %v522_v59 }
 0x3e4   :  { %7727 = vmatprep.mubr.msk.f32.mxu0 %vm8596_vm1, %v8597_v6  ;;  %8522 = vmatprep.mubr.msk.f32.mxu1 %vm8596_vm1, %v8597_v6  ;;  %v529_v3 = vld [vmem:[%s14486_s0 + $0x1030] sm:$0xff] }
 0x3e5   :  { %v5044_v7 = vmax.f32 %v3173_v51, 0.0  ;;  %v5309_v8 = vmax.f32 %v4498_v2, 0.0  ;;  %v264_v2 = vld [vmem:[%s14486_s0 + $0x7e8] sm:$0xff] }
 0x3e6   :  { %v3177_v9 = vpop.f32.mrb[132].mxu0  ;;  %v4502_v10 = vpop.f32.mrb[132].mxu1 }
 0x3e7   :  { %5574 = vst.msk [vmem:[%s14487_s2 + $0x608] sm:$0xff] %vm5380_vm5, %v5044_v7  ;;  %5839 = vst.msk [vmem:[%s14487_s2 + $0xe50] sm:$0xff] %vm5380_vm5, %v5309_v8  ;;  %v3178_v1 = vadd.f32 %v13529_v53, %v3177_v9  ;;  %v7570_v11 = vpop.f32.mrb[133].mxu0  ;;  %7728 = vmatmul.mubr.msk.f32.gmra.mrb[238].mxu0 %vm549_vm4, %v258_v4  ;;  %v4503_v13 = vadd.f32 %v13529_v53, %v4502_v10  ;;  %v8365_v14 = vpop.f32.mrb[133].mxu1  ;;  %8523 = vmatmul.mubr.msk.f32.gmra.mrb[238].mxu1 %vm549_vm4, %v523_v5 }
 0x3e8   :  { %7730 = vmatprep.mubr.msk.f32.mxu0 %vm8596_vm1, %v8597_v6  ;;  %8525 = vmatprep.mubr.msk.f32.mxu1 %vm8596_vm1, %v8597_v6  ;;  %v530_v14 = vld [vmem:[%s14486_s0 + $0x1038] sm:$0xff] }
 0x3e9   :  { %v5045_v17 = vmax.f32 %v3178_v1, 0.0  ;;  %v5310_v18 = vmax.f32 %v4503_v13, 0.0  ;;  %v265_v13 = vld [vmem:[%s14486_s0 + $0x7f0] sm:$0xff] }
 0x3ea   :  { %v3182_v19 = vpop.f32.mrb[134].mxu0  ;;  %v4507_v20 = vpop.f32.mrb[134].mxu1 }
 0x3eb   :  { %5575 = vst.msk [vmem:[%s14487_s2 + $0x610] sm:$0xff] %vm5380_vm5, %v5045_v17  ;;  %5840 = vst.msk [vmem:[%s14487_s2 + $0xe58] sm:$0xff] %vm5380_vm5, %v5310_v18  ;;  %v3183_v12 = vadd.f32 %v13529_v53, %v3182_v19  ;;  %v7573_v21 = vpop.f32.mrb[135].mxu0  ;;  %7731 = vmatmul.mubr.msk.f32.gmra.mrb[240].mxu0 %vm549_vm4, %v259_v15  ;;  %v4508_v23 = vadd.f32 %v13529_v53, %v4507_v20  ;;  %v8368_v24 = vpop.f32.mrb[135].mxu1  ;;  %8526 = vmatmul.mubr.msk.f32.gmra.mrb[240].mxu1 %vm549_vm4, %v524_v16 }
 0x3ec   :  { %7733 = vmatprep.mubr.msk.f32.mxu0 %vm8596_vm1, %v8597_v6  ;;  %8528 = vmatprep.mubr.msk.f32.mxu1 %vm8596_vm1, %v8597_v6  ;;  %v531_v24 = vld [vmem:[%s14486_s0 + $0x1040] sm:$0xff] }
 0x3ed   :  { %v5046_v27 = vmax.f32 %v3183_v12, 0.0  ;;  %v5311_v28 = vmax.f32 %v4508_v23, 0.0  ;;  %v266_v23 = vld [vmem:[%s14486_s0 + $0x7f8] sm:$0xff] }
 0x3ee   :  { %v3187_v29 = vpop.f32.mrb[136].mxu0  ;;  %v4512_v30 = vpop.f32.mrb[136].mxu1 }
 0x3ef   :  { %5576 = vst.msk [vmem:[%s14487_s2 + $0x618] sm:$0xff] %vm5380_vm5, %v5046_v27  ;;  %5841 = vst.msk [vmem:[%s14487_s2 + $0xe60] sm:$0xff] %vm5380_vm5, %v5311_v28  ;;  %v3188_v22 = vadd.f32 %v13529_v53, %v3187_v29  ;;  %v7576_v31 = vpop.f32.mrb[137].mxu0  ;;  %7734 = vmatmul.mubr.msk.f32.gmra.mrb[242].mxu0 %vm549_vm4, %v260_v25  ;;  %v4513_v33 = vadd.f32 %v13529_v53, %v4512_v30  ;;  %v8371_v34 = vpop.f32.mrb[137].mxu1  ;;  %8529 = vmatmul.mubr.msk.f32.gmra.mrb[242].mxu1 %vm549_vm4, %v525_v26 }
 0x3f0   :  { %7736 = vmatprep.mubr.msk.f32.mxu0 %vm8596_vm1, %v8597_v6  ;;  %8531 = vmatprep.mubr.msk.f32.mxu1 %vm8596_vm1, %v8597_v6  ;;  %v532_v34 = vld [vmem:[%s14486_s0 + $0x1048] sm:$0xff] }
 0x3f1   :  { %v5047_v37 = vmax.f32 %v3188_v22, 0.0  ;;  %v5312_v38 = vmax.f32 %v4513_v33, 0.0  ;;  %v267_v33 = vld [vmem:[%s14486_s0 + $0x800] sm:$0xff] }
 0x3f2   :  { %v3192_v39 = vpop.f32.mrb[138].mxu0  ;;  %v4517_v40 = vpop.f32.mrb[138].mxu1 }
 0x3f3   :  { %5577 = vst.msk [vmem:[%s14487_s2 + $0x620] sm:$0xff] %vm5380_vm5, %v5047_v37  ;;  %5842 = vst.msk [vmem:[%s14487_s2 + $0xe68] sm:$0xff] %vm5380_vm5, %v5312_v38  ;;  %v3193_v32 = vadd.f32 %v13529_v53, %v3192_v39  ;;  %v7579_v41 = vpop.f32.mrb[139].mxu0  ;;  %7737 = vmatmul.mubr.msk.f32.gmra.mrb[244].mxu0 %vm549_vm4, %v261_v35  ;;  %v4518_v43 = vadd.f32 %v13529_v53, %v4517_v40  ;;  %v8374_v44 = vpop.f32.mrb[139].mxu1  ;;  %8532 = vmatmul.mubr.msk.f32.gmra.mrb[244].mxu1 %vm549_vm4, %v526_v36 }
 0x3f4   :  { %7739 = vmatprep.mubr.msk.f32.mxu0 %vm8596_vm1, %v8597_v6  ;;  %8534 = vmatprep.mubr.msk.f32.mxu1 %vm8596_vm1, %v8597_v6  ;;  %v533_v44 = vld [vmem:[%s14486_s0 + $0x1050] sm:$0xff] }
 0x3f5   :  { %v5048_v47 = vmax.f32 %v3193_v32, 0.0  ;;  %v5313_v48 = vmax.f32 %v4518_v43, 0.0  ;;  %v268_v43 = vld [vmem:[%s14486_s0 + $0x808] sm:$0xff] }
 0x3f6   :  { %v3197_v49 = vpop.f32.mrb[140].mxu0  ;;  %v4522_v50 = vpop.f32.mrb[140].mxu1 }
 0x3f7   :  { %5578 = vst.msk [vmem:[%s14487_s2 + $0x628] sm:$0xff] %vm5380_vm5, %v5048_v47  ;;  %5843 = vst.msk [vmem:[%s14487_s2 + $0xe70] sm:$0xff] %vm5380_vm5, %v5313_v48  ;;  %v3198_v42 = vadd.f32 %v13529_v53, %v3197_v49  ;;  %v7582_v52 = vpop.f32.mrb[141].mxu0  ;;  %7740 = vmatmul.mubr.msk.f32.gmra.mrb[246].mxu0 %vm549_vm4, %v262_v45  ;;  %v4523_v54 = vadd.f32 %v13529_v53, %v4522_v50  ;;  %v8377_v55 = vpop.f32.mrb[141].mxu1  ;;  %8535 = vmatmul.mubr.msk.f32.gmra.mrb[246].mxu1 %vm549_vm4, %v527_v46 }
 0x3f8   :  { %7742 = vmatprep.mubr.msk.f32.mxu0 %vm8596_vm1, %v8597_v6  ;;  %8537 = vmatprep.mubr.msk.f32.mxu1 %vm8596_vm1, %v8597_v6  ;;  %v534_v55 = vld [vmem:[%s14486_s0 + $0x1058] sm:$0xff] }
 0x3f9   :  { %v5049_v58 = vmax.f32 %v3198_v42, 0.0  ;;  %v5314_v59 = vmax.f32 %v4523_v54, 0.0  ;;  %v269_v54 = vld [vmem:[%s14486_s0 + $0x810] sm:$0xff] }
 0x3fa   :  { %v3202_v60 = vpop.f32.mrb[142].mxu0  ;;  %v4527_v61 = vpop.f32.mrb[142].mxu1 }
 0x3fb   :  { %5579 = vst.msk [vmem:[%s14487_s2 + $0x630] sm:$0xff] %vm5380_vm5, %v5049_v58  ;;  %5844 = vst.msk [vmem:[%s14487_s2 + $0xe78] sm:$0xff] %vm5380_vm5, %v5314_v59  ;;  %v3203_v62 = vadd.f32 %v13529_v53, %v3202_v60  ;;  %v7585_v63 = vpop.f32.mrb[143].mxu0  ;;  %7743 = vmatmul.mubr.msk.f32.gmra.mrb[248].mxu0 %vm549_vm4, %v263_v56  ;;  %v4528_v51 = vadd.f32 %v13529_v53, %v4527_v61  ;;  %v8380_v0 = vpop.f32.mrb[143].mxu1  ;;  %8538 = vmatmul.mubr.msk.f32.gmra.mrb[248].mxu1 %vm549_vm4, %v528_v57 }
 0x3fc   :  { %7745 = vmatprep.mubr.msk.f32.mxu0 %vm8596_vm1, %v8597_v6  ;;  %8540 = vmatprep.mubr.msk.f32.mxu1 %vm8596_vm1, %v8597_v6  ;;  %v535_v0 = vld [vmem:[%s14486_s0 + $0x1060] sm:$0xff] }
 0x3fd   :  { %v5050_v4 = vmax.f32 %v3203_v62, 0.0  ;;  %v5315_v5 = vmax.f32 %v4528_v51, 0.0  ;;  %v270_v51 = vld [vmem:[%s14486_s0 + $0x818] sm:$0xff] }
 0x3fe   :  { %v3207_v7 = vpop.f32.mrb[144].mxu0  ;;  %v4532_v8 = vpop.f32.mrb[144].mxu1 }
 0x3ff   :  { %5580 = vst.msk [vmem:[%s14487_s2 + $0x638] sm:$0xff] %vm5380_vm5, %v5050_v4  ;;  %5845 = vst.msk [vmem:[%s14487_s2 + $0xe80] sm:$0xff] %vm5380_vm5, %v5315_v5  ;;  %v3208_v9 = vadd.f32 %v13529_v53, %v3207_v7  ;;  %v7588_v10 = vpop.f32.mrb[145].mxu0  ;;  %7746 = vmatmul.mubr.msk.f32.gmra.mrb[250].mxu0 %vm549_vm4, %v264_v2  ;;  %v4533_v1 = vadd.f32 %v13529_v53, %v4532_v8  ;;  %v8383_v11 = vpop.f32.mrb[145].mxu1  ;;  %8541 = vmatmul.mubr.msk.f32.gmra.mrb[250].mxu1 %vm549_vm4, %v529_v3 }
 0x400   :  { %7748 = vmatprep.mubr.msk.f32.mxu0 %vm8596_vm1, %v8597_v6  ;;  %8543 = vmatprep.mubr.msk.f32.mxu1 %vm8596_vm1, %v8597_v6  ;;  %v536_v11 = vld [vmem:[%s14486_s0 + $0x1068] sm:$0xff] }
 0x401   :  { %v5051_v15 = vmax.f32 %v3208_v9, 0.0  ;;  %v5316_v16 = vmax.f32 %v4533_v1, 0.0  ;;  %v271_v1 = vld [vmem:[%s14486_s0 + $0x820] sm:$0xff] }
 0x402   :  { %v3212_v17 = vpop.f32.mrb[146].mxu0  ;;  %v4537_v18 = vpop.f32.mrb[146].mxu1 }
 0x403   :  { %5581 = vst.msk [vmem:[%s14487_s2 + $0x640] sm:$0xff] %vm5380_vm5, %v5051_v15  ;;  %5846 = vst.msk [vmem:[%s14487_s2 + $0xe88] sm:$0xff] %vm5380_vm5, %v5316_v16  ;;  %v3213_v19 = vadd.f32 %v13529_v53, %v3212_v17  ;;  %v7591_v20 = vpop.f32.mrb[147].mxu0  ;;  %7749 = vmatmul.mubr.msk.f32.gmra.mrb[252].mxu0 %vm549_vm4, %v265_v13  ;;  %v4538_v12 = vadd.f32 %v13529_v53, %v4537_v18  ;;  %v8386_v21 = vpop.f32.mrb[147].mxu1  ;;  %8544 = vmatmul.mubr.msk.f32.gmra.mrb[252].mxu1 %vm549_vm4, %v530_v14 }
 0x404   :  { %7751 = vmatprep.mubr.msk.f32.mxu0 %vm8596_vm1, %v8597_v6  ;;  %8546 = vmatprep.mubr.msk.f32.mxu1 %vm8596_vm1, %v8597_v6  ;;  %v537_v21 = vld [vmem:[%s14486_s0 + $0x1070] sm:$0xff] }
 0x405   :  { %v5052_v25 = vmax.f32 %v3213_v19, 0.0  ;;  %v5317_v26 = vmax.f32 %v4538_v12, 0.0  ;;  %v272_v12 = vld [vmem:[%s14486_s0 + $0x828] sm:$0xff] }
 0x406   :  { %v3217_v27 = vpop.f32.mrb[148].mxu0  ;;  %v4542_v28 = vpop.f32.mrb[148].mxu1 }
 0x407   :  { %5582 = vst.msk [vmem:[%s14487_s2 + $0x648] sm:$0xff] %vm5380_vm5, %v5052_v25  ;;  %5847 = vst.msk [vmem:[%s14487_s2 + $0xe90] sm:$0xff] %vm5380_vm5, %v5317_v26  ;;  %v3218_v29 = vadd.f32 %v13529_v53, %v3217_v27  ;;  %v7594_v30 = vpop.f32.mrb[149].mxu0  ;;  %7752 = vmatmul.mubr.msk.f32.gmra.mrb[254].mxu0 %vm549_vm4, %v266_v23  ;;  %v4543_v22 = vadd.f32 %v13529_v53, %v4542_v28  ;;  %v8389_v31 = vpop.f32.mrb[149].mxu1  ;;  %8547 = vmatmul.mubr.msk.f32.gmra.mrb[254].mxu1 %vm549_vm4, %v531_v24 }
 0x408   :  { %7754 = vmatprep.mubr.msk.f32.mxu0 %vm8596_vm1, %v8597_v6  ;;  %8549 = vmatprep.mubr.msk.f32.mxu1 %vm8596_vm1, %v8597_v6  ;;  %v538_v31 = vld [vmem:[%s14486_s0 + $0x1078] sm:$0xff] }
 0x409   :  { %v5053_v35 = vmax.f32 %v3218_v29, 0.0  ;;  %v5318_v36 = vmax.f32 %v4543_v22, 0.0  ;;  %v273_v22 = vld [vmem:[%s14486_s0 + $0x830] sm:$0xff] }
 0x40a   :  { %v3222_v37 = vpop.f32.mrb[150].mxu0  ;;  %v4547_v38 = vpop.f32.mrb[150].mxu1 }
 0x40b   :  { %5583 = vst.msk [vmem:[%s14487_s2 + $0x650] sm:$0xff] %vm5380_vm5, %v5053_v35  ;;  %5848 = vst.msk [vmem:[%s14487_s2 + $0xe98] sm:$0xff] %vm5380_vm5, %v5318_v36  ;;  %v3223_v39 = vadd.f32 %v13529_v53, %v3222_v37  ;;  %v7597_v40 = vpop.f32.mrb[151].mxu0  ;;  %7755 = vmatmul.mubr.msk.f32.gmra.mrb[0].mxu0 %vm549_vm4, %v267_v33  ;;  %v4548_v32 = vadd.f32 %v13529_v53, %v4547_v38  ;;  %v8392_v41 = vpop.f32.mrb[151].mxu1  ;;  %8550 = vmatmul.mubr.msk.f32.gmra.mrb[0].mxu1 %vm549_vm4, %v532_v34 }
 0x40c   :  { %7757 = vmatprep.mubr.msk.f32.mxu0 %vm8596_vm1, %v8597_v6  ;;  %8552 = vmatprep.mubr.msk.f32.mxu1 %vm8596_vm1, %v8597_v6  ;;  %v539_v41 = vld [vmem:[%s14486_s0 + $0x1080] sm:$0xff] }
 0x40d   :  { %v5054_v45 = vmax.f32 %v3223_v39, 0.0  ;;  %v5319_v46 = vmax.f32 %v4548_v32, 0.0  ;;  %v274_v32 = vld [vmem:[%s14486_s0 + $0x838] sm:$0xff] }
 0x40e   :  { %v3227_v47 = vpop.f32.mrb[152].mxu0  ;;  %v4552_v48 = vpop.f32.mrb[152].mxu1 }
 0x40f   :  { %5584 = vst.msk [vmem:[%s14487_s2 + $0x658] sm:$0xff] %vm5380_vm5, %v5054_v45  ;;  %5849 = vst.msk [vmem:[%s14487_s2 + $0xea0] sm:$0xff] %vm5380_vm5, %v5319_v46  ;;  %v3228_v49 = vadd.f32 %v13529_v53, %v3227_v47  ;;  %v7600_v50 = vpop.f32.mrb[153].mxu0  ;;  %7758 = vmatmul.mubr.msk.f32.gmra.mrb[2].mxu0 %vm549_vm4, %v268_v43  ;;  %v4553_v42 = vadd.f32 %v13529_v53, %v4552_v48  ;;  %v8395_v52 = vpop.f32.mrb[153].mxu1  ;;  %8553 = vmatmul.mubr.msk.f32.gmra.mrb[2].mxu1 %vm549_vm4, %v533_v44 }
 0x410   :  { %7760 = vmatprep.mubr.msk.f32.mxu0 %vm8596_vm1, %v8597_v6  ;;  %8555 = vmatprep.mubr.msk.f32.mxu1 %vm8596_vm1, %v8597_v6 }
 0x411   :  { %v5055_v56 = vmax.f32 %v3228_v49, 0.0  ;;  %v5320_v57 = vmax.f32 %v4553_v42, 0.0  ;;  %v275_v42 = vld [vmem:[%s14486_s0 + $0x840] sm:$0xff] }
 0x412   :  { %v3232_v58 = vpop.f32.mrb[154].mxu0  ;;  %v4557_v59 = vpop.f32.mrb[154].mxu1 }
 0x413   :  { %5585 = vst.msk [vmem:[%s14487_s2 + $0x660] sm:$0xff] %vm5380_vm5, %v5055_v56  ;;  %5850 = vst.msk [vmem:[%s14487_s2 + $0xea8] sm:$0xff] %vm5380_vm5, %v5320_v57  ;;  %v3233_v60 = vadd.f32 %v13529_v53, %v3232_v58  ;;  %v7603_v61 = vpop.f32.mrb[155].mxu0  ;;  %7761 = vmatmul.mubr.msk.f32.gmra.mrb[4].mxu0 %vm549_vm4, %v269_v54  ;;  %v4558_v62 = vadd.f32 %v13529_v53, %v4557_v59  ;;  %v8398_v63 = vpop.f32.mrb[155].mxu1  ;;  %8556 = vmatmul.mubr.msk.f32.gmra.mrb[4].mxu1 %vm549_vm4, %v534_v55 }
 0x414   :  { %7763 = vmatprep.mubr.msk.f32.mxu0 %vm8596_vm1, %v8597_v6  ;;  %8558 = vmatprep.mubr.msk.f32.mxu1 %vm8596_vm1, %v8597_v6 }
 0x415   :  { %v5056_v2 = vmax.f32 %v3233_v60, 0.0  ;;  %v5321_v3 = vmax.f32 %v4558_v62, 0.0 }
 0x416   :  { %v3237_v4 = vpop.f32.mrb[156].mxu0  ;;  %v4562_v5 = vpop.f32.mrb[156].mxu1 }
 0x417   :  { %5586 = vst.msk [vmem:[%s14487_s2 + $0x668] sm:$0xff] %vm5380_vm5, %v5056_v2  ;;  %5851 = vst.msk [vmem:[%s14487_s2 + $0xeb0] sm:$0xff] %vm5380_vm5, %v5321_v3  ;;  %v3238_v7 = vadd.f32 %v13529_v53, %v3237_v4  ;;  %v7606_v8 = vpop.f32.mrb[157].mxu0  ;;  %7764 = vmatmul.mubr.msk.f32.gmra.mrb[6].mxu0 %vm549_vm4, %v270_v51  ;;  %v4563_v9 = vadd.f32 %v13529_v53, %v4562_v5  ;;  %v8401_v10 = vpop.f32.mrb[157].mxu1  ;;  %8559 = vmatmul.mubr.msk.f32.gmra.mrb[6].mxu1 %vm549_vm4, %v535_v0 }
 0x418   :  { %7766 = vmatprep.mubr.msk.f32.mxu0 %vm8596_vm1, %v8597_v6  ;;  %8561 = vmatprep.mubr.msk.f32.mxu1 %vm8596_vm1, %v8597_v6 }
 0x419   :  { %v5057_v13 = vmax.f32 %v3238_v7, 0.0  ;;  %v5322_v14 = vmax.f32 %v4563_v9, 0.0 }
 0x41a   :  { %v3242_v15 = vpop.f32.mrb[158].mxu0  ;;  %v4567_v16 = vpop.f32.mrb[158].mxu1 }
 0x41b   :  { %5587 = vst.msk [vmem:[%s14487_s2 + $0x670] sm:$0xff] %vm5380_vm5, %v5057_v13  ;;  %5852 = vst.msk [vmem:[%s14487_s2 + $0xeb8] sm:$0xff] %vm5380_vm5, %v5322_v14  ;;  %v3243_v17 = vadd.f32 %v13529_v53, %v3242_v15  ;;  %v7609_v18 = vpop.f32.mrb[159].mxu0  ;;  %7767 = vmatmul.mubr.msk.f32.gmra.mrb[8].mxu0 %vm549_vm4, %v271_v1  ;;  %v4568_v19 = vadd.f32 %v13529_v53, %v4567_v16  ;;  %v8404_v20 = vpop.f32.mrb[159].mxu1  ;;  %8562 = vmatmul.mubr.msk.f32.gmra.mrb[8].mxu1 %vm549_vm4, %v536_v11 }
 0x41c   :  { %7769 = vmatprep.mubr.msk.f32.mxu0 %vm8596_vm1, %v8597_v6  ;;  %8564 = vmatprep.mubr.msk.f32.mxu1 %vm8596_vm1, %v8597_v6 }
 0x41d   :  { %v5058_v23 = vmax.f32 %v3243_v17, 0.0  ;;  %v5323_v24 = vmax.f32 %v4568_v19, 0.0 }
 0x41e   :  { %v3247_v25 = vpop.f32.mrb[160].mxu0  ;;  %v4572_v26 = vpop.f32.mrb[160].mxu1 }
 0x41f   :  { %5588 = vst.msk [vmem:[%s14487_s2 + $0x678] sm:$0xff] %vm5380_vm5, %v5058_v23  ;;  %5853 = vst.msk [vmem:[%s14487_s2 + $0xec0] sm:$0xff] %vm5380_vm5, %v5323_v24  ;;  %v3248_v27 = vadd.f32 %v13529_v53, %v3247_v25  ;;  %v7612_v28 = vpop.f32.mrb[161].mxu0  ;;  %7770 = vmatmul.mubr.msk.f32.gmra.mrb[10].mxu0 %vm549_vm4, %v272_v12  ;;  %v4573_v29 = vadd.f32 %v13529_v53, %v4572_v26  ;;  %v8407_v30 = vpop.f32.mrb[161].mxu1  ;;  %8565 = vmatmul.mubr.msk.f32.gmra.mrb[10].mxu1 %vm549_vm4, %v537_v21 }
 0x420   :  { %7772 = vmatprep.mubr.msk.f32.mxu0 %vm8596_vm1, %v8597_v6  ;;  %8567 = vmatprep.mubr.msk.f32.mxu1 %vm8596_vm1, %v8597_v6 }
 0x421   :  { %v5059_v33 = vmax.f32 %v3248_v27, 0.0  ;;  %v5324_v34 = vmax.f32 %v4573_v29, 0.0 }
 0x422   :  { %v3252_v35 = vpop.f32.mrb[162].mxu0  ;;  %v4577_v36 = vpop.f32.mrb[162].mxu1 }
 0x423   :  { %5589 = vst.msk [vmem:[%s14487_s2 + $0x680] sm:$0xff] %vm5380_vm5, %v5059_v33  ;;  %5854 = vst.msk [vmem:[%s14487_s2 + $0xec8] sm:$0xff] %vm5380_vm5, %v5324_v34  ;;  %v3253_v37 = vadd.f32 %v13529_v53, %v3252_v35  ;;  %v7615_v38 = vpop.f32.mrb[163].mxu0  ;;  %7773 = vmatmul.mubr.msk.f32.gmra.mrb[12].mxu0 %vm549_vm4, %v273_v22  ;;  %v4578_v39 = vadd.f32 %v13529_v53, %v4577_v36  ;;  %v8410_v40 = vpop.f32.mrb[163].mxu1  ;;  %8568 = vmatmul.mubr.msk.f32.gmra.mrb[12].mxu1 %vm549_vm4, %v538_v31 }
 0x424   :  { %7775 = vmatprep.mubr.msk.f32.mxu0 %vm8596_vm1, %v8597_v6  ;;  %8570 = vmatprep.mubr.msk.f32.mxu1 %vm8596_vm1, %v8597_v6 }
 0x425   :  { %v5060_v43 = vmax.f32 %v3253_v37, 0.0  ;;  %v5325_v44 = vmax.f32 %v4578_v39, 0.0 }
 0x426   :  { %v3257_v45 = vpop.f32.mrb[164].mxu0  ;;  %v4582_v46 = vpop.f32.mrb[164].mxu1 }
 0x427   :  { %5590 = vst.msk [vmem:[%s14487_s2 + $0x688] sm:$0xff] %vm5380_vm5, %v5060_v43  ;;  %5855 = vst.msk [vmem:[%s14487_s2 + $0xed0] sm:$0xff] %vm5380_vm5, %v5325_v44  ;;  %v3258_v47 = vadd.f32 %v13529_v53, %v3257_v45  ;;  %v7618_v48 = vpop.f32.mrb[165].mxu0  ;;  %7776 = vmatmul.mubr.msk.f32.gmra.mrb[14].mxu0 %vm549_vm4, %v274_v32  ;;  %v4583_v49 = vadd.f32 %v13529_v53, %v4582_v46  ;;  %v8413_v50 = vpop.f32.mrb[165].mxu1  ;;  %8571 = vmatmul.mubr.msk.f32.gmra.mrb[14].mxu1 %vm549_vm4, %v539_v41 }
 0x428   :  { %7778 = vmatprep.mubr.msk.f32.mxu0 %vm8596_vm1, %v8597_v6 }
 0x429   :  { %v5061_v52 = vmax.f32 %v3258_v47, 0.0  ;;  %v5326_v54 = vmax.f32 %v4583_v49, 0.0 }
 0x42a   :  { %v3262_v55 = vpop.f32.mrb[166].mxu0  ;;  %v4587_v56 = vpop.f32.mrb[166].mxu1 }
 0x42b   :  { %5591 = vst.msk [vmem:[%s14487_s2 + $0x690] sm:$0xff] %vm5380_vm5, %v5061_v52  ;;  %5856 = vst.msk [vmem:[%s14487_s2 + $0xed8] sm:$0xff] %vm5380_vm5, %v5326_v54  ;;  %v3263_v6 = vadd.f32 %v13529_v53, %v3262_v55  ;;  %v7621_v57 = vpop.f32.mrb[167].mxu0  ;;  %7779 = vmatmul.mubr.msk.f32.gmra.mrb[16].mxu0 %vm549_vm4, %v275_v42  ;;  %v4588_v58 = vadd.f32 %v13529_v53, %v4587_v56  ;;  %v8416_v59 = vpop.f32.mrb[167].mxu1 }
 0x42d   :  { %v5062_v60 = vmax.f32 %v3263_v6, 0.0  ;;  %v5327_v61 = vmax.f32 %v4588_v58, 0.0 }
 0x42e   :  { %v3267_v62 = vpop.f32.mrb[168].mxu0  ;;  %v4592_v63 = vpop.f32.mrb[168].mxu1 }
 0x42f   :  { %5592 = vst.msk [vmem:[%s14487_s2 + $0x698] sm:$0xff] %vm5380_vm5, %v5062_v60  ;;  %5857 = vst.msk [vmem:[%s14487_s2 + $0xee0] sm:$0xff] %vm5380_vm5, %v5327_v61  ;;  %v3268_v51 = vadd.f32 %v13529_v53, %v3267_v62  ;;  %v7624_v0 = vpop.f32.mrb[169].mxu0  ;;  %v4593_v2 = vadd.f32 %v13529_v53, %v4592_v63  ;;  %v8419_v3 = vpop.f32.mrb[169].mxu1 }
 0x431   :  { %v5063_v4 = vmax.f32 %v3268_v51, 0.0  ;;  %v5328_v5 = vmax.f32 %v4593_v2, 0.0 }
 0x432   :  { %v3272_v7 = vpop.f32.mrb[170].mxu0  ;;  %v4597_v8 = vpop.f32.mrb[170].mxu1 }
 0x433   :  { %5593 = vst.msk [vmem:[%s14487_s2 + $0x6a0] sm:$0xff] %vm5380_vm5, %v5063_v4  ;;  %5858 = vst.msk [vmem:[%s14487_s2 + $0xee8] sm:$0xff] %vm5380_vm5, %v5328_v5  ;;  %v3273_v9 = vadd.f32 %v13529_v53, %v3272_v7  ;;  %v7627_v10 = vpop.f32.mrb[171].mxu0  ;;  %v4598_v1 = vadd.f32 %v13529_v53, %v4597_v8  ;;  %v8422_v11 = vpop.f32.mrb[171].mxu1 }
 0x435   :  { %v5064_v13 = vmax.f32 %v3273_v9, 0.0  ;;  %v5329_v14 = vmax.f32 %v4598_v1, 0.0 }
 0x436   :  { %v3277_v15 = vpop.f32.mrb[172].mxu0  ;;  %v4602_v16 = vpop.f32.mrb[172].mxu1 }
 0x437   :  { %5594 = vst.msk [vmem:[%s14487_s2 + $0x6a8] sm:$0xff] %vm5380_vm5, %v5064_v13  ;;  %5859 = vst.msk [vmem:[%s14487_s2 + $0xef0] sm:$0xff] %vm5380_vm5, %v5329_v14  ;;  %v3278_v17 = vadd.f32 %v13529_v53, %v3277_v15  ;;  %v7630_v18 = vpop.f32.mrb[173].mxu0  ;;  %v4603_v19 = vadd.f32 %v13529_v53, %v4602_v16  ;;  %v8425_v20 = vpop.f32.mrb[173].mxu1 }
 0x439   :  { %v5065_v12 = vmax.f32 %v3278_v17, 0.0  ;;  %v5330_v21 = vmax.f32 %v4603_v19, 0.0 }
 0x43a   :  { %v3282_v23 = vpop.f32.mrb[174].mxu0  ;;  %v4607_v24 = vpop.f32.mrb[174].mxu1 }
 0x43b   :  { %5595 = vst.msk [vmem:[%s14487_s2 + $0x6b0] sm:$0xff] %vm5380_vm5, %v5065_v12  ;;  %5860 = vst.msk [vmem:[%s14487_s2 + $0xef8] sm:$0xff] %vm5380_vm5, %v5330_v21  ;;  %v3283_v25 = vadd.f32 %v13529_v53, %v3282_v23  ;;  %v7633_v26 = vpop.f32.mrb[175].mxu0  ;;  %v4608_v27 = vadd.f32 %v13529_v53, %v4607_v24  ;;  %v8428_v28 = vpop.f32.mrb[175].mxu1 }
 0x43d   :  { %v5066_v29 = vmax.f32 %v3283_v25, 0.0  ;;  %v5331_v30 = vmax.f32 %v4608_v27, 0.0 }
 0x43e   :  { %v3287_v22 = vpop.f32.mrb[176].mxu0  ;;  %v4612_v31 = vpop.f32.mrb[176].mxu1 }
 0x43f   :  { %5596 = vst.msk [vmem:[%s14487_s2 + $0x6b8] sm:$0xff] %vm5380_vm5, %v5066_v29  ;;  %5861 = vst.msk [vmem:[%s14487_s2 + $0xf00] sm:$0xff] %vm5380_vm5, %v5331_v30  ;;  %v3288_v33 = vadd.f32 %v13529_v53, %v3287_v22  ;;  %v7636_v34 = vpop.f32.mrb[177].mxu0  ;;  %v4613_v35 = vadd.f32 %v13529_v53, %v4612_v31  ;;  %v8431_v36 = vpop.f32.mrb[177].mxu1 }
 0x441   :  { %v5067_v37 = vmax.f32 %v3288_v33, 0.0  ;;  %v5332_v38 = vmax.f32 %v4613_v35, 0.0 }
 0x442   :  { %v3292_v39 = vpop.f32.mrb[178].mxu0  ;;  %v4617_v40 = vpop.f32.mrb[178].mxu1 }
 0x443   :  { %5597 = vst.msk [vmem:[%s14487_s2 + $0x6c0] sm:$0xff] %vm5380_vm5, %v5067_v37  ;;  %5862 = vst.msk [vmem:[%s14487_s2 + $0xf08] sm:$0xff] %vm5380_vm5, %v5332_v38  ;;  %v3293_v32 = vadd.f32 %v13529_v53, %v3292_v39  ;;  %v7639_v41 = vpop.f32.mrb[179].mxu0  ;;  %v4618_v43 = vadd.f32 %v13529_v53, %v4617_v40  ;;  %v8434_v44 = vpop.f32.mrb[179].mxu1 }
 0x445   :  { %v5068_v45 = vmax.f32 %v3293_v32, 0.0  ;;  %v5333_v46 = vmax.f32 %v4618_v43, 0.0 }
 0x446   :  { %v3297_v47 = vpop.f32.mrb[180].mxu0  ;;  %v4622_v48 = vpop.f32.mrb[180].mxu1 }
 0x447   :  { %5598 = vst.msk [vmem:[%s14487_s2 + $0x6c8] sm:$0xff] %vm5380_vm5, %v5068_v45  ;;  %5863 = vst.msk [vmem:[%s14487_s2 + $0xf10] sm:$0xff] %vm5380_vm5, %v5333_v46  ;;  %v3298_v49 = vadd.f32 %v13529_v53, %v3297_v47  ;;  %v7642_v50 = vpop.f32.mrb[181].mxu0  ;;  %v4623_v42 = vadd.f32 %v13529_v53, %v4622_v48  ;;  %v8437_v52 = vpop.f32.mrb[181].mxu1 }
 0x449   :  { %v5069_v54 = vmax.f32 %v3298_v49, 0.0  ;;  %v5334_v55 = vmax.f32 %v4623_v42, 0.0 }
 0x44a   :  { %v3302_v56 = vpop.f32.mrb[182].mxu0  ;;  %v4627_v6 = vpop.f32.mrb[182].mxu1 }
 0x44b   :  { %5599 = vst.msk [vmem:[%s14487_s2 + $0x6d0] sm:$0xff] %vm5380_vm5, %v5069_v54  ;;  %5864 = vst.msk [vmem:[%s14487_s2 + $0xf18] sm:$0xff] %vm5380_vm5, %v5334_v55  ;;  %v3303_v57 = vadd.f32 %v13529_v53, %v3302_v56  ;;  %v7645_v58 = vpop.f32.mrb[183].mxu0  ;;  %v4628_v59 = vadd.f32 %v13529_v53, %v4627_v6  ;;  %v8440_v60 = vpop.f32.mrb[183].mxu1 }
 0x44d   :  { %v5070_v61 = vmax.f32 %v3303_v57, 0.0  ;;  %v5335_v62 = vmax.f32 %v4628_v59, 0.0 }
 0x44e   :  { %v3307_v63 = vpop.f32.mrb[184].mxu0  ;;  %v4632_v51 = vpop.f32.mrb[184].mxu1 }
 0x44f   :  { %5600 = vst.msk [vmem:[%s14487_s2 + $0x6d8] sm:$0xff] %vm5380_vm5, %v5070_v61  ;;  %5865 = vst.msk [vmem:[%s14487_s2 + $0xf20] sm:$0xff] %vm5380_vm5, %v5335_v62  ;;  %v3308_v0 = vadd.f32 %v13529_v53, %v3307_v63  ;;  %v7648_v2 = vpop.f32.mrb[185].mxu0  ;;  %v4633_v3 = vadd.f32 %v13529_v53, %v4632_v51  ;;  %v8443_v4 = vpop.f32.mrb[185].mxu1 }
 0x451   :  { %v5071_v5 = vmax.f32 %v3308_v0, 0.0  ;;  %v5336_v7 = vmax.f32 %v4633_v3, 0.0 }
 0x452   :  { %v3312_v8 = vpop.f32.mrb[186].mxu0  ;;  %v4637_v9 = vpop.f32.mrb[186].mxu1 }
 0x453   :  { %5601 = vst.msk [vmem:[%s14487_s2 + $0x6e0] sm:$0xff] %vm5380_vm5, %v5071_v5  ;;  %5866 = vst.msk [vmem:[%s14487_s2 + $0xf28] sm:$0xff] %vm5380_vm5, %v5336_v7  ;;  %v3313_v10 = vadd.f32 %v13529_v53, %v3312_v8  ;;  %v7651_v1 = vpop.f32.mrb[187].mxu0  ;;  %v4638_v11 = vadd.f32 %v13529_v53, %v4637_v9  ;;  %v8446_v13 = vpop.f32.mrb[187].mxu1 }
 0x455   :  { %v5072_v14 = vmax.f32 %v3313_v10, 0.0  ;;  %v5337_v15 = vmax.f32 %v4638_v11, 0.0 }
 0x456   :  { %v3317_v16 = vpop.f32.mrb[188].mxu0  ;;  %v4642_v17 = vpop.f32.mrb[188].mxu1 }
 0x457   :  { %5602 = vst.msk [vmem:[%s14487_s2 + $0x6e8] sm:$0xff] %vm5380_vm5, %v5072_v14  ;;  %5867 = vst.msk [vmem:[%s14487_s2 + $0xf30] sm:$0xff] %vm5380_vm5, %v5337_v15  ;;  %v3318_v18 = vadd.f32 %v13529_v53, %v3317_v16  ;;  %v7654_v19 = vpop.f32.mrb[189].mxu0  ;;  %v4643_v20 = vadd.f32 %v13529_v53, %v4642_v17  ;;  %v8449_v12 = vpop.f32.mrb[189].mxu1 }
 0x459   :  { %v5073_v21 = vmax.f32 %v3318_v18, 0.0  ;;  %v5338_v23 = vmax.f32 %v4643_v20, 0.0 }
 0x45a   :  { %v3322_v24 = vpop.f32.mrb[190].mxu0  ;;  %v4647_v25 = vpop.f32.mrb[190].mxu1 }
 0x45b   :  { %5603 = vst.msk [vmem:[%s14487_s2 + $0x6f0] sm:$0xff] %vm5380_vm5, %v5073_v21  ;;  %5868 = vst.msk [vmem:[%s14487_s2 + $0xf38] sm:$0xff] %vm5380_vm5, %v5338_v23  ;;  %v3323_v26 = vadd.f32 %v13529_v53, %v3322_v24  ;;  %v7657_v27 = vpop.f32.mrb[191].mxu0  ;;  %v4648_v28 = vadd.f32 %v13529_v53, %v4647_v25  ;;  %v8452_v29 = vpop.f32.mrb[191].mxu1 }
 0x45d   :  { %v5074_v30 = vmax.f32 %v3323_v26, 0.0  ;;  %v5339_v22 = vmax.f32 %v4648_v28, 0.0 }
 0x45e   :  { %v3327_v31 = vpop.f32.mrb[192].mxu0  ;;  %v4652_v33 = vpop.f32.mrb[192].mxu1 }
 0x45f   :  { %5604 = vst.msk [vmem:[%s14487_s2 + $0x6f8] sm:$0xff] %vm5380_vm5, %v5074_v30  ;;  %5869 = vst.msk [vmem:[%s14487_s2 + $0xf40] sm:$0xff] %vm5380_vm5, %v5339_v22  ;;  %v3328_v34 = vadd.f32 %v13529_v53, %v3327_v31  ;;  %v7660_v35 = vpop.f32.mrb[193].mxu0  ;;  %v4653_v36 = vadd.f32 %v13529_v53, %v4652_v33  ;;  %v8455_v37 = vpop.f32.mrb[193].mxu1 }
 0x460   :  { %v14158_v35 = vld [vmem:[%s14485_s1 + $0x19] ss:$0 sm:$0xff] }
 0x461   :  { %v5075_v38 = vmax.f32 %v3328_v34, 0.0  ;;  %v5340_v39 = vmax.f32 %v4653_v36, 0.0 }
 0x462   :  { %v3332_v40 = vpop.f32.mrb[194].mxu0  ;;  %v4657_v32 = vpop.f32.mrb[194].mxu1 }
 0x463   :  { %5605 = vst.msk [vmem:[%s14487_s2 + $0x700] sm:$0xff] %vm5380_vm5, %v5075_v38  ;;  %5870 = vst.msk [vmem:[%s14487_s2 + $0xf48] sm:$0xff] %vm5380_vm5, %v5340_v39  ;;  %v3333_v41 = vadd.f32 %v13529_v53, %v3332_v40  ;;  %v7663_v43 = vpop.f32.mrb[195].mxu0  ;;  %v4658_v44 = vadd.f32 %v13529_v53, %v4657_v32  ;;  %v8458_v45 = vpop.f32.mrb[195].mxu1 }
 0x465   :  { %v5076_v46 = vmax.f32 %v3333_v41, 0.0  ;;  %v5341_v47 = vmax.f32 %v4658_v44, 0.0 }
 0x466   :  { %v3337_v48 = vpop.f32.mrb[196].mxu0  ;;  %v4662_v49 = vpop.f32.mrb[196].mxu1 }
 0x467   :  { %5606 = vst.msk [vmem:[%s14487_s2 + $0x708] sm:$0xff] %vm5380_vm5, %v5076_v46  ;;  %5871 = vst.msk [vmem:[%s14487_s2 + $0xf50] sm:$0xff] %vm5380_vm5, %v5341_v47  ;;  %v3338_v50 = vadd.f32 %v13529_v53, %v3337_v48  ;;  %v7666_v42 = vpop.f32.mrb[197].mxu0  ;;  %v4663_v52 = vadd.f32 %v13529_v53, %v4662_v49  ;;  %v8461_v54 = vpop.f32.mrb[197].mxu1 }
 0x469   :  { %v5077_v55 = vmax.f32 %v3338_v50, 0.0  ;;  %v5342_v56 = vmax.f32 %v4663_v52, 0.0 }
 0x46a   :  { %v3342_v6 = vpop.f32.mrb[198].mxu0  ;;  %v4667_v57 = vpop.f32.mrb[198].mxu1 }
 0x46b   :  { %5607 = vst.msk [vmem:[%s14487_s2 + $0x710] sm:$0xff] %vm5380_vm5, %v5077_v55  ;;  %5872 = vst.msk [vmem:[%s14487_s2 + $0xf58] sm:$0xff] %vm5380_vm5, %v5342_v56  ;;  %v3343_v58 = vadd.f32 %v13529_v53, %v3342_v6  ;;  %v7669_v59 = vpop.f32.mrb[199].mxu0  ;;  %v4668_v60 = vadd.f32 %v13529_v53, %v4667_v57  ;;  %v8464_v61 = vpop.f32.mrb[199].mxu1 }
 0x46d   :  { %v5078_v62 = vmax.f32 %v3343_v58, 0.0  ;;  %v5343_v63 = vmax.f32 %v4668_v60, 0.0 }
 0x46e   :  { %v3347_v51 = vpop.f32.mrb[200].mxu0  ;;  %v4672_v0 = vpop.f32.mrb[200].mxu1 }
 0x46f   :  { %5608 = vst.msk [vmem:[%s14487_s2 + $0x718] sm:$0xff] %vm5380_vm5, %v5078_v62  ;;  %5873 = vst.msk [vmem:[%s14487_s2 + $0xf60] sm:$0xff] %vm5380_vm5, %v5343_v63  ;;  %v3348_v2 = vadd.f32 %v13529_v53, %v3347_v51  ;;  %v7672_v3 = vpop.f32.mrb[201].mxu0  ;;  %v4673_v4 = vadd.f32 %v13529_v53, %v4672_v0  ;;  %v8467_v5 = vpop.f32.mrb[201].mxu1 }
 0x471   :  { %v5079_v7 = vmax.f32 %v3348_v2, 0.0  ;;  %v5344_v8 = vmax.f32 %v4673_v4, 0.0 }
 0x472   :  { %v3352_v9 = vpop.f32.mrb[202].mxu0  ;;  %v4677_v10 = vpop.f32.mrb[202].mxu1 }
 0x473   :  { %5609 = vst.msk [vmem:[%s14487_s2 + $0x720] sm:$0xff] %vm5380_vm5, %v5079_v7  ;;  %5874 = vst.msk [vmem:[%s14487_s2 + $0xf68] sm:$0xff] %vm5380_vm5, %v5344_v8  ;;  %v3353_v1 = vadd.f32 %v13529_v53, %v3352_v9  ;;  %v7675_v11 = vpop.f32.mrb[203].mxu0  ;;  %v4678_v13 = vadd.f32 %v13529_v53, %v4677_v10  ;;  %v8470_v14 = vpop.f32.mrb[203].mxu1 }
 0x475   :  { %v5080_v15 = vmax.f32 %v3353_v1, 0.0  ;;  %v5345_v16 = vmax.f32 %v4678_v13, 0.0 }
 0x476   :  { %v3357_v17 = vpop.f32.mrb[204].mxu0  ;;  %v4682_v18 = vpop.f32.mrb[204].mxu1 }
 0x477   :  { %5610 = vst.msk [vmem:[%s14487_s2 + $0x728] sm:$0xff] %vm5380_vm5, %v5080_v15  ;;  %5875 = vst.msk [vmem:[%s14487_s2 + $0xf70] sm:$0xff] %vm5380_vm5, %v5345_v16  ;;  %v3358_v19 = vadd.f32 %v13529_v53, %v3357_v17  ;;  %v7678_v20 = vpop.f32.mrb[205].mxu0  ;;  %v4683_v12 = vadd.f32 %v13529_v53, %v4682_v18  ;;  %v8473_v21 = vpop.f32.mrb[205].mxu1 }
 0x479   :  { %v5081_v23 = vmax.f32 %v3358_v19, 0.0  ;;  %v5346_v24 = vmax.f32 %v4683_v12, 0.0 }
 0x47a   :  { %v3362_v25 = vpop.f32.mrb[206].mxu0  ;;  %v4687_v26 = vpop.f32.mrb[206].mxu1 }
 0x47b   :  { %5611 = vst.msk [vmem:[%s14487_s2 + $0x730] sm:$0xff] %vm5380_vm5, %v5081_v23  ;;  %5876 = vst.msk [vmem:[%s14487_s2 + $0xf78] sm:$0xff] %vm5380_vm5, %v5346_v24  ;;  %v3363_v27 = vadd.f32 %v13529_v53, %v3362_v25  ;;  %v7681_v28 = vpop.f32.mrb[207].mxu0  ;;  %v4688_v29 = vadd.f32 %v13529_v53, %v4687_v26  ;;  %v8476_v30 = vpop.f32.mrb[207].mxu1 }
 0x47d   :  { %v5082_v22 = vmax.f32 %v3363_v27, 0.0  ;;  %v5347_v31 = vmax.f32 %v4688_v29, 0.0 }
 0x47e   :  { %v3367_v33 = vpop.f32.mrb[208].mxu0  ;;  %v4692_v34 = vpop.f32.mrb[208].mxu1 }
 0x47f   :  { %5612 = vst.msk [vmem:[%s14487_s2 + $0x738] sm:$0xff] %vm5380_vm5, %v5082_v22  ;;  %5877 = vst.msk [vmem:[%s14487_s2 + $0xf80] sm:$0xff] %vm5380_vm5, %v5347_v31  ;;  %v3368_v53 = vadd.f32 %v14158_v35, %v3367_v33  ;;  %v7684_v36 = vpop.f32.mrb[209].mxu0  ;;  %v4693_v37 = vadd.f32 %v14158_v35, %v4692_v34  ;;  %v8479_v38 = vpop.f32.mrb[209].mxu1 }
 0x481   :  { %v5083_v39 = vmax.f32 %v3368_v53, 0.0  ;;  %v5348_v40 = vmax.f32 %v4693_v37, 0.0 }
 0x482   :  { %v3372_v32 = vpop.f32.mrb[210].mxu0  ;;  %v4697_v41 = vpop.f32.mrb[210].mxu1 }
 0x483   :  { %5613 = vst.msk [vmem:[%s14487_s2 + $0x740] sm:$0xff] %vm5380_vm5, %v5083_v39  ;;  %5878 = vst.msk [vmem:[%s14487_s2 + $0xf88] sm:$0xff] %vm5380_vm5, %v5348_v40  ;;  %v3373_v43 = vadd.f32 %v14158_v35, %v3372_v32  ;;  %v7687_v44 = vpop.f32.mrb[211].mxu0  ;;  %v4698_v45 = vadd.f32 %v14158_v35, %v4697_v41  ;;  %v8482_v46 = vpop.f32.mrb[211].mxu1 }
 0x485   :  { %v5084_v47 = vmax.f32 %v3373_v43, 0.0  ;;  %v5349_v48 = vmax.f32 %v4698_v45, 0.0 }
 0x486   :  { %v3377_v49 = vpop.f32.mrb[212].mxu0  ;;  %v4702_v50 = vpop.f32.mrb[212].mxu1 }
 0x487   :  { %5614 = vst.msk [vmem:[%s14487_s2 + $0x748] sm:$0xff] %vm5380_vm5, %v5084_v47  ;;  %5879 = vst.msk [vmem:[%s14487_s2 + $0xf90] sm:$0xff] %vm5380_vm5, %v5349_v48  ;;  %v3378_v42 = vadd.f32 %v14158_v35, %v3377_v49  ;;  %v7690_v52 = vpop.f32.mrb[213].mxu0  ;;  %v4703_v54 = vadd.f32 %v14158_v35, %v4702_v50  ;;  %v8485_v55 = vpop.f32.mrb[213].mxu1 }
 0x489   :  { %v5085_v56 = vmax.f32 %v3378_v42, 0.0  ;;  %v5350_v6 = vmax.f32 %v4703_v54, 0.0 }
 0x48a   :  { %v3382_v57 = vpop.f32.mrb[214].mxu0  ;;  %v4707_v58 = vpop.f32.mrb[214].mxu1 }
 0x48b   :  { %5615 = vst.msk [vmem:[%s14487_s2 + $0x750] sm:$0xff] %vm5380_vm5, %v5085_v56  ;;  %5880 = vst.msk [vmem:[%s14487_s2 + $0xf98] sm:$0xff] %vm5380_vm5, %v5350_v6  ;;  %v3383_v59 = vadd.f32 %v14158_v35, %v3382_v57  ;;  %v7693_v60 = vpop.f32.mrb[215].mxu0  ;;  %v4708_v61 = vadd.f32 %v14158_v35, %v4707_v58  ;;  %v8488_v62 = vpop.f32.mrb[215].mxu1 }
 0x48d   :  { %v5086_v63 = vmax.f32 %v3383_v59, 0.0  ;;  %v5351_v51 = vmax.f32 %v4708_v61, 0.0 }
 0x48e   :  { %v3387_v0 = vpop.f32.mrb[216].mxu0  ;;  %v4712_v2 = vpop.f32.mrb[216].mxu1 }
 0x48f   :  { %5616 = vst.msk [vmem:[%s14487_s2 + $0x758] sm:$0xff] %vm5380_vm5, %v5086_v63  ;;  %5881 = vst.msk [vmem:[%s14487_s2 + $0xfa0] sm:$0xff] %vm5380_vm5, %v5351_v51  ;;  %v3388_v3 = vadd.f32 %v14158_v35, %v3387_v0  ;;  %v7696_v4 = vpop.f32.mrb[217].mxu0  ;;  %v4713_v5 = vadd.f32 %v14158_v35, %v4712_v2  ;;  %v8491_v7 = vpop.f32.mrb[217].mxu1 }
 0x491   :  { %v5087_v8 = vmax.f32 %v3388_v3, 0.0  ;;  %v5352_v9 = vmax.f32 %v4713_v5, 0.0 }
 0x492   :  { %v3392_v10 = vpop.f32.mrb[218].mxu0  ;;  %v4717_v1 = vpop.f32.mrb[218].mxu1 }
 0x493   :  { %5617 = vst.msk [vmem:[%s14487_s2 + $0x760] sm:$0xff] %vm5380_vm5, %v5087_v8  ;;  %5882 = vst.msk [vmem:[%s14487_s2 + $0xfa8] sm:$0xff] %vm5380_vm5, %v5352_v9  ;;  %v3393_v11 = vadd.f32 %v14158_v35, %v3392_v10  ;;  %v7699_v13 = vpop.f32.mrb[219].mxu0  ;;  %v4718_v14 = vadd.f32 %v14158_v35, %v4717_v1  ;;  %v8494_v15 = vpop.f32.mrb[219].mxu1 }
 0x495   :  { %v5088_v16 = vmax.f32 %v3393_v11, 0.0  ;;  %v5353_v17 = vmax.f32 %v4718_v14, 0.0 }
 0x496   :  { %v3397_v18 = vpop.f32.mrb[220].mxu0  ;;  %v4722_v19 = vpop.f32.mrb[220].mxu1 }
 0x497   :  { %5618 = vst.msk [vmem:[%s14487_s2 + $0x768] sm:$0xff] %vm5380_vm5, %v5088_v16  ;;  %5883 = vst.msk [vmem:[%s14487_s2 + $0xfb0] sm:$0xff] %vm5380_vm5, %v5353_v17  ;;  %v3398_v20 = vadd.f32 %v14158_v35, %v3397_v18  ;;  %v7702_v12 = vpop.f32.mrb[221].mxu0  ;;  %v4723_v21 = vadd.f32 %v14158_v35, %v4722_v19  ;;  %v8497_v23 = vpop.f32.mrb[221].mxu1 }
 0x499   :  { %v5089_v24 = vmax.f32 %v3398_v20, 0.0  ;;  %v5354_v25 = vmax.f32 %v4723_v21, 0.0 }
 0x49a   :  { %v3402_v26 = vpop.f32.mrb[222].mxu0  ;;  %v4727_v27 = vpop.f32.mrb[222].mxu1 }
 0x49b   :  { %5619 = vst.msk [vmem:[%s14487_s2 + $0x770] sm:$0xff] %vm5380_vm5, %v5089_v24  ;;  %5884 = vst.msk [vmem:[%s14487_s2 + $0xfb8] sm:$0xff] %vm5380_vm5, %v5354_v25  ;;  %v3403_v28 = vadd.f32 %v14158_v35, %v3402_v26  ;;  %v7705_v29 = vpop.f32.mrb[223].mxu0  ;;  %v4728_v30 = vadd.f32 %v14158_v35, %v4727_v27  ;;  %v8500_v22 = vpop.f32.mrb[223].mxu1 }
 0x49d   :  { %v5090_v31 = vmax.f32 %v3403_v28, 0.0  ;;  %v5355_v33 = vmax.f32 %v4728_v30, 0.0 }
 0x49e   :  { %v3407_v34 = vpop.f32.mrb[224].mxu0  ;;  %v4732_v53 = vpop.f32.mrb[224].mxu1 }
 0x49f   :  { %5620 = vst.msk [vmem:[%s14487_s2 + $0x778] sm:$0xff] %vm5380_vm5, %v5090_v31  ;;  %5885 = vst.msk [vmem:[%s14487_s2 + $0xfc0] sm:$0xff] %vm5380_vm5, %v5355_v33  ;;  %v3408_v36 = vadd.f32 %v14158_v35, %v3407_v34  ;;  %v7708_v37 = vpop.f32.mrb[225].mxu0  ;;  %v4733_v38 = vadd.f32 %v14158_v35, %v4732_v53  ;;  %v8503_v39 = vpop.f32.mrb[225].mxu1 }
 0x4a1   :  { %v5091_v40 = vmax.f32 %v3408_v36, 0.0  ;;  %v5356_v32 = vmax.f32 %v4733_v38, 0.0 }
 0x4a2   :  { %v3412_v41 = vpop.f32.mrb[226].mxu0  ;;  %v4737_v43 = vpop.f32.mrb[226].mxu1 }
 0x4a3   :  { %5621 = vst.msk [vmem:[%s14487_s2 + $0x780] sm:$0xff] %vm5380_vm5, %v5091_v40  ;;  %5886 = vst.msk [vmem:[%s14487_s2 + $0xfc8] sm:$0xff] %vm5380_vm5, %v5356_v32  ;;  %v3413_v44 = vadd.f32 %v14158_v35, %v3412_v41  ;;  %v7711_v45 = vpop.f32.mrb[227].mxu0  ;;  %v4738_v46 = vadd.f32 %v14158_v35, %v4737_v43  ;;  %v8506_v47 = vpop.f32.mrb[227].mxu1 }
 0x4a5   :  { %v5092_v48 = vmax.f32 %v3413_v44, 0.0  ;;  %v5357_v49 = vmax.f32 %v4738_v46, 0.0 }
 0x4a6   :  { %v3417_v50 = vpop.f32.mrb[228].mxu0  ;;  %v4742_v42 = vpop.f32.mrb[228].mxu1 }
 0x4a7   :  { %5622 = vst.msk [vmem:[%s14487_s2 + $0x788] sm:$0xff] %vm5380_vm5, %v5092_v48  ;;  %5887 = vst.msk [vmem:[%s14487_s2 + $0xfd0] sm:$0xff] %vm5380_vm5, %v5357_v49  ;;  %v3418_v52 = vadd.f32 %v14158_v35, %v3417_v50  ;;  %v7714_v54 = vpop.f32.mrb[229].mxu0  ;;  %v4743_v55 = vadd.f32 %v14158_v35, %v4742_v42  ;;  %v8509_v56 = vpop.f32.mrb[229].mxu1 }
 0x4a9   :  { %v5093_v6 = vmax.f32 %v3418_v52, 0.0  ;;  %v5358_v57 = vmax.f32 %v4743_v55, 0.0 }
 0x4aa   :  { %v3422_v58 = vpop.f32.mrb[230].mxu0  ;;  %v4747_v59 = vpop.f32.mrb[230].mxu1 }
 0x4ab   :  { %5623 = vst.msk [vmem:[%s14487_s2 + $0x790] sm:$0xff] %vm5380_vm5, %v5093_v6  ;;  %5888 = vst.msk [vmem:[%s14487_s2 + $0xfd8] sm:$0xff] %vm5380_vm5, %v5358_v57  ;;  %v3423_v60 = vadd.f32 %v14158_v35, %v3422_v58  ;;  %v7717_v61 = vpop.f32.mrb[231].mxu0  ;;  %v4748_v62 = vadd.f32 %v14158_v35, %v4747_v59  ;;  %v8512_v63 = vpop.f32.mrb[231].mxu1 }
 0x4ad   :  { %v5094_v51 = vmax.f32 %v3423_v60, 0.0  ;;  %v5359_v0 = vmax.f32 %v4748_v62, 0.0 }
 0x4ae   :  { %v3427_v2 = vpop.f32.mrb[232].mxu0  ;;  %v4752_v3 = vpop.f32.mrb[232].mxu1 }
 0x4af   :  { %5624 = vst.msk [vmem:[%s14487_s2 + $0x798] sm:$0xff] %vm5380_vm5, %v5094_v51  ;;  %5889 = vst.msk [vmem:[%s14487_s2 + $0xfe0] sm:$0xff] %vm5380_vm5, %v5359_v0  ;;  %v3428_v4 = vadd.f32 %v14158_v35, %v3427_v2  ;;  %v7720_v5 = vpop.f32.mrb[233].mxu0  ;;  %v4753_v7 = vadd.f32 %v14158_v35, %v4752_v3  ;;  %v8515_v8 = vpop.f32.mrb[233].mxu1 }
 0x4b1   :  { %v5095_v9 = vmax.f32 %v3428_v4, 0.0  ;;  %v5360_v10 = vmax.f32 %v4753_v7, 0.0 }
 0x4b2   :  { %v3432_v1 = vpop.f32.mrb[234].mxu0  ;;  %v4757_v11 = vpop.f32.mrb[234].mxu1 }
 0x4b3   :  { %5625 = vst.msk [vmem:[%s14487_s2 + $0x7a0] sm:$0xff] %vm5380_vm5, %v5095_v9  ;;  %5890 = vst.msk [vmem:[%s14487_s2 + $0xfe8] sm:$0xff] %vm5380_vm5, %v5360_v10  ;;  %v3433_v13 = vadd.f32 %v14158_v35, %v3432_v1  ;;  %v7723_v14 = vpop.f32.mrb[235].mxu0  ;;  %v4758_v15 = vadd.f32 %v14158_v35, %v4757_v11  ;;  %v8518_v16 = vpop.f32.mrb[235].mxu1 }
 0x4b5   :  { %v5096_v17 = vmax.f32 %v3433_v13, 0.0  ;;  %v5361_v18 = vmax.f32 %v4758_v15, 0.0 }
 0x4b6   :  { %v3437_v19 = vpop.f32.mrb[236].mxu0  ;;  %v4762_v20 = vpop.f32.mrb[236].mxu1 }
 0x4b7   :  { %5626 = vst.msk [vmem:[%s14487_s2 + $0x7a8] sm:$0xff] %vm5380_vm5, %v5096_v17  ;;  %5891 = vst.msk [vmem:[%s14487_s2 + $0xff0] sm:$0xff] %vm5380_vm5, %v5361_v18  ;;  %v3438_v12 = vadd.f32 %v14158_v35, %v3437_v19  ;;  %v7726_v21 = vpop.f32.mrb[237].mxu0  ;;  %v4763_v23 = vadd.f32 %v14158_v35, %v4762_v20  ;;  %v8521_v24 = vpop.f32.mrb[237].mxu1 }
 0x4b9   :  { %v5097_v25 = vmax.f32 %v3438_v12, 0.0  ;;  %v5362_v26 = vmax.f32 %v4763_v23, 0.0 }
 0x4ba   :  { %v3442_v27 = vpop.f32.mrb[238].mxu0  ;;  %v4767_v28 = vpop.f32.mrb[238].mxu1 }
 0x4bb   :  { %5627 = vst.msk [vmem:[%s14487_s2 + $0x7b0] sm:$0xff] %vm5380_vm5, %v5097_v25  ;;  %5892 = vst.msk [vmem:[%s14487_s2 + $0xff8] sm:$0xff] %vm5380_vm5, %v5362_v26  ;;  %v3443_v29 = vadd.f32 %v14158_v35, %v3442_v27  ;;  %v7729_v30 = vpop.f32.mrb[239].mxu0  ;;  %v4768_v22 = vadd.f32 %v14158_v35, %v4767_v28  ;;  %v8524_v31 = vpop.f32.mrb[239].mxu1 }
 0x4bd   :  { %v5098_v33 = vmax.f32 %v3443_v29, 0.0  ;;  %v5363_v34 = vmax.f32 %v4768_v22, 0.0 }
 0x4be   :  { %v3447_v53 = vpop.f32.mrb[240].mxu0  ;;  %v4772_v36 = vpop.f32.mrb[240].mxu1 }
 0x4bf   :  { %5628 = vst.msk [vmem:[%s14487_s2 + $0x7b8] sm:$0xff] %vm5380_vm5, %v5098_v33  ;;  %5893 = vst.msk [vmem:[%s14487_s2 + $0x1000] sm:$0xff] %vm5380_vm5, %v5363_v34  ;;  %v3448_v37 = vadd.f32 %v14158_v35, %v3447_v53  ;;  %v7732_v38 = vpop.f32.mrb[241].mxu0  ;;  %v4773_v39 = vadd.f32 %v14158_v35, %v4772_v36  ;;  %v8527_v40 = vpop.f32.mrb[241].mxu1 }
 0x4c1   :  { %v5099_v32 = vmax.f32 %v3448_v37, 0.0  ;;  %v5364_v41 = vmax.f32 %v4773_v39, 0.0 }
 0x4c2   :  { %v3452_v43 = vpop.f32.mrb[242].mxu0  ;;  %v4777_v44 = vpop.f32.mrb[242].mxu1 }
 0x4c3   :  { %5629 = vst.msk [vmem:[%s14487_s2 + $0x7c0] sm:$0xff] %vm5380_vm5, %v5099_v32  ;;  %5894 = vst.msk [vmem:[%s14487_s2 + $0x1008] sm:$0xff] %vm5380_vm5, %v5364_v41  ;;  %v3453_v45 = vadd.f32 %v14158_v35, %v3452_v43  ;;  %v7735_v46 = vpop.f32.mrb[243].mxu0  ;;  %v4778_v47 = vadd.f32 %v14158_v35, %v4777_v44  ;;  %v8530_v48 = vpop.f32.mrb[243].mxu1 }
 0x4c5   :  { %v5100_v49 = vmax.f32 %v3453_v45, 0.0  ;;  %v5365_v50 = vmax.f32 %v4778_v47, 0.0 }
 0x4c6   :  { %v3457_v42 = vpop.f32.mrb[244].mxu0  ;;  %v4782_v52 = vpop.f32.mrb[244].mxu1 }
 0x4c7   :  { %5630 = vst.msk [vmem:[%s14487_s2 + $0x7c8] sm:$0xff] %vm5380_vm5, %v5100_v49  ;;  %5895 = vst.msk [vmem:[%s14487_s2 + $0x1010] sm:$0xff] %vm5380_vm5, %v5365_v50  ;;  %v3458_v54 = vadd.f32 %v14158_v35, %v3457_v42  ;;  %v7738_v55 = vpop.f32.mrb[245].mxu0  ;;  %v4783_v56 = vadd.f32 %v14158_v35, %v4782_v52  ;;  %v8533_v6 = vpop.f32.mrb[245].mxu1 }
 0x4c9   :  { %v5101_v57 = vmax.f32 %v3458_v54, 0.0  ;;  %v5366_v58 = vmax.f32 %v4783_v56, 0.0 }
 0x4ca   :  { %v3462_v59 = vpop.f32.mrb[246].mxu0  ;;  %v4787_v60 = vpop.f32.mrb[246].mxu1 }
 0x4cb   :  { %5631 = vst.msk [vmem:[%s14487_s2 + $0x7d0] sm:$0xff] %vm5380_vm5, %v5101_v57  ;;  %5896 = vst.msk [vmem:[%s14487_s2 + $0x1018] sm:$0xff] %vm5380_vm5, %v5366_v58  ;;  %v3463_v61 = vadd.f32 %v14158_v35, %v3462_v59  ;;  %v7741_v62 = vpop.f32.mrb[247].mxu0  ;;  %v4788_v63 = vadd.f32 %v14158_v35, %v4787_v60  ;;  %v8536_v51 = vpop.f32.mrb[247].mxu1 }
 0x4cd   :  { %v5102_v0 = vmax.f32 %v3463_v61, 0.0  ;;  %v5367_v2 = vmax.f32 %v4788_v63, 0.0 }
 0x4ce   :  { %v3467_v3 = vpop.f32.mrb[248].mxu0  ;;  %v4792_v4 = vpop.f32.mrb[248].mxu1 }
 0x4cf   :  { %5632 = vst.msk [vmem:[%s14487_s2 + $0x7d8] sm:$0xff] %vm5380_vm5, %v5102_v0  ;;  %5897 = vst.msk [vmem:[%s14487_s2 + $0x1020] sm:$0xff] %vm5380_vm5, %v5367_v2  ;;  %v3468_v5 = vadd.f32 %v14158_v35, %v3467_v3  ;;  %v7744_v7 = vpop.f32.mrb[249].mxu0  ;;  %v4793_v8 = vadd.f32 %v14158_v35, %v4792_v4  ;;  %v8539_v9 = vpop.f32.mrb[249].mxu1 }
 0x4d1   :  { %v5103_v10 = vmax.f32 %v3468_v5, 0.0  ;;  %v5368_v1 = vmax.f32 %v4793_v8, 0.0 }
 0x4d2   :  { %v3472_v11 = vpop.f32.mrb[250].mxu0  ;;  %v4797_v13 = vpop.f32.mrb[250].mxu1 }
 0x4d3   :  { %5633 = vst.msk [vmem:[%s14487_s2 + $0x7e0] sm:$0xff] %vm5380_vm5, %v5103_v10  ;;  %5898 = vst.msk [vmem:[%s14487_s2 + $0x1028] sm:$0xff] %vm5380_vm5, %v5368_v1  ;;  %v3473_v14 = vadd.f32 %v14158_v35, %v3472_v11  ;;  %v7747_v15 = vpop.f32.mrb[251].mxu0  ;;  %v4798_v16 = vadd.f32 %v14158_v35, %v4797_v13  ;;  %v8542_v17 = vpop.f32.mrb[251].mxu1 }
 0x4d5   :  { %v5104_v18 = vmax.f32 %v3473_v14, 0.0  ;;  %v5369_v19 = vmax.f32 %v4798_v16, 0.0 }
 0x4d6   :  { %v3477_v20 = vpop.f32.mrb[252].mxu0  ;;  %v4802_v12 = vpop.f32.mrb[252].mxu1 }
 0x4d7   :  { %5634 = vst.msk [vmem:[%s14487_s2 + $0x7e8] sm:$0xff] %vm5380_vm5, %v5104_v18  ;;  %5899 = vst.msk [vmem:[%s14487_s2 + $0x1030] sm:$0xff] %vm5380_vm5, %v5369_v19  ;;  %v3478_v21 = vadd.f32 %v14158_v35, %v3477_v20  ;;  %v7750_v23 = vpop.f32.mrb[253].mxu0  ;;  %v4803_v24 = vadd.f32 %v14158_v35, %v4802_v12  ;;  %v8545_v25 = vpop.f32.mrb[253].mxu1 }
 0x4d9   :  { %v5105_v26 = vmax.f32 %v3478_v21, 0.0  ;;  %v5370_v27 = vmax.f32 %v4803_v24, 0.0 }
 0x4da   :  { %v3482_v28 = vpop.f32.mrb[254].mxu0  ;;  %v4807_v29 = vpop.f32.mrb[254].mxu1 }
 0x4db   :  { %5635 = vst.msk [vmem:[%s14487_s2 + $0x7f0] sm:$0xff] %vm5380_vm5, %v5105_v26  ;;  %5900 = vst.msk [vmem:[%s14487_s2 + $0x1038] sm:$0xff] %vm5380_vm5, %v5370_v27  ;;  %v3483_v30 = vadd.f32 %v14158_v35, %v3482_v28  ;;  %v7753_v22 = vpop.f32.mrb[255].mxu0  ;;  %v4808_v31 = vadd.f32 %v14158_v35, %v4807_v29  ;;  %v8548_v33 = vpop.f32.mrb[255].mxu1 }
 0x4dd   :  { %v5106_v34 = vmax.f32 %v3483_v30, 0.0  ;;  %v5371_v53 = vmax.f32 %v4808_v31, 0.0 }
 0x4de   :  { %v3487_v36 = vpop.f32.mrb[0].mxu0  ;;  %v4812_v37 = vpop.f32.mrb[0].mxu1 }
 0x4df   :  { %5636 = vst.msk [vmem:[%s14487_s2 + $0x7f8] sm:$0xff] %vm5380_vm5, %v5106_v34  ;;  %5901 = vst.msk [vmem:[%s14487_s2 + $0x1040] sm:$0xff] %vm5380_vm5, %v5371_v53  ;;  %v3488_v38 = vadd.f32 %v14158_v35, %v3487_v36  ;;  %v7756_v39 = vpop.f32.mrb[1].mxu0  ;;  %v4813_v40 = vadd.f32 %v14158_v35, %v4812_v37  ;;  %v8551_v32 = vpop.f32.mrb[1].mxu1 }
 0x4e1   :  { %v5107_v41 = vmax.f32 %v3488_v38, 0.0  ;;  %v5372_v43 = vmax.f32 %v4813_v40, 0.0 }
 0x4e2   :  { %v3492_v44 = vpop.f32.mrb[2].mxu0  ;;  %v4817_v45 = vpop.f32.mrb[2].mxu1 }
 0x4e3   :  { %5637 = vst.msk [vmem:[%s14487_s2 + $0x800] sm:$0xff] %vm5380_vm5, %v5107_v41  ;;  %5902 = vst.msk [vmem:[%s14487_s2 + $0x1048] sm:$0xff] %vm5380_vm5, %v5372_v43  ;;  %v3493_v46 = vadd.f32 %v14158_v35, %v3492_v44  ;;  %v7759_v47 = vpop.f32.mrb[3].mxu0  ;;  %v4818_v48 = vadd.f32 %v14158_v35, %v4817_v45  ;;  %v8554_v49 = vpop.f32.mrb[3].mxu1 }
 0x4e5   :  { %v5108_v50 = vmax.f32 %v3493_v46, 0.0  ;;  %v5373_v42 = vmax.f32 %v4818_v48, 0.0 }
 0x4e6   :  { %v3497_v52 = vpop.f32.mrb[4].mxu0  ;;  %v4822_v54 = vpop.f32.mrb[4].mxu1 }
 0x4e7   :  { %5638 = vst.msk [vmem:[%s14487_s2 + $0x808] sm:$0xff] %vm5380_vm5, %v5108_v50  ;;  %5903 = vst.msk [vmem:[%s14487_s2 + $0x1050] sm:$0xff] %vm5380_vm5, %v5373_v42  ;;  %v3498_v55 = vadd.f32 %v14158_v35, %v3497_v52  ;;  %v7762_v56 = vpop.f32.mrb[5].mxu0  ;;  %v4823_v6 = vadd.f32 %v14158_v35, %v4822_v54  ;;  %v8557_v57 = vpop.f32.mrb[5].mxu1 }
 0x4e9   :  { %v5109_v58 = vmax.f32 %v3498_v55, 0.0  ;;  %v5374_v59 = vmax.f32 %v4823_v6, 0.0 }
 0x4ea   :  { %v3502_v60 = vpop.f32.mrb[6].mxu0  ;;  %v4827_v61 = vpop.f32.mrb[6].mxu1 }
 0x4eb   :  { %5639 = vst.msk [vmem:[%s14487_s2 + $0x810] sm:$0xff] %vm5380_vm5, %v5109_v58  ;;  %5904 = vst.msk [vmem:[%s14487_s2 + $0x1058] sm:$0xff] %vm5380_vm5, %v5374_v59  ;;  %v3503_v62 = vadd.f32 %v14158_v35, %v3502_v60  ;;  %v7765_v63 = vpop.f32.mrb[7].mxu0  ;;  %v4828_v51 = vadd.f32 %v14158_v35, %v4827_v61  ;;  %v8560_v0 = vpop.f32.mrb[7].mxu1 }
 0x4ed   :  { %v5110_v2 = vmax.f32 %v3503_v62, 0.0  ;;  %v5375_v3 = vmax.f32 %v4828_v51, 0.0 }
 0x4ee   :  { %v3507_v4 = vpop.f32.mrb[8].mxu0  ;;  %v4832_v5 = vpop.f32.mrb[8].mxu1 }
 0x4ef   :  { %5640 = vst.msk [vmem:[%s14487_s2 + $0x818] sm:$0xff] %vm5380_vm5, %v5110_v2  ;;  %5905 = vst.msk [vmem:[%s14487_s2 + $0x1060] sm:$0xff] %vm5380_vm5, %v5375_v3  ;;  %v3508_v7 = vadd.f32 %v14158_v35, %v3507_v4  ;;  %v7768_v8 = vpop.f32.mrb[9].mxu0  ;;  %v4833_v9 = vadd.f32 %v14158_v35, %v4832_v5  ;;  %v8563_v10 = vpop.f32.mrb[9].mxu1 }
 0x4f1   :  { %v5111_v1 = vmax.f32 %v3508_v7, 0.0  ;;  %v5376_v11 = vmax.f32 %v4833_v9, 0.0 }
 0x4f2   :  { %v3512_v13 = vpop.f32.mrb[10].mxu0  ;;  %v4837_v14 = vpop.f32.mrb[10].mxu1 }
 0x4f3   :  { %5641 = vst.msk [vmem:[%s14487_s2 + $0x820] sm:$0xff] %vm5380_vm5, %v5111_v1  ;;  %5906 = vst.msk [vmem:[%s14487_s2 + $0x1068] sm:$0xff] %vm5380_vm5, %v5376_v11  ;;  %v3513_v15 = vadd.f32 %v14158_v35, %v3512_v13  ;;  %v7771_v16 = vpop.f32.mrb[11].mxu0  ;;  %v4838_v17 = vadd.f32 %v14158_v35, %v4837_v14  ;;  %v8566_v18 = vpop.f32.mrb[11].mxu1 }
 0x4f5   :  { %v5112_v19 = vmax.f32 %v3513_v15, 0.0  ;;  %v5377_v20 = vmax.f32 %v4838_v17, 0.0 }
 0x4f6   :  { %v3517_v12 = vpop.f32.mrb[12].mxu0  ;;  %v4842_v21 = vpop.f32.mrb[12].mxu1 }
 0x4f7   :  { %5642 = vst.msk [vmem:[%s14487_s2 + $0x828] sm:$0xff] %vm5380_vm5, %v5112_v19  ;;  %5907 = vst.msk [vmem:[%s14487_s2 + $0x1070] sm:$0xff] %vm5380_vm5, %v5377_v20  ;;  %v3518_v23 = vadd.f32 %v14158_v35, %v3517_v12  ;;  %v7774_v24 = vpop.f32.mrb[13].mxu0  ;;  %v4843_v25 = vadd.f32 %v14158_v35, %v4842_v21  ;;  %v8569_v26 = vpop.f32.mrb[13].mxu1 }
 0x4f9   :  { %v5113_v27 = vmax.f32 %v3518_v23, 0.0  ;;  %v5378_v28 = vmax.f32 %v4843_v25, 0.0 }
 0x4fa   :  { %v3522_v29 = vpop.f32.mrb[14].mxu0  ;;  %v4847_v30 = vpop.f32.mrb[14].mxu1 }
 0x4fb   :  { %5643 = vst.msk [vmem:[%s14487_s2 + $0x830] sm:$0xff] %vm5380_vm5, %v5113_v27  ;;  %5908 = vst.msk [vmem:[%s14487_s2 + $0x1078] sm:$0xff] %vm5380_vm5, %v5378_v28  ;;  %v3523_v22 = vadd.f32 %v14158_v35, %v3522_v29  ;;  %v7777_v31 = vpop.f32.mrb[15].mxu0  ;;  %v4848_v33 = vadd.f32 %v14158_v35, %v4847_v30  ;;  %v8572_v34 = vpop.f32.mrb[15].mxu1 }
 0x4fd   :  { %v5114_v53 = vmax.f32 %v3523_v22, 0.0  ;;  %v5379_v36 = vmax.f32 %v4848_v33, 0.0 }
 0x4fe   :  { %v3527_v37 = vpop.f32.mrb[16].mxu0 }
 0x4ff   :  { %5644 = vst.msk [vmem:[%s14487_s2 + $0x838] sm:$0xff] %vm5380_vm5, %v5114_v53  ;;  %5909 = vst.msk [vmem:[%s14487_s2 + $0x1080] sm:$0xff] %vm5380_vm5, %v5379_v36  ;;  %v3528_v38 = vadd.f32 %v14158_v35, %v3527_v37  ;;  %v7780_v39 = vpop.f32.mrb[17].mxu0 }
 0x501   :  { %v5115_v40 = vmax.f32 %v3528_v38, 0.0 }
 0x503   :  { %5645 = vst.msk [vmem:[%s14487_s2 + $0x840] sm:$0xff] %vm5380_vm5, %v5115_v40 }

// kernel: encoder_cnn_forward.5
= control target key start
LH: loop header
LB: loop body
LE: loop exit
PB: predicated region body
PF: predicated region fallthrough
CT: control target
= control target key end

     0   :  { %v2086_v0 = vmov 0.0|0.0   ;;  %vm2087_vm0 = vmmov 0   ;;  %v2088_v6 = vmov 0.0   ;;  %vm146_vm1 = vcmask 588800   ;;  %s3474_s1 = inlined_call_operand.vmem [shape: f32[73,16], index: 1, kind: input, shape index: {}]   ;;  %s3475_s0 = inlined_call_operand.vmem [shape: f32[968,72], index: 0, kind: input, shape index: {}]   ;;  %s3476_s2 = inlined_call_operand.vmem [shape: f32[968,16], index: 2, kind: output, shape index: {}]  }
   0x1   :  { %2060 = vmatprep.subr.bf16.mxu0 %v2086_v0  ;;  %v132_v1 = vld [vmem:[%s3474_s1] sm:$0xff]  ;;  %v133_v2 = vld [vmem:[%s3474_s1 + $0x8] sm:$0xff]  ;;  %2072 = vmatprep.subr.bf16.mxu1 %v2086_v0  ;;  %v134_v3 = vld [vmem:[%s3474_s1 + $0x10] sm:$0xff]  ;;  %vm1301_vm2 = vcmask 130048  }
   0x2   :  { %v2061_v4 = vpack.c.bf16 %v133_v2, %v132_v1  ;;  %v135_v5 = vld [vmem:[%s3474_s1 + $0x18] sm:$0xff]  ;;  %1697 = vmatprep.mubr.msk.f32.mxu0 %vm2087_vm0, %v2088_v6  ;;  %1880 = vmatprep.mubr.msk.f32.mxu1 %vm2087_vm0, %v2088_v6  ;;  %v136_v8 = vld [vmem:[%s3474_s1 + $0x20] sm:$0xff]  ;;  %v137_v9 = vld [vmem:[%s3474_s1 + $0x28] sm:$0xff] }
   0x3   :  { %v2064_v7 = vpack.c.bf16 %v135_v5, %v134_v3  ;;  %v2067_v10 = vpack.c.bf16 %v137_v9, %v136_v8  ;;  %v138_v11 = vld [vmem:[%s3474_s1 + $0x30] sm:$0xff]  ;;  %v139_v12 = vld [vmem:[%s3474_s1 + $0x38] sm:$0xff]  ;;  %v140_v14 = vld [vmem:[%s3474_s1 + $0x40] sm:$0xff] }
   0x4   :  { %2062 = vmatpush3.bf16.msra.mxu0 %v2061_v4  ;;  %2077 = vmatpush3.bf16.msra.mxu1 %v2061_v4  ;;  %v2070_v13 = vpack.c.bf16 %v139_v12, %v138_v11  ;;  %v11_v15 = vld [vmem:[%s3475_s0] sm:$0xff]  ;;  %v72_v16 = vld [vmem:[%s3475_s0 + $0x1e8] sm:$0xff]  ;;  %v73_v18 = vld [vmem:[%s3475_s0 + $0x1f0] sm:$0xff] }
   0x5   :  { %2063 = vmatprep.subr.bf16.mxu0 %v2086_v0  ;;  %2073 = vmatprep.subr.bf16.mxu1 %v2086_v0  ;;  %v12_v17 = vld [vmem:[%s3475_s0 + $0x8] sm:$0xff]  ;;  %v13_v19 = vld [vmem:[%s3475_s0 + $0x10] sm:$0xff]  ;;  %v74_v20 = vld [vmem:[%s3475_s0 + $0x1f8] sm:$0xff] }
   0x6   :  { %v14_v21 = vld [vmem:[%s3475_s0 + $0x18] sm:$0xff]  ;;  %v75_v22 = vld [vmem:[%s3475_s0 + $0x200] sm:$0xff]  ;;  %v76_v24 = vld [vmem:[%s3475_s0 + $0x208] sm:$0xff] }
   0x7   :  { %v15_v23 = vld [vmem:[%s3475_s0 + $0x20] sm:$0xff]  ;;  %v16_v25 = vld [vmem:[%s3475_s0 + $0x28] sm:$0xff]  ;;  %v77_v26 = vld [vmem:[%s3475_s0 + $0x210] sm:$0xff] }
   0x8   :  { %2065 = vmatpush3.bf16.msra.mxu0 %v2064_v7  ;;  %2078 = vmatpush3.bf16.msra.mxu1 %v2064_v7  ;;  %v17_v27 = vld [vmem:[%s3475_s0 + $0x30] sm:$0xff]  ;;  %v78_v28 = vld [vmem:[%s3475_s0 + $0x218] sm:$0xff]  ;;  %v79_v30 = vld [vmem:[%s3475_s0 + $0x220] sm:$0xff] }
   0x9   :  { %2066 = vmatprep.subr.bf16.mxu0 %v2086_v0  ;;  %2074 = vmatprep.subr.bf16.mxu1 %v2086_v0  ;;  %v18_v29 = vld [vmem:[%s3475_s0 + $0x38] sm:$0xff]  ;;  %v19_v31 = vld [vmem:[%s3475_s0 + $0x40] sm:$0xff]  ;;  %v80_v32 = vld [vmem:[%s3475_s0 + $0x228] sm:$0xff] }
   0xa   :  { %v20_v33 = vld [vmem:[%s3475_s0 + $0x48] sm:$0xff]  ;;  %v81_v34 = vld [vmem:[%s3475_s0 + $0x230] sm:$0xff]  ;;  %v82_v36 = vld [vmem:[%s3475_s0 + $0x238] sm:$0xff] }
   0xb   :  { %v21_v35 = vld [vmem:[%s3475_s0 + $0x50] sm:$0xff]  ;;  %v22_v37 = vld [vmem:[%s3475_s0 + $0x58] sm:$0xff]  ;;  %v83_v38 = vld [vmem:[%s3475_s0 + $0x240] sm:$0xff] }
   0xc   :  { %2068 = vmatpush3.bf16.msra.mxu0 %v2067_v10  ;;  %2079 = vmatpush3.bf16.msra.mxu1 %v2067_v10  ;;  %v23_v39 = vld [vmem:[%s3475_s0 + $0x60] sm:$0xff]  ;;  %v84_v40 = vld [vmem:[%s3475_s0 + $0x248] sm:$0xff]  ;;  %v85_v42 = vld [vmem:[%s3475_s0 + $0x250] sm:$0xff] }
   0xd   :  { %2069 = vmatprep.subr.bf16.mxu0 %v2086_v0  ;;  %2075 = vmatprep.subr.bf16.mxu1 %v2086_v0  ;;  %v24_v41 = vld [vmem:[%s3475_s0 + $0x68] sm:$0xff]  ;;  %v25_v43 = vld [vmem:[%s3475_s0 + $0x70] sm:$0xff]  ;;  %v86_v44 = vld [vmem:[%s3475_s0 + $0x258] sm:$0xff] }
   0xe   :  { %v26_v45 = vld [vmem:[%s3475_s0 + $0x78] sm:$0xff]  ;;  %v87_v46 = vld [vmem:[%s3475_s0 + $0x260] sm:$0xff]  ;;  %v88_v48 = vld [vmem:[%s3475_s0 + $0x268] sm:$0xff] }
   0xf   :  { %v27_v47 = vld [vmem:[%s3475_s0 + $0x80] sm:$0xff]  ;;  %v28_v49 = vld [vmem:[%s3475_s0 + $0x88] sm:$0xff]  ;;  %v89_v50 = vld [vmem:[%s3475_s0 + $0x270] sm:$0xff] }
  0x10   :  { %2071 = vmatpush3.bf16.msra.mxu0 %v2070_v13  ;;  %2080 = vmatpush3.bf16.msra.mxu1 %v2070_v13  ;;  %v29_v51 = vld [vmem:[%s3475_s0 + $0x90] sm:$0xff]  ;;  %v90_v52 = vld [vmem:[%s3475_s0 + $0x278] sm:$0xff]  ;;  %v91_v54 = vld [vmem:[%s3475_s0 + $0x280] sm:$0xff] }
  0x11   :  { %1695 = vmatprep.subr.mxu0 %v2088_v6  ;;  %2076 = vmatprep.subr.mxu1 %v2088_v6  ;;  %v30_v53 = vld [vmem:[%s3475_s0 + $0x98] sm:$0xff]  ;;  %v31_v55 = vld [vmem:[%s3475_s0 + $0xa0] sm:$0xff]  ;;  %v92_v56 = vld [vmem:[%s3475_s0 + $0x288] sm:$0xff] }
  0x12   :  { %v32_v57 = vld [vmem:[%s3475_s0 + $0xa8] sm:$0xff]  ;;  %v93_v58 = vld [vmem:[%s3475_s0 + $0x290] sm:$0xff]  ;;  %v94_v60 = vld [vmem:[%s3475_s0 + $0x298] sm:$0xff] }
  0x13   :  { %v33_v59 = vld [vmem:[%s3475_s0 + $0xb0] sm:$0xff]  ;;  %v34_v61 = vld [vmem:[%s3475_s0 + $0xb8] sm:$0xff]  ;;  %v95_v62 = vld [vmem:[%s3475_s0 + $0x2a0] sm:$0xff] }
  0x14   :  { %1696 = vmatpush3.msra.mxu0 %v140_v14  ;;  %2081 = vmatpush3.msra.mxu1 %v140_v14  ;;  %v35_v63 = vld [vmem:[%s3475_s0 + $0xc0] sm:$0xff]  ;;  %v96_v0 = vld [vmem:[%s3475_s0 + $0x2a8] sm:$0xff]  ;;  %v97_v2 = vld [vmem:[%s3475_s0 + $0x2b0] sm:$0xff] }
  0x15   :  { %1698 = vmatmul.mubr.msk.f32.vlgmr.msra.gmra.mrb[0].mxu0 %vm146_vm1, %v11_v15  ;;  %1881 = vmatmul.mubr.msk.f32.vlgmr.msra.gmra.mrb[0].mxu1 %vm146_vm1, %v72_v16  ;;  %v36_v1 = vld [vmem:[%s3475_s0 + $0xc8] sm:$0xff]  ;;  %v37_v3 = vld [vmem:[%s3475_s0 + $0xd0] sm:$0xff]  ;;  %v98_v4 = vld [vmem:[%s3475_s0 + $0x2b8] sm:$0xff] }
  0x16   :  { %1700 = vmatprep.mubr.msk.f32.mxu0 %vm2087_vm0, %v2088_v6  ;;  %1883 = vmatprep.mubr.msk.f32.mxu1 %vm2087_vm0, %v2088_v6  ;;  %v38_v5 = vld [vmem:[%s3475_s0 + $0xd8] sm:$0xff]  ;;  %v99_v7 = vld [vmem:[%s3475_s0 + $0x2c0] sm:$0xff]  ;;  %v100_v9 = vld [vmem:[%s3475_s0 + $0x2c8] sm:$0xff] }
  0x17   :  { %v39_v8 = vld [vmem:[%s3475_s0 + $0xe0] sm:$0xff]  ;;  %v40_v10 = vld [vmem:[%s3475_s0 + $0xe8] sm:$0xff]  ;;  %v101_v11 = vld [vmem:[%s3475_s0 + $0x2d0] sm:$0xff] }
  0x18   :  { %v41_v12 = vld [vmem:[%s3475_s0 + $0xf0] sm:$0xff]  ;;  %v102_v13 = vld [vmem:[%s3475_s0 + $0x2d8] sm:$0xff]  ;;  %v103_v15 = vld [vmem:[%s3475_s0 + $0x2e0] sm:$0xff] }
  0x19   :  { %1701 = vmatmul.mubr.msk.f32.gmra.mrb[2].mxu0 %vm146_vm1, %v12_v17  ;;  %1884 = vmatmul.mubr.msk.f32.gmra.mrb[2].mxu1 %vm146_vm1, %v73_v18  ;;  %v42_v14 = vld [vmem:[%s3475_s0 + $0xf8] sm:$0xff]  ;;  %v43_v16 = vld [vmem:[%s3475_s0 + $0x100] sm:$0xff]  ;;  %v104_v17 = vld [vmem:[%s3475_s0 + $0x2e8] sm:$0xff] }
  0x1a   :  { %1703 = vmatprep.mubr.msk.f32.mxu0 %vm2087_vm0, %v2088_v6  ;;  %1886 = vmatprep.mubr.msk.f32.mxu1 %vm2087_vm0, %v2088_v6  ;;  %v44_v18 = vld [vmem:[%s3475_s0 + $0x108] sm:$0xff] }
  0x1d   :  { %1704 = vmatmul.mubr.msk.f32.gmra.mrb[4].mxu0 %vm146_vm1, %v13_v19  ;;  %1887 = vmatmul.mubr.msk.f32.gmra.mrb[4].mxu1 %vm146_vm1, %v74_v20  ;;  %v105_v19 = vld [vmem:[%s3475_s0 + $0x2f0] sm:$0xff] }
  0x1e   :  { %1706 = vmatprep.mubr.msk.f32.mxu0 %vm2087_vm0, %v2088_v6  ;;  %1889 = vmatprep.mubr.msk.f32.mxu1 %vm2087_vm0, %v2088_v6  ;;  %v45_v20 = vld [vmem:[%s3475_s0 + $0x110] sm:$0xff] }
  0x21   :  { %1707 = vmatmul.mubr.msk.f32.gmra.mrb[6].mxu0 %vm146_vm1, %v14_v21  ;;  %1890 = vmatmul.mubr.msk.f32.gmra.mrb[6].mxu1 %vm146_vm1, %v75_v22  ;;  %v106_v21 = vld [vmem:[%s3475_s0 + $0x2f8] sm:$0xff] }
  0x22   :  { %1709 = vmatprep.mubr.msk.f32.mxu0 %vm2087_vm0, %v2088_v6  ;;  %1892 = vmatprep.mubr.msk.f32.mxu1 %vm2087_vm0, %v2088_v6  ;;  %v46_v22 = vld [vmem:[%s3475_s0 + $0x118] sm:$0xff] }
  0x25   :  { %1710 = vmatmul.mubr.msk.f32.gmra.mrb[8].mxu0 %vm146_vm1, %v15_v23  ;;  %1893 = vmatmul.mubr.msk.f32.gmra.mrb[8].mxu1 %vm146_vm1, %v76_v24  ;;  %v107_v23 = vld [vmem:[%s3475_s0 + $0x300] sm:$0xff] }
  0x26   :  { %1712 = vmatprep.mubr.msk.f32.mxu0 %vm2087_vm0, %v2088_v6  ;;  %1895 = vmatprep.mubr.msk.f32.mxu1 %vm2087_vm0, %v2088_v6  ;;  %v47_v24 = vld [vmem:[%s3475_s0 + $0x120] sm:$0xff] }
  0x29   :  { %1713 = vmatmul.mubr.msk.f32.gmra.mrb[10].mxu0 %vm146_vm1, %v16_v25  ;;  %1896 = vmatmul.mubr.msk.f32.gmra.mrb[10].mxu1 %vm146_vm1, %v77_v26  ;;  %v108_v25 = vld [vmem:[%s3475_s0 + $0x308] sm:$0xff] }
  0x2a   :  { %1715 = vmatprep.mubr.msk.f32.mxu0 %vm2087_vm0, %v2088_v6  ;;  %1898 = vmatprep.mubr.msk.f32.mxu1 %vm2087_vm0, %v2088_v6  ;;  %v48_v26 = vld [vmem:[%s3475_s0 + $0x128] sm:$0xff] }
  0x2d   :  { %1716 = vmatmul.mubr.msk.f32.gmra.mrb[12].mxu0 %vm146_vm1, %v17_v27  ;;  %1899 = vmatmul.mubr.msk.f32.gmra.mrb[12].mxu1 %vm146_vm1, %v78_v28  ;;  %v109_v27 = vld [vmem:[%s3475_s0 + $0x310] sm:$0xff] }
  0x2e   :  { %1718 = vmatprep.mubr.msk.f32.mxu0 %vm2087_vm0, %v2088_v6  ;;  %1901 = vmatprep.mubr.msk.f32.mxu1 %vm2087_vm0, %v2088_v6  ;;  %v49_v28 = vld [vmem:[%s3475_s0 + $0x130] sm:$0xff] }
  0x31   :  { %1719 = vmatmul.mubr.msk.f32.gmra.mrb[14].mxu0 %vm146_vm1, %v18_v29  ;;  %1902 = vmatmul.mubr.msk.f32.gmra.mrb[14].mxu1 %vm146_vm1, %v79_v30  ;;  %v110_v29 = vld [vmem:[%s3475_s0 + $0x318] sm:$0xff] }
  0x32   :  { %1721 = vmatprep.mubr.msk.f32.mxu0 %vm2087_vm0, %v2088_v6  ;;  %1904 = vmatprep.mubr.msk.f32.mxu1 %vm2087_vm0, %v2088_v6  ;;  %v50_v30 = vld [vmem:[%s3475_s0 + $0x138] sm:$0xff] }
  0x35   :  { %1722 = vmatmul.mubr.msk.f32.gmra.mrb[16].mxu0 %vm146_vm1, %v19_v31  ;;  %1905 = vmatmul.mubr.msk.f32.gmra.mrb[16].mxu1 %vm146_vm1, %v80_v32  ;;  %v111_v31 = vld [vmem:[%s3475_s0 + $0x320] sm:$0xff] }
  0x36   :  { %1724 = vmatprep.mubr.msk.f32.mxu0 %vm2087_vm0, %v2088_v6  ;;  %1907 = vmatprep.mubr.msk.f32.mxu1 %vm2087_vm0, %v2088_v6  ;;  %v51_v32 = vld [vmem:[%s3475_s0 + $0x140] sm:$0xff] }
  0x39   :  { %1725 = vmatmul.mubr.msk.f32.gmra.mrb[18].mxu0 %vm146_vm1, %v20_v33  ;;  %1908 = vmatmul.mubr.msk.f32.gmra.mrb[18].mxu1 %vm146_vm1, %v81_v34  ;;  %v112_v33 = vld [vmem:[%s3475_s0 + $0x328] sm:$0xff] }
  0x3a   :  { %1727 = vmatprep.mubr.msk.f32.mxu0 %vm2087_vm0, %v2088_v6  ;;  %1910 = vmatprep.mubr.msk.f32.mxu1 %vm2087_vm0, %v2088_v6  ;;  %v52_v34 = vld [vmem:[%s3475_s0 + $0x148] sm:$0xff] }
  0x3d   :  { %1728 = vmatmul.mubr.msk.f32.gmra.mrb[20].mxu0 %vm146_vm1, %v21_v35  ;;  %1911 = vmatmul.mubr.msk.f32.gmra.mrb[20].mxu1 %vm146_vm1, %v82_v36  ;;  %v113_v35 = vld [vmem:[%s3475_s0 + $0x330] sm:$0xff] }
  0x3e   :  { %1730 = vmatprep.mubr.msk.f32.mxu0 %vm2087_vm0, %v2088_v6  ;;  %1913 = vmatprep.mubr.msk.f32.mxu1 %vm2087_vm0, %v2088_v6  ;;  %v53_v36 = vld [vmem:[%s3475_s0 + $0x150] sm:$0xff] }
  0x41   :  { %1731 = vmatmul.mubr.msk.f32.gmra.mrb[22].mxu0 %vm146_vm1, %v22_v37  ;;  %1914 = vmatmul.mubr.msk.f32.gmra.mrb[22].mxu1 %vm146_vm1, %v83_v38  ;;  %v114_v37 = vld [vmem:[%s3475_s0 + $0x338] sm:$0xff] }
  0x42   :  { %1733 = vmatprep.mubr.msk.f32.mxu0 %vm2087_vm0, %v2088_v6  ;;  %1916 = vmatprep.mubr.msk.f32.mxu1 %vm2087_vm0, %v2088_v6  ;;  %v54_v38 = vld [vmem:[%s3475_s0 + $0x158] sm:$0xff] }
  0x45   :  { %1734 = vmatmul.mubr.msk.f32.gmra.mrb[24].mxu0 %vm146_vm1, %v23_v39  ;;  %1917 = vmatmul.mubr.msk.f32.gmra.mrb[24].mxu1 %vm146_vm1, %v84_v40  ;;  %v115_v39 = vld [vmem:[%s3475_s0 + $0x340] sm:$0xff] }
  0x46   :  { %1736 = vmatprep.mubr.msk.f32.mxu0 %vm2087_vm0, %v2088_v6  ;;  %1919 = vmatprep.mubr.msk.f32.mxu1 %vm2087_vm0, %v2088_v6  ;;  %v55_v40 = vld [vmem:[%s3475_s0 + $0x160] sm:$0xff] }
  0x49   :  { %1737 = vmatmul.mubr.msk.f32.gmra.mrb[26].mxu0 %vm146_vm1, %v24_v41  ;;  %1920 = vmatmul.mubr.msk.f32.gmra.mrb[26].mxu1 %vm146_vm1, %v85_v42  ;;  %v116_v41 = vld [vmem:[%s3475_s0 + $0x348] sm:$0xff] }
  0x4a   :  { %1739 = vmatprep.mubr.msk.f32.mxu0 %vm2087_vm0, %v2088_v6  ;;  %1922 = vmatprep.mubr.msk.f32.mxu1 %vm2087_vm0, %v2088_v6  ;;  %v56_v42 = vld [vmem:[%s3475_s0 + $0x168] sm:$0xff] }
  0x4d   :  { %1740 = vmatmul.mubr.msk.f32.gmra.mrb[28].mxu0 %vm146_vm1, %v25_v43  ;;  %1923 = vmatmul.mubr.msk.f32.gmra.mrb[28].mxu1 %vm146_vm1, %v86_v44  ;;  %v117_v43 = vld [vmem:[%s3475_s0 + $0x350] sm:$0xff] }
  0x4e   :  { %1742 = vmatprep.mubr.msk.f32.mxu0 %vm2087_vm0, %v2088_v6  ;;  %1925 = vmatprep.mubr.msk.f32.mxu1 %vm2087_vm0, %v2088_v6  ;;  %v57_v44 = vld [vmem:[%s3475_s0 + $0x170] sm:$0xff] }
  0x51   :  { %1743 = vmatmul.mubr.msk.f32.gmra.mrb[30].mxu0 %vm146_vm1, %v26_v45  ;;  %1926 = vmatmul.mubr.msk.f32.gmra.mrb[30].mxu1 %vm146_vm1, %v87_v46  ;;  %v118_v45 = vld [vmem:[%s3475_s0 + $0x358] sm:$0xff] }
  0x52   :  { %1745 = vmatprep.mubr.msk.f32.mxu0 %vm2087_vm0, %v2088_v6  ;;  %1928 = vmatprep.mubr.msk.f32.mxu1 %vm2087_vm0, %v2088_v6  ;;  %v58_v46 = vld [vmem:[%s3475_s0 + $0x178] sm:$0xff] }
  0x55   :  { %1746 = vmatmul.mubr.msk.f32.gmra.mrb[32].mxu0 %vm146_vm1, %v27_v47  ;;  %1929 = vmatmul.mubr.msk.f32.gmra.mrb[32].mxu1 %vm146_vm1, %v88_v48  ;;  %v119_v47 = vld [vmem:[%s3475_s0 + $0x360] sm:$0xff] }
  0x56   :  { %1748 = vmatprep.mubr.msk.f32.mxu0 %vm2087_vm0, %v2088_v6  ;;  %1931 = vmatprep.mubr.msk.f32.mxu1 %vm2087_vm0, %v2088_v6  ;;  %v59_v48 = vld [vmem:[%s3475_s0 + $0x180] sm:$0xff] }
  0x59   :  { %1749 = vmatmul.mubr.msk.f32.gmra.mrb[34].mxu0 %vm146_vm1, %v28_v49  ;;  %1932 = vmatmul.mubr.msk.f32.gmra.mrb[34].mxu1 %vm146_vm1, %v89_v50  ;;  %v120_v49 = vld [vmem:[%s3475_s0 + $0x368] sm:$0xff] }
  0x5a   :  { %1751 = vmatprep.mubr.msk.f32.mxu0 %vm2087_vm0, %v2088_v6  ;;  %1934 = vmatprep.mubr.msk.f32.mxu1 %vm2087_vm0, %v2088_v6  ;;  %v60_v50 = vld [vmem:[%s3475_s0 + $0x188] sm:$0xff] }
  0x5d   :  { %1752 = vmatmul.mubr.msk.f32.gmra.mrb[36].mxu0 %vm146_vm1, %v29_v51  ;;  %1935 = vmatmul.mubr.msk.f32.gmra.mrb[36].mxu1 %vm146_vm1, %v90_v52  ;;  %v121_v51 = vld [vmem:[%s3475_s0 + $0x370] sm:$0xff] }
  0x5e   :  { %1754 = vmatprep.mubr.msk.f32.mxu0 %vm2087_vm0, %v2088_v6  ;;  %1937 = vmatprep.mubr.msk.f32.mxu1 %vm2087_vm0, %v2088_v6  ;;  %v61_v52 = vld [vmem:[%s3475_s0 + $0x190] sm:$0xff] }
  0x61   :  { %1755 = vmatmul.mubr.msk.f32.gmra.mrb[38].mxu0 %vm146_vm1, %v30_v53  ;;  %1938 = vmatmul.mubr.msk.f32.gmra.mrb[38].mxu1 %vm146_vm1, %v91_v54  ;;  %v122_v53 = vld [vmem:[%s3475_s0 + $0x378] sm:$0xff] }
  0x62   :  { %1757 = vmatprep.mubr.msk.f32.mxu0 %vm2087_vm0, %v2088_v6  ;;  %1940 = vmatprep.mubr.msk.f32.mxu1 %vm2087_vm0, %v2088_v6  ;;  %v62_v54 = vld [vmem:[%s3475_s0 + $0x198] sm:$0xff] }
  0x65   :  { %1758 = vmatmul.mubr.msk.f32.gmra.mrb[40].mxu0 %vm146_vm1, %v31_v55  ;;  %1941 = vmatmul.mubr.msk.f32.gmra.mrb[40].mxu1 %vm146_vm1, %v92_v56  ;;  %v123_v55 = vld [vmem:[%s3475_s0 + $0x380] sm:$0xff] }
  0x66   :  { %1760 = vmatprep.mubr.msk.f32.mxu0 %vm2087_vm0, %v2088_v6  ;;  %1943 = vmatprep.mubr.msk.f32.mxu1 %vm2087_vm0, %v2088_v6  ;;  %v63_v56 = vld [vmem:[%s3475_s0 + $0x1a0] sm:$0xff] }
  0x69   :  { %1761 = vmatmul.mubr.msk.f32.gmra.mrb[42].mxu0 %vm146_vm1, %v32_v57  ;;  %1944 = vmatmul.mubr.msk.f32.gmra.mrb[42].mxu1 %vm146_vm1, %v93_v58  ;;  %v124_v57 = vld [vmem:[%s3475_s0 + $0x388] sm:$0xff] }
  0x6a   :  { %1763 = vmatprep.mubr.msk.f32.mxu0 %vm2087_vm0, %v2088_v6  ;;  %1946 = vmatprep.mubr.msk.f32.mxu1 %vm2087_vm0, %v2088_v6  ;;  %v2772_v58 = vld [vmem:[%s3474_s1 + $0x48] ss:$0 sm:$0xff] }
  0x6d   :  { %1764 = vmatmul.mubr.msk.f32.gmra.mrb[44].mxu0 %vm146_vm1, %v33_v59  ;;  %1947 = vmatmul.mubr.msk.f32.gmra.mrb[44].mxu1 %vm146_vm1, %v94_v60  ;;  %v64_v59 = vld [vmem:[%s3475_s0 + $0x1a8] sm:$0xff]  ;;  %v125_v60 = vld [vmem:[%s3475_s0 + $0x390] sm:$0xff] }
  0x6e   :  { %1766 = vmatprep.mubr.msk.f32.mxu0 %vm2087_vm0, %v2088_v6  ;;  %1949 = vmatprep.mubr.msk.f32.mxu1 %vm2087_vm0, %v2088_v6 }
  0x71   :  { %1767 = vmatmul.mubr.msk.f32.gmra.mrb[46].mxu0 %vm146_vm1, %v34_v61  ;;  %1950 = vmatmul.mubr.msk.f32.gmra.mrb[46].mxu1 %vm146_vm1, %v95_v62 }
  0x72   :  { %1769 = vmatprep.mubr.msk.f32.mxu0 %vm2087_vm0, %v2088_v6  ;;  %1952 = vmatprep.mubr.msk.f32.mxu1 %vm2087_vm0, %v2088_v6 }
  0x75   :  { %1770 = vmatmul.mubr.msk.f32.gmra.mrb[48].mxu0 %vm146_vm1, %v35_v63  ;;  %1953 = vmatmul.mubr.msk.f32.gmra.mrb[48].mxu1 %vm146_vm1, %v96_v0 }
  0x76   :  { %1772 = vmatprep.mubr.msk.f32.mxu0 %vm2087_vm0, %v2088_v6  ;;  %1955 = vmatprep.mubr.msk.f32.mxu1 %vm2087_vm0, %v2088_v6 }
  0x79   :  { %1773 = vmatmul.mubr.msk.f32.gmra.mrb[50].mxu0 %vm146_vm1, %v36_v1  ;;  %1956 = vmatmul.mubr.msk.f32.gmra.mrb[50].mxu1 %vm146_vm1, %v97_v2 }
  0x7a   :  { %1775 = vmatprep.mubr.msk.f32.mxu0 %vm2087_vm0, %v2088_v6  ;;  %1958 = vmatprep.mubr.msk.f32.mxu1 %vm2087_vm0, %v2088_v6 }
  0x7d   :  { %1776 = vmatmul.mubr.msk.f32.gmra.mrb[52].mxu0 %vm146_vm1, %v37_v3  ;;  %1959 = vmatmul.mubr.msk.f32.gmra.mrb[52].mxu1 %vm146_vm1, %v98_v4  ;;  %v65_v3 = vld [vmem:[%s3475_s0 + $0x1b0] sm:$0xff]  ;;  %v126_v4 = vld [vmem:[%s3475_s0 + $0x398] sm:$0xff] }
  0x7e   :  { %1778 = vmatprep.mubr.msk.f32.mxu0 %vm2087_vm0, %v2088_v6  ;;  %1961 = vmatprep.mubr.msk.f32.mxu1 %vm2087_vm0, %v2088_v6 }
  0x81   :  { %1779 = vmatmul.mubr.msk.f32.gmra.mrb[54].mxu0 %vm146_vm1, %v38_v5  ;;  %1962 = vmatmul.mubr.msk.f32.gmra.mrb[54].mxu1 %vm146_vm1, %v99_v7 }
  0x82   :  { %1781 = vmatprep.mubr.msk.f32.mxu0 %vm2087_vm0, %v2088_v6  ;;  %1964 = vmatprep.mubr.msk.f32.mxu1 %vm2087_vm0, %v2088_v6 }
  0x85   :  { %1782 = vmatmul.mubr.msk.f32.gmra.mrb[56].mxu0 %vm146_vm1, %v39_v8  ;;  %1965 = vmatmul.mubr.msk.f32.gmra.mrb[56].mxu1 %vm146_vm1, %v100_v9 }
  0x86   :  { %1784 = vmatprep.mubr.msk.f32.mxu0 %vm2087_vm0, %v2088_v6  ;;  %1967 = vmatprep.mubr.msk.f32.mxu1 %vm2087_vm0, %v2088_v6 }
  0x89   :  { %1785 = vmatmul.mubr.msk.f32.gmra.mrb[58].mxu0 %vm146_vm1, %v40_v10  ;;  %1968 = vmatmul.mubr.msk.f32.gmra.mrb[58].mxu1 %vm146_vm1, %v101_v11 }
  0x8a   :  { %1787 = vmatprep.mubr.msk.f32.mxu0 %vm2087_vm0, %v2088_v6  ;;  %1970 = vmatprep.mubr.msk.f32.mxu1 %vm2087_vm0, %v2088_v6 }
  0x8d   :  { %1788 = vmatmul.mubr.msk.f32.gmra.mrb[60].mxu0 %vm146_vm1, %v41_v12  ;;  %1971 = vmatmul.mubr.msk.f32.gmra.mrb[60].mxu1 %vm146_vm1, %v102_v13 }
  0x8e   :  { %1790 = vmatprep.mubr.msk.f32.mxu0 %vm2087_vm0, %v2088_v6  ;;  %1973 = vmatprep.mubr.msk.f32.mxu1 %vm2087_vm0, %v2088_v6 }
  0x91   :  { %1791 = vmatmul.mubr.msk.f32.gmra.mrb[62].mxu0 %vm146_vm1, %v42_v14  ;;  %1974 = vmatmul.mubr.msk.f32.gmra.mrb[62].mxu1 %vm146_vm1, %v103_v15  ;;  %v66_v14 = vld [vmem:[%s3475_s0 + $0x1b8] sm:$0xff]  ;;  %v127_v15 = vld [vmem:[%s3475_s0 + $0x3a0] sm:$0xff] }
  0x92   :  { %1793 = vmatprep.mubr.msk.f32.mxu0 %vm2087_vm0, %v2088_v6  ;;  %1976 = vmatprep.mubr.msk.f32.mxu1 %vm2087_vm0, %v2088_v6 }
  0x95   :  { %1794 = vmatmul.mubr.msk.f32.gmra.mrb[64].mxu0 %vm146_vm1, %v43_v16  ;;  %1977 = vmatmul.mubr.msk.f32.gmra.mrb[64].mxu1 %vm146_vm1, %v104_v17 }
  0x96   :  { %1796 = vmatprep.mubr.msk.f32.mxu0 %vm2087_vm0, %v2088_v6  ;;  %1979 = vmatprep.mubr.msk.f32.mxu1 %vm2087_vm0, %v2088_v6 }
  0x99   :  { %1797 = vmatmul.mubr.msk.f32.gmra.mrb[66].mxu0 %vm146_vm1, %v44_v18  ;;  %1980 = vmatmul.mubr.msk.f32.gmra.mrb[66].mxu1 %vm146_vm1, %v105_v19 }
  0x9a   :  { %1799 = vmatprep.mubr.msk.f32.mxu0 %vm2087_vm0, %v2088_v6  ;;  %1982 = vmatprep.mubr.msk.f32.mxu1 %vm2087_vm0, %v2088_v6 }
  0x9d   :  { %1800 = vmatmul.mubr.msk.f32.gmra.mrb[68].mxu0 %vm146_vm1, %v45_v20  ;;  %1983 = vmatmul.mubr.msk.f32.gmra.mrb[68].mxu1 %vm146_vm1, %v106_v21 }
  0x9e   :  { %1802 = vmatprep.mubr.msk.f32.mxu0 %vm2087_vm0, %v2088_v6  ;;  %1985 = vmatprep.mubr.msk.f32.mxu1 %vm2087_vm0, %v2088_v6 }
  0xa1   :  { %1803 = vmatmul.mubr.msk.f32.gmra.mrb[70].mxu0 %vm146_vm1, %v46_v22  ;;  %1986 = vmatmul.mubr.msk.f32.gmra.mrb[70].mxu1 %vm146_vm1, %v107_v23 }
  0xa2   :  { %1805 = vmatprep.mubr.msk.f32.mxu0 %vm2087_vm0, %v2088_v6  ;;  %1988 = vmatprep.mubr.msk.f32.mxu1 %vm2087_vm0, %v2088_v6 }
  0xa5   :  { %1806 = vmatmul.mubr.msk.f32.gmra.mrb[72].mxu0 %vm146_vm1, %v47_v24  ;;  %1989 = vmatmul.mubr.msk.f32.gmra.mrb[72].mxu1 %vm146_vm1, %v108_v25  ;;  %v67_v24 = vld [vmem:[%s3475_s0 + $0x1c0] sm:$0xff]  ;;  %v128_v25 = vld [vmem:[%s3475_s0 + $0x3a8] sm:$0xff] }
  0xa6   :  { %1808 = vmatprep.mubr.msk.f32.mxu0 %vm2087_vm0, %v2088_v6  ;;  %1991 = vmatprep.mubr.msk.f32.mxu1 %vm2087_vm0, %v2088_v6 }
  0xa9   :  { %1809 = vmatmul.mubr.msk.f32.gmra.mrb[74].mxu0 %vm146_vm1, %v48_v26  ;;  %1992 = vmatmul.mubr.msk.f32.gmra.mrb[74].mxu1 %vm146_vm1, %v109_v27 }
  0xaa   :  { %1811 = vmatprep.mubr.msk.f32.mxu0 %vm2087_vm0, %v2088_v6  ;;  %1994 = vmatprep.mubr.msk.f32.mxu1 %vm2087_vm0, %v2088_v6 }
  0xad   :  { %1812 = vmatmul.mubr.msk.f32.gmra.mrb[76].mxu0 %vm146_vm1, %v49_v28  ;;  %1995 = vmatmul.mubr.msk.f32.gmra.mrb[76].mxu1 %vm146_vm1, %v110_v29 }
  0xae   :  { %1814 = vmatprep.mubr.msk.f32.mxu0 %vm2087_vm0, %v2088_v6  ;;  %1997 = vmatprep.mubr.msk.f32.mxu1 %vm2087_vm0, %v2088_v6 }
  0xb1   :  { %1815 = vmatmul.mubr.msk.f32.gmra.mrb[78].mxu0 %vm146_vm1, %v50_v30  ;;  %1998 = vmatmul.mubr.msk.f32.gmra.mrb[78].mxu1 %vm146_vm1, %v111_v31 }
  0xb2   :  { %1817 = vmatprep.mubr.msk.f32.mxu0 %vm2087_vm0, %v2088_v6  ;;  %2000 = vmatprep.mubr.msk.f32.mxu1 %vm2087_vm0, %v2088_v6 }
  0xb5   :  { %1818 = vmatmul.mubr.msk.f32.gmra.mrb[80].mxu0 %vm146_vm1, %v51_v32  ;;  %2001 = vmatmul.mubr.msk.f32.gmra.mrb[80].mxu1 %vm146_vm1, %v112_v33 }
  0xb6   :  { %1820 = vmatprep.mubr.msk.f32.mxu0 %vm2087_vm0, %v2088_v6  ;;  %2003 = vmatprep.mubr.msk.f32.mxu1 %vm2087_vm0, %v2088_v6 }
  0xb9   :  { %1821 = vmatmul.mubr.msk.f32.gmra.mrb[82].mxu0 %vm146_vm1, %v52_v34  ;;  %2004 = vmatmul.mubr.msk.f32.gmra.mrb[82].mxu1 %vm146_vm1, %v113_v35  ;;  %v68_v34 = vld [vmem:[%s3475_s0 + $0x1c8] sm:$0xff]  ;;  %v129_v35 = vld [vmem:[%s3475_s0 + $0x3b0] sm:$0xff] }
  0xba   :  { %1823 = vmatprep.mubr.msk.f32.mxu0 %vm2087_vm0, %v2088_v6  ;;  %2006 = vmatprep.mubr.msk.f32.mxu1 %vm2087_vm0, %v2088_v6 }
  0xbd   :  { %1824 = vmatmul.mubr.msk.f32.gmra.mrb[84].mxu0 %vm146_vm1, %v53_v36  ;;  %2007 = vmatmul.mubr.msk.f32.gmra.mrb[84].mxu1 %vm146_vm1, %v114_v37 }
  0xbe   :  { %1826 = vmatprep.mubr.msk.f32.mxu0 %vm2087_vm0, %v2088_v6  ;;  %2009 = vmatprep.mubr.msk.f32.mxu1 %vm2087_vm0, %v2088_v6 }
  0xc1   :  { %1827 = vmatmul.mubr.msk.f32.gmra.mrb[86].mxu0 %vm146_vm1, %v54_v38  ;;  %2010 = vmatmul.mubr.msk.f32.gmra.mrb[86].mxu1 %vm146_vm1, %v115_v39 }
  0xc2   :  { %1829 = vmatprep.mubr.msk.f32.mxu0 %vm2087_vm0, %v2088_v6  ;;  %2012 = vmatprep.mubr.msk.f32.mxu1 %vm2087_vm0, %v2088_v6 }
  0xc5   :  { %1830 = vmatmul.mubr.msk.f32.gmra.mrb[88].mxu0 %vm146_vm1, %v55_v40  ;;  %2013 = vmatmul.mubr.msk.f32.gmra.mrb[88].mxu1 %vm146_vm1, %v116_v41 }
  0xc6   :  { %1832 = vmatprep.mubr.msk.f32.mxu0 %vm2087_vm0, %v2088_v6  ;;  %2015 = vmatprep.mubr.msk.f32.mxu1 %vm2087_vm0, %v2088_v6 }
  0xc9   :  { %1833 = vmatmul.mubr.msk.f32.gmra.mrb[90].mxu0 %vm146_vm1, %v56_v42  ;;  %2016 = vmatmul.mubr.msk.f32.gmra.mrb[90].mxu1 %vm146_vm1, %v117_v43 }
  0xca   :  { %1835 = vmatprep.mubr.msk.f32.mxu0 %vm2087_vm0, %v2088_v6  ;;  %2018 = vmatprep.mubr.msk.f32.mxu1 %vm2087_vm0, %v2088_v6 }
  0xcd   :  { %1836 = vmatmul.mubr.msk.f32.gmra.mrb[92].mxu0 %vm146_vm1, %v57_v44  ;;  %2019 = vmatmul.mubr.msk.f32.gmra.mrb[92].mxu1 %vm146_vm1, %v118_v45  ;;  %v69_v44 = vld [vmem:[%s3475_s0 + $0x1d0] sm:$0xff]  ;;  %v130_v45 = vld [vmem:[%s3475_s0 + $0x3b8] sm:$0xff] }
  0xce   :  { %1838 = vmatprep.mubr.msk.f32.mxu0 %vm2087_vm0, %v2088_v6  ;;  %2021 = vmatprep.mubr.msk.f32.mxu1 %vm2087_vm0, %v2088_v6 }
  0xd1   :  { %1839 = vmatmul.mubr.msk.f32.gmra.mrb[94].mxu0 %vm146_vm1, %v58_v46  ;;  %2022 = vmatmul.mubr.msk.f32.gmra.mrb[94].mxu1 %vm146_vm1, %v119_v47 }
  0xd2   :  { %1841 = vmatprep.mubr.msk.f32.mxu0 %vm2087_vm0, %v2088_v6  ;;  %2024 = vmatprep.mubr.msk.f32.mxu1 %vm2087_vm0, %v2088_v6 }
  0xd5   :  { %1842 = vmatmul.mubr.msk.f32.gmra.mrb[96].mxu0 %vm146_vm1, %v59_v48  ;;  %2025 = vmatmul.mubr.msk.f32.gmra.mrb[96].mxu1 %vm146_vm1, %v120_v49 }
  0xd6   :  { %1844 = vmatprep.mubr.msk.f32.mxu0 %vm2087_vm0, %v2088_v6  ;;  %2027 = vmatprep.mubr.msk.f32.mxu1 %vm2087_vm0, %v2088_v6 }
  0xd9   :  { %1845 = vmatmul.mubr.msk.f32.gmra.mrb[98].mxu0 %vm146_vm1, %v60_v50  ;;  %2028 = vmatmul.mubr.msk.f32.gmra.mrb[98].mxu1 %vm146_vm1, %v121_v51 }
  0xda   :  { %1847 = vmatprep.mubr.msk.f32.mxu0 %vm2087_vm0, %v2088_v6  ;;  %2030 = vmatprep.mubr.msk.f32.mxu1 %vm2087_vm0, %v2088_v6 }
  0xdd   :  { %1848 = vmatmul.mubr.msk.f32.gmra.mrb[100].mxu0 %vm146_vm1, %v61_v52  ;;  %2031 = vmatmul.mubr.msk.f32.gmra.mrb[100].mxu1 %vm146_vm1, %v122_v53 }
  0xde   :  { %1850 = vmatprep.mubr.msk.f32.mxu0 %vm2087_vm0, %v2088_v6  ;;  %2033 = vmatprep.mubr.msk.f32.mxu1 %vm2087_vm0, %v2088_v6 }
  0xe1   :  { %1851 = vmatmul.mubr.msk.f32.gmra.mrb[102].mxu0 %vm146_vm1, %v62_v54  ;;  %2034 = vmatmul.mubr.msk.f32.gmra.mrb[102].mxu1 %vm146_vm1, %v123_v55  ;;  %v70_v54 = vld [vmem:[%s3475_s0 + $0x1d8] sm:$0xff]  ;;  %v131_v55 = vld [vmem:[%s3475_s0 + $0x3c0] sm:$0xff] }
  0xe2   :  { %1853 = vmatprep.mubr.msk.f32.mxu0 %vm2087_vm0, %v2088_v6  ;;  %2036 = vmatprep.mubr.msk.f32.mxu1 %vm2087_vm0, %v2088_v6 }
  0xe5   :  { %1854 = vmatmul.mubr.msk.f32.gmra.mrb[104].mxu0 %vm146_vm1, %v63_v56  ;;  %2037 = vmatmul.mubr.msk.f32.gmra.mrb[104].mxu1 %vm146_vm1, %v124_v57 }
  0xe6   :  { %1856 = vmatprep.mubr.msk.f32.mxu0 %vm2087_vm0, %v2088_v6  ;;  %2039 = vmatprep.mubr.msk.f32.mxu1 %vm2087_vm0, %v2088_v6 }
  0xe8   :  { %v576_v61 = vpop.f32.mrb[0].mxu0  ;;  %v881_v62 = vpop.f32.mrb[0].mxu1 }
  0xe9   :  { %v577_v63 = vadd.f32 %v2772_v58, %v576_v61  ;;  %v1699_v0 = vpop.f32.mrb[1].mxu0  ;;  %1857 = vmatmul.mubr.msk.f32.gmra.mrb[106].mxu0 %vm146_vm1, %v64_v59  ;;  %v882_v1 = vadd.f32 %v2772_v58, %v881_v62  ;;  %v1882_v2 = vpop.f32.mrb[1].mxu1  ;;  %2040 = vmatmul.mubr.msk.f32.gmra.mrb[106].mxu1 %vm146_vm1, %v125_v60 }
  0xea   :  { %1859 = vmatprep.mubr.msk.f32.mxu0 %vm2087_vm0, %v2088_v6  ;;  %2042 = vmatprep.mubr.msk.f32.mxu1 %vm2087_vm0, %v2088_v6 }
  0xeb   :  { %v1180_v5 = vmax.f32 %v577_v63, 0.0  ;;  %v1241_v7 = vmax.f32 %v882_v1, 0.0  ;;  %v71_v1 = vld [vmem:[%s3475_s0 + $0x1e0] sm:$0xff] }
  0xec   :  { %v581_v8 = vpop.f32.mrb[2].mxu0  ;;  %v886_v9 = vpop.f32.mrb[2].mxu1 }
  0xed   :  { %1302 = vst.msk [vmem:[%s3476_s2] sm:$0xff] %vm1301_vm2, %v1180_v5  ;;  %1363 = vst.msk [vmem:[%s3476_s2 + $0x1e8] sm:$0xff] %vm1301_vm2, %v1241_v7  ;;  %v582_v10 = vadd.f32 %v2772_v58, %v581_v8  ;;  %v1702_v11 = vpop.f32.mrb[3].mxu0  ;;  %1860 = vmatmul.mubr.msk.f32.gmra.mrb[108].mxu0 %vm146_vm1, %v65_v3  ;;  %v887_v12 = vadd.f32 %v2772_v58, %v886_v9  ;;  %v1885_v13 = vpop.f32.mrb[3].mxu1  ;;  %2043 = vmatmul.mubr.msk.f32.gmra.mrb[108].mxu1 %vm146_vm1, %v126_v4 }
  0xee   :  { %1862 = vmatprep.mubr.msk.f32.mxu0 %vm2087_vm0, %v2088_v6  ;;  %2045 = vmatprep.mubr.msk.f32.mxu1 %vm2087_vm0, %v2088_v6 }
  0xef   :  { %v1181_v16 = vmax.f32 %v582_v10, 0.0  ;;  %v1242_v17 = vmax.f32 %v887_v12, 0.0 }
  0xf0   :  { %v586_v18 = vpop.f32.mrb[4].mxu0  ;;  %v891_v19 = vpop.f32.mrb[4].mxu1 }
  0xf1   :  { %1303 = vst.msk [vmem:[%s3476_s2 + $0x8] sm:$0xff] %vm1301_vm2, %v1181_v16  ;;  %1364 = vst.msk [vmem:[%s3476_s2 + $0x1f0] sm:$0xff] %vm1301_vm2, %v1242_v17  ;;  %v587_v20 = vadd.f32 %v2772_v58, %v586_v18  ;;  %v1705_v21 = vpop.f32.mrb[5].mxu0  ;;  %1863 = vmatmul.mubr.msk.f32.gmra.mrb[110].mxu0 %vm146_vm1, %v66_v14  ;;  %v892_v22 = vadd.f32 %v2772_v58, %v891_v19  ;;  %v1888_v23 = vpop.f32.mrb[5].mxu1  ;;  %2046 = vmatmul.mubr.msk.f32.gmra.mrb[110].mxu1 %vm146_vm1, %v127_v15 }
  0xf2   :  { %1865 = vmatprep.mubr.msk.f32.mxu0 %vm2087_vm0, %v2088_v6  ;;  %2048 = vmatprep.mubr.msk.f32.mxu1 %vm2087_vm0, %v2088_v6 }
  0xf3   :  { %v1182_v26 = vmax.f32 %v587_v20, 0.0  ;;  %v1243_v27 = vmax.f32 %v892_v22, 0.0 }
  0xf4   :  { %v591_v28 = vpop.f32.mrb[6].mxu0  ;;  %v896_v29 = vpop.f32.mrb[6].mxu1 }
  0xf5   :  { %1304 = vst.msk [vmem:[%s3476_s2 + $0x10] sm:$0xff] %vm1301_vm2, %v1182_v26  ;;  %1365 = vst.msk [vmem:[%s3476_s2 + $0x1f8] sm:$0xff] %vm1301_vm2, %v1243_v27  ;;  %v592_v30 = vadd.f32 %v2772_v58, %v591_v28  ;;  %v1708_v31 = vpop.f32.mrb[7].mxu0  ;;  %1866 = vmatmul.mubr.msk.f32.gmra.mrb[112].mxu0 %vm146_vm1, %v67_v24  ;;  %v897_v32 = vadd.f32 %v2772_v58, %v896_v29  ;;  %v1891_v33 = vpop.f32.mrb[7].mxu1  ;;  %2049 = vmatmul.mubr.msk.f32.gmra.mrb[112].mxu1 %vm146_vm1, %v128_v25 }
  0xf6   :  { %1868 = vmatprep.mubr.msk.f32.mxu0 %vm2087_vm0, %v2088_v6  ;;  %2051 = vmatprep.mubr.msk.f32.mxu1 %vm2087_vm0, %v2088_v6 }
  0xf7   :  { %v1183_v36 = vmax.f32 %v592_v30, 0.0  ;;  %v1244_v37 = vmax.f32 %v897_v32, 0.0 }
  0xf8   :  { %v596_v38 = vpop.f32.mrb[8].mxu0  ;;  %v901_v39 = vpop.f32.mrb[8].mxu1 }
  0xf9   :  { %1305 = vst.msk [vmem:[%s3476_s2 + $0x18] sm:$0xff] %vm1301_vm2, %v1183_v36  ;;  %1366 = vst.msk [vmem:[%s3476_s2 + $0x200] sm:$0xff] %vm1301_vm2, %v1244_v37  ;;  %v597_v40 = vadd.f32 %v2772_v58, %v596_v38  ;;  %v1711_v41 = vpop.f32.mrb[9].mxu0  ;;  %1869 = vmatmul.mubr.msk.f32.gmra.mrb[114].mxu0 %vm146_vm1, %v68_v34  ;;  %v902_v42 = vadd.f32 %v2772_v58, %v901_v39  ;;  %v1894_v43 = vpop.f32.mrb[9].mxu1  ;;  %2052 = vmatmul.mubr.msk.f32.gmra.mrb[114].mxu1 %vm146_vm1, %v129_v35 }
  0xfa   :  { %1871 = vmatprep.mubr.msk.f32.mxu0 %vm2087_vm0, %v2088_v6  ;;  %2054 = vmatprep.mubr.msk.f32.mxu1 %vm2087_vm0, %v2088_v6 }
  0xfb   :  { %v1184_v46 = vmax.f32 %v597_v40, 0.0  ;;  %v1245_v47 = vmax.f32 %v902_v42, 0.0 }
  0xfc   :  { %v601_v48 = vpop.f32.mrb[10].mxu0  ;;  %v906_v49 = vpop.f32.mrb[10].mxu1 }
  0xfd   :  { %1306 = vst.msk [vmem:[%s3476_s2 + $0x20] sm:$0xff] %vm1301_vm2, %v1184_v46  ;;  %1367 = vst.msk [vmem:[%s3476_s2 + $0x208] sm:$0xff] %vm1301_vm2, %v1245_v47  ;;  %v602_v50 = vadd.f32 %v2772_v58, %v601_v48  ;;  %v1714_v51 = vpop.f32.mrb[11].mxu0  ;;  %1872 = vmatmul.mubr.msk.f32.gmra.mrb[116].mxu0 %vm146_vm1, %v69_v44  ;;  %v907_v52 = vadd.f32 %v2772_v58, %v906_v49  ;;  %v1897_v53 = vpop.f32.mrb[11].mxu1  ;;  %2055 = vmatmul.mubr.msk.f32.gmra.mrb[116].mxu1 %vm146_vm1, %v130_v45 }
  0xfe   :  { %1874 = vmatprep.mubr.msk.f32.mxu0 %vm2087_vm0, %v2088_v6  ;;  %2057 = vmatprep.mubr.msk.f32.mxu1 %vm2087_vm0, %v2088_v6 }
  0xff   :  { %v1185_v56 = vmax.f32 %v602_v50, 0.0  ;;  %v1246_v57 = vmax.f32 %v907_v52, 0.0 }
 0x100   :  { %v606_v59 = vpop.f32.mrb[12].mxu0  ;;  %v911_v60 = vpop.f32.mrb[12].mxu1 }
 0x101   :  { %1307 = vst.msk [vmem:[%s3476_s2 + $0x28] sm:$0xff] %vm1301_vm2, %v1185_v56  ;;  %1368 = vst.msk [vmem:[%s3476_s2 + $0x210] sm:$0xff] %vm1301_vm2, %v1246_v57  ;;  %v607_v61 = vadd.f32 %v2772_v58, %v606_v59  ;;  %v1717_v62 = vpop.f32.mrb[13].mxu0  ;;  %1875 = vmatmul.mubr.msk.f32.gmra.mrb[118].mxu0 %vm146_vm1, %v70_v54  ;;  %v912_v63 = vadd.f32 %v2772_v58, %v911_v60  ;;  %v1900_v0 = vpop.f32.mrb[13].mxu1  ;;  %2058 = vmatmul.mubr.msk.f32.gmra.mrb[118].mxu1 %vm146_vm1, %v131_v55 }
 0x102   :  { %1877 = vmatprep.mubr.msk.f32.mxu0 %vm2087_vm0, %v2088_v6 }
 0x103   :  { %v1186_v2 = vmax.f32 %v607_v61, 0.0  ;;  %v1247_v3 = vmax.f32 %v912_v63, 0.0 }
 0x104   :  { %v611_v4 = vpop.f32.mrb[14].mxu0  ;;  %v916_v5 = vpop.f32.mrb[14].mxu1 }
 0x105   :  { %1308 = vst.msk [vmem:[%s3476_s2 + $0x30] sm:$0xff] %vm1301_vm2, %v1186_v2  ;;  %1369 = vst.msk [vmem:[%s3476_s2 + $0x218] sm:$0xff] %vm1301_vm2, %v1247_v3  ;;  %v612_v6 = vadd.f32 %v2772_v58, %v611_v4  ;;  %v1720_v7 = vpop.f32.mrb[15].mxu0  ;;  %1878 = vmatmul.mubr.msk.f32.gmra.mrb[120].mxu0 %vm146_vm1, %v71_v1  ;;  %v917_v8 = vadd.f32 %v2772_v58, %v916_v5  ;;  %v1903_v9 = vpop.f32.mrb[15].mxu1 }
 0x107   :  { %v1187_v10 = vmax.f32 %v612_v6, 0.0  ;;  %v1248_v11 = vmax.f32 %v917_v8, 0.0 }
 0x108   :  { %v616_v12 = vpop.f32.mrb[16].mxu0  ;;  %v921_v13 = vpop.f32.mrb[16].mxu1 }
 0x109   :  { %1309 = vst.msk [vmem:[%s3476_s2 + $0x38] sm:$0xff] %vm1301_vm2, %v1187_v10  ;;  %1370 = vst.msk [vmem:[%s3476_s2 + $0x220] sm:$0xff] %vm1301_vm2, %v1248_v11  ;;  %v617_v14 = vadd.f32 %v2772_v58, %v616_v12  ;;  %v1723_v15 = vpop.f32.mrb[17].mxu0  ;;  %v922_v16 = vadd.f32 %v2772_v58, %v921_v13  ;;  %v1906_v17 = vpop.f32.mrb[17].mxu1 }
 0x10b   :  { %v1188_v18 = vmax.f32 %v617_v14, 0.0  ;;  %v1249_v19 = vmax.f32 %v922_v16, 0.0 }
 0x10c   :  { %v621_v20 = vpop.f32.mrb[18].mxu0  ;;  %v926_v21 = vpop.f32.mrb[18].mxu1 }
 0x10d   :  { %1310 = vst.msk [vmem:[%s3476_s2 + $0x40] sm:$0xff] %vm1301_vm2, %v1188_v18  ;;  %1371 = vst.msk [vmem:[%s3476_s2 + $0x228] sm:$0xff] %vm1301_vm2, %v1249_v19  ;;  %v622_v22 = vadd.f32 %v2772_v58, %v621_v20  ;;  %v1726_v23 = vpop.f32.mrb[19].mxu0  ;;  %v927_v24 = vadd.f32 %v2772_v58, %v926_v21  ;;  %v1909_v25 = vpop.f32.mrb[19].mxu1 }
 0x10f   :  { %v1189_v26 = vmax.f32 %v622_v22, 0.0  ;;  %v1250_v27 = vmax.f32 %v927_v24, 0.0 }
 0x110   :  { %v626_v28 = vpop.f32.mrb[20].mxu0  ;;  %v931_v29 = vpop.f32.mrb[20].mxu1 }
 0x111   :  { %1311 = vst.msk [vmem:[%s3476_s2 + $0x48] sm:$0xff] %vm1301_vm2, %v1189_v26  ;;  %1372 = vst.msk [vmem:[%s3476_s2 + $0x230] sm:$0xff] %vm1301_vm2, %v1250_v27  ;;  %v627_v30 = vadd.f32 %v2772_v58, %v626_v28  ;;  %v1729_v31 = vpop.f32.mrb[21].mxu0  ;;  %v932_v32 = vadd.f32 %v2772_v58, %v931_v29  ;;  %v1912_v33 = vpop.f32.mrb[21].mxu1 }
 0x113   :  { %v1190_v34 = vmax.f32 %v627_v30, 0.0  ;;  %v1251_v35 = vmax.f32 %v932_v32, 0.0 }
 0x114   :  { %v631_v36 = vpop.f32.mrb[22].mxu0  ;;  %v936_v37 = vpop.f32.mrb[22].mxu1 }
 0x115   :  { %1312 = vst.msk [vmem:[%s3476_s2 + $0x50] sm:$0xff] %vm1301_vm2, %v1190_v34  ;;  %1373 = vst.msk [vmem:[%s3476_s2 + $0x238] sm:$0xff] %vm1301_vm2, %v1251_v35  ;;  %v632_v38 = vadd.f32 %v2772_v58, %v631_v36  ;;  %v1732_v39 = vpop.f32.mrb[23].mxu0  ;;  %v937_v40 = vadd.f32 %v2772_v58, %v936_v37  ;;  %v1915_v41 = vpop.f32.mrb[23].mxu1 }
 0x117   :  { %v1191_v42 = vmax.f32 %v632_v38, 0.0  ;;  %v1252_v43 = vmax.f32 %v937_v40, 0.0 }
 0x118   :  { %v636_v44 = vpop.f32.mrb[24].mxu0  ;;  %v941_v45 = vpop.f32.mrb[24].mxu1 }
 0x119   :  { %1313 = vst.msk [vmem:[%s3476_s2 + $0x58] sm:$0xff] %vm1301_vm2, %v1191_v42  ;;  %1374 = vst.msk [vmem:[%s3476_s2 + $0x240] sm:$0xff] %vm1301_vm2, %v1252_v43  ;;  %v637_v46 = vadd.f32 %v2772_v58, %v636_v44  ;;  %v1735_v47 = vpop.f32.mrb[25].mxu0  ;;  %v942_v48 = vadd.f32 %v2772_v58, %v941_v45  ;;  %v1918_v49 = vpop.f32.mrb[25].mxu1 }
 0x11b   :  { %v1192_v50 = vmax.f32 %v637_v46, 0.0  ;;  %v1253_v51 = vmax.f32 %v942_v48, 0.0 }
 0x11c   :  { %v641_v52 = vpop.f32.mrb[26].mxu0  ;;  %v946_v53 = vpop.f32.mrb[26].mxu1 }
 0x11d   :  { %1314 = vst.msk [vmem:[%s3476_s2 + $0x60] sm:$0xff] %vm1301_vm2, %v1192_v50  ;;  %1375 = vst.msk [vmem:[%s3476_s2 + $0x248] sm:$0xff] %vm1301_vm2, %v1253_v51  ;;  %v642_v54 = vadd.f32 %v2772_v58, %v641_v52  ;;  %v1738_v55 = vpop.f32.mrb[27].mxu0  ;;  %v947_v56 = vadd.f32 %v2772_v58, %v946_v53  ;;  %v1921_v57 = vpop.f32.mrb[27].mxu1 }
 0x11f   :  { %v1193_v59 = vmax.f32 %v642_v54, 0.0  ;;  %v1254_v60 = vmax.f32 %v947_v56, 0.0 }
 0x120   :  { %v646_v61 = vpop.f32.mrb[28].mxu0  ;;  %v951_v62 = vpop.f32.mrb[28].mxu1 }
 0x121   :  { %1315 = vst.msk [vmem:[%s3476_s2 + $0x68] sm:$0xff] %vm1301_vm2, %v1193_v59  ;;  %1376 = vst.msk [vmem:[%s3476_s2 + $0x250] sm:$0xff] %vm1301_vm2, %v1254_v60  ;;  %v647_v63 = vadd.f32 %v2772_v58, %v646_v61  ;;  %v1741_v0 = vpop.f32.mrb[29].mxu0  ;;  %v952_v1 = vadd.f32 %v2772_v58, %v951_v62  ;;  %v1924_v2 = vpop.f32.mrb[29].mxu1 }
 0x123   :  { %v1194_v3 = vmax.f32 %v647_v63, 0.0  ;;  %v1255_v4 = vmax.f32 %v952_v1, 0.0 }
 0x124   :  { %v651_v5 = vpop.f32.mrb[30].mxu0  ;;  %v956_v6 = vpop.f32.mrb[30].mxu1 }
 0x125   :  { %1316 = vst.msk [vmem:[%s3476_s2 + $0x70] sm:$0xff] %vm1301_vm2, %v1194_v3  ;;  %1377 = vst.msk [vmem:[%s3476_s2 + $0x258] sm:$0xff] %vm1301_vm2, %v1255_v4  ;;  %v652_v7 = vadd.f32 %v2772_v58, %v651_v5  ;;  %v1744_v8 = vpop.f32.mrb[31].mxu0  ;;  %v957_v9 = vadd.f32 %v2772_v58, %v956_v6  ;;  %v1927_v10 = vpop.f32.mrb[31].mxu1 }
 0x127   :  { %v1195_v11 = vmax.f32 %v652_v7, 0.0  ;;  %v1256_v12 = vmax.f32 %v957_v9, 0.0 }
 0x128   :  { %v656_v13 = vpop.f32.mrb[32].mxu0  ;;  %v961_v14 = vpop.f32.mrb[32].mxu1 }
 0x129   :  { %1317 = vst.msk [vmem:[%s3476_s2 + $0x78] sm:$0xff] %vm1301_vm2, %v1195_v11  ;;  %1378 = vst.msk [vmem:[%s3476_s2 + $0x260] sm:$0xff] %vm1301_vm2, %v1256_v12  ;;  %v657_v15 = vadd.f32 %v2772_v58, %v656_v13  ;;  %v1747_v16 = vpop.f32.mrb[33].mxu0  ;;  %v962_v17 = vadd.f32 %v2772_v58, %v961_v14  ;;  %v1930_v18 = vpop.f32.mrb[33].mxu1 }
 0x12b   :  { %v1196_v19 = vmax.f32 %v657_v15, 0.0  ;;  %v1257_v20 = vmax.f32 %v962_v17, 0.0 }
 0x12c   :  { %v661_v21 = vpop.f32.mrb[34].mxu0  ;;  %v966_v22 = vpop.f32.mrb[34].mxu1 }
 0x12d   :  { %1318 = vst.msk [vmem:[%s3476_s2 + $0x80] sm:$0xff] %vm1301_vm2, %v1196_v19  ;;  %1379 = vst.msk [vmem:[%s3476_s2 + $0x268] sm:$0xff] %vm1301_vm2, %v1257_v20  ;;  %v662_v23 = vadd.f32 %v2772_v58, %v661_v21  ;;  %v1750_v24 = vpop.f32.mrb[35].mxu0  ;;  %v967_v25 = vadd.f32 %v2772_v58, %v966_v22  ;;  %v1933_v26 = vpop.f32.mrb[35].mxu1 }
 0x12f   :  { %v1197_v27 = vmax.f32 %v662_v23, 0.0  ;;  %v1258_v28 = vmax.f32 %v967_v25, 0.0 }
 0x130   :  { %v666_v29 = vpop.f32.mrb[36].mxu0  ;;  %v971_v30 = vpop.f32.mrb[36].mxu1 }
 0x131   :  { %1319 = vst.msk [vmem:[%s3476_s2 + $0x88] sm:$0xff] %vm1301_vm2, %v1197_v27  ;;  %1380 = vst.msk [vmem:[%s3476_s2 + $0x270] sm:$0xff] %vm1301_vm2, %v1258_v28  ;;  %v667_v31 = vadd.f32 %v2772_v58, %v666_v29  ;;  %v1753_v32 = vpop.f32.mrb[37].mxu0  ;;  %v972_v33 = vadd.f32 %v2772_v58, %v971_v30  ;;  %v1936_v34 = vpop.f32.mrb[37].mxu1 }
 0x133   :  { %v1198_v35 = vmax.f32 %v667_v31, 0.0  ;;  %v1259_v36 = vmax.f32 %v972_v33, 0.0 }
 0x134   :  { %v671_v37 = vpop.f32.mrb[38].mxu0  ;;  %v976_v38 = vpop.f32.mrb[38].mxu1 }
 0x135   :  { %1320 = vst.msk [vmem:[%s3476_s2 + $0x90] sm:$0xff] %vm1301_vm2, %v1198_v35  ;;  %1381 = vst.msk [vmem:[%s3476_s2 + $0x278] sm:$0xff] %vm1301_vm2, %v1259_v36  ;;  %v672_v39 = vadd.f32 %v2772_v58, %v671_v37  ;;  %v1756_v40 = vpop.f32.mrb[39].mxu0  ;;  %v977_v41 = vadd.f32 %v2772_v58, %v976_v38  ;;  %v1939_v42 = vpop.f32.mrb[39].mxu1 }
 0x137   :  { %v1199_v43 = vmax.f32 %v672_v39, 0.0  ;;  %v1260_v44 = vmax.f32 %v977_v41, 0.0 }
 0x138   :  { %v676_v45 = vpop.f32.mrb[40].mxu0  ;;  %v981_v46 = vpop.f32.mrb[40].mxu1 }
 0x139   :  { %1321 = vst.msk [vmem:[%s3476_s2 + $0x98] sm:$0xff] %vm1301_vm2, %v1199_v43  ;;  %1382 = vst.msk [vmem:[%s3476_s2 + $0x280] sm:$0xff] %vm1301_vm2, %v1260_v44  ;;  %v677_v47 = vadd.f32 %v2772_v58, %v676_v45  ;;  %v1759_v48 = vpop.f32.mrb[41].mxu0  ;;  %v982_v49 = vadd.f32 %v2772_v58, %v981_v46  ;;  %v1942_v50 = vpop.f32.mrb[41].mxu1 }
 0x13b   :  { %v1200_v51 = vmax.f32 %v677_v47, 0.0  ;;  %v1261_v52 = vmax.f32 %v982_v49, 0.0 }
 0x13c   :  { %v681_v53 = vpop.f32.mrb[42].mxu0  ;;  %v986_v54 = vpop.f32.mrb[42].mxu1 }
 0x13d   :  { %1322 = vst.msk [vmem:[%s3476_s2 + $0xa0] sm:$0xff] %vm1301_vm2, %v1200_v51  ;;  %1383 = vst.msk [vmem:[%s3476_s2 + $0x288] sm:$0xff] %vm1301_vm2, %v1261_v52  ;;  %v682_v55 = vadd.f32 %v2772_v58, %v681_v53  ;;  %v1762_v56 = vpop.f32.mrb[43].mxu0  ;;  %v987_v57 = vadd.f32 %v2772_v58, %v986_v54  ;;  %v1945_v59 = vpop.f32.mrb[43].mxu1 }
 0x13f   :  { %v1201_v60 = vmax.f32 %v682_v55, 0.0  ;;  %v1262_v61 = vmax.f32 %v987_v57, 0.0 }
 0x140   :  { %v686_v62 = vpop.f32.mrb[44].mxu0  ;;  %v991_v63 = vpop.f32.mrb[44].mxu1 }
 0x141   :  { %1323 = vst.msk [vmem:[%s3476_s2 + $0xa8] sm:$0xff] %vm1301_vm2, %v1201_v60  ;;  %1384 = vst.msk [vmem:[%s3476_s2 + $0x290] sm:$0xff] %vm1301_vm2, %v1262_v61  ;;  %v687_v0 = vadd.f32 %v2772_v58, %v686_v62  ;;  %v1765_v1 = vpop.f32.mrb[45].mxu0  ;;  %v992_v2 = vadd.f32 %v2772_v58, %v991_v63  ;;  %v1948_v3 = vpop.f32.mrb[45].mxu1 }
 0x143   :  { %v1202_v4 = vmax.f32 %v687_v0, 0.0  ;;  %v1263_v5 = vmax.f32 %v992_v2, 0.0 }
 0x144   :  { %v691_v6 = vpop.f32.mrb[46].mxu0  ;;  %v996_v7 = vpop.f32.mrb[46].mxu1 }
 0x145   :  { %1324 = vst.msk [vmem:[%s3476_s2 + $0xb0] sm:$0xff] %vm1301_vm2, %v1202_v4  ;;  %1385 = vst.msk [vmem:[%s3476_s2 + $0x298] sm:$0xff] %vm1301_vm2, %v1263_v5  ;;  %v692_v8 = vadd.f32 %v2772_v58, %v691_v6  ;;  %v1768_v9 = vpop.f32.mrb[47].mxu0  ;;  %v997_v10 = vadd.f32 %v2772_v58, %v996_v7  ;;  %v1951_v11 = vpop.f32.mrb[47].mxu1 }
 0x147   :  { %v1203_v12 = vmax.f32 %v692_v8, 0.0  ;;  %v1264_v13 = vmax.f32 %v997_v10, 0.0 }
 0x148   :  { %v696_v14 = vpop.f32.mrb[48].mxu0  ;;  %v1001_v15 = vpop.f32.mrb[48].mxu1 }
 0x149   :  { %1325 = vst.msk [vmem:[%s3476_s2 + $0xb8] sm:$0xff] %vm1301_vm2, %v1203_v12  ;;  %1386 = vst.msk [vmem:[%s3476_s2 + $0x2a0] sm:$0xff] %vm1301_vm2, %v1264_v13  ;;  %v697_v16 = vadd.f32 %v2772_v58, %v696_v14  ;;  %v1771_v17 = vpop.f32.mrb[49].mxu0  ;;  %v1002_v18 = vadd.f32 %v2772_v58, %v1001_v15  ;;  %v1954_v19 = vpop.f32.mrb[49].mxu1 }
 0x14b   :  { %v1204_v20 = vmax.f32 %v697_v16, 0.0  ;;  %v1265_v21 = vmax.f32 %v1002_v18, 0.0 }
 0x14c   :  { %v701_v22 = vpop.f32.mrb[50].mxu0  ;;  %v1006_v23 = vpop.f32.mrb[50].mxu1 }
 0x14d   :  { %1326 = vst.msk [vmem:[%s3476_s2 + $0xc0] sm:$0xff] %vm1301_vm2, %v1204_v20  ;;  %1387 = vst.msk [vmem:[%s3476_s2 + $0x2a8] sm:$0xff] %vm1301_vm2, %v1265_v21  ;;  %v702_v24 = vadd.f32 %v2772_v58, %v701_v22  ;;  %v1774_v25 = vpop.f32.mrb[51].mxu0  ;;  %v1007_v26 = vadd.f32 %v2772_v58, %v1006_v23  ;;  %v1957_v27 = vpop.f32.mrb[51].mxu1 }
 0x14f   :  { %v1205_v28 = vmax.f32 %v702_v24, 0.0  ;;  %v1266_v29 = vmax.f32 %v1007_v26, 0.0 }
 0x150   :  { %v706_v30 = vpop.f32.mrb[52].mxu0  ;;  %v1011_v31 = vpop.f32.mrb[52].mxu1 }
 0x151   :  { %1327 = vst.msk [vmem:[%s3476_s2 + $0xc8] sm:$0xff] %vm1301_vm2, %v1205_v28  ;;  %1388 = vst.msk [vmem:[%s3476_s2 + $0x2b0] sm:$0xff] %vm1301_vm2, %v1266_v29  ;;  %v707_v32 = vadd.f32 %v2772_v58, %v706_v30  ;;  %v1777_v33 = vpop.f32.mrb[53].mxu0  ;;  %v1012_v34 = vadd.f32 %v2772_v58, %v1011_v31  ;;  %v1960_v35 = vpop.f32.mrb[53].mxu1 }
 0x153   :  { %v1206_v36 = vmax.f32 %v707_v32, 0.0  ;;  %v1267_v37 = vmax.f32 %v1012_v34, 0.0 }
 0x154   :  { %v711_v38 = vpop.f32.mrb[54].mxu0  ;;  %v1016_v39 = vpop.f32.mrb[54].mxu1 }
 0x155   :  { %1328 = vst.msk [vmem:[%s3476_s2 + $0xd0] sm:$0xff] %vm1301_vm2, %v1206_v36  ;;  %1389 = vst.msk [vmem:[%s3476_s2 + $0x2b8] sm:$0xff] %vm1301_vm2, %v1267_v37  ;;  %v712_v40 = vadd.f32 %v2772_v58, %v711_v38  ;;  %v1780_v41 = vpop.f32.mrb[55].mxu0  ;;  %v1017_v42 = vadd.f32 %v2772_v58, %v1016_v39  ;;  %v1963_v43 = vpop.f32.mrb[55].mxu1 }
 0x157   :  { %v1207_v44 = vmax.f32 %v712_v40, 0.0  ;;  %v1268_v45 = vmax.f32 %v1017_v42, 0.0 }
 0x158   :  { %v716_v46 = vpop.f32.mrb[56].mxu0  ;;  %v1021_v47 = vpop.f32.mrb[56].mxu1 }
 0x159   :  { %1329 = vst.msk [vmem:[%s3476_s2 + $0xd8] sm:$0xff] %vm1301_vm2, %v1207_v44  ;;  %1390 = vst.msk [vmem:[%s3476_s2 + $0x2c0] sm:$0xff] %vm1301_vm2, %v1268_v45  ;;  %v717_v48 = vadd.f32 %v2772_v58, %v716_v46  ;;  %v1783_v49 = vpop.f32.mrb[57].mxu0  ;;  %v1022_v50 = vadd.f32 %v2772_v58, %v1021_v47  ;;  %v1966_v51 = vpop.f32.mrb[57].mxu1 }
 0x15b   :  { %v1208_v52 = vmax.f32 %v717_v48, 0.0  ;;  %v1269_v53 = vmax.f32 %v1022_v50, 0.0 }
 0x15c   :  { %v721_v54 = vpop.f32.mrb[58].mxu0  ;;  %v1026_v55 = vpop.f32.mrb[58].mxu1 }
 0x15d   :  { %1330 = vst.msk [vmem:[%s3476_s2 + $0xe0] sm:$0xff] %vm1301_vm2, %v1208_v52  ;;  %1391 = vst.msk [vmem:[%s3476_s2 + $0x2c8] sm:$0xff] %vm1301_vm2, %v1269_v53  ;;  %v722_v56 = vadd.f32 %v2772_v58, %v721_v54  ;;  %v1786_v57 = vpop.f32.mrb[59].mxu0  ;;  %v1027_v59 = vadd.f32 %v2772_v58, %v1026_v55  ;;  %v1969_v60 = vpop.f32.mrb[59].mxu1 }
 0x15f   :  { %v1209_v61 = vmax.f32 %v722_v56, 0.0  ;;  %v1270_v62 = vmax.f32 %v1027_v59, 0.0 }
 0x160   :  { %v726_v63 = vpop.f32.mrb[60].mxu0  ;;  %v1031_v0 = vpop.f32.mrb[60].mxu1 }
 0x161   :  { %1331 = vst.msk [vmem:[%s3476_s2 + $0xe8] sm:$0xff] %vm1301_vm2, %v1209_v61  ;;  %1392 = vst.msk [vmem:[%s3476_s2 + $0x2d0] sm:$0xff] %vm1301_vm2, %v1270_v62  ;;  %v727_v1 = vadd.f32 %v2772_v58, %v726_v63  ;;  %v1789_v2 = vpop.f32.mrb[61].mxu0  ;;  %v1032_v3 = vadd.f32 %v2772_v58, %v1031_v0  ;;  %v1972_v4 = vpop.f32.mrb[61].mxu1 }
 0x163   :  { %v1210_v5 = vmax.f32 %v727_v1, 0.0  ;;  %v1271_v6 = vmax.f32 %v1032_v3, 0.0 }
 0x164   :  { %v731_v7 = vpop.f32.mrb[62].mxu0  ;;  %v1036_v8 = vpop.f32.mrb[62].mxu1 }
 0x165   :  { %1332 = vst.msk [vmem:[%s3476_s2 + $0xf0] sm:$0xff] %vm1301_vm2, %v1210_v5  ;;  %1393 = vst.msk [vmem:[%s3476_s2 + $0x2d8] sm:$0xff] %vm1301_vm2, %v1271_v6  ;;  %v732_v9 = vadd.f32 %v2772_v58, %v731_v7  ;;  %v1792_v10 = vpop.f32.mrb[63].mxu0  ;;  %v1037_v11 = vadd.f32 %v2772_v58, %v1036_v8  ;;  %v1975_v12 = vpop.f32.mrb[63].mxu1 }
 0x167   :  { %v1211_v13 = vmax.f32 %v732_v9, 0.0  ;;  %v1272_v14 = vmax.f32 %v1037_v11, 0.0 }
 0x168   :  { %v736_v15 = vpop.f32.mrb[64].mxu0  ;;  %v1041_v16 = vpop.f32.mrb[64].mxu1 }
 0x169   :  { %1333 = vst.msk [vmem:[%s3476_s2 + $0xf8] sm:$0xff] %vm1301_vm2, %v1211_v13  ;;  %1394 = vst.msk [vmem:[%s3476_s2 + $0x2e0] sm:$0xff] %vm1301_vm2, %v1272_v14  ;;  %v737_v17 = vadd.f32 %v2772_v58, %v736_v15  ;;  %v1795_v18 = vpop.f32.mrb[65].mxu0  ;;  %v1042_v19 = vadd.f32 %v2772_v58, %v1041_v16  ;;  %v1978_v20 = vpop.f32.mrb[65].mxu1 }
 0x16b   :  { %v1212_v21 = vmax.f32 %v737_v17, 0.0  ;;  %v1273_v22 = vmax.f32 %v1042_v19, 0.0 }
 0x16c   :  { %v741_v23 = vpop.f32.mrb[66].mxu0  ;;  %v1046_v24 = vpop.f32.mrb[66].mxu1 }
 0x16d   :  { %1334 = vst.msk [vmem:[%s3476_s2 + $0x100] sm:$0xff] %vm1301_vm2, %v1212_v21  ;;  %1395 = vst.msk [vmem:[%s3476_s2 + $0x2e8] sm:$0xff] %vm1301_vm2, %v1273_v22  ;;  %v742_v25 = vadd.f32 %v2772_v58, %v741_v23  ;;  %v1798_v26 = vpop.f32.mrb[67].mxu0  ;;  %v1047_v27 = vadd.f32 %v2772_v58, %v1046_v24  ;;  %v1981_v28 = vpop.f32.mrb[67].mxu1 }
 0x16f   :  { %v1213_v29 = vmax.f32 %v742_v25, 0.0  ;;  %v1274_v30 = vmax.f32 %v1047_v27, 0.0 }
 0x170   :  { %v746_v31 = vpop.f32.mrb[68].mxu0  ;;  %v1051_v32 = vpop.f32.mrb[68].mxu1 }
 0x171   :  { %1335 = vst.msk [vmem:[%s3476_s2 + $0x108] sm:$0xff] %vm1301_vm2, %v1213_v29  ;;  %1396 = vst.msk [vmem:[%s3476_s2 + $0x2f0] sm:$0xff] %vm1301_vm2, %v1274_v30  ;;  %v747_v33 = vadd.f32 %v2772_v58, %v746_v31  ;;  %v1801_v34 = vpop.f32.mrb[69].mxu0  ;;  %v1052_v35 = vadd.f32 %v2772_v58, %v1051_v32  ;;  %v1984_v36 = vpop.f32.mrb[69].mxu1 }
 0x173   :  { %v1214_v37 = vmax.f32 %v747_v33, 0.0  ;;  %v1275_v38 = vmax.f32 %v1052_v35, 0.0 }
 0x174   :  { %v751_v39 = vpop.f32.mrb[70].mxu0  ;;  %v1056_v40 = vpop.f32.mrb[70].mxu1 }
 0x175   :  { %1336 = vst.msk [vmem:[%s3476_s2 + $0x110] sm:$0xff] %vm1301_vm2, %v1214_v37  ;;  %1397 = vst.msk [vmem:[%s3476_s2 + $0x2f8] sm:$0xff] %vm1301_vm2, %v1275_v38  ;;  %v752_v41 = vadd.f32 %v2772_v58, %v751_v39  ;;  %v1804_v42 = vpop.f32.mrb[71].mxu0  ;;  %v1057_v43 = vadd.f32 %v2772_v58, %v1056_v40  ;;  %v1987_v44 = vpop.f32.mrb[71].mxu1 }
 0x177   :  { %v1215_v45 = vmax.f32 %v752_v41, 0.0  ;;  %v1276_v46 = vmax.f32 %v1057_v43, 0.0 }
 0x178   :  { %v756_v47 = vpop.f32.mrb[72].mxu0  ;;  %v1061_v48 = vpop.f32.mrb[72].mxu1 }
 0x179   :  { %1337 = vst.msk [vmem:[%s3476_s2 + $0x118] sm:$0xff] %vm1301_vm2, %v1215_v45  ;;  %1398 = vst.msk [vmem:[%s3476_s2 + $0x300] sm:$0xff] %vm1301_vm2, %v1276_v46  ;;  %v757_v49 = vadd.f32 %v2772_v58, %v756_v47  ;;  %v1807_v50 = vpop.f32.mrb[73].mxu0  ;;  %v1062_v51 = vadd.f32 %v2772_v58, %v1061_v48  ;;  %v1990_v52 = vpop.f32.mrb[73].mxu1 }
 0x17b   :  { %v1216_v53 = vmax.f32 %v757_v49, 0.0  ;;  %v1277_v54 = vmax.f32 %v1062_v51, 0.0 }
 0x17c   :  { %v761_v55 = vpop.f32.mrb[74].mxu0  ;;  %v1066_v56 = vpop.f32.mrb[74].mxu1 }
 0x17d   :  { %1338 = vst.msk [vmem:[%s3476_s2 + $0x120] sm:$0xff] %vm1301_vm2, %v1216_v53  ;;  %1399 = vst.msk [vmem:[%s3476_s2 + $0x308] sm:$0xff] %vm1301_vm2, %v1277_v54  ;;  %v762_v57 = vadd.f32 %v2772_v58, %v761_v55  ;;  %v1810_v59 = vpop.f32.mrb[75].mxu0  ;;  %v1067_v60 = vadd.f32 %v2772_v58, %v1066_v56  ;;  %v1993_v61 = vpop.f32.mrb[75].mxu1 }
 0x17f   :  { %v1217_v62 = vmax.f32 %v762_v57, 0.0  ;;  %v1278_v63 = vmax.f32 %v1067_v60, 0.0 }
 0x180   :  { %v766_v0 = vpop.f32.mrb[76].mxu0  ;;  %v1071_v1 = vpop.f32.mrb[76].mxu1 }
 0x181   :  { %1339 = vst.msk [vmem:[%s3476_s2 + $0x128] sm:$0xff] %vm1301_vm2, %v1217_v62  ;;  %1400 = vst.msk [vmem:[%s3476_s2 + $0x310] sm:$0xff] %vm1301_vm2, %v1278_v63  ;;  %v767_v2 = vadd.f32 %v2772_v58, %v766_v0  ;;  %v1813_v3 = vpop.f32.mrb[77].mxu0  ;;  %v1072_v4 = vadd.f32 %v2772_v58, %v1071_v1  ;;  %v1996_v5 = vpop.f32.mrb[77].mxu1 }
 0x182   :  { %v3328_v5 = vld [vmem:[%s3474_s1 + $0x48] ss:$0 sm:$0xff] }
 0x183   :  { %v1218_v6 = vmax.f32 %v767_v2, 0.0  ;;  %v1279_v7 = vmax.f32 %v1072_v4, 0.0 }
 0x184   :  { %v771_v8 = vpop.f32.mrb[78].mxu0  ;;  %v1076_v9 = vpop.f32.mrb[78].mxu1 }
 0x185   :  { %1340 = vst.msk [vmem:[%s3476_s2 + $0x130] sm:$0xff] %vm1301_vm2, %v1218_v6  ;;  %1401 = vst.msk [vmem:[%s3476_s2 + $0x318] sm:$0xff] %vm1301_vm2, %v1279_v7  ;;  %v772_v10 = vadd.f32 %v2772_v58, %v771_v8  ;;  %v1816_v11 = vpop.f32.mrb[79].mxu0  ;;  %v1077_v12 = vadd.f32 %v2772_v58, %v1076_v9  ;;  %v1999_v13 = vpop.f32.mrb[79].mxu1 }
 0x187   :  { %v1219_v14 = vmax.f32 %v772_v10, 0.0  ;;  %v1280_v15 = vmax.f32 %v1077_v12, 0.0 }
 0x188   :  { %v776_v16 = vpop.f32.mrb[80].mxu0  ;;  %v1081_v17 = vpop.f32.mrb[80].mxu1 }
 0x189   :  { %1341 = vst.msk [vmem:[%s3476_s2 + $0x138] sm:$0xff] %vm1301_vm2, %v1219_v14  ;;  %1402 = vst.msk [vmem:[%s3476_s2 + $0x320] sm:$0xff] %vm1301_vm2, %v1280_v15  ;;  %v777_v18 = vadd.f32 %v2772_v58, %v776_v16  ;;  %v1819_v19 = vpop.f32.mrb[81].mxu0  ;;  %v1082_v20 = vadd.f32 %v2772_v58, %v1081_v17  ;;  %v2002_v21 = vpop.f32.mrb[81].mxu1 }
 0x18b   :  { %v1220_v22 = vmax.f32 %v777_v18, 0.0  ;;  %v1281_v23 = vmax.f32 %v1082_v20, 0.0 }
 0x18c   :  { %v781_v24 = vpop.f32.mrb[82].mxu0  ;;  %v1086_v25 = vpop.f32.mrb[82].mxu1 }
 0x18d   :  { %1342 = vst.msk [vmem:[%s3476_s2 + $0x140] sm:$0xff] %vm1301_vm2, %v1220_v22  ;;  %1403 = vst.msk [vmem:[%s3476_s2 + $0x328] sm:$0xff] %vm1301_vm2, %v1281_v23  ;;  %v782_v26 = vadd.f32 %v2772_v58, %v781_v24  ;;  %v1822_v27 = vpop.f32.mrb[83].mxu0  ;;  %v1087_v28 = vadd.f32 %v2772_v58, %v1086_v25  ;;  %v2005_v29 = vpop.f32.mrb[83].mxu1 }
 0x18f   :  { %v1221_v30 = vmax.f32 %v782_v26, 0.0  ;;  %v1282_v31 = vmax.f32 %v1087_v28, 0.0 }
 0x190   :  { %v786_v32 = vpop.f32.mrb[84].mxu0  ;;  %v1091_v33 = vpop.f32.mrb[84].mxu1 }
 0x191   :  { %1343 = vst.msk [vmem:[%s3476_s2 + $0x148] sm:$0xff] %vm1301_vm2, %v1221_v30  ;;  %1404 = vst.msk [vmem:[%s3476_s2 + $0x330] sm:$0xff] %vm1301_vm2, %v1282_v31  ;;  %v787_v34 = vadd.f32 %v2772_v58, %v786_v32  ;;  %v1825_v35 = vpop.f32.mrb[85].mxu0  ;;  %v1092_v36 = vadd.f32 %v2772_v58, %v1091_v33  ;;  %v2008_v37 = vpop.f32.mrb[85].mxu1 }
 0x193   :  { %v1222_v38 = vmax.f32 %v787_v34, 0.0  ;;  %v1283_v39 = vmax.f32 %v1092_v36, 0.0 }
 0x194   :  { %v791_v40 = vpop.f32.mrb[86].mxu0  ;;  %v1096_v41 = vpop.f32.mrb[86].mxu1 }
 0x195   :  { %1344 = vst.msk [vmem:[%s3476_s2 + $0x150] sm:$0xff] %vm1301_vm2, %v1222_v38  ;;  %1405 = vst.msk [vmem:[%s3476_s2 + $0x338] sm:$0xff] %vm1301_vm2, %v1283_v39  ;;  %v792_v42 = vadd.f32 %v2772_v58, %v791_v40  ;;  %v1828_v43 = vpop.f32.mrb[87].mxu0  ;;  %v1097_v44 = vadd.f32 %v2772_v58, %v1096_v41  ;;  %v2011_v45 = vpop.f32.mrb[87].mxu1 }
 0x197   :  { %v1223_v46 = vmax.f32 %v792_v42, 0.0  ;;  %v1284_v47 = vmax.f32 %v1097_v44, 0.0 }
 0x198   :  { %v796_v48 = vpop.f32.mrb[88].mxu0  ;;  %v1101_v49 = vpop.f32.mrb[88].mxu1 }
 0x199   :  { %1345 = vst.msk [vmem:[%s3476_s2 + $0x158] sm:$0xff] %vm1301_vm2, %v1223_v46  ;;  %1406 = vst.msk [vmem:[%s3476_s2 + $0x340] sm:$0xff] %vm1301_vm2, %v1284_v47  ;;  %v797_v50 = vadd.f32 %v2772_v58, %v796_v48  ;;  %v1831_v51 = vpop.f32.mrb[89].mxu0  ;;  %v1102_v52 = vadd.f32 %v2772_v58, %v1101_v49  ;;  %v2014_v53 = vpop.f32.mrb[89].mxu1 }
 0x19b   :  { %v1224_v54 = vmax.f32 %v797_v50, 0.0  ;;  %v1285_v55 = vmax.f32 %v1102_v52, 0.0 }
 0x19c   :  { %v801_v56 = vpop.f32.mrb[90].mxu0  ;;  %v1106_v57 = vpop.f32.mrb[90].mxu1 }
 0x19d   :  { %1346 = vst.msk [vmem:[%s3476_s2 + $0x160] sm:$0xff] %vm1301_vm2, %v1224_v54  ;;  %1407 = vst.msk [vmem:[%s3476_s2 + $0x348] sm:$0xff] %vm1301_vm2, %v1285_v55  ;;  %v802_v59 = vadd.f32 %v2772_v58, %v801_v56  ;;  %v1834_v60 = vpop.f32.mrb[91].mxu0  ;;  %v1107_v61 = vadd.f32 %v2772_v58, %v1106_v57  ;;  %v2017_v62 = vpop.f32.mrb[91].mxu1 }
 0x19f   :  { %v1225_v63 = vmax.f32 %v802_v59, 0.0  ;;  %v1286_v0 = vmax.f32 %v1107_v61, 0.0 }
 0x1a0   :  { %v806_v1 = vpop.f32.mrb[92].mxu0  ;;  %v1111_v2 = vpop.f32.mrb[92].mxu1 }
 0x1a1   :  { %1347 = vst.msk [vmem:[%s3476_s2 + $0x168] sm:$0xff] %vm1301_vm2, %v1225_v63  ;;  %1408 = vst.msk [vmem:[%s3476_s2 + $0x350] sm:$0xff] %vm1301_vm2, %v1286_v0  ;;  %v807_v3 = vadd.f32 %v2772_v58, %v806_v1  ;;  %v1837_v4 = vpop.f32.mrb[93].mxu0  ;;  %v1112_v6 = vadd.f32 %v3328_v5, %v1111_v2  ;;  %v2020_v7 = vpop.f32.mrb[93].mxu1 }
 0x1a3   :  { %v1226_v8 = vmax.f32 %v807_v3, 0.0  ;;  %v1287_v9 = vmax.f32 %v1112_v6, 0.0 }
 0x1a4   :  { %v811_v10 = vpop.f32.mrb[94].mxu0  ;;  %v1116_v11 = vpop.f32.mrb[94].mxu1 }
 0x1a5   :  { %1348 = vst.msk [vmem:[%s3476_s2 + $0x170] sm:$0xff] %vm1301_vm2, %v1226_v8  ;;  %1409 = vst.msk [vmem:[%s3476_s2 + $0x358] sm:$0xff] %vm1301_vm2, %v1287_v9  ;;  %v812_v58 = vadd.f32 %v3328_v5, %v811_v10  ;;  %v1840_v12 = vpop.f32.mrb[95].mxu0  ;;  %v1117_v13 = vadd.f32 %v3328_v5, %v1116_v11  ;;  %v2023_v14 = vpop.f32.mrb[95].mxu1 }
 0x1a7   :  { %v1227_v15 = vmax.f32 %v812_v58, 0.0  ;;  %v1288_v16 = vmax.f32 %v1117_v13, 0.0 }
 0x1a8   :  { %v816_v17 = vpop.f32.mrb[96].mxu0  ;;  %v1121_v18 = vpop.f32.mrb[96].mxu1 }
 0x1a9   :  { %1349 = vst.msk [vmem:[%s3476_s2 + $0x178] sm:$0xff] %vm1301_vm2, %v1227_v15  ;;  %1410 = vst.msk [vmem:[%s3476_s2 + $0x360] sm:$0xff] %vm1301_vm2, %v1288_v16  ;;  %v817_v19 = vadd.f32 %v3328_v5, %v816_v17  ;;  %v1843_v20 = vpop.f32.mrb[97].mxu0  ;;  %v1122_v21 = vadd.f32 %v3328_v5, %v1121_v18  ;;  %v2026_v22 = vpop.f32.mrb[97].mxu1 }
 0x1ab   :  { %v1228_v23 = vmax.f32 %v817_v19, 0.0  ;;  %v1289_v24 = vmax.f32 %v1122_v21, 0.0 }
 0x1ac   :  { %v821_v25 = vpop.f32.mrb[98].mxu0  ;;  %v1126_v26 = vpop.f32.mrb[98].mxu1 }
 0x1ad   :  { %1350 = vst.msk [vmem:[%s3476_s2 + $0x180] sm:$0xff] %vm1301_vm2, %v1228_v23  ;;  %1411 = vst.msk [vmem:[%s3476_s2 + $0x368] sm:$0xff] %vm1301_vm2, %v1289_v24  ;;  %v822_v27 = vadd.f32 %v3328_v5, %v821_v25  ;;  %v1846_v28 = vpop.f32.mrb[99].mxu0  ;;  %v1127_v29 = vadd.f32 %v3328_v5, %v1126_v26  ;;  %v2029_v30 = vpop.f32.mrb[99].mxu1 }
 0x1af   :  { %v1229_v31 = vmax.f32 %v822_v27, 0.0  ;;  %v1290_v32 = vmax.f32 %v1127_v29, 0.0 }
 0x1b0   :  { %v826_v33 = vpop.f32.mrb[100].mxu0  ;;  %v1131_v34 = vpop.f32.mrb[100].mxu1 }
 0x1b1   :  { %1351 = vst.msk [vmem:[%s3476_s2 + $0x188] sm:$0xff] %vm1301_vm2, %v1229_v31  ;;  %1412 = vst.msk [vmem:[%s3476_s2 + $0x370] sm:$0xff] %vm1301_vm2, %v1290_v32  ;;  %v827_v35 = vadd.f32 %v3328_v5, %v826_v33  ;;  %v1849_v36 = vpop.f32.mrb[101].mxu0  ;;  %v1132_v37 = vadd.f32 %v3328_v5, %v1131_v34  ;;  %v2032_v38 = vpop.f32.mrb[101].mxu1 }
 0x1b3   :  { %v1230_v39 = vmax.f32 %v827_v35, 0.0  ;;  %v1291_v40 = vmax.f32 %v1132_v37, 0.0 }
 0x1b4   :  { %v831_v41 = vpop.f32.mrb[102].mxu0  ;;  %v1136_v42 = vpop.f32.mrb[102].mxu1 }
 0x1b5   :  { %1352 = vst.msk [vmem:[%s3476_s2 + $0x190] sm:$0xff] %vm1301_vm2, %v1230_v39  ;;  %1413 = vst.msk [vmem:[%s3476_s2 + $0x378] sm:$0xff] %vm1301_vm2, %v1291_v40  ;;  %v832_v43 = vadd.f32 %v3328_v5, %v831_v41  ;;  %v1852_v44 = vpop.f32.mrb[103].mxu0  ;;  %v1137_v45 = vadd.f32 %v3328_v5, %v1136_v42  ;;  %v2035_v46 = vpop.f32.mrb[103].mxu1 }
 0x1b7   :  { %v1231_v47 = vmax.f32 %v832_v43, 0.0  ;;  %v1292_v48 = vmax.f32 %v1137_v45, 0.0 }
 0x1b8   :  { %v836_v49 = vpop.f32.mrb[104].mxu0  ;;  %v1141_v50 = vpop.f32.mrb[104].mxu1 }
 0x1b9   :  { %1353 = vst.msk [vmem:[%s3476_s2 + $0x198] sm:$0xff] %vm1301_vm2, %v1231_v47  ;;  %1414 = vst.msk [vmem:[%s3476_s2 + $0x380] sm:$0xff] %vm1301_vm2, %v1292_v48  ;;  %v837_v51 = vadd.f32 %v3328_v5, %v836_v49  ;;  %v1855_v52 = vpop.f32.mrb[105].mxu0  ;;  %v1142_v53 = vadd.f32 %v3328_v5, %v1141_v50  ;;  %v2038_v54 = vpop.f32.mrb[105].mxu1 }
 0x1bb   :  { %v1232_v55 = vmax.f32 %v837_v51, 0.0  ;;  %v1293_v56 = vmax.f32 %v1142_v53, 0.0 }
 0x1bc   :  { %v841_v57 = vpop.f32.mrb[106].mxu0  ;;  %v1146_v59 = vpop.f32.mrb[106].mxu1 }
 0x1bd   :  { %1354 = vst.msk [vmem:[%s3476_s2 + $0x1a0] sm:$0xff] %vm1301_vm2, %v1232_v55  ;;  %1415 = vst.msk [vmem:[%s3476_s2 + $0x388] sm:$0xff] %vm1301_vm2, %v1293_v56  ;;  %v842_v60 = vadd.f32 %v3328_v5, %v841_v57  ;;  %v1858_v61 = vpop.f32.mrb[107].mxu0  ;;  %v1147_v62 = vadd.f32 %v3328_v5, %v1146_v59  ;;  %v2041_v63 = vpop.f32.mrb[107].mxu1 }
 0x1bf   :  { %v1233_v0 = vmax.f32 %v842_v60, 0.0  ;;  %v1294_v1 = vmax.f32 %v1147_v62, 0.0 }
 0x1c0   :  { %v846_v2 = vpop.f32.mrb[108].mxu0  ;;  %v1151_v3 = vpop.f32.mrb[108].mxu1 }
 0x1c1   :  { %1355 = vst.msk [vmem:[%s3476_s2 + $0x1a8] sm:$0xff] %vm1301_vm2, %v1233_v0  ;;  %1416 = vst.msk [vmem:[%s3476_s2 + $0x390] sm:$0xff] %vm1301_vm2, %v1294_v1  ;;  %v847_v4 = vadd.f32 %v3328_v5, %v846_v2  ;;  %v1861_v6 = vpop.f32.mrb[109].mxu0  ;;  %v1152_v7 = vadd.f32 %v3328_v5, %v1151_v3  ;;  %v2044_v8 = vpop.f32.mrb[109].mxu1 }
 0x1c3   :  { %v1234_v9 = vmax.f32 %v847_v4, 0.0  ;;  %v1295_v10 = vmax.f32 %v1152_v7, 0.0 }
 0x1c4   :  { %v851_v11 = vpop.f32.mrb[110].mxu0  ;;  %v1156_v58 = vpop.f32.mrb[110].mxu1 }
 0x1c5   :  { %1356 = vst.msk [vmem:[%s3476_s2 + $0x1b0] sm:$0xff] %vm1301_vm2, %v1234_v9  ;;  %1417 = vst.msk [vmem:[%s3476_s2 + $0x398] sm:$0xff] %vm1301_vm2, %v1295_v10  ;;  %v852_v12 = vadd.f32 %v3328_v5, %v851_v11  ;;  %v1864_v13 = vpop.f32.mrb[111].mxu0  ;;  %v1157_v14 = vadd.f32 %v3328_v5, %v1156_v58  ;;  %v2047_v15 = vpop.f32.mrb[111].mxu1 }
 0x1c7   :  { %v1235_v16 = vmax.f32 %v852_v12, 0.0  ;;  %v1296_v17 = vmax.f32 %v1157_v14, 0.0 }
 0x1c8   :  { %v856_v18 = vpop.f32.mrb[112].mxu0  ;;  %v1161_v19 = vpop.f32.mrb[112].mxu1 }
 0x1c9   :  { %1357 = vst.msk [vmem:[%s3476_s2 + $0x1b8] sm:$0xff] %vm1301_vm2, %v1235_v16  ;;  %1418 = vst.msk [vmem:[%s3476_s2 + $0x3a0] sm:$0xff] %vm1301_vm2, %v1296_v17  ;;  %v857_v20 = vadd.f32 %v3328_v5, %v856_v18  ;;  %v1867_v21 = vpop.f32.mrb[113].mxu0  ;;  %v1162_v22 = vadd.f32 %v3328_v5, %v1161_v19  ;;  %v2050_v23 = vpop.f32.mrb[113].mxu1 }
 0x1cb   :  { %v1236_v24 = vmax.f32 %v857_v20, 0.0  ;;  %v1297_v25 = vmax.f32 %v1162_v22, 0.0 }
 0x1cc   :  { %v861_v26 = vpop.f32.mrb[114].mxu0  ;;  %v1166_v27 = vpop.f32.mrb[114].mxu1 }
 0x1cd   :  { %1358 = vst.msk [vmem:[%s3476_s2 + $0x1c0] sm:$0xff] %vm1301_vm2, %v1236_v24  ;;  %1419 = vst.msk [vmem:[%s3476_s2 + $0x3a8] sm:$0xff] %vm1301_vm2, %v1297_v25  ;;  %v862_v28 = vadd.f32 %v3328_v5, %v861_v26  ;;  %v1870_v29 = vpop.f32.mrb[115].mxu0  ;;  %v1167_v30 = vadd.f32 %v3328_v5, %v1166_v27  ;;  %v2053_v31 = vpop.f32.mrb[115].mxu1 }
 0x1cf   :  { %v1237_v32 = vmax.f32 %v862_v28, 0.0  ;;  %v1298_v33 = vmax.f32 %v1167_v30, 0.0 }
 0x1d0   :  { %v866_v34 = vpop.f32.mrb[116].mxu0  ;;  %v1171_v35 = vpop.f32.mrb[116].mxu1 }
 0x1d1   :  { %1359 = vst.msk [vmem:[%s3476_s2 + $0x1c8] sm:$0xff] %vm1301_vm2, %v1237_v32  ;;  %1420 = vst.msk [vmem:[%s3476_s2 + $0x3b0] sm:$0xff] %vm1301_vm2, %v1298_v33  ;;  %v867_v36 = vadd.f32 %v3328_v5, %v866_v34  ;;  %v1873_v37 = vpop.f32.mrb[117].mxu0  ;;  %v1172_v38 = vadd.f32 %v3328_v5, %v1171_v35  ;;  %v2056_v39 = vpop.f32.mrb[117].mxu1 }
 0x1d3   :  { %v1238_v40 = vmax.f32 %v867_v36, 0.0  ;;  %v1299_v41 = vmax.f32 %v1172_v38, 0.0 }
 0x1d4   :  { %v871_v42 = vpop.f32.mrb[118].mxu0  ;;  %v1176_v43 = vpop.f32.mrb[118].mxu1 }
 0x1d5   :  { %1360 = vst.msk [vmem:[%s3476_s2 + $0x1d0] sm:$0xff] %vm1301_vm2, %v1238_v40  ;;  %1421 = vst.msk [vmem:[%s3476_s2 + $0x3b8] sm:$0xff] %vm1301_vm2, %v1299_v41  ;;  %v872_v44 = vadd.f32 %v3328_v5, %v871_v42  ;;  %v1876_v45 = vpop.f32.mrb[119].mxu0  ;;  %v1177_v46 = vadd.f32 %v3328_v5, %v1176_v43  ;;  %v2059_v47 = vpop.f32.mrb[119].mxu1 }
 0x1d7   :  { %v1239_v48 = vmax.f32 %v872_v44, 0.0  ;;  %v1300_v49 = vmax.f32 %v1177_v46, 0.0 }
 0x1d8   :  { %v876_v50 = vpop.f32.mrb[120].mxu0 }
 0x1d9   :  { %1361 = vst.msk [vmem:[%s3476_s2 + $0x1d8] sm:$0xff] %vm1301_vm2, %v1239_v48  ;;  %1422 = vst.msk [vmem:[%s3476_s2 + $0x3c0] sm:$0xff] %vm1301_vm2, %v1300_v49  ;;  %v877_v51 = vadd.f32 %v3328_v5, %v876_v50  ;;  %v1879_v52 = vpop.f32.mrb[121].mxu0 }
 0x1db   :  { %v1240_v53 = vmax.f32 %v877_v51, 0.0 }
 0x1dd   :  { %1362 = vst.msk [vmem:[%s3476_s2 + $0x1e0] sm:$0xff] %vm1301_vm2, %v1240_v53 }

// kernel: encoder_cnn_forward.6
= control target key start
LH: loop header
LB: loop body
LE: loop exit
PB: predicated region body
PF: predicated region fallthrough
CT: control target
= control target key end

     0   :  { %v244_v0 = vmov 0.0|0.0   ;;  %vm48_vm0 = vcmask 130048   ;;  %vm177_vm1 = vcmask 261120   ;;  %vm184_vm2 = vcmask 254976   ;;  %s411_s1 = inlined_call_operand.vmem [shape: f32[145,32], index: 1, kind: input, shape index: {}]   ;;  %s412_s0 = inlined_call_operand.vmem [shape: f32[50,144], index: 0, kind: input, shape index: {}]   ;;  %s413_s2 = inlined_call_operand.vmem [shape: f32[50,32], index: 2, kind: output, shape index: {}]  }
   0x1   :  { %198 = vmatprep.subr.bf16.mxu0 %v244_v0  ;;  %v25_v1 = vld [vmem:[%s411_s1] sm:$0xff]  ;;  %v26_v2 = vld [vmem:[%s411_s1 + $0x8] sm:$0xff]  ;;  %225 = vmatprep.subr.bf16.mxu1 %v244_v0  ;;  %v27_v3 = vld [vmem:[%s411_s1 + $0x10] sm:$0xff] }
   0x2   :  { %v199_v4 = vpack.c.bf16 %v26_v2, %v25_v1  ;;  %v28_v5 = vld [vmem:[%s411_s1 + $0x18] sm:$0xff]  ;;  %v29_v7 = vld [vmem:[%s411_s1 + $0x20] sm:$0xff]  ;;  %v30_v8 = vld [vmem:[%s411_s1 + $0x28] sm:$0xff] }
   0x3   :  { %v202_v6 = vpack.c.bf16 %v28_v5, %v27_v3  ;;  %v12_v9 = vld [vmem:[%s412_s0 + $0x8] sm:$0xff]  ;;  %v205_v11 = vpack.c.bf16 %v30_v8, %v29_v7  ;;  %v31_v12 = vld [vmem:[%s411_s1 + $0x30] sm:$0xff]  ;;  %v32_v13 = vld [vmem:[%s411_s1 + $0x38] sm:$0xff] }
   0x4   :  { %200 = vmatpush1.bf16.msra.mxu0 %v199_v4  ;;  %234 = vmatpush1.bf16.msra.mxu1 %v199_v4  ;;  %v20_v10 = vld [vmem:[%s412_s0 + $0x48] sm:$0xff]  ;;  %v208_v14 = vpack.c.bf16 %v32_v13, %v31_v12  ;;  %v33_v15 = vld [vmem:[%s411_s1 + $0x40] sm:$0xff]  ;;  %v35_v18 = vld [vmem:[%s411_s1 + $0x50] sm:$0xff] }
   0x5   :  { %201 = vmatprep.subr.bf16.mxu0 %v244_v0  ;;  %226 = vmatprep.subr.bf16.mxu1 %v244_v0  ;;  %v34_v16 = vld [vmem:[%s411_s1 + $0x48] sm:$0xff]  ;;  %v36_v19 = vld [vmem:[%s411_s1 + $0x58] sm:$0xff]  ;;  %v37_v21 = vld [vmem:[%s411_s1 + $0x60] sm:$0xff] }
   0x6   :  { %191 = vmatprep.mubr.msk.f32.mxu0 %vm48_vm0, %v12_v9  ;;  %195 = vmatprep.mubr.msk.f32.mxu1 %vm48_vm0, %v20_v10  ;;  %v211_v17 = vpack.c.bf16 %v34_v16, %v33_v15  ;;  %v214_v20 = vpack.c.bf16 %v36_v19, %v35_v18  ;;  %v38_v22 = vld [vmem:[%s411_s1 + $0x68] sm:$0xff]  ;;  %v39_v24 = vld [vmem:[%s411_s1 + $0x70] sm:$0xff]  ;;  %v40_v25 = vld [vmem:[%s411_s1 + $0x78] sm:$0xff] }
   0x7   :  { %v217_v23 = vpack.c.bf16 %v38_v22, %v37_v21  ;;  %v220_v26 = vpack.c.bf16 %v40_v25, %v39_v24  ;;  %v41_v27 = vld [vmem:[%s411_s1 + $0x80] sm:$0xff]  ;;  %v42_v28 = vld [vmem:[%s411_s1 + $0x88] sm:$0xff]  ;;  %v14_v32 = vld [vmem:[%s412_s0 + $0x18] sm:$0xff] }
   0x8   :  { %203 = vmatpush1.bf16.msra.mxu0 %v202_v6  ;;  %235 = vmatpush1.bf16.msra.mxu1 %v202_v6  ;;  %v223_v29 = vpack.c.bf16 %v42_v28, %v41_v27  ;;  %v11_v30 = vld [vmem:[%s412_s0] sm:$0xff]  ;;  %v22_v33 = vld [vmem:[%s412_s0 + $0x58] sm:$0xff]  ;;  %v13_v34 = vld [vmem:[%s412_s0 + $0x10] sm:$0xff] }
   0x9   :  { %204 = vmatprep.subr.bf16.mxu0 %v244_v0  ;;  %227 = vmatprep.subr.bf16.mxu1 %v244_v0  ;;  %v19_v31 = vld [vmem:[%s412_s0 + $0x40] sm:$0xff]  ;;  %v21_v35 = vld [vmem:[%s412_s0 + $0x50] sm:$0xff]  ;;  %v16_v36 = vld [vmem:[%s412_s0 + $0x28] sm:$0xff] }
   0xa   :  { %v24_v37 = vld [vmem:[%s412_s0 + $0x68] sm:$0x3]  ;;  %v15_v38 = vld [vmem:[%s412_s0 + $0x20] sm:$0xff]  ;;  %v18_v40 = vld [vmem:[%s412_s0 + $0x38] sm:$0xff] }
   0xb   :  { %v23_v39 = vld [vmem:[%s412_s0 + $0x60] sm:$0x3]  ;;  %v17_v41 = vld [vmem:[%s412_s0 + $0x30] sm:$0xff] }
   0xc   :  { %206 = vmatpush1.bf16.msra.mxu0 %v205_v11  ;;  %236 = vmatpush1.bf16.msra.mxu1 %v205_v11  ;;  %v190_v42 = vld [vmem:[%s411_s1 + $0x90] ss:$0 sm:$0xff] }
   0xd   :  { %207 = vmatprep.subr.bf16.mxu0 %v244_v0  ;;  %228 = vmatprep.subr.bf16.mxu1 %v244_v0 }
  0x10   :  { %209 = vmatpush1.bf16.msra.mxu0 %v208_v14  ;;  %237 = vmatpush1.bf16.msra.mxu1 %v208_v14 }
  0x11   :  { %210 = vmatprep.subr.bf16.mxu0 %v244_v0  ;;  %229 = vmatprep.subr.bf16.mxu1 %v244_v0 }
  0x14   :  { %212 = vmatpush1.bf16.msra.mxu0 %v211_v17  ;;  %238 = vmatpush1.bf16.msra.mxu1 %v211_v17 }
  0x15   :  { %213 = vmatprep.subr.bf16.mxu0 %v244_v0  ;;  %230 = vmatprep.subr.bf16.mxu1 %v244_v0 }
  0x18   :  { %215 = vmatpush1.bf16.msra.mxu0 %v214_v20  ;;  %239 = vmatpush1.bf16.msra.mxu1 %v214_v20 }
  0x19   :  { %216 = vmatprep.subr.bf16.mxu0 %v244_v0  ;;  %231 = vmatprep.subr.bf16.mxu1 %v244_v0 }
  0x1c   :  { %218 = vmatpush1.bf16.msra.mxu0 %v217_v23  ;;  %240 = vmatpush1.bf16.msra.mxu1 %v217_v23 }
  0x1d   :  { %219 = vmatprep.subr.bf16.mxu0 %v244_v0  ;;  %232 = vmatprep.subr.bf16.mxu1 %v244_v0 }
  0x20   :  { %221 = vmatpush1.bf16.msra.mxu0 %v220_v26  ;;  %241 = vmatpush1.bf16.msra.mxu1 %v220_v26 }
  0x21   :  { %222 = vmatprep.subr.bf16.mxu0 %v244_v0  ;;  %233 = vmatprep.subr.bf16.mxu1 %v244_v0 }
  0x24   :  { %224 = vmatpush1.bf16.msra.mxu0 %v223_v29  ;;  %242 = vmatpush1.bf16.msra.mxu1 %v223_v29 }
  0x27   :  { %135 = vmatmul.mubr.f32.vlgmr.msra.gmra.mrb[0].mxu0 %v11_v30  ;;  %155 = vmatmul.mubr.f32.vlgmr.msra.gmra.mrb[0].mxu1 %v19_v31 }
  0x28   :  { %192 = vmatprep.mubr.msk.f32.mxu0 %vm48_vm0, %v14_v32  ;;  %196 = vmatprep.mubr.msk.f32.mxu1 %vm48_vm0, %v22_v33 }
  0x2b   :  { %140 = vmatmul.mubr.f32.gmra.mrb[2].mxu0 %v13_v34  ;;  %160 = vmatmul.mubr.f32.gmra.mrb[2].mxu1 %v21_v35 }
  0x2c   :  { %193 = vmatprep.mubr.msk.f32.mxu0 %vm48_vm0, %v16_v36  ;;  %197 = vmatprep.mubr.msk.f32.mxu1 %vm48_vm0, %v24_v37 }
  0x2f   :  { %145 = vmatmul.mubr.f32.gmra.mrb[4].mxu0 %v15_v38  ;;  %165 = vmatmul.mubr.f32.gmra.mrb[4].mxu1 %v23_v39 }
  0x30   :  { %194 = vmatprep.mubr.msk.f32.mxu0 %vm48_vm0, %v18_v40 }
  0x33   :  { %150 = vmatmul.mubr.f32.gmra.mrb[6].mxu0 %v17_v41 }
  0xfa   :  { %v136_v43 = vpop.f32.mrb[0].mxu0  ;;  %v156_v44 = vpop.f32.mrb[0].mxu1 }
  0xfb   :  { %v137_v45 = vadd.f32 %v190_v42, %v136_v43  ;;  %v138_v46 = vpop.f32.mrb[1].mxu0  ;;  %v157_v47 = vadd.f32 %v190_v42, %v156_v44  ;;  %v158_v48 = vpop.f32.mrb[1].mxu1 }
  0xfd   :  { %v170_v49 = vmax.f32 %v137_v45, 0.0  ;;  %v174_v50 = vmax.f32 %v157_v47, 0.0 }
  0xfe   :  { %v141_v51 = vpop.f32.mrb[2].mxu0  ;;  %v161_v52 = vpop.f32.mrb[2].mxu1 }
  0xff   :  { %178 = vst.msk [vmem:[%s413_s2] sm:$0xff] %vm177_vm1, %v170_v49  ;;  %182 = vst.msk [vmem:[%s413_s2 + $0x20] sm:$0xff] %vm177_vm1, %v174_v50  ;;  %v142_v53 = vadd.f32 %v190_v42, %v141_v51  ;;  %v143_v54 = vpop.f32.mrb[3].mxu0  ;;  %v162_v55 = vadd.f32 %v190_v42, %v161_v52  ;;  %v163_v56 = vpop.f32.mrb[3].mxu1 }
 0x101   :  { %v171_v57 = vmax.f32 %v142_v53, 0.0  ;;  %v175_v58 = vmax.f32 %v162_v55, 0.0 }
 0x102   :  { %v146_v59 = vpop.f32.mrb[4].mxu0  ;;  %v166_v60 = vpop.f32.mrb[4].mxu1 }
 0x103   :  { %179 = vst.msk [vmem:[%s413_s2 + $0x8] sm:$0xff] %vm177_vm1, %v171_v57  ;;  %183 = vst.msk [vmem:[%s413_s2 + $0x28] sm:$0xff] %vm177_vm1, %v175_v58  ;;  %v147_v61 = vadd.f32 %v190_v42, %v146_v59  ;;  %v148_v62 = vpop.f32.mrb[5].mxu0  ;;  %v167_v63 = vadd.f32 %v190_v42, %v166_v60  ;;  %v168_v0 = vpop.f32.mrb[5].mxu1 }
 0x105   :  { %v172_v1 = vmax.f32 %v147_v61, 0.0  ;;  %v176_v2 = vmax.f32 %v167_v63, 0.0 }
 0x106   :  { %v151_v3 = vpop.f32.mrb[6].mxu0 }
 0x107   :  { %180 = vst.msk [vmem:[%s413_s2 + $0x10] sm:$0xff] %vm177_vm1, %v172_v1  ;;  %v152_v4 = vadd.f32 %v190_v42, %v151_v3  ;;  %v153_v5 = vpop.f32.mrb[7].mxu0 }
 0x108   :  { %185 = vst.msk [vmem:[%s413_s2 + $0x30] sm:$0x3] %vm184_vm2, %v176_v2 }
 0x109   :  { %v173_v6 = vmax.f32 %v152_v4, 0.0 }
 0x10b   :  { %181 = vst.msk [vmem:[%s413_s2 + $0x18] sm:$0xff] %vm177_vm1, %v173_v6 }

// kernel: encoder_cnn_forward.7
= control target key start
LH: loop header
LB: loop body
LE: loop exit
PB: predicated region body
PF: predicated region fallthrough
CT: control target
= control target key end

     0   :  { %v849_v7 = vmov 0.0|0.0   ;;  %vm850_vm0 = vmmov 0   ;;  %v851_v8 = vmov 0.0   ;;  %s1187_s0 = inlined_call_operand.vmem [shape: f32[8,288], index: 0, kind: input, shape index: {}]   ;;  %s1188_s1 = inlined_call_operand.vmem [shape: f32[676,128], index: 1, kind: input, shape index: {}]   ;;  %s1189_s2 = inlined_call_operand.hbm [shape: f32[2,128], index: 2, kind: output, shape index: {}]  }
   0x1   :  { %v28_v0 = vld [vmem:[%s1188_s1 + $0x80] sm:$0xff]  ;;  %v29_v1 = vld [vmem:[%s1188_s1 + $0x88] sm:$0xff]  ;;  %v30_v5 = vld [vmem:[%s1188_s1 + $0x90] sm:$0xff]  ;;  %743 = vmatprep.subr.bf16.mxu1 %v849_v7  ;;  %603 = vmatprep.mubr.msk.f32.mxu1 %vm850_vm0, %v851_v8 }
   0x2   :  { %v12_v2 = vld [vmem:[%s1188_s1] sm:$0xff]  ;;  %v711_v3 = vpack.c.bf16 %v29_v1, %v28_v0  ;;  %v13_v4 = vld [vmem:[%s1188_s1 + $0x8] sm:$0xff]  ;;  %v31_v6 = vld [vmem:[%s1188_s1 + $0x98] sm:$0xff] }
   0x3   :  { %v713_v9 = vpack.c.bf16 %v13_v4, %v12_v2  ;;  %v715_v10 = vpack.c.bf16 %v31_v6, %v30_v5  ;;  %v14_v11 = vld [vmem:[%s1188_s1 + $0x10] sm:$0xff]  ;;  %v15_v12 = vld [vmem:[%s1188_s1 + $0x18] sm:$0xff]  ;;  %v32_v13 = vld [vmem:[%s1188_s1 + $0xa0] sm:$0xff] }
   0x4   :  { %712 = vmatprep.subr.bf16.mxu0 %v711_v3  ;;  %v33_v14 = vld [vmem:[%s1188_s1 + $0xa8] sm:$0xff]  ;;  %v717_v15 = vpack.c.bf16 %v15_v12, %v14_v11  ;;  %v16_v17 = vld [vmem:[%s1188_s1 + $0x20] sm:$0xff]  ;;  %v34_v19 = vld [vmem:[%s1188_s1 + $0xb0] sm:$0xff] }
   0x5   :  { %714 = vmatpush3.bf16.msra.mxu0 %v713_v9  ;;  %v719_v16 = vpack.c.bf16 %v33_v14, %v32_v13  ;;  %v17_v18 = vld [vmem:[%s1188_s1 + $0x28] sm:$0xff]  ;;  %v35_v20 = vld [vmem:[%s1188_s1 + $0xb8] sm:$0xff]  ;;  %v18_v23 = vld [vmem:[%s1188_s1 + $0x30] sm:$0xff] }
   0x6   :  { %716 = vmatprep.subr.bf16.mxu0 %v715_v10  ;;  %v721_v21 = vpack.c.bf16 %v17_v18, %v16_v17  ;;  %v723_v22 = vpack.c.bf16 %v35_v20, %v34_v19  ;;  %v19_v24 = vld [vmem:[%s1188_s1 + $0x38] sm:$0xff]  ;;  %v36_v25 = vld [vmem:[%s1188_s1 + $0xc0] sm:$0xff]  ;;  %v37_v26 = vld [vmem:[%s1188_s1 + $0xc8] sm:$0xff] }
   0x7   :  { %v44_v27 = vld [vmem:[%s1188_s1 + $0x100] sm:$0xff]  ;;  %v45_v28 = vld [vmem:[%s1188_s1 + $0x108] sm:$0xff]  ;;  %v725_v30 = vpack.c.bf16 %v19_v24, %v18_v23  ;;  %v46_v32 = vld [vmem:[%s1188_s1 + $0x110] sm:$0xff]  ;;  %v727_v34 = vpack.c.bf16 %v37_v26, %v36_v25 }
   0x8   :  { %v101_v29 = vld [vmem:[%s1187_s0 + $0x8] sm:$0xff]  ;;  %v744_v31 = vpack.c.bf16 %v45_v28, %v44_v27  ;;  %v47_v33 = vld [vmem:[%s1188_s1 + $0x118] sm:$0xff]  ;;  %v20_v35 = vld [vmem:[%s1188_s1 + $0x40] sm:$0xff] }
   0x9   :  { %718 = vmatpush3.bf16.msra.mxu0 %v717_v15  ;;  %175 = vmatprep.mubr.f32.mxu0 %v101_v29  ;;  %v21_v36 = vld [vmem:[%s1188_s1 + $0x48] sm:$0xff]  ;;  %v38_v37 = vld [vmem:[%s1188_s1 + $0xd0] sm:$0xff]  ;;  %v39_v38 = vld [vmem:[%s1188_s1 + $0xd8] sm:$0xff]  ;;  %v747_v39 = vpack.c.bf16 %v47_v33, %v46_v32 }
   0xa   :  { %720 = vmatprep.subr.bf16.mxu0 %v719_v16  ;;  %745 = vmatpush3.bf16.msra.mxu1 %v744_v31  ;;  %v49_v40 = vld [vmem:[%s1188_s1 + $0x121] sm:$0xff]  ;;  %v50_v41 = vld [vmem:[%s1188_s1 + $0x129] sm:$0xff] }
   0xb   :  { %746 = vmatprep.subr.bf16.mxu1 %v849_v7 }
   0xd   :  { %722 = vmatpush3.bf16.msra.mxu0 %v721_v21 }
   0xe   :  { %724 = vmatprep.subr.bf16.mxu0 %v723_v22 }
   0xf   :  { %7 = vsyncpa [#allocation3], 0  ;;  %v729_v42 = vpack.c.bf16 %v21_v36, %v20_v35  ;;  %v731_v43 = vpack.c.bf16 %v39_v38, %v38_v37  ;;  %v22_v44 = vld [vmem:[%s1188_s1 + $0x50] sm:$0xff]  ;;  %v23_v45 = vld [vmem:[%s1188_s1 + $0x58] sm:$0xff]  ;;  %748 = vmatpush3.bf16.msra.mxu1 %v747_v39  ;;  %vm107_vm1 = vcmask 261120   ;;  %v750_v49 = vpack.c.bf16 %v50_v41, %v49_v40  ;;  %s852_s20 = smov [#allocation2]  }
  0x10   :  { %v40_v46 = vld [vmem:[%s1188_s1 + $0xe0] sm:$0xff]  ;;  %v41_v47 = vld [vmem:[%s1188_s1 + $0xe8] sm:$0xff]  ;;  %v102_v48 = vld [vmem:[%s1187_s0 + $0x10] sm:$0xff]  ;;  %749 = vmatprep.subr.bf16.mxu1 %v849_v7  ;;  %v733_v52 = vpack.c.bf16 %v23_v45, %v22_v44  ;;  %s491_s21 = sshll.u32 %s852_s20, 4  ;;  %s492_s21 = int_to_ptr.vmem [resolvable:$true] %s491_s21 }
  0x11   :  { %726 = vmatpush3.bf16.msra.mxu0 %v725_v30  ;;  %v51_v50 = vld [vmem:[%s1188_s1 + $0x131] sm:$0xff]  ;;  %v52_v51 = vld [vmem:[%s1188_s1 + $0x139] sm:$0xff]  ;;  %v735_v53 = vpack.c.bf16 %v41_v47, %v40_v46  ;;  %v25_v55 = vld [vmem:[%s1188_s1 + $0x68] sm:$0xff]  ;;  %s825_s22 = scalar_lea.vmem %s492_s21, 32  ;;  %p830_p1 = scmp.lt.s32.totalorder %s492_s21, %s492_s21 }
  0x12   :  { %728 = vmatprep.subr.bf16.mxu0 %v727_v34  ;;  %v24_v54 = vld [vmem:[%s1188_s1 + $0x60] sm:$0xff]  ;;  %604 = vmatmul.mubr.msk.f32.vlgmr.msra.gmra.mrb[0].mxu1 %vm107_vm1, %v102_v48  ;;  %v42_v56 = vld [vmem:[%s1188_s1 + $0xf0] sm:$0xff]  ;;  %v43_v57 = vld [vmem:[%s1188_s1 + $0xf8] sm:$0xff]  ;;  %v753_v58 = vpack.c.bf16 %v52_v51, %v51_v50  ;;  %p826_p0 = scmp.ne.s32.totalorder %s492_s21, %s825_s22  ;;  %p831_p2 = scmp.lt.s32.totalorder %s825_s22, %s825_s22 }
  0x13   :  { %751 = vmatpush3.bf16.msra.mxu1 %v750_v49  ;;  %638 = vmatprep.mubr.msk.f32.mxu1 %vm850_vm0, %v851_v8  ;;  %v53_v59 = vld [vmem:[%s1188_s1 + $0x141] sm:$0xff]  ;;  %v54_v60 = vld [vmem:[%s1188_s1 + $0x149] sm:$0xff]  ;;  %v737_v61 = vpack.c.bf16 %v25_v55, %v24_v54  ;;  %v739_v62 = vpack.c.bf16 %v43_v57, %v42_v56  ;;  %v27_v0 = vld [vmem:[%s1188_s1 + $0x78] sm:$0xff] }
  0x14   :  { %752 = vmatprep.subr.bf16.mxu1 %v849_v7  ;;  %v26_v63 = vld [vmem:[%s1188_s1 + $0x70] sm:$0xff]  ;;  %v756_v1 = vpack.c.bf16 %v54_v60, %v53_v59  ;;  %v56_v3 = vld [vmem:[%s1188_s1 + $0x159] sm:$0xff]  ;;  %v57_v9 = vld [vmem:[%s1188_s1 + $0x161] sm:$0xff]  ;;  %p832_p3 = por %p831_p2, %p830_p1 }
  0x15   :  { %730 = vmatpush3.bf16.msra.mxu0 %v729_v42  ;;  %v55_v2 = vld [vmem:[%s1188_s1 + $0x151] sm:$0xff]  ;;  %v741_v4 = vpack.c.bf16 %v27_v0, %v26_v63  ;;  %v100_v6 = vld [vmem:[%s1187_s0] sm:$0xff]  ;;  %v58_v10 = vld [vmem:[%s1188_s1 + $0x169] sm:$0xff] }
  0x16   :  { %732 = vmatprep.subr.bf16.mxu0 %v731_v43  ;;  %v759_v5 = vpack.c.bf16 %v56_v3, %v55_v2  ;;  %v762_v11 = vpack.c.bf16 %v58_v10, %v57_v9  ;;  %v59_v12 = vld [vmem:[%s1188_s1 + $0x171] sm:$0xff]  ;;  %v60_v13 = vld [vmem:[%s1188_s1 + $0x179] sm:$0xff]  ;;  %v61_v15 = vld [vmem:[%s1188_s1 + $0x181] sm:$0xff]  ;;  %p833_p4 = pnand %p832_p3, %p826_p0 }
  0x17   :  { %754 = vmatpush3.bf16.msra.mxu1 %v753_v58  ;;  %v765_v14 = vpack.c.bf16 %v60_v13, %v59_v12  ;;  %v62_v16 = vld [vmem:[%s1188_s1 + $0x189] sm:$0xff]  ;;  %v63_v18 = vld [vmem:[%s1188_s1 + $0x191] sm:$0xff]  ;;  %v64_v19 = vld [vmem:[%s1188_s1 + $0x199] sm:$0xff] }
  0x18   :  { %755 = vmatprep.subr.bf16.mxu1 %v849_v7  ;;  %v768_v17 = vpack.c.bf16 %v62_v16, %v61_v15  ;;  %v771_v20 = vpack.c.bf16 %v64_v19, %v63_v18  ;;  %v66_v21 = vld [vmem:[%s1188_s1 + $0x1a2] sm:$0xff]  ;;  %v67_v22 = vld [vmem:[%s1188_s1 + $0x1aa] sm:$0xff]  ;;  %v68_v23 = vld [vmem:[%s1188_s1 + $0x1b2] sm:$0xff] }
  0x19   :  { %734 = vmatpush3.bf16.msra.mxu0 %v733_v52  ;;  %v774_v24 = vpack.c.bf16 %v67_v22, %v66_v21  ;;  %v69_v25 = vld [vmem:[%s1188_s1 + $0x1ba] sm:$0xff]  ;;  %v70_v27 = vld [vmem:[%s1188_s1 + $0x1c2] sm:$0xff]  ;;  %v71_v28 = vld [vmem:[%s1188_s1 + $0x1ca] sm:$0xff] }
  0x1a   :  { %736 = vmatprep.subr.bf16.mxu0 %v735_v53  ;;  %v777_v26 = vpack.c.bf16 %v69_v25, %v68_v23  ;;  %v780_v29 = vpack.c.bf16 %v71_v28, %v70_v27  ;;  %v72_v30 = vld [vmem:[%s1188_s1 + $0x1d2] sm:$0xff]  ;;  %v73_v31 = vld [vmem:[%s1188_s1 + $0x1da] sm:$0xff]  ;;  %v74_v33 = vld [vmem:[%s1188_s1 + $0x1e2] sm:$0xff] }
  0x1b   :  { %757 = vmatpush3.bf16.msra.mxu1 %v756_v1  ;;  %v783_v32 = vpack.c.bf16 %v73_v31, %v72_v30  ;;  %v75_v34 = vld [vmem:[%s1188_s1 + $0x1ea] sm:$0xff]  ;;  %v76_v36 = vld [vmem:[%s1188_s1 + $0x1f2] sm:$0xff]  ;;  %v77_v37 = vld [vmem:[%s1188_s1 + $0x1fa] sm:$0xff] }
  0x1c   :  { %758 = vmatprep.subr.bf16.mxu1 %v849_v7  ;;  %v786_v35 = vpack.c.bf16 %v75_v34, %v74_v33  ;;  %v789_v38 = vpack.c.bf16 %v77_v37, %v76_v36  ;;  %v78_v39 = vld [vmem:[%s1188_s1 + $0x202] sm:$0xff]  ;;  %v79_v40 = vld [vmem:[%s1188_s1 + $0x20a] sm:$0xff]  ;;  %v499_v46 = vld [vmem:[%s1188_s1 + $0x120] ss:$0 sm:$0xff] }
  0x1d   :  { %738 = vmatpush3.bf16.msra.mxu0 %v737_v61  ;;  %v792_v41 = vpack.c.bf16 %v79_v40, %v78_v39  ;;  %v80_v55 = vld [vmem:[%s1188_s1 + $0x212] sm:$0xff]  ;;  %v81_v56 = vld [vmem:[%s1188_s1 + $0x21a] sm:$0xff]  ;;  %v83_v58 = vld [vmem:[%s1188_s1 + $0x223] sm:$0xff] }
  0x1e   :  { %740 = vmatprep.subr.bf16.mxu0 %v739_v62  ;;  %v795_v57 = vpack.c.bf16 %v81_v56, %v80_v55  ;;  %v84_v59 = vld [vmem:[%s1188_s1 + $0x22b] sm:$0xff]  ;;  %v86_v61 = vld [vmem:[%s1188_s1 + $0x23b] sm:$0xff]  ;;  %v87_v63 = vld [vmem:[%s1188_s1 + $0x243] sm:$0xff] }
  0x1f   :  { %760 = vmatpush3.bf16.msra.mxu1 %v759_v5  ;;  %v798_v60 = vpack.c.bf16 %v84_v59, %v83_v58  ;;  %v88_v0 = vld [vmem:[%s1188_s1 + $0x24b] sm:$0xff]  ;;  %v89_v2 = vld [vmem:[%s1188_s1 + $0x253] sm:$0xff]  ;;  %v90_v3 = vld [vmem:[%s1188_s1 + $0x25b] sm:$0xff] }
  0x20   :  { %761 = vmatprep.subr.bf16.mxu1 %v849_v7  ;;  %v804_v1 = vpack.c.bf16 %v88_v0, %v87_v63  ;;  %v91_v5 = vld [vmem:[%s1188_s1 + $0x263] sm:$0xff]  ;;  %v93_v10 = vld [vmem:[%s1188_s1 + $0x273] sm:$0xff]  ;;  %v501_v16 = vld [vmem:[%s1188_s1 + $0x1a1] ss:$0 sm:$0xff] }
  0x21   :  { %742 = vmatpush3.bf16.msra.mxu0 %v741_v4  ;;  %v807_v4 = vpack.c.bf16 %v90_v3, %v89_v2  ;;  %v95_v13 = vld [vmem:[%s1188_s1 + $0x283] sm:$0xff]  ;;  %v97_v21 = vld [vmem:[%s1188_s1 + $0x293] sm:$0xff]  ;;  %v98_v22 = vld [vmem:[%s1188_s1 + $0x29b] sm:$0xff] }
  0x22   :  { %773 = vmatprep.subr.bf16.mxu0 %v849_v7  ;;  %v819_v23 = vpack.c.bf16 %v98_v22, %v97_v21  ;;  %v503_v28 = vld [vmem:[%s1188_s1 + $0x2a3] ss:$0 sm:$0xff] }
  0x23   :  { %763 = vmatpush3.bf16.msra.mxu1 %v762_v11  ;;  %v94_v11 = vld [vmem:[%s1188_s1 + $0x27b] sm:$0xff] }
  0x24   :  { %176 = vmatmul.mubr.f32.vlgmr.msra.gmra.mrb[0].mxu0 %v100_v6  ;;  %764 = vmatprep.subr.bf16.mxu1 %v849_v7  ;;  %v92_v6 = vld [vmem:[%s1188_s1 + $0x26b] sm:$0xff]  ;;  %v813_v12 = vpack.c.bf16 %v94_v11, %v93_v10 }
  0x25   :  { %673 = vmatprep.mubr.msk.f32.mxu0 %vm850_vm0, %v851_v8  ;;  %775 = vmatpush3.bf16.msra.mxu0 %v774_v24  ;;  %v810_v9 = vpack.c.bf16 %v92_v6, %v91_v5 }
  0x26   :  { %776 = vmatprep.subr.bf16.mxu0 %v849_v7 }
  0x27   :  { %766 = vmatpush3.bf16.msra.mxu1 %v765_v14  ;;  %v96_v14 = vld [vmem:[%s1188_s1 + $0x28b] sm:$0xff] }
  0x28   :  { %767 = vmatprep.subr.bf16.mxu1 %v849_v7  ;;  %v816_v15 = vpack.c.bf16 %v96_v14, %v95_v13 }
  0x29   :  { %778 = vmatpush3.bf16.msra.mxu0 %v777_v26 }
  0x2a   :  { %779 = vmatprep.subr.bf16.mxu0 %v849_v7 }
  0x2b   :  { %769 = vmatpush3.bf16.msra.mxu1 %v768_v17 }
  0x2c   :  { %770 = vmatprep.subr.bf16.mxu1 %v849_v7 }
  0x2d   :  { %781 = vmatpush3.bf16.msra.mxu0 %v780_v29 }
  0x2e   :  { %782 = vmatprep.subr.bf16.mxu0 %v849_v7 }
  0x2f   :  { %772 = vmatpush3.bf16.msra.mxu1 %v771_v20 }
  0x30   :  { %797 = vmatprep.subr.bf16.mxu1 %v849_v7 }
  0x31   :  { %784 = vmatpush3.bf16.msra.mxu0 %v783_v32 }
  0x32   :  { %785 = vmatprep.subr.bf16.mxu0 %v849_v7 }
  0x35   :  { %787 = vmatpush3.bf16.msra.mxu0 %v786_v35 }
  0x36   :  { %788 = vmatprep.subr.bf16.mxu0 %v849_v7 }
  0x39   :  { %790 = vmatpush3.bf16.msra.mxu0 %v789_v38 }
  0x3a   :  { %791 = vmatprep.subr.bf16.mxu0 %v849_v7 }
  0x3d   :  { %793 = vmatpush3.bf16.msra.mxu0 %v792_v41 }
  0x3e   :  { %794 = vmatprep.subr.bf16.mxu0 %v849_v7 }
  0x41   :  { %796 = vmatpush3.bf16.msra.mxu0 %v795_v57 }
  0xe5   :  { %v247_v42 = vpop.f32.mrb[0].mxu1 }
  0xe6   :  { %v605_v43 = vpop.f32.mrb[1].mxu1 }
  0xf7   :  { %v536_v44 = vpop.f32.mrb[0].mxu0 }
  0xf8   :  { %v537_v45 = vpop.f32.mrb[1].mxu0 }
  0xf9   :  { %v538_v47 = vadd.f32 %v537_v45, %v536_v44 }
  0xfb   :  { %v178_v48 = vadd.f32 %v538_v47, %v499_v46 }
  0xfd   :  { %v248_v49 = vadd.f32 %v247_v42, %v178_v48 }
  0xff   :  { %v251_v50 = vmax.f32 %v248_v49, 0.0 }
 0x101   :  { %v253_v51 = vrot.slane %v251_v50, 2 }
 0x103   :  { %v255_v52 = vmax.f32 %v251_v50, %v253_v51 }
 0x105   :  { %v257_v53 = vrot.slane %v255_v52, 4 }
 0x107   :  { %v259_v54 = vmax.f32 %v255_v52, %v257_v53 }
 0x109   :  { %639 = vmatmul.mubr.f32.vlgmr.msra.gmra.mrb[2].mxu1 %v259_v54 }
 0x10a   :  { %708 = vmatprep.mubr.msk.f32.mxu1 %vm850_vm0, %v851_v8  ;;  %v85_v8 = vld [vmem:[%s1188_s1 + $0x233] sm:$0xff]  ;;  %799 = vmatpush3.bf16.msra.mxu1 %v798_v60 }
 0x10b   :  { %v801_v62 = vpack.c.bf16 %v86_v61, %v85_v8  ;;  %800 = vmatprep.subr.bf16.mxu1 %v849_v7 }
 0x10e   :  { %802 = vmatpush3.bf16.msra.mxu1 %v801_v62 }
 0x10f   :  { %803 = vmatprep.subr.bf16.mxu1 %v849_v7 }
 0x112   :  { %805 = vmatpush3.bf16.msra.mxu1 %v804_v1 }
 0x113   :  { %806 = vmatprep.subr.bf16.mxu1 %v849_v7 }
 0x116   :  { %808 = vmatpush3.bf16.msra.mxu1 %v807_v4 }
 0x117   :  { %809 = vmatprep.subr.bf16.mxu1 %v849_v7 }
 0x11a   :  { %811 = vmatpush3.bf16.msra.mxu1 %v810_v9 }
 0x11b   :  { %812 = vmatprep.subr.bf16.mxu1 %v849_v7 }
 0x11e   :  { %814 = vmatpush3.bf16.msra.mxu1 %v813_v12 }
 0x11f   :  { %815 = vmatprep.subr.bf16.mxu1 %v849_v7 }
 0x122   :  { %817 = vmatpush3.bf16.msra.mxu1 %v816_v15 }
 0x123   :  { %818 = vmatprep.subr.bf16.mxu1 %v849_v7  ;;  %v502_v7 = vld [vmem:[%s1188_s1 + $0x222] ss:$0 sm:$0xff] }
 0x126   :  { %820 = vmatpush3.bf16.msra.mxu1 %v819_v23 }
 0x1dc   :  { %v330_v17 = vpop.f32.mrb[2].mxu1 }
 0x1dd   :  { %v331_v18 = vadd.f32 %v501_v16, %v330_v17  ;;  %v640_v19 = vpop.f32.mrb[3].mxu1 }
 0x1df   :  { %v334_v20 = vmax.f32 %v331_v18, 0.0 }
 0x1e1   :  { %674 = vmatmul.mubr.f32.vlgmr.msra.gmra.mrb[2].mxu0 %v334_v20 }
 0x2b4   :  { %v405_v24 = vpop.f32.mrb[2].mxu0 }
 0x2b5   :  { %v406_v25 = vadd.f32 %v502_v7, %v405_v24  ;;  %v675_v26 = vpop.f32.mrb[3].mxu0 }
 0x2b7   :  { %v409_v27 = vmax.f32 %v406_v25, 0.0 }
 0x2b9   :  { %709 = vmatmul.mubr.f32.vlgmr.msra.gmra.mrb[4].mxu1 %v409_v27 }
 0x38c   :  { %v480_v29 = vpop.f32.mrb[4].mxu1 }
 0x38d   :  { %v481_v30 = vadd.f32 %v503_v28, %v480_v29  ;;  %v710_v31 = vpop.f32.mrb[5].mxu1 }
 0x38f   :  { %484 = vst [vmem:[#allocation2] sm:$0x3] %v481_v30 }
 0x390   :  { %836 = shalt.err (!%p833_p4)
}
 0x391   :  { %s837_s24 = scalar_lea.hbm %s1189_s2, 32 }
 0x392   :  { %p838_p5 = scmp.ne.s32.totalorder %s1189_s2, %s837_s24  ;;  %p841_p6 = scmp.lt.u32.totalorder %s837_s24, %s1189_s2 }
 0x394   :  { %p843_p7 = pnand %p841_p6, %p838_p5 }
 0x396   :  { %846 = shalt.err (!%p843_p7)
}
 0x397   :  { %494 = dma.vmem_to_hbm [thread:$0]  %s492_s21, 32, %s1189_s2, [#allocation3]  }
 0x398   :  { %847 = dma.done.wait [#allocation3], 32  }
 0x399   :  { %848 = vsyncadd [#allocation3], 4294967264 }
 0x39a   :  { %498 = vsyncpa [#allocation3], 1 }

</bundles_post_ra>
